<compile_context>
chip_gen: v7x
topology: tpu7x:2x2x1
jax: 0.10.0
libtpu: 0.0.40
codegen_flags: <defaults>
</compile_context>

<pallas_src>
import functools

import jax
import jax.numpy as jnp
from jax import lax
from jax.experimental import pallas as pl
from jax.experimental.pallas import tpu as pltpu

_NEG = 0.2          # LeakyReLU negative slope
_CB = 128           # conv1 output channels (64) lane-padded to a full 128 lanes


def _lrelu(x):
    return jnp.where(x > 0, x, _NEG * x)


# ----------------------------------------------------------------------------
# The fused kernel: conv1 + LReLU + (in-VMEM im2col) + conv2 + LReLU + Linear
# ----------------------------------------------------------------------------
def _critic_kernel(p1_ref, w1bd_ref, b1t_ref, w2_ref, b2_ref, fcw_ref,
                   sel_ref, fcb_ref, o_ref,
                   a1_ref, h1f_ref, h1u_ref, p2_ref, p2f_ref, *, n_batch):
    n_b = n_batch

    # ---------------- conv1 + bias + LeakyReLU -------------------------------
    # p1[s]  : rows (rho, n, u), cols (v, kh*4+kw)     -- phase-ordered patches
    # w1bd[s]: block-structured weights so that output columns are already the
    #          lane-padded, padded-grid column blocks (j, c) with j = v + s
    #          (the border block is exactly zero, bias included).
    # Result layout:  h1f[2*p+q, n, i, j*128+c] == pad(conv1_act)[n, 2i+p, 2j+q, c]
    h1f_ref[...] = jnp.zeros_like(h1f_ref)
    for s in range(2):                       # output-column parity (sigma)
        a1 = jnp.dot(p1_ref[s, :, :], w1bd_ref[s, :, :],
                     preferred_element_type=jnp.float32)       # (2*N*7, 1024)
        a1 = _lrelu(a1 + b1t_ref[s, :, :])
        a1_ref[s, :, :] = a1.astype(a1_ref.dtype)
        for r in range(2):                   # output-row parity (rho)
            pq = 2 * (1 - r) + (1 - s)
            for n in range(n_b):
                row0 = (r * n_b + n) * 7
                # rows i = r .. r+6 of the padded 8x8 phase grid (border row
                # stays zero from the init above).
                h1f_ref[pq, n, r:r + 7, :] = a1_ref[s, row0:row0 + 7, :]

    # ---------------- split the fused (j, c) blocks ---------------------------
    #   h1u[j, pq, n, i, c] == pad(conv1_act)[n, 2i+p, 2j+q, c]
    for j in range(8):
        h1u_ref[j, :, :, :, :] = h1f_ref[:, :, :, j * _CB:(j + 1) * _CB]

    # ---------------- in-VMEM im2col for conv2 (unit-stride slices only) -----
    #   p2[jj, n, i, (kh*4+kw)*128 + c] == pad(conv1_act)[n, 2i+kh, 2jj+kw, c]
    for kh in range(4):
        a_, p_ = kh // 2, kh % 2
        for kw in range(4):
            b_, q_ = kw // 2, kw % 2
            pq = 2 * p_ + q_
            t = kh * 4 + kw
            p2_ref[:, :, :, t * _CB:(t + 1) * _CB] = \
                h1u_ref[b_:b_ + 7, pq, :, a_:a_ + 7, :]

    # ---------------- flatten patch rows:  row = n*49 + jj*7 + i --------------
    for jj in range(7):
        for n in range(n_b):
            r0 = n * 49 + jj * 7
            p2f_ref[r0:r0 + 7, :] = p2_ref[jj, n, :, :]

    # ---------------- conv2 + bias + LeakyReLU: ONE lane-dense MXU matmul -----
    h2 = jnp.dot(p2f_ref[:, :], w2_ref[:, :],
                 preferred_element_type=jnp.float32)           # (49*N, 128) f32
    h2 = _lrelu(h2 + b2_ref[:, :])

    # ---------------- Linear(6272, 1): multiply + reduce (no Nout=1 matmul) ---
    prod = h2 * fcw_ref[:, :]                                  # (49*N, 128) f32
    tot = jnp.dot(sel_ref[:, :], prod,
                  preferred_element_type=jnp.float32)          # (N, 128)
    o_ref[:, :] = jnp.sum(tot, axis=1, keepdims=True) + fcb_ref[:, :]


# ----------------------------------------------------------------------------
# Host-side (cheap, tiny) data / weight re-layout
# ----------------------------------------------------------------------------
def _conv1_patches(x):
    """Phase-ordered conv1 im2col.

    Returns (2[sigma], 2*N*7, 112): rows ordered (rho, n, u), columns (v, t)
    with t = kh*4+kw and patch value pad(x)[n, 2*(2u+rho)+kh, 2*(2v+sigma)+kw].
    """
    n_b = x.shape[0]
    xp = jnp.pad(x[:, 0], ((0, 0), (1, 1), (1, 1)))            # (N, 30, 30)
    cols = [xp[:, kh:kh + 27:2, kw:kw + 27:2]
            for kh in range(4) for kw in range(4)]
    base = jnp.stack(cols, axis=-1)                            # (N, 14, 14, 16)
    out = []
    for s in range(2):
        per_rho = jnp.stack([base[:, r::2, s::2, :] for r in range(2)], axis=0)
        out.append(per_rho.reshape(2 * n_b * 7, 7 * 16))       # (2N*7, 112)
    return jnp.stack(out, axis=0)                              # (2, 2N*7, 112)


def init_params(key):
    """Deterministic DCGAN-style init (N(0, 0.02)); PyTorch layouts."""
    k1, k2, k3, k4, k5, k6 = jax.random.split(key, 6)
    return {
        "conv1_w": 0.02 * jax.random.normal(k1, (64, 1, 4, 4), jnp.float32),
        "conv1_b": 0.02 * jax.random.normal(k2, (64,), jnp.float32),
        "conv2_w": 0.02 * jax.random.normal(k3, (128, 64, 4, 4), jnp.float32),
        "conv2_b": 0.02 * jax.random.normal(k4, (128,), jnp.float32),
        "fc_w": 0.02 * jax.random.normal(k5, (1, 128 * 7 * 7), jnp.float32),
        "fc_b": 0.02 * jax.random.normal(k6, (1,), jnp.float32),
    }


def prepare_params(params):
    """One-time re-layout of the PyTorch-format weights for the fused kernel."""
    f32 = jnp.float32
    w1 = params["conv1_w"].astype(f32)             # (64, 1, 4, 4)
    b1 = params["conv1_b"].astype(f32)             # (64,)
    w2 = params["conv2_w"].astype(f32)             # (128, 64, 4, 4)
    b2 = params["conv2_b"].astype(f32)             # (128,)
    fw = params["fc_w"].astype(f32)                # (1, 6272)
    fb = params["fc_b"].astype(f32)                # (1,)

    # conv1: (16, 64) matrix, lane-padded to (16, 128), then block-structured
    # so a single matmul emits a full padded row of the phase grid.
    w1mat = jnp.pad(w1.reshape(64, 16).T, ((0, 0), (0, _CB - 64)))   # (16, 128)
    b1pad = jnp.pad(b1, (0, _CB - 64))                               # (128,)
    w1bd, b1t = [], []
    for s in range(2):
        shift = jnp.eye(7, 8, k=s, dtype=f32)                  # v -> j = v + s
        w1bd.append(jnp.kron(shift, w1mat))                    # (112, 1024)
        b1t.append(jnp.kron(shift.sum(axis=0), b1pad))         # (1024,)
    w1bd = jnp.stack(w1bd, axis=0).astype(jnp.bfloat16)        # (2, 112, 1024)
    b1t = jnp.stack(b1t, axis=0)[:, None, :]                   # (2, 1, 1024)

    # conv2: rows ordered ((kh*4+kw)*128 + cin), cin lane-padded 64 -> 128.
    w2m = jnp.pad(w2.transpose(2, 3, 1, 0),
                  ((0, 0), (0, 0), (0, _CB - 64), (0, 0)))     # (4,4,128,128)
    w2m = w2m.reshape(16 * _CB, 128).astype(jnp.bfloat16)      # (2048, 128)

    # fc: permute the 6272 weights once to the kernel's (ow2, oh2, cout) order:
    #   fcw49[jj*7 + i, c] = fc_w[0, c*49 + i*7 + jj]
    fcw49 = fw.reshape(128, 7, 7).transpose(2, 1, 0).reshape(49, 128)
    return {"w1bd": w1bd, "b1t": b1t, "w2m": w2m, "b2": b2.reshape(1, 128),
            "fcw49": fcw49, "fcb": fb.reshape(1, 1)}


@jax.jit
def critic_forward(prep, x):
    n_b = x.shape[0]
    p1 = _conv1_patches(x.astype(jnp.float32)).astype(jnp.bfloat16)
    fcw = jnp.tile(prep["fcw49"], (n_b, 1))                         # (49N, 128)
    sel = jnp.repeat(jnp.eye(n_b, dtype=jnp.float32), 49, axis=1)   # (N, 49N)

    kernel = functools.partial(_critic_kernel, n_batch=n_b)
    grid_spec = pltpu.PrefetchScalarGridSpec(
        num_scalar_prefetch=0,
        grid=(1,),
        in_specs=[
            pl.BlockSpec(p1.shape, lambda i: (0, 0, 0)),
            pl.BlockSpec(prep["w1bd"].shape, lambda i: (0, 0, 0)),
            pl.BlockSpec(prep["b1t"].shape, lambda i: (0, 0, 0)),
            pl.BlockSpec(prep["w2m"].shape, lambda i: (0, 0)),
            pl.BlockSpec(prep["b2"].shape, lambda i: (0, 0)),
            pl.BlockSpec(fcw.shape, lambda i: (0, 0)),
            pl.BlockSpec(sel.shape, lambda i: (0, 0)),
            pl.BlockSpec(prep["fcb"].shape, lambda i: (0, 0)),
        ],
        out_specs=pl.BlockSpec((n_b, 1), lambda i: (0, 0)),
        scratch_shapes=[
            pltpu.VMEM((2, 2 * n_b * 7, 8 * _CB), jnp.bfloat16),  # conv1 acts
            pltpu.VMEM((4, n_b, 8, 8 * _CB), jnp.bfloat16),       # phase grid
            pltpu.VMEM((8, 4, n_b, 8, _CB), jnp.bfloat16),        # unfused grid
            pltpu.VMEM((7, n_b, 7, 16 * _CB), jnp.bfloat16),      # conv2 im2col
            pltpu.VMEM((49 * n_b, 16 * _CB), jnp.bfloat16),       # flat patches
        ],
    )
    return pl.pallas_call(
        kernel,
        out_shape=jax.ShapeDtypeStruct((n_b, 1), jnp.float32),
        grid_spec=grid_spec,
        compiler_params=pltpu.CompilerParams(
            dimension_semantics=("arbitrary",)),
    )(p1, prep["w1bd"], prep["b1t"], prep["w2m"], prep["b2"],
      fcw, sel, prep["fcb"])


# ----------------------------------------------------------------------------
# Plain-JAX reference (f32) for a sanity check of the fused kernel
# ----------------------------------------------------------------------------
def _reference_forward(params, x):
    dn = ("NCHW", "OIHW", "NCHW")
    h = lax.conv_general_dilated(x, params["conv1_w"], (2, 2),
                                 ((1, 1), (1, 1)), dimension_numbers=dn)
    h = h + params["conv1_b"][None, :, None, None]
    h = jnp.where(h > 0, h, _NEG * h)
    h = lax.conv_general_dilated(h, params["conv2_w"], (2, 2),
                                 ((1, 1), (1, 1)), dimension_numbers=dn)
    h = h + params["conv2_b"][None, :, None, None]
    h = jnp.where(h > 0, h, _NEG * h)
    flat = h.reshape(h.shape[0], -1)
    return flat @ params["fc_w"].T + params["fc_b"][None, :]


if __name__ == "__main__":
    key = jax.random.PRNGKey(0)
    pkey, xkey = jax.random.split(key)
    params = init_params(pkey)
    prep = prepare_params(params)
    # 28x28 input is required by the module (Flatten -> Linear(128*7*7, 1)).
    x = jax.random.normal(xkey, (2, 1, 28, 28), jnp.float32)

    y = critic_forward(prep, x)
    jax.block_until_ready(y)
    assert y.shape == (2, 1), y.shape
    assert y.dtype == jnp.float32

    # Sanity check vs. plain-JAX f32 reference (lenient: bf16 matmul operands).
    y_ref = _reference_forward(params, x)
    assert jnp.allclose(y, y_ref, rtol=1e-1, atol=1e-2), (y, y_ref)
    print("KERNEL_OK")
</pallas_src>

<mosaic_0001>
module attributes {stable_mosaic.version = 11 : i64} {
  func.func @_critic_kernel(%arg0: i32, %arg1: memref<2x28x112xbf16, #tpu.memory_space<vmem>>, %arg2: memref<2x112x1024xbf16, #tpu.memory_space<vmem>>, %arg3: memref<2x1x1024xf32, #tpu.memory_space<vmem>>, %arg4: memref<2048x128xbf16, #tpu.memory_space<vmem>>, %arg5: memref<1x128xf32, #tpu.memory_space<vmem>>, %arg6: memref<98x128xf32, #tpu.memory_space<vmem>>, %arg7: memref<2x98xf32, #tpu.memory_space<vmem>>, %arg8: memref<1x1xf32, #tpu.memory_space<vmem>>, %arg9: memref<2x1xf32, #tpu.memory_space<vmem>>, %arg10: memref<2x28x1024xbf16, #tpu.memory_space<vmem>>, %arg11: memref<4x2x8x1024xbf16, #tpu.memory_space<vmem>>, %arg12: memref<8x4x2x8x128xbf16, #tpu.memory_space<vmem>>, %arg13: memref<7x2x7x2048xbf16, #tpu.memory_space<vmem>>, %arg14: memref<98x2048xbf16, #tpu.memory_space<vmem>>) attributes {dimension_semantics = [#tpu.dimension_semantics<arbitrary>], iteration_bounds = array<i64: 1>, scalar_prefetch = 0 : i64, scratch_operands = 5 : i64, tpu.core_type = #tpu.core_type<tc>, window_params = [{pipeline_mode = #tpu.pipeline_mode<synchronous>, transform_indices = @transform_0, window_bounds = array<i64: 2, 28, 112>}, {pipeline_mode = #tpu.pipeline_mode<synchronous>, transform_indices = @transform_1, window_bounds = array<i64: 2, 112, 1024>}, {pipeline_mode = #tpu.pipeline_mode<synchronous>, transform_indices = @transform_2, window_bounds = array<i64: 2, 1, 1024>}, {pipeline_mode = #tpu.pipeline_mode<synchronous>, transform_indices = @transform_3, window_bounds = array<i64: 2048, 128>}, {pipeline_mode = #tpu.pipeline_mode<synchronous>, transform_indices = @transform_4, window_bounds = array<i64: 1, 128>}, {pipeline_mode = #tpu.pipeline_mode<synchronous>, transform_indices = @transform_5, window_bounds = array<i64: 98, 128>}, {pipeline_mode = #tpu.pipeline_mode<synchronous>, transform_indices = @transform_6, window_bounds = array<i64: 2, 98>}, {pipeline_mode = #tpu.pipeline_mode<synchronous>, transform_indices = @transform_7, window_bounds = array<i64: 1, 1>}, {pipeline_mode = #tpu.pipeline_mode<synchronous>, transform_indices = @transform_8, window_bounds = array<i64: 2, 1>}]} {
    %cst = arith.constant 0.000000e+00 : bf16
    %0 = vector.broadcast %cst : bf16 to vector<4x2x8x1024xbf16>
    %c0 = arith.constant 0 : index
    %c0_0 = arith.constant 0 : index
    %c0_1 = arith.constant 0 : index
    %c0_2 = arith.constant 0 : index
    %1 = vector.load %arg11[%c0, %c0_0, %c0_1, %c0_2] : memref<4x2x8x1024xbf16, #tpu.memory_space<vmem>>, vector<4x2x8x1024xbf16>
    tpu.vector_store %arg11[%c0, %c0_0, %c0_1, %c0_2], %0 {strides = array<i32>} : memref<4x2x8x1024xbf16, #tpu.memory_space<vmem>>, vector<4x2x8x1024xbf16>,
    %c0_3 = arith.constant 0 : index
    %c0_4 = arith.constant 0 : index
    %c0_5 = arith.constant 0 : index
    %2 = vector.load %arg1[%c0_3, %c0_4, %c0_5] : memref<2x28x112xbf16, #tpu.memory_space<vmem>>, vector<1x28x112xbf16>
    %3 = vector.shape_cast %2 : vector<1x28x112xbf16> to vector<28x112xbf16>
    %c0_6 = arith.constant 0 : index
    %c0_7 = arith.constant 0 : index
    %c0_8 = arith.constant 0 : index
    %4 = vector.load %arg2[%c0_6, %c0_7, %c0_8] : memref<2x112x1024xbf16, #tpu.memory_space<vmem>>, vector<1x112x1024xbf16>
    %5 = vector.shape_cast %4 : vector<1x112x1024xbf16> to vector<112x1024xbf16>
    %cst_9 = arith.constant dense<0.000000e+00> : vector<28x1024xf32>
    %6 = tpu.matmul %3, %5, %cst_9 {dimension_numbers = #tpu.dot_dimension_numbers<[1], [0], [0], [1], [0, 0, 1, 1], [], []>} : vector<28x112xbf16>, vector<112x1024xbf16>, vector<28x1024xf32> -> vector<28x1024xf32>
    %c0_10 = arith.constant 0 : index
    %c0_11 = arith.constant 0 : index
    %c0_12 = arith.constant 0 : index
    %7 = vector.load %arg3[%c0_10, %c0_11, %c0_12] : memref<2x1x1024xf32, #tpu.memory_space<vmem>>, vector<1x1x1024xf32>
    %8 = vector.shape_cast %7 : vector<1x1x1024xf32> to vector<1x1024xf32>
    %9 = vector.broadcast %8 : vector<1x1024xf32> to vector<28x1024xf32>
    %10 = arith.addf %6, %9 : vector<28x1024xf32>
    %cst_13 = arith.constant 0.000000e+00 : f32
    %11 = vector.broadcast %cst_13 : f32 to vector<28x1024xf32>
    %12 = arith.cmpf ogt, %10, %11 : vector<28x1024xf32>
    %cst_14 = arith.constant 2.000000e-01 : f32
    %13 = vector.broadcast %cst_14 : f32 to vector<28x1024xf32>
    %14 = arith.mulf %13, %10 : vector<28x1024xf32>
    %15 = arith.select %12, %10, %14 : vector<28x1024xi1>, vector<28x1024xf32>
    %16 = arith.truncf %15 : vector<28x1024xf32> to vector<28x1024xbf16>
    %c0_15 = arith.constant 0 : index
    %c0_16 = arith.constant 0 : index
    %c0_17 = arith.constant 0 : index
    %17 = vector.load %arg10[%c0_15, %c0_16, %c0_17] : memref<2x28x1024xbf16, #tpu.memory_space<vmem>>, vector<1x28x1024xbf16>
    %18 = vector.shape_cast %17 : vector<1x28x1024xbf16> to vector<28x1024xbf16>
    %19 = vector.shape_cast %16 : vector<28x1024xbf16> to vector<1x28x1024xbf16>
    tpu.vector_store %arg10[%c0_15, %c0_16, %c0_17], %19 {strides = array<i32>} : memref<2x28x1024xbf16, #tpu.memory_space<vmem>>, vector<1x28x1024xbf16>,
    %c0_18 = arith.constant 0 : index
    %c0_19 = arith.constant 0 : index
    %c0_20 = arith.constant 0 : index
    %20 = vector.load %arg10[%c0_18, %c0_19, %c0_20] : memref<2x28x1024xbf16, #tpu.memory_space<vmem>>, vector<1x7x1024xbf16>
    %21 = vector.shape_cast %20 : vector<1x7x1024xbf16> to vector<7x1024xbf16>
    %c3 = arith.constant 3 : index
    %c0_21 = arith.constant 0 : index
    %c0_22 = arith.constant 0 : index
    %c0_23 = arith.constant 0 : index
    %22 = vector.load %arg11[%c3, %c0_21, %c0_22, %c0_23] : memref<4x2x8x1024xbf16, #tpu.memory_space<vmem>>, vector<1x1x7x1024xbf16>
    %23 = vector.shape_cast %22 : vector<1x1x7x1024xbf16> to vector<7x1024xbf16>
    %24 = vector.shape_cast %21 : vector<7x1024xbf16> to vector<1x1x7x1024xbf16>
    tpu.vector_store %arg11[%c3, %c0_21, %c0_22, %c0_23], %24 {strides = array<i32>} : memref<4x2x8x1024xbf16, #tpu.memory_space<vmem>>, vector<1x1x7x1024xbf16>,
    %c0_24 = arith.constant 0 : index
    %c7 = arith.constant 7 : index
    %c0_25 = arith.constant 0 : index
    %25 = vector.load %arg10[%c0_24, %c7, %c0_25] : memref<2x28x1024xbf16, #tpu.memory_space<vmem>>, vector<1x7x1024xbf16>
    %26 = vector.shape_cast %25 : vector<1x7x1024xbf16> to vector<7x1024xbf16>
    %c3_26 = arith.constant 3 : index
    %c1 = arith.constant 1 : index
    %c0_27 = arith.constant 0 : index
    %c0_28 = arith.constant 0 : index
    %27 = vector.load %arg11[%c3_26, %c1, %c0_27, %c0_28] : memref<4x2x8x1024xbf16, #tpu.memory_space<vmem>>, vector<1x1x7x1024xbf16>
    %28 = vector.shape_cast %27 : vector<1x1x7x1024xbf16> to vector<7x1024xbf16>
    %29 = vector.shape_cast %26 : vector<7x1024xbf16> to vector<1x1x7x1024xbf16>
    tpu.vector_store %arg11[%c3_26, %c1, %c0_27, %c0_28], %29 {strides = array<i32>} : memref<4x2x8x1024xbf16, #tpu.memory_space<vmem>>, vector<1x1x7x1024xbf16>,
    %c0_29 = arith.constant 0 : index
    %c14 = arith.constant 14 : index
    %c0_30 = arith.constant 0 : index
    %30 = vector.load %arg10[%c0_29, %c14, %c0_30] : memref<2x28x1024xbf16, #tpu.memory_space<vmem>>, vector<1x7x1024xbf16>
    %31 = vector.shape_cast %30 : vector<1x7x1024xbf16> to vector<7x1024xbf16>
    %c1_31 = arith.constant 1 : index
    %c0_32 = arith.constant 0 : index
    %c1_33 = arith.constant 1 : index
    %c0_34 = arith.constant 0 : index
    %32 = vector.load %arg11[%c1_31, %c0_32, %c1_33, %c0_34] : memref<4x2x8x1024xbf16, #tpu.memory_space<vmem>>, vector<1x1x7x1024xbf16>
    %33 = vector.shape_cast %32 : vector<1x1x7x1024xbf16> to vector<7x1024xbf16>
    %34 = vector.shape_cast %31 : vector<7x1024xbf16> to vector<1x1x7x1024xbf16>
    tpu.vector_store %arg11[%c1_31, %c0_32, %c1_33, %c0_34], %34 {strides = array<i32>} : memref<4x2x8x1024xbf16, #tpu.memory_space<vmem>>, vector<1x1x7x1024xbf16>,
    %c0_35 = arith.constant 0 : index
    %c21 = arith.constant 21 : index
    %c0_36 = arith.constant 0 : index
    %35 = vector.load %arg10[%c0_35, %c21, %c0_36] : memref<2x28x1024xbf16, #tpu.memory_space<vmem>>, vector<1x7x1024xbf16>
    %36 = vector.shape_cast %35 : vector<1x7x1024xbf16> to vector<7x1024xbf16>
    %c1_37 = arith.constant 1 : index
    %c1_38 = arith.constant 1 : index
    %c1_39 = arith.constant 1 : index
    %c0_40 = arith.constant 0 : index
    %37 = vector.load %arg11[%c1_37, %c1_38, %c1_39, %c0_40] : memref<4x2x8x1024xbf16, #tpu.memory_space<vmem>>, vector<1x1x7x1024xbf16>
    %38 = vector.shape_cast %37 : vector<1x1x7x1024xbf16> to vector<7x1024xbf16>
    %39 = vector.shape_cast %36 : vector<7x1024xbf16> to vector<1x1x7x1024xbf16>
    tpu.vector_store %arg11[%c1_37, %c1_38, %c1_39, %c0_40], %39 {strides = array<i32>} : memref<4x2x8x1024xbf16, #tpu.memory_space<vmem>>, vector<1x1x7x1024xbf16>,
    %c1_41 = arith.constant 1 : index
    %c0_42 = arith.constant 0 : index
    %c0_43 = arith.constant 0 : index
    %40 = vector.load %arg1[%c1_41, %c0_42, %c0_43] : memref<2x28x112xbf16, #tpu.memory_space<vmem>>, vector<1x28x112xbf16>
    %41 = vector.shape_cast %40 : vector<1x28x112xbf16> to vector<28x112xbf16>
    %c1_44 = arith.constant 1 : index
    %c0_45 = arith.constant 0 : index
    %c0_46 = arith.constant 0 : index
    %42 = vector.load %arg2[%c1_44, %c0_45, %c0_46] : memref<2x112x1024xbf16, #tpu.memory_space<vmem>>, vector<1x112x1024xbf16>
    %43 = vector.shape_cast %42 : vector<1x112x1024xbf16> to vector<112x1024xbf16>
    %cst_47 = arith.constant dense<0.000000e+00> : vector<28x1024xf32>
    %44 = tpu.matmul %41, %43, %cst_47 {dimension_numbers = #tpu.dot_dimension_numbers<[1], [0], [0], [1], [0, 0, 1, 1], [], []>} : vector<28x112xbf16>, vector<112x1024xbf16>, vector<28x1024xf32> -> vector<28x1024xf32>
    %c1_48 = arith.constant 1 : index
    %c0_49 = arith.constant 0 : index
    %c0_50 = arith.constant 0 : index
    %45 = vector.load %arg3[%c1_48, %c0_49, %c0_50] : memref<2x1x1024xf32, #tpu.memory_space<vmem>>, vector<1x1x1024xf32>
    %46 = vector.shape_cast %45 : vector<1x1x1024xf32> to vector<1x1024xf32>
    %47 = vector.broadcast %46 : vector<1x1024xf32> to vector<28x1024xf32>
    %48 = arith.addf %44, %47 : vector<28x1024xf32>
    %cst_51 = arith.constant 0.000000e+00 : f32
    %49 = vector.broadcast %cst_51 : f32 to vector<28x1024xf32>
    %50 = arith.cmpf ogt, %48, %49 : vector<28x1024xf32>
    %cst_52 = arith.constant 2.000000e-01 : f32
    %51 = vector.broadcast %cst_52 : f32 to vector<28x1024xf32>
    %52 = arith.mulf %51, %48 : vector<28x1024xf32>
    %53 = arith.select %50, %48, %52 : vector<28x1024xi1>, vector<28x1024xf32>
    %54 = arith.truncf %53 : vector<28x1024xf32> to vector<28x1024xbf16>
    %c1_53 = arith.constant 1 : index
    %c0_54 = arith.constant 0 : index
    %c0_55 = arith.constant 0 : index
    %55 = vector.load %arg10[%c1_53, %c0_54, %c0_55] : memref<2x28x1024xbf16, #tpu.memory_space<vmem>>, vector<1x28x1024xbf16>
    %56 = vector.shape_cast %55 : vector<1x28x1024xbf16> to vector<28x1024xbf16>
    %57 = vector.shape_cast %54 : vector<28x1024xbf16> to vector<1x28x1024xbf16>
    tpu.vector_store %arg10[%c1_53, %c0_54, %c0_55], %57 {strides = array<i32>} : memref<2x28x1024xbf16, #tpu.memory_space<vmem>>, vector<1x28x1024xbf16>,
    %c1_56 = arith.constant 1 : index
    %c0_57 = arith.constant 0 : index
    %c0_58 = arith.constant 0 : index
    %58 = vector.load %arg10[%c1_56, %c0_57, %c0_58] : memref<2x28x1024xbf16, #tpu.memory_space<vmem>>, vector<1x7x1024xbf16>
    %59 = vector.shape_cast %58 : vector<1x7x1024xbf16> to vector<7x1024xbf16>
    %c2 = arith.constant 2 : index
    %c0_59 = arith.constant 0 : index
    %c0_60 = arith.constant 0 : index
    %c0_61 = arith.constant 0 : index
    %60 = vector.load %arg11[%c2, %c0_59, %c0_60, %c0_61] : memref<4x2x8x1024xbf16, #tpu.memory_space<vmem>>, vector<1x1x7x1024xbf16>
    %61 = vector.shape_cast %60 : vector<1x1x7x1024xbf16> to vector<7x1024xbf16>
    %62 = vector.shape_cast %59 : vector<7x1024xbf16> to vector<1x1x7x1024xbf16>
    tpu.vector_store %arg11[%c2, %c0_59, %c0_60, %c0_61], %62 {strides = array<i32>} : memref<4x2x8x1024xbf16, #tpu.memory_space<vmem>>, vector<1x1x7x1024xbf16>,
    %c1_62 = arith.constant 1 : index
    %c7_63 = arith.constant 7 : index
    %c0_64 = arith.constant 0 : index
    %63 = vector.load %arg10[%c1_62, %c7_63, %c0_64] : memref<2x28x1024xbf16, #tpu.memory_space<vmem>>, vector<1x7x1024xbf16>
    %64 = vector.shape_cast %63 : vector<1x7x1024xbf16> to vector<7x1024xbf16>
    %c2_65 = arith.constant 2 : index
    %c1_66 = arith.constant 1 : index
    %c0_67 = arith.constant 0 : index
    %c0_68 = arith.constant 0 : index
    %65 = vector.load %arg11[%c2_65, %c1_66, %c0_67, %c0_68] : memref<4x2x8x1024xbf16, #tpu.memory_space<vmem>>, vector<1x1x7x1024xbf16>
    %66 = vector.shape_cast %65 : vector<1x1x7x1024xbf16> to vector<7x1024xbf16>
    %67 = vector.shape_cast %64 : vector<7x1024xbf16> to vector<1x1x7x1024xbf16>
    tpu.vector_store %arg11[%c2_65, %c1_66, %c0_67, %c0_68], %67 {strides = array<i32>} : memref<4x2x8x1024xbf16, #tpu.memory_space<vmem>>, vector<1x1x7x1024xbf16>,
    %c1_69 = arith.constant 1 : index
    %c14_70 = arith.constant 14 : index
    %c0_71 = arith.constant 0 : index
    %68 = vector.load %arg10[%c1_69, %c14_70, %c0_71] : memref<2x28x1024xbf16, #tpu.memory_space<vmem>>, vector<1x7x1024xbf16>
    %69 = vector.shape_cast %68 : vector<1x7x1024xbf16> to vector<7x1024xbf16>
    %c0_72 = arith.constant 0 : index
    %c0_73 = arith.constant 0 : index
    %c1_74 = arith.constant 1 : index
    %c0_75 = arith.constant 0 : index
    %70 = vector.load %arg11[%c0_72, %c0_73, %c1_74, %c0_75] : memref<4x2x8x1024xbf16, #tpu.memory_space<vmem>>, vector<1x1x7x1024xbf16>
    %71 = vector.shape_cast %70 : vector<1x1x7x1024xbf16> to vector<7x1024xbf16>
    %72 = vector.shape_cast %69 : vector<7x1024xbf16> to vector<1x1x7x1024xbf16>
    tpu.vector_store %arg11[%c0_72, %c0_73, %c1_74, %c0_75], %72 {strides = array<i32>} : memref<4x2x8x1024xbf16, #tpu.memory_space<vmem>>, vector<1x1x7x1024xbf16>,
    %c1_76 = arith.constant 1 : index
    %c21_77 = arith.constant 21 : index
    %c0_78 = arith.constant 0 : index
    %73 = vector.load %arg10[%c1_76, %c21_77, %c0_78] : memref<2x28x1024xbf16, #tpu.memory_space<vmem>>, vector<1x7x1024xbf16>
    %74 = vector.shape_cast %73 : vector<1x7x1024xbf16> to vector<7x1024xbf16>
    %c0_79 = arith.constant 0 : index
    %c1_80 = arith.constant 1 : index
    %c1_81 = arith.constant 1 : index
    %c0_82 = arith.constant 0 : index
    %75 = vector.load %arg11[%c0_79, %c1_80, %c1_81, %c0_82] : memref<4x2x8x1024xbf16, #tpu.memory_space<vmem>>, vector<1x1x7x1024xbf16>
    %76 = vector.shape_cast %75 : vector<1x1x7x1024xbf16> to vector<7x1024xbf16>
    %77 = vector.shape_cast %74 : vector<7x1024xbf16> to vector<1x1x7x1024xbf16>
    tpu.vector_store %arg11[%c0_79, %c1_80, %c1_81, %c0_82], %77 {strides = array<i32>} : memref<4x2x8x1024xbf16, #tpu.memory_space<vmem>>, vector<1x1x7x1024xbf16>,
    %c0_83 = arith.constant 0 : index
    %c0_84 = arith.constant 0 : index
    %c0_85 = arith.constant 0 : index
    %c0_86 = arith.constant 0 : index
    %78 = vector.load %arg11[%c0_83, %c0_84, %c0_85, %c0_86] : memref<4x2x8x1024xbf16, #tpu.memory_space<vmem>>, vector<4x2x8x128xbf16>
    %c0_87 = arith.constant 0 : index
    %c0_88 = arith.constant 0 : index
    %c0_89 = arith.constant 0 : index
    %c0_90 = arith.constant 0 : index
    %c0_91 = arith.constant 0 : index
    %79 = vector.load %arg12[%c0_87, %c0_88, %c0_89, %c0_90, %c0_91] : memref<8x4x2x8x128xbf16, #tpu.memory_space<vmem>>, vector<1x4x2x8x128xbf16>
    %80 = vector.shape_cast %79 : vector<1x4x2x8x128xbf16> to vector<4x2x8x128xbf16>
    %81 = vector.shape_cast %78 : vector<4x2x8x128xbf16> to vector<1x4x2x8x128xbf16>
    tpu.vector_store %arg12[%c0_87, %c0_88, %c0_89, %c0_90, %c0_91], %81 {strides = array<i32>} : memref<8x4x2x8x128xbf16, #tpu.memory_space<vmem>>, vector<1x4x2x8x128xbf16>,
    %c0_92 = arith.constant 0 : index
    %c0_93 = arith.constant 0 : index
    %c0_94 = arith.constant 0 : index
    %c128 = arith.constant 128 : index
    %82 = vector.load %arg11[%c0_92, %c0_93, %c0_94, %c128] : memref<4x2x8x1024xbf16, #tpu.memory_space<vmem>>, vector<4x2x8x128xbf16>
    %c1_95 = arith.constant 1 : index
    %c0_96 = arith.constant 0 : index
    %c0_97 = arith.constant 0 : index
    %c0_98 = arith.constant 0 : index
    %c0_99 = arith.constant 0 : index
    %83 = vector.load %arg12[%c1_95, %c0_96, %c0_97, %c0_98, %c0_99] : memref<8x4x2x8x128xbf16, #tpu.memory_space<vmem>>, vector<1x4x2x8x128xbf16>
    %84 = vector.shape_cast %83 : vector<1x4x2x8x128xbf16> to vector<4x2x8x128xbf16>
    %85 = vector.shape_cast %82 : vector<4x2x8x128xbf16> to vector<1x4x2x8x128xbf16>
    tpu.vector_store %arg12[%c1_95, %c0_96, %c0_97, %c0_98, %c0_99], %85 {strides = array<i32>} : memref<8x4x2x8x128xbf16, #tpu.memory_space<vmem>>, vector<1x4x2x8x128xbf16>,
    %c0_100 = arith.constant 0 : index
    %c0_101 = arith.constant 0 : index
    %c0_102 = arith.constant 0 : index
    %c256 = arith.constant 256 : index
    %86 = vector.load %arg11[%c0_100, %c0_101, %c0_102, %c256] : memref<4x2x8x1024xbf16, #tpu.memory_space<vmem>>, vector<4x2x8x128xbf16>
    %c2_103 = arith.constant 2 : index
    %c0_104 = arith.constant 0 : index
    %c0_105 = arith.constant 0 : index
    %c0_106 = arith.constant 0 : index
    %c0_107 = arith.constant 0 : index
    %87 = vector.load %arg12[%c2_103, %c0_104, %c0_105, %c0_106, %c0_107] : memref<8x4x2x8x128xbf16, #tpu.memory_space<vmem>>, vector<1x4x2x8x128xbf16>
    %88 = vector.shape_cast %87 : vector<1x4x2x8x128xbf16> to vector<4x2x8x128xbf16>
    %89 = vector.shape_cast %86 : vector<4x2x8x128xbf16> to vector<1x4x2x8x128xbf16>
    tpu.vector_store %arg12[%c2_103, %c0_104, %c0_105, %c0_106, %c0_107], %89 {strides = array<i32>} : memref<8x4x2x8x128xbf16, #tpu.memory_space<vmem>>, vector<1x4x2x8x128xbf16>,
    %c0_108 = arith.constant 0 : index
    %c0_109 = arith.constant 0 : index
    %c0_110 = arith.constant 0 : index
    %c384 = arith.constant 384 : index
    %90 = vector.load %arg11[%c0_108, %c0_109, %c0_110, %c384] : memref<4x2x8x1024xbf16, #tpu.memory_space<vmem>>, vector<4x2x8x128xbf16>
    %c3_111 = arith.constant 3 : index
    %c0_112 = arith.constant 0 : index
    %c0_113 = arith.constant 0 : index
    %c0_114 = arith.constant 0 : index
    %c0_115 = arith.constant 0 : index
    %91 = vector.load %arg12[%c3_111, %c0_112, %c0_113, %c0_114, %c0_115] : memref<8x4x2x8x128xbf16, #tpu.memory_space<vmem>>, vector<1x4x2x8x128xbf16>
    %92 = vector.shape_cast %91 : vector<1x4x2x8x128xbf16> to vector<4x2x8x128xbf16>
    %93 = vector.shape_cast %90 : vector<4x2x8x128xbf16> to vector<1x4x2x8x128xbf16>
    tpu.vector_store %arg12[%c3_111, %c0_112, %c0_113, %c0_114, %c0_115], %93 {strides = array<i32>} : memref<8x4x2x8x128xbf16, #tpu.memory_space<vmem>>, vector<1x4x2x8x128xbf16>,
    %c0_116 = arith.constant 0 : index
    %c0_117 = arith.constant 0 : index
    %c0_118 = arith.constant 0 : index
    %c512 = arith.constant 512 : index
    %94 = vector.load %arg11[%c0_116, %c0_117, %c0_118, %c512] : memref<4x2x8x1024xbf16, #tpu.memory_space<vmem>>, vector<4x2x8x128xbf16>
    %c4 = arith.constant 4 : index
    %c0_119 = arith.constant 0 : index
    %c0_120 = arith.constant 0 : index
    %c0_121 = arith.constant 0 : index
    %c0_122 = arith.constant 0 : index
    %95 = vector.load %arg12[%c4, %c0_119, %c0_120, %c0_121, %c0_122] : memref<8x4x2x8x128xbf16, #tpu.memory_space<vmem>>, vector<1x4x2x8x128xbf16>
    %96 = vector.shape_cast %95 : vector<1x4x2x8x128xbf16> to vector<4x2x8x128xbf16>
    %97 = vector.shape_cast %94 : vector<4x2x8x128xbf16> to vector<1x4x2x8x128xbf16>
    tpu.vector_store %arg12[%c4, %c0_119, %c0_120, %c0_121, %c0_122], %97 {strides = array<i32>} : memref<8x4x2x8x128xbf16, #tpu.memory_space<vmem>>, vector<1x4x2x8x128xbf16>,
    %c0_123 = arith.constant 0 : index
    %c0_124 = arith.constant 0 : index
    %c0_125 = arith.constant 0 : index
    %c640 = arith.constant 640 : index
    %98 = vector.load %arg11[%c0_123, %c0_124, %c0_125, %c640] : memref<4x2x8x1024xbf16, #tpu.memory_space<vmem>>, vector<4x2x8x128xbf16>
    %c5 = arith.constant 5 : index
    %c0_126 = arith.constant 0 : index
    %c0_127 = arith.constant 0 : index
    %c0_128 = arith.constant 0 : index
    %c0_129 = arith.constant 0 : index
    %99 = vector.load %arg12[%c5, %c0_126, %c0_127, %c0_128, %c0_129] : memref<8x4x2x8x128xbf16, #tpu.memory_space<vmem>>, vector<1x4x2x8x128xbf16>
    %100 = vector.shape_cast %99 : vector<1x4x2x8x128xbf16> to vector<4x2x8x128xbf16>
    %101 = vector.shape_cast %98 : vector<4x2x8x128xbf16> to vector<1x4x2x8x128xbf16>
    tpu.vector_store %arg12[%c5, %c0_126, %c0_127, %c0_128, %c0_129], %101 {strides = array<i32>} : memref<8x4x2x8x128xbf16, #tpu.memory_space<vmem>>, vector<1x4x2x8x128xbf16>,
    %c0_130 = arith.constant 0 : index
    %c0_131 = arith.constant 0 : index
    %c0_132 = arith.constant 0 : index
    %c768 = arith.constant 768 : index
    %102 = vector.load %arg11[%c0_130, %c0_131, %c0_132, %c768] : memref<4x2x8x1024xbf16, #tpu.memory_space<vmem>>, vector<4x2x8x128xbf16>
    %c6 = arith.constant 6 : index
    %c0_133 = arith.constant 0 : index
    %c0_134 = arith.constant 0 : index
    %c0_135 = arith.constant 0 : index
    %c0_136 = arith.constant 0 : index
    %103 = vector.load %arg12[%c6, %c0_133, %c0_134, %c0_135, %c0_136] : memref<8x4x2x8x128xbf16, #tpu.memory_space<vmem>>, vector<1x4x2x8x128xbf16>
    %104 = vector.shape_cast %103 : vector<1x4x2x8x128xbf16> to vector<4x2x8x128xbf16>
    %105 = vector.shape_cast %102 : vector<4x2x8x128xbf16> to vector<1x4x2x8x128xbf16>
    tpu.vector_store %arg12[%c6, %c0_133, %c0_134, %c0_135, %c0_136], %105 {strides = array<i32>} : memref<8x4x2x8x128xbf16, #tpu.memory_space<vmem>>, vector<1x4x2x8x128xbf16>,
    %c0_137 = arith.constant 0 : index
    %c0_138 = arith.constant 0 : index
    %c0_139 = arith.constant 0 : index
    %c896 = arith.constant 896 : index
    %106 = vector.load %arg11[%c0_137, %c0_138, %c0_139, %c896] : memref<4x2x8x1024xbf16, #tpu.memory_space<vmem>>, vector<4x2x8x128xbf16>
    %c7_140 = arith.constant 7 : index
    %c0_141 = arith.constant 0 : index
    %c0_142 = arith.constant 0 : index
    %c0_143 = arith.constant 0 : index
    %c0_144 = arith.constant 0 : index
    %107 = vector.load %arg12[%c7_140, %c0_141, %c0_142, %c0_143, %c0_144] : memref<8x4x2x8x128xbf16, #tpu.memory_space<vmem>>, vector<1x4x2x8x128xbf16>
    %108 = vector.shape_cast %107 : vector<1x4x2x8x128xbf16> to vector<4x2x8x128xbf16>
    %109 = vector.shape_cast %106 : vector<4x2x8x128xbf16> to vector<1x4x2x8x128xbf16>
    tpu.vector_store %arg12[%c7_140, %c0_141, %c0_142, %c0_143, %c0_144], %109 {strides = array<i32>} : memref<8x4x2x8x128xbf16, #tpu.memory_space<vmem>>, vector<1x4x2x8x128xbf16>,
    %c0_145 = arith.constant 0 : index
    %c0_146 = arith.constant 0 : index
    %c0_147 = arith.constant 0 : index
    %c0_148 = arith.constant 0 : index
    %c0_149 = arith.constant 0 : index
    %110 = vector.load %arg12[%c0_145, %c0_146, %c0_147, %c0_148, %c0_149] : memref<8x4x2x8x128xbf16, #tpu.memory_space<vmem>>, vector<7x1x2x7x128xbf16>
    %111 = vector.shape_cast %110 : vector<7x1x2x7x128xbf16> to vector<7x2x7x128xbf16>
    %c0_150 = arith.constant 0 : index
    %c0_151 = arith.constant 0 : index
    %c0_152 = arith.constant 0 : index
    %c0_153 = arith.constant 0 : index
    %112 = vector.load %arg13[%c0_150, %c0_151, %c0_152, %c0_153] : memref<7x2x7x2048xbf16, #tpu.memory_space<vmem>>, vector<7x2x7x128xbf16>
    tpu.vector_store %arg13[%c0_150, %c0_151, %c0_152, %c0_153], %111 {strides = array<i32>} : memref<7x2x7x2048xbf16, #tpu.memory_space<vmem>>, vector<7x2x7x128xbf16>,
    %c0_154 = arith.constant 0 : index
    %c1_155 = arith.constant 1 : index
    %c0_156 = arith.constant 0 : index
    %c0_157 = arith.constant 0 : index
    %c0_158 = arith.constant 0 : index
    %113 = vector.load %arg12[%c0_154, %c1_155, %c0_156, %c0_157, %c0_158] : memref<8x4x2x8x128xbf16, #tpu.memory_space<vmem>>, vector<7x1x2x7x128xbf16>
    %114 = vector.shape_cast %113 : vector<7x1x2x7x128xbf16> to vector<7x2x7x128xbf16>
    %c0_159 = arith.constant 0 : index
    %c0_160 = arith.constant 0 : index
    %c0_161 = arith.constant 0 : index
    %c128_162 = arith.constant 128 : index
    %115 = vector.load %arg13[%c0_159, %c0_160, %c0_161, %c128_162] : memref<7x2x7x2048xbf16, #tpu.memory_space<vmem>>, vector<7x2x7x128xbf16>
    tpu.vector_store %arg13[%c0_159, %c0_160, %c0_161, %c128_162], %114 {strides = array<i32>} : memref<7x2x7x2048xbf16, #tpu.memory_space<vmem>>, vector<7x2x7x128xbf16>,
    %c1_163 = arith.constant 1 : index
    %c0_164 = arith.constant 0 : index
    %c0_165 = arith.constant 0 : index
    %c0_166 = arith.constant 0 : index
    %c0_167 = arith.constant 0 : index
    %116 = vector.load %arg12[%c1_163, %c0_164, %c0_165, %c0_166, %c0_167] : memref<8x4x2x8x128xbf16, #tpu.memory_space<vmem>>, vector<7x1x2x7x128xbf16>
    %117 = vector.shape_cast %116 : vector<7x1x2x7x128xbf16> to vector<7x2x7x128xbf16>
    %c0_168 = arith.constant 0 : index
    %c0_169 = arith.constant 0 : index
    %c0_170 = arith.constant 0 : index
    %c256_171 = arith.constant 256 : index
    %118 = vector.load %arg13[%c0_168, %c0_169, %c0_170, %c256_171] : memref<7x2x7x2048xbf16, #tpu.memory_space<vmem>>, vector<7x2x7x128xbf16>
    tpu.vector_store %arg13[%c0_168, %c0_169, %c0_170, %c256_171], %117 {strides = array<i32>} : memref<7x2x7x2048xbf16, #tpu.memory_space<vmem>>, vector<7x2x7x128xbf16>,
    %c1_172 = arith.constant 1 : index
    %c1_173 = arith.constant 1 : index
    %c0_174 = arith.constant 0 : index
    %c0_175 = arith.constant 0 : index
    %c0_176 = arith.constant 0 : index
    %119 = vector.load %arg12[%c1_172, %c1_173, %c0_174, %c0_175, %c0_176] : memref<8x4x2x8x128xbf16, #tpu.memory_space<vmem>>, vector<7x1x2x7x128xbf16>
    %120 = vector.shape_cast %119 : vector<7x1x2x7x128xbf16> to vector<7x2x7x128xbf16>
    %c0_177 = arith.constant 0 : index
    %c0_178 = arith.constant 0 : index
    %c0_179 = arith.constant 0 : index
    %c384_180 = arith.constant 384 : index
    %121 = vector.load %arg13[%c0_177, %c0_178, %c0_179, %c384_180] : memref<7x2x7x2048xbf16, #tpu.memory_space<vmem>>, vector<7x2x7x128xbf16>
    tpu.vector_store %arg13[%c0_177, %c0_178, %c0_179, %c384_180], %120 {strides = array<i32>} : memref<7x2x7x2048xbf16, #tpu.memory_space<vmem>>, vector<7x2x7x128xbf16>,
    %c0_181 = arith.constant 0 : index
    %c2_182 = arith.constant 2 : index
    %c0_183 = arith.constant 0 : index
    %c0_184 = arith.constant 0 : index
    %c0_185 = arith.constant 0 : index
    %122 = vector.load %arg12[%c0_181, %c2_182, %c0_183, %c0_184, %c0_185] : memref<8x4x2x8x128xbf16, #tpu.memory_space<vmem>>, vector<7x1x2x7x128xbf16>
    %123 = vector.shape_cast %122 : vector<7x1x2x7x128xbf16> to vector<7x2x7x128xbf16>
    %c0_186 = arith.constant 0 : index
    %c0_187 = arith.constant 0 : index
    %c0_188 = arith.constant 0 : index
    %c512_189 = arith.constant 512 : index
    %124 = vector.load %arg13[%c0_186, %c0_187, %c0_188, %c512_189] : memref<7x2x7x2048xbf16, #tpu.memory_space<vmem>>, vector<7x2x7x128xbf16>
    tpu.vector_store %arg13[%c0_186, %c0_187, %c0_188, %c512_189], %123 {strides = array<i32>} : memref<7x2x7x2048xbf16, #tpu.memory_space<vmem>>, vector<7x2x7x128xbf16>,
    %c0_190 = arith.constant 0 : index
    %c3_191 = arith.constant 3 : index
    %c0_192 = arith.constant 0 : index
    %c0_193 = arith.constant 0 : index
    %c0_194 = arith.constant 0 : index
    %125 = vector.load %arg12[%c0_190, %c3_191, %c0_192, %c0_193, %c0_194] : memref<8x4x2x8x128xbf16, #tpu.memory_space<vmem>>, vector<7x1x2x7x128xbf16>
    %126 = vector.shape_cast %125 : vector<7x1x2x7x128xbf16> to vector<7x2x7x128xbf16>
    %c0_195 = arith.constant 0 : index
    %c0_196 = arith.constant 0 : index
    %c0_197 = arith.constant 0 : index
    %c640_198 = arith.constant 640 : index
    %127 = vector.load %arg13[%c0_195, %c0_196, %c0_197, %c640_198] : memref<7x2x7x2048xbf16, #tpu.memory_space<vmem>>, vector<7x2x7x128xbf16>
    tpu.vector_store %arg13[%c0_195, %c0_196, %c0_197, %c640_198], %126 {strides = array<i32>} : memref<7x2x7x2048xbf16, #tpu.memory_space<vmem>>, vector<7x2x7x128xbf16>,
    %c1_199 = arith.constant 1 : index
    %c2_200 = arith.constant 2 : index
    %c0_201 = arith.constant 0 : index
    %c0_202 = arith.constant 0 : index
    %c0_203 = arith.constant 0 : index
    %128 = vector.load %arg12[%c1_199, %c2_200, %c0_201, %c0_202, %c0_203] : memref<8x4x2x8x128xbf16, #tpu.memory_space<vmem>>, vector<7x1x2x7x128xbf16>
    %129 = vector.shape_cast %128 : vector<7x1x2x7x128xbf16> to vector<7x2x7x128xbf16>
    %c0_204 = arith.constant 0 : index
    %c0_205 = arith.constant 0 : index
    %c0_206 = arith.constant 0 : index
    %c768_207 = arith.constant 768 : index
    %130 = vector.load %arg13[%c0_204, %c0_205, %c0_206, %c768_207] : memref<7x2x7x2048xbf16, #tpu.memory_space<vmem>>, vector<7x2x7x128xbf16>
    tpu.vector_store %arg13[%c0_204, %c0_205, %c0_206, %c768_207], %129 {strides = array<i32>} : memref<7x2x7x2048xbf16, #tpu.memory_space<vmem>>, vector<7x2x7x128xbf16>,
    %c1_208 = arith.constant 1 : index
    %c3_209 = arith.constant 3 : index
    %c0_210 = arith.constant 0 : index
    %c0_211 = arith.constant 0 : index
    %c0_212 = arith.constant 0 : index
    %131 = vector.load %arg12[%c1_208, %c3_209, %c0_210, %c0_211, %c0_212] : memref<8x4x2x8x128xbf16, #tpu.memory_space<vmem>>, vector<7x1x2x7x128xbf16>
    %132 = vector.shape_cast %131 : vector<7x1x2x7x128xbf16> to vector<7x2x7x128xbf16>
    %c0_213 = arith.constant 0 : index
    %c0_214 = arith.constant 0 : index
    %c0_215 = arith.constant 0 : index
    %c896_216 = arith.constant 896 : index
    %133 = vector.load %arg13[%c0_213, %c0_214, %c0_215, %c896_216] : memref<7x2x7x2048xbf16, #tpu.memory_space<vmem>>, vector<7x2x7x128xbf16>
    tpu.vector_store %arg13[%c0_213, %c0_214, %c0_215, %c896_216], %132 {strides = array<i32>} : memref<7x2x7x2048xbf16, #tpu.memory_space<vmem>>, vector<7x2x7x128xbf16>,
    %c0_217 = arith.constant 0 : index
    %c0_218 = arith.constant 0 : index
    %c0_219 = arith.constant 0 : index
    %c1_220 = arith.constant 1 : index
    %c0_221 = arith.constant 0 : index
    %134 = vector.load %arg12[%c0_217, %c0_218, %c0_219, %c1_220, %c0_221] : memref<8x4x2x8x128xbf16, #tpu.memory_space<vmem>>, vector<7x1x2x7x128xbf16>
    %135 = vector.shape_cast %134 : vector<7x1x2x7x128xbf16> to vector<7x2x7x128xbf16>
    %c0_222 = arith.constant 0 : index
    %c0_223 = arith.constant 0 : index
    %c0_224 = arith.constant 0 : index
    %c1024 = arith.constant 1024 : index
    %136 = vector.load %arg13[%c0_222, %c0_223, %c0_224, %c1024] : memref<7x2x7x2048xbf16, #tpu.memory_space<vmem>>, vector<7x2x7x128xbf16>
    tpu.vector_store %arg13[%c0_222, %c0_223, %c0_224, %c1024], %135 {strides = array<i32>} : memref<7x2x7x2048xbf16, #tpu.memory_space<vmem>>, vector<7x2x7x128xbf16>,
    %c0_225 = arith.constant 0 : index
    %c1_226 = arith.constant 1 : index
    %c0_227 = arith.constant 0 : index
    %c1_228 = arith.constant 1 : index
    %c0_229 = arith.constant 0 : index
    %137 = vector.load %arg12[%c0_225, %c1_226, %c0_227, %c1_228, %c0_229] : memref<8x4x2x8x128xbf16, #tpu.memory_space<vmem>>, vector<7x1x2x7x128xbf16>
    %138 = vector.shape_cast %137 : vector<7x1x2x7x128xbf16> to vector<7x2x7x128xbf16>
    %c0_230 = arith.constant 0 : index
    %c0_231 = arith.constant 0 : index
    %c0_232 = arith.constant 0 : index
    %c1152 = arith.constant 1152 : index
    %139 = vector.load %arg13[%c0_230, %c0_231, %c0_232, %c1152] : memref<7x2x7x2048xbf16, #tpu.memory_space<vmem>>, vector<7x2x7x128xbf16>
    tpu.vector_store %arg13[%c0_230, %c0_231, %c0_232, %c1152], %138 {strides = array<i32>} : memref<7x2x7x2048xbf16, #tpu.memory_space<vmem>>, vector<7x2x7x128xbf16>,
    %c1_233 = arith.constant 1 : index
    %c0_234 = arith.constant 0 : index
    %c0_235 = arith.constant 0 : index
    %c1_236 = arith.constant 1 : index
    %c0_237 = arith.constant 0 : index
    %140 = vector.load %arg12[%c1_233, %c0_234, %c0_235, %c1_236, %c0_237] : memref<8x4x2x8x128xbf16, #tpu.memory_space<vmem>>, vector<7x1x2x7x128xbf16>
    %141 = vector.shape_cast %140 : vector<7x1x2x7x128xbf16> to vector<7x2x7x128xbf16>
    %c0_238 = arith.constant 0 : index
    %c0_239 = arith.constant 0 : index
    %c0_240 = arith.constant 0 : index
    %c1280 = arith.constant 1280 : index
    %142 = vector.load %arg13[%c0_238, %c0_239, %c0_240, %c1280] : memref<7x2x7x2048xbf16, #tpu.memory_space<vmem>>, vector<7x2x7x128xbf16>
    tpu.vector_store %arg13[%c0_238, %c0_239, %c0_240, %c1280], %141 {strides = array<i32>} : memref<7x2x7x2048xbf16, #tpu.memory_space<vmem>>, vector<7x2x7x128xbf16>,
    %c1_241 = arith.constant 1 : index
    %c1_242 = arith.constant 1 : index
    %c0_243 = arith.constant 0 : index
    %c1_244 = arith.constant 1 : index
    %c0_245 = arith.constant 0 : index
    %143 = vector.load %arg12[%c1_241, %c1_242, %c0_243, %c1_244, %c0_245] : memref<8x4x2x8x128xbf16, #tpu.memory_space<vmem>>, vector<7x1x2x7x128xbf16>
    %144 = vector.shape_cast %143 : vector<7x1x2x7x128xbf16> to vector<7x2x7x128xbf16>
    %c0_246 = arith.constant 0 : index
    %c0_247 = arith.constant 0 : index
    %c0_248 = arith.constant 0 : index
    %c1408 = arith.constant 1408 : index
    %145 = vector.load %arg13[%c0_246, %c0_247, %c0_248, %c1408] : memref<7x2x7x2048xbf16, #tpu.memory_space<vmem>>, vector<7x2x7x128xbf16>
    tpu.vector_store %arg13[%c0_246, %c0_247, %c0_248, %c1408], %144 {strides = array<i32>} : memref<7x2x7x2048xbf16, #tpu.memory_space<vmem>>, vector<7x2x7x128xbf16>,
    %c0_249 = arith.constant 0 : index
    %c2_250 = arith.constant 2 : index
    %c0_251 = arith.constant 0 : index
    %c1_252 = arith.constant 1 : index
    %c0_253 = arith.constant 0 : index
    %146 = vector.load %arg12[%c0_249, %c2_250, %c0_251, %c1_252, %c0_253] : memref<8x4x2x8x128xbf16, #tpu.memory_space<vmem>>, vector<7x1x2x7x128xbf16>
    %147 = vector.shape_cast %146 : vector<7x1x2x7x128xbf16> to vector<7x2x7x128xbf16>
    %c0_254 = arith.constant 0 : index
    %c0_255 = arith.constant 0 : index
    %c0_256 = arith.constant 0 : index
    %c1536 = arith.constant 1536 : index
    %148 = vector.load %arg13[%c0_254, %c0_255, %c0_256, %c1536] : memref<7x2x7x2048xbf16, #tpu.memory_space<vmem>>, vector<7x2x7x128xbf16>
    tpu.vector_store %arg13[%c0_254, %c0_255, %c0_256, %c1536], %147 {strides = array<i32>} : memref<7x2x7x2048xbf16, #tpu.memory_space<vmem>>, vector<7x2x7x128xbf16>,
    %c0_257 = arith.constant 0 : index
    %c3_258 = arith.constant 3 : index
    %c0_259 = arith.constant 0 : index
    %c1_260 = arith.constant 1 : index
    %c0_261 = arith.constant 0 : index
    %149 = vector.load %arg12[%c0_257, %c3_258, %c0_259, %c1_260, %c0_261] : memref<8x4x2x8x128xbf16, #tpu.memory_space<vmem>>, vector<7x1x2x7x128xbf16>
    %150 = vector.shape_cast %149 : vector<7x1x2x7x128xbf16> to vector<7x2x7x128xbf16>
    %c0_262 = arith.constant 0 : index
    %c0_263 = arith.constant 0 : index
    %c0_264 = arith.constant 0 : index
    %c1664 = arith.constant 1664 : index
    %151 = vector.load %arg13[%c0_262, %c0_263, %c0_264, %c1664] : memref<7x2x7x2048xbf16, #tpu.memory_space<vmem>>, vector<7x2x7x128xbf16>
    tpu.vector_store %arg13[%c0_262, %c0_263, %c0_264, %c1664], %150 {strides = array<i32>} : memref<7x2x7x2048xbf16, #tpu.memory_space<vmem>>, vector<7x2x7x128xbf16>,
    %c1_265 = arith.constant 1 : index
    %c2_266 = arith.constant 2 : index
    %c0_267 = arith.constant 0 : index
    %c1_268 = arith.constant 1 : index
    %c0_269 = arith.constant 0 : index
    %152 = vector.load %arg12[%c1_265, %c2_266, %c0_267, %c1_268, %c0_269] : memref<8x4x2x8x128xbf16, #tpu.memory_space<vmem>>, vector<7x1x2x7x128xbf16>
    %153 = vector.shape_cast %152 : vector<7x1x2x7x128xbf16> to vector<7x2x7x128xbf16>
    %c0_270 = arith.constant 0 : index
    %c0_271 = arith.constant 0 : index
    %c0_272 = arith.constant 0 : index
    %c1792 = arith.constant 1792 : index
    %154 = vector.load %arg13[%c0_270, %c0_271, %c0_272, %c1792] : memref<7x2x7x2048xbf16, #tpu.memory_space<vmem>>, vector<7x2x7x128xbf16>
    tpu.vector_store %arg13[%c0_270, %c0_271, %c0_272, %c1792], %153 {strides = array<i32>} : memref<7x2x7x2048xbf16, #tpu.memory_space<vmem>>, vector<7x2x7x128xbf16>,
    %c1_273 = arith.constant 1 : index
    %c3_274 = arith.constant 3 : index
    %c0_275 = arith.constant 0 : index
    %c1_276 = arith.constant 1 : index
    %c0_277 = arith.constant 0 : index
    %155 = vector.load %arg12[%c1_273, %c3_274, %c0_275, %c1_276, %c0_277] : memref<8x4x2x8x128xbf16, #tpu.memory_space<vmem>>, vector<7x1x2x7x128xbf16>
    %156 = vector.shape_cast %155 : vector<7x1x2x7x128xbf16> to vector<7x2x7x128xbf16>
    %c0_278 = arith.constant 0 : index
    %c0_279 = arith.constant 0 : index
    %c0_280 = arith.constant 0 : index
    %c1920 = arith.constant 1920 : index
    %157 = vector.load %arg13[%c0_278, %c0_279, %c0_280, %c1920] : memref<7x2x7x2048xbf16, #tpu.memory_space<vmem>>, vector<7x2x7x128xbf16>
    tpu.vector_store %arg13[%c0_278, %c0_279, %c0_280, %c1920], %156 {strides = array<i32>} : memref<7x2x7x2048xbf16, #tpu.memory_space<vmem>>, vector<7x2x7x128xbf16>,
    %c0_281 = arith.constant 0 : index
    %c0_282 = arith.constant 0 : index
    %c0_283 = arith.constant 0 : index
    %c0_284 = arith.constant 0 : index
    %158 = vector.load %arg13[%c0_281, %c0_282, %c0_283, %c0_284] : memref<7x2x7x2048xbf16, #tpu.memory_space<vmem>>, vector<1x1x7x2048xbf16>
    %159 = vector.shape_cast %158 : vector<1x1x7x2048xbf16> to vector<7x2048xbf16>
    %c0_285 = arith.constant 0 : index
    %c0_286 = arith.constant 0 : index
    %160 = vector.load %arg14[%c0_285, %c0_286] : memref<98x2048xbf16, #tpu.memory_space<vmem>>, vector<7x2048xbf16>
    tpu.vector_store %arg14[%c0_285, %c0_286], %159 {strides = array<i32>} : memref<98x2048xbf16, #tpu.memory_space<vmem>>, vector<7x2048xbf16>,
    %c0_287 = arith.constant 0 : index
    %c1_288 = arith.constant 1 : index
    %c0_289 = arith.constant 0 : index
    %c0_290 = arith.constant 0 : index
    %161 = vector.load %arg13[%c0_287, %c1_288, %c0_289, %c0_290] : memref<7x2x7x2048xbf16, #tpu.memory_space<vmem>>, vector<1x1x7x2048xbf16>
    %162 = vector.shape_cast %161 : vector<1x1x7x2048xbf16> to vector<7x2048xbf16>
    %c49 = arith.constant 49 : index
    %c0_291 = arith.constant 0 : index
    %163 = vector.load %arg14[%c49, %c0_291] : memref<98x2048xbf16, #tpu.memory_space<vmem>>, vector<7x2048xbf16>
    tpu.vector_store %arg14[%c49, %c0_291], %162 {strides = array<i32>} : memref<98x2048xbf16, #tpu.memory_space<vmem>>, vector<7x2048xbf16>,
    %c1_292 = arith.constant 1 : index
    %c0_293 = arith.constant 0 : index
    %c0_294 = arith.constant 0 : index
    %c0_295 = arith.constant 0 : index
    %164 = vector.load %arg13[%c1_292, %c0_293, %c0_294, %c0_295] : memref<7x2x7x2048xbf16, #tpu.memory_space<vmem>>, vector<1x1x7x2048xbf16>
    %165 = vector.shape_cast %164 : vector<1x1x7x2048xbf16> to vector<7x2048xbf16>
    %c7_296 = arith.constant 7 : index
    %c0_297 = arith.constant 0 : index
    %166 = vector.load %arg14[%c7_296, %c0_297] : memref<98x2048xbf16, #tpu.memory_space<vmem>>, vector<7x2048xbf16>
    tpu.vector_store %arg14[%c7_296, %c0_297], %165 {strides = array<i32>} : memref<98x2048xbf16, #tpu.memory_space<vmem>>, vector<7x2048xbf16>,
    %c1_298 = arith.constant 1 : index
    %c1_299 = arith.constant 1 : index
    %c0_300 = arith.constant 0 : index
    %c0_301 = arith.constant 0 : index
    %167 = vector.load %arg13[%c1_298, %c1_299, %c0_300, %c0_301] : memref<7x2x7x2048xbf16, #tpu.memory_space<vmem>>, vector<1x1x7x2048xbf16>
    %168 = vector.shape_cast %167 : vector<1x1x7x2048xbf16> to vector<7x2048xbf16>
    %c56 = arith.constant 56 : index
    %c0_302 = arith.constant 0 : index
    %169 = vector.load %arg14[%c56, %c0_302] : memref<98x2048xbf16, #tpu.memory_space<vmem>>, vector<7x2048xbf16>
    tpu.vector_store %arg14[%c56, %c0_302], %168 {strides = array<i32>} : memref<98x2048xbf16, #tpu.memory_space<vmem>>, vector<7x2048xbf16>,
    %c2_303 = arith.constant 2 : index
    %c0_304 = arith.constant 0 : index
    %c0_305 = arith.constant 0 : index
    %c0_306 = arith.constant 0 : index
    %170 = vector.load %arg13[%c2_303, %c0_304, %c0_305, %c0_306] : memref<7x2x7x2048xbf16, #tpu.memory_space<vmem>>, vector<1x1x7x2048xbf16>
    %171 = vector.shape_cast %170 : vector<1x1x7x2048xbf16> to vector<7x2048xbf16>
    %c14_307 = arith.constant 14 : index
    %c0_308 = arith.constant 0 : index
    %172 = vector.load %arg14[%c14_307, %c0_308] : memref<98x2048xbf16, #tpu.memory_space<vmem>>, vector<7x2048xbf16>
    tpu.vector_store %arg14[%c14_307, %c0_308], %171 {strides = array<i32>} : memref<98x2048xbf16, #tpu.memory_space<vmem>>, vector<7x2048xbf16>,
    %c2_309 = arith.constant 2 : index
    %c1_310 = arith.constant 1 : index
    %c0_311 = arith.constant 0 : index
    %c0_312 = arith.constant 0 : index
    %173 = vector.load %arg13[%c2_309, %c1_310, %c0_311, %c0_312] : memref<7x2x7x2048xbf16, #tpu.memory_space<vmem>>, vector<1x1x7x2048xbf16>
    %174 = vector.shape_cast %173 : vector<1x1x7x2048xbf16> to vector<7x2048xbf16>
    %c63 = arith.constant 63 : index
    %c0_313 = arith.constant 0 : index
    %175 = vector.load %arg14[%c63, %c0_313] : memref<98x2048xbf16, #tpu.memory_space<vmem>>, vector<7x2048xbf16>
    tpu.vector_store %arg14[%c63, %c0_313], %174 {strides = array<i32>} : memref<98x2048xbf16, #tpu.memory_space<vmem>>, vector<7x2048xbf16>,
    %c3_314 = arith.constant 3 : index
    %c0_315 = arith.constant 0 : index
    %c0_316 = arith.constant 0 : index
    %c0_317 = arith.constant 0 : index
    %176 = vector.load %arg13[%c3_314, %c0_315, %c0_316, %c0_317] : memref<7x2x7x2048xbf16, #tpu.memory_space<vmem>>, vector<1x1x7x2048xbf16>
    %177 = vector.shape_cast %176 : vector<1x1x7x2048xbf16> to vector<7x2048xbf16>
    %c21_318 = arith.constant 21 : index
    %c0_319 = arith.constant 0 : index
    %178 = vector.load %arg14[%c21_318, %c0_319] : memref<98x2048xbf16, #tpu.memory_space<vmem>>, vector<7x2048xbf16>
    tpu.vector_store %arg14[%c21_318, %c0_319], %177 {strides = array<i32>} : memref<98x2048xbf16, #tpu.memory_space<vmem>>, vector<7x2048xbf16>,
    %c3_320 = arith.constant 3 : index
    %c1_321 = arith.constant 1 : index
    %c0_322 = arith.constant 0 : index
    %c0_323 = arith.constant 0 : index
    %179 = vector.load %arg13[%c3_320, %c1_321, %c0_322, %c0_323] : memref<7x2x7x2048xbf16, #tpu.memory_space<vmem>>, vector<1x1x7x2048xbf16>
    %180 = vector.shape_cast %179 : vector<1x1x7x2048xbf16> to vector<7x2048xbf16>
    %c70 = arith.constant 70 : index
    %c0_324 = arith.constant 0 : index
    %181 = vector.load %arg14[%c70, %c0_324] : memref<98x2048xbf16, #tpu.memory_space<vmem>>, vector<7x2048xbf16>
    tpu.vector_store %arg14[%c70, %c0_324], %180 {strides = array<i32>} : memref<98x2048xbf16, #tpu.memory_space<vmem>>, vector<7x2048xbf16>,
    %c4_325 = arith.constant 4 : index
    %c0_326 = arith.constant 0 : index
    %c0_327 = arith.constant 0 : index
    %c0_328 = arith.constant 0 : index
    %182 = vector.load %arg13[%c4_325, %c0_326, %c0_327, %c0_328] : memref<7x2x7x2048xbf16, #tpu.memory_space<vmem>>, vector<1x1x7x2048xbf16>
    %183 = vector.shape_cast %182 : vector<1x1x7x2048xbf16> to vector<7x2048xbf16>
    %c28 = arith.constant 28 : index
    %c0_329 = arith.constant 0 : index
    %184 = vector.load %arg14[%c28, %c0_329] : memref<98x2048xbf16, #tpu.memory_space<vmem>>, vector<7x2048xbf16>
    tpu.vector_store %arg14[%c28, %c0_329], %183 {strides = array<i32>} : memref<98x2048xbf16, #tpu.memory_space<vmem>>, vector<7x2048xbf16>,
    %c4_330 = arith.constant 4 : index
    %c1_331 = arith.constant 1 : index
    %c0_332 = arith.constant 0 : index
    %c0_333 = arith.constant 0 : index
    %185 = vector.load %arg13[%c4_330, %c1_331, %c0_332, %c0_333] : memref<7x2x7x2048xbf16, #tpu.memory_space<vmem>>, vector<1x1x7x2048xbf16>
    %186 = vector.shape_cast %185 : vector<1x1x7x2048xbf16> to vector<7x2048xbf16>
    %c77 = arith.constant 77 : index
    %c0_334 = arith.constant 0 : index
    %187 = vector.load %arg14[%c77, %c0_334] : memref<98x2048xbf16, #tpu.memory_space<vmem>>, vector<7x2048xbf16>
    tpu.vector_store %arg14[%c77, %c0_334], %186 {strides = array<i32>} : memref<98x2048xbf16, #tpu.memory_space<vmem>>, vector<7x2048xbf16>,
    %c5_335 = arith.constant 5 : index
    %c0_336 = arith.constant 0 : index
    %c0_337 = arith.constant 0 : index
    %c0_338 = arith.constant 0 : index
    %188 = vector.load %arg13[%c5_335, %c0_336, %c0_337, %c0_338] : memref<7x2x7x2048xbf16, #tpu.memory_space<vmem>>, vector<1x1x7x2048xbf16>
    %189 = vector.shape_cast %188 : vector<1x1x7x2048xbf16> to vector<7x2048xbf16>
    %c35 = arith.constant 35 : index
    %c0_339 = arith.constant 0 : index
    %190 = vector.load %arg14[%c35, %c0_339] : memref<98x2048xbf16, #tpu.memory_space<vmem>>, vector<7x2048xbf16>
    tpu.vector_store %arg14[%c35, %c0_339], %189 {strides = array<i32>} : memref<98x2048xbf16, #tpu.memory_space<vmem>>, vector<7x2048xbf16>,
    %c5_340 = arith.constant 5 : index
    %c1_341 = arith.constant 1 : index
    %c0_342 = arith.constant 0 : index
    %c0_343 = arith.constant 0 : index
    %191 = vector.load %arg13[%c5_340, %c1_341, %c0_342, %c0_343] : memref<7x2x7x2048xbf16, #tpu.memory_space<vmem>>, vector<1x1x7x2048xbf16>
    %192 = vector.shape_cast %191 : vector<1x1x7x2048xbf16> to vector<7x2048xbf16>
    %c84 = arith.constant 84 : index
    %c0_344 = arith.constant 0 : index
    %193 = vector.load %arg14[%c84, %c0_344] : memref<98x2048xbf16, #tpu.memory_space<vmem>>, vector<7x2048xbf16>
    tpu.vector_store %arg14[%c84, %c0_344], %192 {strides = array<i32>} : memref<98x2048xbf16, #tpu.memory_space<vmem>>, vector<7x2048xbf16>,
    %c6_345 = arith.constant 6 : index
    %c0_346 = arith.constant 0 : index
    %c0_347 = arith.constant 0 : index
    %c0_348 = arith.constant 0 : index
    %194 = vector.load %arg13[%c6_345, %c0_346, %c0_347, %c0_348] : memref<7x2x7x2048xbf16, #tpu.memory_space<vmem>>, vector<1x1x7x2048xbf16>
    %195 = vector.shape_cast %194 : vector<1x1x7x2048xbf16> to vector<7x2048xbf16>
    %c42 = arith.constant 42 : index
    %c0_349 = arith.constant 0 : index
    %196 = vector.load %arg14[%c42, %c0_349] : memref<98x2048xbf16, #tpu.memory_space<vmem>>, vector<7x2048xbf16>
    tpu.vector_store %arg14[%c42, %c0_349], %195 {strides = array<i32>} : memref<98x2048xbf16, #tpu.memory_space<vmem>>, vector<7x2048xbf16>,
    %c6_350 = arith.constant 6 : index
    %c1_351 = arith.constant 1 : index
    %c0_352 = arith.constant 0 : index
    %c0_353 = arith.constant 0 : index
    %197 = vector.load %arg13[%c6_350, %c1_351, %c0_352, %c0_353] : memref<7x2x7x2048xbf16, #tpu.memory_space<vmem>>, vector<1x1x7x2048xbf16>
    %198 = vector.shape_cast %197 : vector<1x1x7x2048xbf16> to vector<7x2048xbf16>
    %c91 = arith.constant 91 : index
    %c0_354 = arith.constant 0 : index
    %199 = vector.load %arg14[%c91, %c0_354] : memref<98x2048xbf16, #tpu.memory_space<vmem>>, vector<7x2048xbf16>
    tpu.vector_store %arg14[%c91, %c0_354], %198 {strides = array<i32>} : memref<98x2048xbf16, #tpu.memory_space<vmem>>, vector<7x2048xbf16>,
    %c0_355 = arith.constant 0 : index
    %c0_356 = arith.constant 0 : index
    %200 = vector.load %arg14[%c0_355, %c0_356] : memref<98x2048xbf16, #tpu.memory_space<vmem>>, vector<98x2048xbf16>
    %c0_357 = arith.constant 0 : index
    %c0_358 = arith.constant 0 : index
    %201 = vector.load %arg4[%c0_357, %c0_358] : memref<2048x128xbf16, #tpu.memory_space<vmem>>, vector<2048x128xbf16>
    %cst_359 = arith.constant dense<0.000000e+00> : vector<98x128xf32>
    %202 = tpu.matmul %200, %201, %cst_359 {dimension_numbers = #tpu.dot_dimension_numbers<[1], [0], [0], [1], [0, 0, 1, 1], [], []>} : vector<98x2048xbf16>, vector<2048x128xbf16>, vector<98x128xf32> -> vector<98x128xf32>
    %c0_360 = arith.constant 0 : index
    %c0_361 = arith.constant 0 : index
    %203 = vector.load %arg5[%c0_360, %c0_361] : memref<1x128xf32, #tpu.memory_space<vmem>>, vector<1x128xf32>
    %204 = vector.broadcast %203 : vector<1x128xf32> to vector<98x128xf32>
    %205 = arith.addf %202, %204 : vector<98x128xf32>
    %cst_362 = arith.constant 0.000000e+00 : f32
    %206 = vector.broadcast %cst_362 : f32 to vector<98x128xf32>
    %207 = arith.cmpf ogt, %205, %206 : vector<98x128xf32>
    %cst_363 = arith.constant 2.000000e-01 : f32
    %208 = vector.broadcast %cst_363 : f32 to vector<98x128xf32>
    %209 = arith.mulf %208, %205 : vector<98x128xf32>
    %210 = arith.select %207, %205, %209 : vector<98x128xi1>, vector<98x128xf32>
    %c0_364 = arith.constant 0 : index
    %c0_365 = arith.constant 0 : index
    %211 = vector.load %arg6[%c0_364, %c0_365] : memref<98x128xf32, #tpu.memory_space<vmem>>, vector<98x128xf32>
    %212 = arith.mulf %210, %211 : vector<98x128xf32>
    %c0_366 = arith.constant 0 : index
    %c0_367 = arith.constant 0 : index
    %213 = vector.load %arg7[%c0_366, %c0_367] : memref<2x98xf32, #tpu.memory_space<vmem>>, vector<2x98xf32>
    %cst_368 = arith.constant dense<0.000000e+00> : vector<2x128xf32>
    %214 = tpu.matmul %213, %212, %cst_368 {dimension_numbers = #tpu.dot_dimension_numbers<[1], [0], [0], [1], [0, 0, 1, 1], [], []>} : vector<2x98xf32>, vector<98x128xf32>, vector<2x128xf32> -> vector<2x128xf32>
    %cst_369 = arith.constant dense<0.000000e+00> : vector<2xf32>
    %215 = vector.multi_reduction <add>, %214, %cst_369 [1] : vector<2x128xf32> to vector<2xf32>
    %216 = vector.shape_cast %215 : vector<2xf32> to vector<2x1xf32>
    %c0_370 = arith.constant 0 : index
    %c0_371 = arith.constant 0 : index
    %217 = vector.load %arg8[%c0_370, %c0_371] : memref<1x1xf32, #tpu.memory_space<vmem>>, vector<1x1xf32>
    %218 = vector.broadcast %217 : vector<1x1xf32> to vector<2x1xf32>
    %219 = arith.addf %216, %218 : vector<2x1xf32>
    %c0_372 = arith.constant 0 : index
    %c0_373 = arith.constant 0 : index
    %220 = vector.load %arg9[%c0_372, %c0_373] : memref<2x1xf32, #tpu.memory_space<vmem>>, vector<2x1xf32>
    tpu.vector_store %arg9[%c0_372, %c0_373], %219 {strides = array<i32>} : memref<2x1xf32, #tpu.memory_space<vmem>>, vector<2x1xf32>,
    return
  }
  func.func @transform_0(%arg0: i32) -> (i32, i32, i32) {
    %c0_i32 = arith.constant 0 : i32
    %c0_i32_0 = arith.constant 0 : i32
    %c0_i32_1 = arith.constant 0 : i32
    %c0_i32_2 = arith.constant 0 : i32
    return %c0_i32, %c0_i32_0, %c0_i32_1 : i32, i32, i32
  }
  func.func @transform_1(%arg0: i32) -> (i32, i32, i32) {
    %c0_i32 = arith.constant 0 : i32
    %c0_i32_0 = arith.constant 0 : i32
    %c0_i32_1 = arith.constant 0 : i32
    %c0_i32_2 = arith.constant 0 : i32
    return %c0_i32, %c0_i32_0, %c0_i32_1 : i32, i32, i32
  }
  func.func @transform_2(%arg0: i32) -> (i32, i32, i32) {
    %c0_i32 = arith.constant 0 : i32
    %c0_i32_0 = arith.constant 0 : i32
    %c0_i32_1 = arith.constant 0 : i32
    %c0_i32_2 = arith.constant 0 : i32
    return %c0_i32, %c0_i32_0, %c0_i32_1 : i32, i32, i32
  }
  func.func @transform_3(%arg0: i32) -> (i32, i32) {
    %c0_i32 = arith.constant 0 : i32
    %c0_i32_0 = arith.constant 0 : i32
    %c0_i32_1 = arith.constant 0 : i32
    return %c0_i32, %c0_i32_0 : i32, i32
  }
  func.func @transform_4(%arg0: i32) -> (i32, i32) {
    %c0_i32 = arith.constant 0 : i32
    %c0_i32_0 = arith.constant 0 : i32
    %c0_i32_1 = arith.constant 0 : i32
    return %c0_i32, %c0_i32_0 : i32, i32
  }
  func.func @transform_5(%arg0: i32) -> (i32, i32) {
    %c0_i32 = arith.constant 0 : i32
    %c0_i32_0 = arith.constant 0 : i32
    %c0_i32_1 = arith.constant 0 : i32
    return %c0_i32, %c0_i32_0 : i32, i32
  }
  func.func @transform_6(%arg0: i32) -> (i32, i32) {
    %c0_i32 = arith.constant 0 : i32
    %c0_i32_0 = arith.constant 0 : i32
    %c0_i32_1 = arith.constant 0 : i32
    return %c0_i32, %c0_i32_0 : i32, i32
  }
  func.func @transform_7(%arg0: i32) -> (i32, i32) {
    %c0_i32 = arith.constant 0 : i32
    %c0_i32_0 = arith.constant 0 : i32
    %c0_i32_1 = arith.constant 0 : i32
    return %c0_i32, %c0_i32_0 : i32, i32
  }
  func.func @transform_8(%arg0: i32) -> (i32, i32) {
    %c0_i32 = arith.constant 0 : i32
    %c0_i32_0 = arith.constant 0 : i32
    %c0_i32_1 = arith.constant 0 : i32
    return %c0_i32, %c0_i32_0 : i32, i32
  }
}

</mosaic_0001>

<bundles_post_ra>
// kernel: tile.9
= control target key start
LH: loop header
LB: loop body
LE: loop exit
PB: predicated region body
PF: predicated region fallthrough
CT: control target
= control target key end

     0   :  { %s25_s6 = smov 3  ;;  %s165_s0 = inlined_call_operand.vmem [shape: f32[2,49,128], index: 0, kind: input, shape index: {}]   ;;  %s166_s1 = inlined_call_operand.vmem [shape: f32[98,128], index: 1, kind: output, shape index: {}]  }
   0x1   :  { %v2_v0 = vld [vmem:[%s165_s0] sm:$0xff]   ;;  %v53_v1 = vld [vmem:[%s165_s0 + $0x8] sm:$0xff]   ;;  %v55_v2 = vld [vmem:[%s165_s0 + $0x10] sm:$0xff]  }
   0x2   :  { %3 = vst [vmem:[%s166_s1] sm:$0xff] %v2_v0   ;;  %54 = vst [vmem:[%s166_s1 + $0x8] sm:$0xff] %v53_v1   ;;  %v57_v3 = vld [vmem:[%s165_s0 + $0x18] sm:$0xff]   ;;  %v59_v4 = vld [vmem:[%s165_s0 + $0x20] sm:$0xff]  }
   0x3   :  { %56 = vst [vmem:[%s166_s1 + $0x10] sm:$0xff] %v55_v2   ;;  %v61_v5 = vld [vmem:[%s165_s0 + $0x28] sm:$0xff]   ;;  %58 = vst [vmem:[%s166_s1 + $0x18] sm:$0xff] %v57_v3   ;;  %v65_v7 = vld [vmem:[%s165_s0 + $0x39] sm:$0xff]  }
   0x4   :  { %60 = vst [vmem:[%s166_s1 + $0x20] sm:$0xff] %v59_v4   ;;  %62 = vst [vmem:[%s166_s1 + $0x28] sm:$0xff] %v61_v5   ;;  %v63_v6 = vld [vmem:[%s165_s0 + $0x30] ss:$8 sm:%s25_s6]  }
   0x5   :  { %v67_v8 = vld [vmem:[%s165_s0 + $0x41] sm:$0xff]   ;;  %64 = vst [vmem:[%s166_s1 + $0x30] sm:$0x3] %v63_v6   ;;  %66 = vst [vmem:[%s166_s1 + $0x32] sm:$0xff] %v65_v7   ;;  %v69_v9 = vld [vmem:[%s165_s0 + $0x49] sm:$0xff]  }
   0x6   :  { %68 = vst [vmem:[%s166_s1 + $0x3a] sm:$0xff] %v67_v8   ;;  %v71_v10 = vld [vmem:[%s165_s0 + $0x51] sm:$0xff]   ;;  %v73_v11 = vld [vmem:[%s165_s0 + $0x59] sm:$0xff]   ;;  %70 = vst [vmem:[%s166_s1 + $0x42] sm:$0xff] %v69_v9  }
   0x7   :  { %72 = vst [vmem:[%s166_s1 + $0x4a] sm:$0xff] %v71_v10   ;;  %74 = vst [vmem:[%s166_s1 + $0x52] sm:$0xff] %v73_v11   ;;  %v75_v12 = vld [vmem:[%s165_s0 + $0x61] sm:$0xff]  }
   0x8   :  { %76 = vst [vmem:[%s166_s1 + $0x5a] sm:$0xff] %v75_v12  }

// kernel: critic_forward.1
= control target key start
LH: loop header
LB: loop body
LE: loop exit
PB: predicated region body
PF: predicated region fallthrough
CT: control target
= control target key end

     0   :  { %v9472_v3 = vmov 0   ;;  %vm456_vm0 = vcmask 916480   ;;  %vm995_vm1 = vsmask.f32 1280  ;;  %vm1108_vm2 = vcmask 1041408   ;;  %s12294_s1 = inlined_call_operand.vmem [shape: bf16[2,112,1024], index: 1, kind: input, shape index: {}]   ;;  %s12295_s0 = inlined_call_operand.vmem [shape: bf16[2,28,112], index: 0, kind: input, shape index: {}]   ;;  %s12296_s2 = inlined_call_operand.vmem [shape: f32[2,1,1024], index: 2, kind: input, shape index: {}]   ;;  %s12297_s3 = inlined_call_operand.vmem [shape: bf16[2048,128], index: 3, kind: input, shape index: {}]   ;;  %s12298_s4 = inlined_call_operand.vmem [shape: f32[1,128], index: 4, kind: input, shape index: {}]   ;;  %s12299_s5 = inlined_call_operand.vmem [shape: f32[98,128], index: 5, kind: input, shape index: {}]   ;;  %s12300_s6 = inlined_call_operand.vmem [shape: f32[2,98], index: 6, kind: input, shape index: {}]   ;;  %s12301_s7 = inlined_call_operand.<no memory space> [shape: f32[1,1], index: 7, kind: input, shape index: {}]   ;;  %s12302_s8 = inlined_call_operand.vmem [shape: f32[2,1], index: 8, kind: output, shape index: {}]  }
   0x1   :  { %v68_v0 = vld [vmem:[%s12294_s1] sm:$0xff]  ;;  %v69_v2 = vld [vmem:[%s12294_s1 + $0x8] sm:$0xff]  ;;  %495 = vmatprep.mubr.bf16.mxu0 %v9472_v3  ;;  %548 = vmatprep.mubr.bf16.mxu1 %v9472_v3  ;;  %v70_v55 = vld [vmem:[%s12294_s1 + $0x10] sm:$0xff]  ;;  %vm1109_vm3 = vcmask 1045508   ;;  %vm5152_vm5 = vsmask.f32 5376 }
   0x2   :  { %v72_v1 = vld [vmem:[%s12294_s1 + $0x20] sm:$0xff]  ;;  %v73_v5 = vld [vmem:[%s12294_s1 + $0x28] sm:$0xff]  ;;  %v74_v56 = vld [vmem:[%s12294_s1 + $0x30] sm:$0xff]  ;;  %vm889_vm8 = vsmask.f32 3328  ;;  %vm888_vm10 = vcmask 1043456  }
   0x3   :  { %v8280_v4 = vcombine.high %v68_v0, %v72_v1  ;;  %v8279_v6 = vcombine.low %v68_v0, %v72_v1  ;;  %v76_v7 = vld [vmem:[%s12294_s1 + $0x40] sm:$0xff]  ;;  %v8282_v9 = vcombine.high %v69_v2, %v73_v5  ;;  %v8281_v10 = vcombine.low %v69_v2, %v73_v5  ;;  %v77_v12 = vld [vmem:[%s12294_s1 + $0x48] sm:$0xff]  ;;  %v71_v57 = vld [vmem:[%s12294_s1 + $0x18] sm:$0xff] }
   0x4   :  { %v80_v8 = vld [vmem:[%s12294_s1 + $0x60] sm:$0xff]  ;;  %v81_v13 = vld [vmem:[%s12294_s1 + $0x68] sm:$0xff]  ;;  %v75_v58 = vld [vmem:[%s12294_s1 + $0x38] sm:$0xff]  ;;  %v8284_v61 = vcombine.high %v70_v55, %v74_v56  ;;  %v8283_v5 = vcombine.low %v70_v55, %v74_v56  ;;  %vm892_vm9 = vsmask.f32 7424  ;;  %vm891_vm11 = vcmask 1047556  }
   0x5   :  { %v8288_v11 = vcombine.high %v76_v7, %v80_v8  ;;  %v84_v14 = vld [vmem:[%s12294_s1 + $0x80] sm:$0xff]  ;;  %463 = vmatprep.subr.bf16.mxu0 %v8280_v4  ;;  %v8290_v15 = vcombine.high %v77_v12, %v81_v13  ;;  %v85_v17 = vld [vmem:[%s12294_s1 + $0x88] sm:$0xff]  ;;  %516 = vmatprep.subr.bf16.mxu1 %v8282_v9  ;;  %v8287_v19 = vcombine.low %v76_v7, %v80_v8  ;;  %v78_v63 = vld [vmem:[%s12294_s1 + $0x50] sm:$0xff] }
   0x6   :  { %v88_v16 = vld [vmem:[%s12294_s1 + $0xa0] sm:$0xff]  ;;  %v89_v18 = vld [vmem:[%s12294_s1 + $0xa8] sm:$0xff]  ;;  %464 = vmatpush1.bf16.msra.mxu0 %v8279_v6  ;;  %517 = vmatpush1.bf16.msra.mxu1 %v8281_v10  ;;  %v8289_v20 = vcombine.low %v77_v12, %v81_v13  ;;  %v8286_v62 = vcombine.high %v71_v57, %v75_v58  ;;  %v82_v0 = vld [vmem:[%s12294_s1 + $0x70] sm:$0xff]  ;;  %v8285_v6 = vcombine.low %v71_v57, %v75_v58 }
   0x7   :  { %465 = vmatprep.subr.bf16.mxu0 %v8288_v11  ;;  %v8296_v21 = vcombine.high %v84_v14, %v88_v16  ;;  %518 = vmatprep.subr.bf16.mxu1 %v8290_v15  ;;  %v8298_v22 = vcombine.high %v85_v17, %v89_v18  ;;  %v92_v23 = vld [vmem:[%s12294_s1 + $0xc0] sm:$0xff]  ;;  %v93_v25 = vld [vmem:[%s12294_s1 + $0xc8] sm:$0xff]  ;;  %v8295_v27 = vcombine.low %v84_v14, %v88_v16  ;;  %v79_v2 = vld [vmem:[%s12294_s1 + $0x58] sm:$0xff] }
   0x8   :  { %v96_v24 = vld [vmem:[%s12294_s1 + $0xe0] sm:$0xff]  ;;  %v97_v26 = vld [vmem:[%s12294_s1 + $0xe8] sm:$0xff]  ;;  %v8297_v28 = vcombine.low %v85_v17, %v89_v18  ;;  %v83_v4 = vld [vmem:[%s12294_s1 + $0x78] sm:$0xff]  ;;  %v8292_v7 = vcombine.high %v78_v63, %v82_v0  ;;  %v8291_v13 = vcombine.low %v78_v63, %v82_v0 }
   0x9   :  { %v8304_v29 = vcombine.high %v92_v23, %v96_v24  ;;  %v8306_v30 = vcombine.high %v93_v25, %v97_v26  ;;  %v100_v31 = vld [vmem:[%s12294_s1 + $0x100] sm:$0xff]  ;;  %v101_v33 = vld [vmem:[%s12294_s1 + $0x108] sm:$0xff]  ;;  %v8303_v35 = vcombine.low %v92_v23, %v96_v24  ;;  %v8305_v36 = vcombine.low %v93_v25, %v97_v26  ;;  %v86_v8 = vld [vmem:[%s12294_s1 + $0x90] sm:$0xff] }
   0xa   :  { %466 = vmatpush1.bf16.msra.mxu0 %v8287_v19  ;;  %519 = vmatpush1.bf16.msra.mxu1 %v8289_v20  ;;  %v104_v32 = vld [vmem:[%s12294_s1 + $0x120] sm:$0xff]  ;;  %v105_v34 = vld [vmem:[%s12294_s1 + $0x128] sm:$0xff]  ;;  %v8294_v9 = vcombine.high %v79_v2, %v83_v4  ;;  %v90_v10 = vld [vmem:[%s12294_s1 + $0xb0] sm:$0xff]  ;;  %v8293_v14 = vcombine.low %v79_v2, %v83_v4 }
   0xb   :  { %467 = vmatprep.subr.bf16.mxu0 %v8296_v21  ;;  %520 = vmatprep.subr.bf16.mxu1 %v8298_v22  ;;  %v8312_v37 = vcombine.high %v100_v31, %v104_v32  ;;  %v8314_v38 = vcombine.high %v101_v33, %v105_v34  ;;  %v108_v39 = vld [vmem:[%s12294_s1 + $0x140] sm:$0xff]  ;;  %v109_v41 = vld [vmem:[%s12294_s1 + $0x148] sm:$0xff]  ;;  %v8311_v43 = vcombine.low %v100_v31, %v104_v32  ;;  %v87_v11 = vld [vmem:[%s12294_s1 + $0x98] sm:$0xff] }
   0xc   :  { %v112_v40 = vld [vmem:[%s12294_s1 + $0x160] sm:$0xff]  ;;  %v113_v42 = vld [vmem:[%s12294_s1 + $0x168] sm:$0xff]  ;;  %v8313_v44 = vcombine.low %v101_v33, %v105_v34  ;;  %v91_v12 = vld [vmem:[%s12294_s1 + $0xb8] sm:$0xff]  ;;  %v8300_v15 = vcombine.high %v86_v8, %v90_v10  ;;  %v8299_v22 = vcombine.low %v86_v8, %v90_v10 }
   0xd   :  { %v8320_v45 = vcombine.high %v108_v39, %v112_v40  ;;  %v8322_v46 = vcombine.high %v109_v41, %v113_v42  ;;  %v116_v47 = vld [vmem:[%s12294_s1 + $0x180] sm:$0xff]  ;;  %v117_v49 = vld [vmem:[%s12294_s1 + $0x188] sm:$0xff]  ;;  %v8319_v51 = vcombine.low %v108_v39, %v112_v40  ;;  %v8321_v52 = vcombine.low %v109_v41, %v113_v42  ;;  %v94_v17 = vld [vmem:[%s12294_s1 + $0xd0] sm:$0xff] }
   0xe   :  { %468 = vmatpush1.bf16.msra.mxu0 %v8295_v27  ;;  %521 = vmatpush1.bf16.msra.mxu1 %v8297_v28  ;;  %v120_v48 = vld [vmem:[%s12294_s1 + $0x1a0] sm:$0xff]  ;;  %v121_v50 = vld [vmem:[%s12294_s1 + $0x1a8] sm:$0xff]  ;;  %v8302_v16 = vcombine.high %v87_v11, %v91_v12  ;;  %v98_v18 = vld [vmem:[%s12294_s1 + $0xf0] sm:$0xff]  ;;  %v8301_v23 = vcombine.low %v87_v11, %v91_v12 }
   0xf   :  { %469 = vmatprep.subr.bf16.mxu0 %v8304_v29  ;;  %522 = vmatprep.subr.bf16.mxu1 %v8306_v30  ;;  %v8328_v53 = vcombine.high %v116_v47, %v120_v48  ;;  %v8330_v54 = vcombine.high %v117_v49, %v121_v50  ;;  %v8327_v59 = vcombine.low %v116_v47, %v120_v48  ;;  %v9628_v1 = vld [vmem:[%s12295_s0] sm:$0xff]   ;;  %v9663_v19 = vld [vmem:[%s12295_s0 + $0x8] sm:$0x3f]   ;;  %v95_v20 = vld [vmem:[%s12294_s1 + $0xd8] sm:$0xff] }
  0x10   :  { %v8329_v60 = vcombine.low %v117_v49, %v121_v50  ;;  %v99_v21 = vld [vmem:[%s12294_s1 + $0xf8] sm:$0xff]  ;;  %v8308_v24 = vcombine.high %v94_v17, %v98_v18  ;;  %v102_v26 = vld [vmem:[%s12294_s1 + $0x110] sm:$0xff]  ;;  %v8307_v30 = vcombine.low %v94_v17, %v98_v18  ;;  %v8371_v50 = vld [vmem:[%s12294_s1 + $0x1c0] sm:$0xff] }
  0x11   :  { %v8310_v25 = vcombine.high %v95_v20, %v99_v21  ;;  %v106_v27 = vld [vmem:[%s12294_s1 + $0x130] sm:$0xff]  ;;  %v103_v28 = vld [vmem:[%s12294_s1 + $0x118] sm:$0xff]  ;;  %v8309_v31 = vcombine.low %v95_v20, %v99_v21  ;;  %v8379_v58 = vld [vmem:[%s12294_s1 + $0x200] sm:$0xff] }
  0x12   :  { %470 = vmatpush1.bf16.msra.mxu0 %v8303_v35  ;;  %523 = vmatpush1.bf16.msra.mxu1 %v8305_v36  ;;  %v107_v29 = vld [vmem:[%s12294_s1 + $0x138] sm:$0xff]  ;;  %v8316_v32 = vcombine.high %v102_v26, %v106_v27  ;;  %v110_v34 = vld [vmem:[%s12294_s1 + $0x150] sm:$0xff]  ;;  %v8387_v4 = vld [vmem:[%s12294_s1 + $0x240] sm:$0xff] }
  0x13   :  { %471 = vmatprep.subr.bf16.mxu0 %v8312_v37  ;;  %524 = vmatprep.subr.bf16.mxu1 %v8314_v38  ;;  %v8318_v33 = vcombine.high %v103_v28, %v107_v29  ;;  %v114_v35 = vld [vmem:[%s12294_s1 + $0x170] sm:$0xff]  ;;  %v111_v36 = vld [vmem:[%s12294_s1 + $0x158] sm:$0xff]  ;;  %v8315_v38 = vcombine.low %v102_v26, %v106_v27  ;;  %v8317_v39 = vcombine.low %v103_v28, %v107_v29  ;;  %v8395_v12 = vld [vmem:[%s12294_s1 + $0x280] sm:$0xff] }
  0x14   :  { %v115_v37 = vld [vmem:[%s12294_s1 + $0x178] sm:$0xff]  ;;  %v8324_v40 = vcombine.high %v110_v34, %v114_v35  ;;  %v118_v42 = vld [vmem:[%s12294_s1 + $0x190] sm:$0xff]  ;;  %v8403_v20 = vld [vmem:[%s12294_s1 + $0x2c0] sm:$0xff] }
  0x15   :  { %v8326_v41 = vcombine.high %v111_v36, %v115_v37  ;;  %v8325_v47 = vcombine.low %v111_v36, %v115_v37  ;;  %v8407_v21 = vld [vmem:[%s12294_s1 + $0x2e0] sm:$0xff]  ;;  %v8420_v37 = vld [vmem:[%s12294_s1 + $0x348] sm:$0xff]  ;;  %vm5151_vm4 = vmand %vm1108_vm2, %vm995_vm1 }
  0x16   :  { %472 = vmatpush1.bf16.msra.mxu0 %v8311_v43  ;;  %525 = vmatpush1.bf16.msra.mxu1 %v8313_v44  ;;  %v122_v43 = vld [vmem:[%s12294_s1 + $0x1b0] sm:$0xff]  ;;  %v119_v44 = vld [vmem:[%s12294_s1 + $0x198] sm:$0xff]  ;;  %v8463_v26 = vcombine.high %v8403_v20, %v8407_v21  ;;  %v8411_v28 = vld [vmem:[%s12294_s1 + $0x300] sm:$0xff] }
  0x17   :  { %473 = vmatprep.subr.bf16.mxu0 %v8320_v45  ;;  %526 = vmatprep.subr.bf16.mxu1 %v8322_v46  ;;  %v123_v45 = vld [vmem:[%s12294_s1 + $0x1b8] sm:$0xff]  ;;  %v8323_v46 = vcombine.low %v110_v34, %v114_v35  ;;  %v8332_v48 = vcombine.high %v118_v42, %v122_v43  ;;  %v8415_v29 = vld [vmem:[%s12294_s1 + $0x320] sm:$0xff]  ;;  %vm5153_vm6 = vmand %vm1109_vm3, %vm5152_vm5 }
  0x18   :  { %v8334_v49 = vcombine.high %v119_v44, %v123_v45  ;;  %v8333_v55 = vcombine.low %v119_v44, %v123_v45  ;;  %v8419_v35 = vld [vmem:[%s12294_s1 + $0x340] sm:$0xff]  ;;  %v8377_v44 = vld [vmem:[%s12294_s1 + $0x1f0] sm:$0xff]  ;;  %v8374_v45 = vld [vmem:[%s12294_s1 + $0x1d8] sm:$0xff] }
  0x19   :  { %v8423_v36 = vld [vmem:[%s12294_s1 + $0x360] sm:$0xff]  ;;  %vm9928_vm7 = vmor %vm5153_vm6, %vm5151_vm4 }
  0x1a   :  { %474 = vmatpush1.bf16.msra.mxu0 %v8319_v51  ;;  %527 = vmatpush1.bf16.msra.mxu1 %v8321_v52  ;;  %v8375_v51 = vld [vmem:[%s12294_s1 + $0x1e0] sm:$0xff]  ;;  %v8372_v52 = vld [vmem:[%s12294_s1 + $0x1c8] sm:$0xff]  ;;  %vm9993_vm12 = vmand %vm888_vm10, %vm889_vm8 }
  0x1b   :  { %475 = vmatprep.subr.bf16.mxu0 %v8328_v53  ;;  %528 = vmatprep.subr.bf16.mxu1 %v8330_v54  ;;  %v8376_v53 = vld [vmem:[%s12294_s1 + $0x1e8] sm:$0xff]  ;;  %v8331_v54 = vcombine.low %v118_v42, %v122_v43  ;;  %v8431_v56 = vcombine.high %v8371_v50, %v8375_v51  ;;  %v8373_v43 = vld [vmem:[%s12294_s1 + $0x1d0] sm:$0xff]  ;;  %vm10010_vm14 = vmand %vm891_vm11, %vm892_vm9 }
  0x1c   :  { %v8433_v57 = vcombine.high %v8372_v52, %v8376_v53  ;;  %v8432_v63 = vcombine.low %v8372_v52, %v8376_v53  ;;  %v8385_v52 = vld [vmem:[%s12294_s1 + $0x230] sm:$0xff]  ;;  %vm10024_vm5 = vmor %vm10010_vm14, %vm9993_vm12  ;;  %vm915_vm14 = vsmask.f32 256 }
  0x1d   :  { %v9830_v53 = vld [vmem:[%s12295_s0 + $0x10] sm:$0xff]  }
  0x1e   :  { %476 = vmatpush1.bf16.msra.mxu0 %v8327_v59  ;;  %529 = vmatpush1.bf16.msra.mxu1 %v8329_v60  ;;  %v8383_v59 = vld [vmem:[%s12294_s1 + $0x220] sm:$0xff]  ;;  %v8380_v60 = vld [vmem:[%s12294_s1 + $0x208] sm:$0xff] }
  0x1f   :  { %569 = vmatprep.subr.bf16.mxu0 %v8284_v61  ;;  %622 = vmatprep.subr.bf16.mxu1 %v8286_v62  ;;  %v8384_v61 = vld [vmem:[%s12294_s1 + $0x228] sm:$0xff]  ;;  %v8430_v62 = vcombine.low %v8371_v50, %v8375_v51  ;;  %v8439_v0 = vcombine.high %v8379_v58, %v8383_v59  ;;  %v8438_v8 = vcombine.low %v8379_v58, %v8383_v59  ;;  %v8381_v51 = vld [vmem:[%s12294_s1 + $0x210] sm:$0xff] }
  0x20   :  { %v8441_v2 = vcombine.high %v8380_v60, %v8384_v61  ;;  %v8443_v58 = vcombine.high %v8381_v51, %v8385_v52 }
  0x21   :  { %8335 = vmatmul.mubr.msk.bf16.vlgmr.msra.gmra.mrb[0].mxu0 %vm456_vm0, %v9628_v1  ;;  %8337 = vmatmul.mubr.msk.bf16.vlgmr.msra.gmra.mrb[0].mxu1 %vm456_vm0, %v9628_v1 }
  0x22   :  { %570 = vmatpush1.bf16.msra.mxu0 %v8283_v5  ;;  %623 = vmatpush1.bf16.msra.mxu1 %v8285_v6  ;;  %v8391_v5 = vld [vmem:[%s12294_s1 + $0x260] sm:$0xff]  ;;  %v8388_v6 = vld [vmem:[%s12294_s1 + $0x248] sm:$0xff] }
  0x23   :  { %571 = vmatprep.subr.bf16.mxu0 %v8292_v7  ;;  %624 = vmatprep.subr.bf16.mxu1 %v8294_v9  ;;  %v8392_v7 = vld [vmem:[%s12294_s1 + $0x268] sm:$0xff]  ;;  %v8440_v9 = vcombine.low %v8380_v60, %v8384_v61  ;;  %v8447_v10 = vcombine.high %v8387_v4, %v8391_v5  ;;  %v8389_v60 = vld [vmem:[%s12294_s1 + $0x250] sm:$0xff] }
  0x24   :  { %505 = vmatprep.mubr.bf16.mxu0 %v9472_v3  ;;  %558 = vmatprep.mubr.bf16.mxu1 %v9472_v3  ;;  %v8449_v11 = vcombine.high %v8388_v6, %v8392_v7  ;;  %v8393_v61 = vld [vmem:[%s12294_s1 + $0x270] sm:$0xff] }
  0x26   :  { %572 = vmatpush1.bf16.msra.mxu0 %v8291_v13  ;;  %625 = vmatpush1.bf16.msra.mxu1 %v8293_v14  ;;  %v8399_v13 = vld [vmem:[%s12294_s1 + $0x2a0] sm:$0xff]  ;;  %v8400_v14 = vld [vmem:[%s12294_s1 + $0x2a8] sm:$0xff] }
  0x27   :  { %573 = vmatprep.subr.bf16.mxu0 %v8300_v15  ;;  %626 = vmatprep.subr.bf16.mxu1 %v8302_v16  ;;  %v8446_v15 = vcombine.low %v8387_v4, %v8391_v5  ;;  %v8448_v16 = vcombine.low %v8388_v6, %v8392_v7  ;;  %v8455_v17 = vcombine.high %v8395_v12, %v8399_v13  ;;  %v8397_v6 = vld [vmem:[%s12294_s1 + $0x290] sm:$0xff] }
  0x28   :  { %v8451_v4 = vcombine.high %v8389_v60, %v8393_v61  ;;  %v8401_v7 = vld [vmem:[%s12294_s1 + $0x2b0] sm:$0xff] }
  0x29   :  { %8336 = vmatmul.mubr.msk.bf16.gmra.mrb[4].mxu0 %vm456_vm0, %v9663_v19  ;;  %8338 = vmatmul.mubr.msk.bf16.gmra.mrb[4].mxu1 %vm456_vm0, %v9663_v19 }
  0x2a   :  { %574 = vmatpush1.bf16.msra.mxu0 %v8299_v22  ;;  %627 = vmatpush1.bf16.msra.mxu1 %v8301_v23  ;;  %v8404_v22 = vld [vmem:[%s12294_s1 + $0x2c8] sm:$0xff] }
  0x2b   :  { %575 = vmatprep.subr.bf16.mxu0 %v8308_v24  ;;  %628 = vmatprep.subr.bf16.mxu1 %v8310_v25  ;;  %v8408_v23 = vld [vmem:[%s12294_s1 + $0x2e8] sm:$0xff]  ;;  %v8454_v24 = vcombine.low %v8395_v12, %v8399_v13  ;;  %v8459_v13 = vcombine.high %v8397_v6, %v8401_v7 }
  0x2c   :  { %601 = vmatprep.mubr.bf16.mxu0 %v9472_v3  ;;  %654 = vmatprep.mubr.bf16.mxu1 %v9472_v3  ;;  %v8465_v27 = vcombine.high %v8404_v22, %v8408_v23 }
  0x2e   :  { %576 = vmatpush1.bf16.msra.mxu0 %v8307_v30  ;;  %629 = vmatpush1.bf16.msra.mxu1 %v8309_v31  ;;  %v8416_v30 = vld [vmem:[%s12294_s1 + $0x328] sm:$0xff]  ;;  %v8462_v31 = vcombine.low %v8403_v20, %v8407_v21 }
  0x2f   :  { %577 = vmatprep.subr.bf16.mxu0 %v8316_v32  ;;  %630 = vmatprep.subr.bf16.mxu1 %v8318_v33  ;;  %v8464_v32 = vcombine.low %v8404_v22, %v8408_v23  ;;  %v8471_v33 = vcombine.high %v8411_v28, %v8415_v29  ;;  %v8413_v23 = vld [vmem:[%s12294_s1 + $0x310] sm:$0xff] }
  0x32   :  { %578 = vmatpush1.bf16.msra.mxu0 %v8315_v38  ;;  %631 = vmatpush1.bf16.msra.mxu1 %v8317_v39  ;;  %v8424_v38 = vld [vmem:[%s12294_s1 + $0x368] sm:$0xff]  ;;  %v8470_v39 = vcombine.low %v8411_v28, %v8415_v29 }
  0x33   :  { %579 = vmatprep.subr.bf16.mxu0 %v8324_v40  ;;  %632 = vmatprep.subr.bf16.mxu1 %v8326_v41  ;;  %v8479_v41 = vcombine.high %v8419_v35, %v8423_v36  ;;  %v8481_v42 = vcombine.high %v8420_v37, %v8424_v38 }
  0x36   :  { %580 = vmatpush1.bf16.msra.mxu0 %v8323_v46  ;;  %633 = vmatpush1.bf16.msra.mxu1 %v8325_v47  ;;  %v8378_v46 = vld [vmem:[%s12294_s1 + $0x1f8] sm:$0xff]  ;;  %v8478_v47 = vcombine.low %v8419_v35, %v8423_v36 }
  0x37   :  { %581 = vmatprep.subr.bf16.mxu0 %v8332_v48  ;;  %634 = vmatprep.subr.bf16.mxu1 %v8334_v49  ;;  %v8480_v48 = vcombine.low %v8420_v37, %v8424_v38  ;;  %v8435_v49 = vcombine.high %v8373_v43, %v8377_v44  ;;  %v8437_v50 = vcombine.high %v8374_v45, %v8378_v46 }
  0x3a   :  { %582 = vmatpush1.bf16.msra.mxu0 %v8331_v54  ;;  %635 = vmatpush1.bf16.msra.mxu1 %v8333_v55  ;;  %v8382_v54 = vld [vmem:[%s12294_s1 + $0x218] sm:$0xff] }
  0x3b   :  { %1545 = vmatprep.subr.bf16.mxu0 %v8431_v56  ;;  %1598 = vmatprep.subr.bf16.mxu1 %v8433_v57  ;;  %v8386_v55 = vld [vmem:[%s12294_s1 + $0x238] sm:$0xff]  ;;  %v8434_v56 = vcombine.low %v8373_v43, %v8377_v44  ;;  %v8436_v57 = vcombine.low %v8374_v45, %v8378_v46  ;;  %v8427_v46 = vld [vmem:[%s12296_s2 + $0x8] sm:$0xff] }
  0x3c   :  { %v8445_v59 = vcombine.high %v8382_v54, %v8386_v55 }
  0x3d   :  { %8339 = vmatmul.mubr.msk.bf16.vlgmr.msra.gmra.mrb[8].mxu0 %vm456_vm0, %v9628_v1  ;;  %8341 = vmatmul.mubr.msk.bf16.vlgmr.msra.gmra.mrb[8].mxu1 %vm456_vm0, %v9628_v1  ;;  %v8396_v1 = vld [vmem:[%s12294_s1 + $0x288] sm:$0xff] }
  0x3e   :  { %1546 = vmatpush1.bf16.msra.mxu0 %v8430_v62  ;;  %1599 = vmatpush1.bf16.msra.mxu1 %v8432_v63  ;;  %v8457_v18 = vcombine.high %v8396_v1, %v8400_v14  ;;  %v8456_v25 = vcombine.low %v8396_v1, %v8400_v14  ;;  %v8390_v62 = vld [vmem:[%s12294_s1 + $0x258] sm:$0xff]  ;;  %v8405_v14 = vld [vmem:[%s12294_s1 + $0x2d0] sm:$0xff] }
  0x3f   :  { %1547 = vmatprep.subr.bf16.mxu0 %v8439_v0  ;;  %1600 = vmatprep.subr.bf16.mxu1 %v8441_v2  ;;  %v8394_v63 = vld [vmem:[%s12294_s1 + $0x278] sm:$0xff]  ;;  %v8442_v0 = vcombine.low %v8381_v51, %v8385_v52  ;;  %v8444_v2 = vcombine.low %v8382_v54, %v8386_v55  ;;  %v9962_v55 = vld [vmem:[%s12296_s2] sm:$0xff] }
  0x40   :  { %611 = vmatprep.mubr.bf16.mxu0 %v9472_v3  ;;  %664 = vmatprep.mubr.bf16.mxu1 %v9472_v3  ;;  %v8453_v5 = vcombine.high %v8390_v62, %v8394_v63  ;;  %v8452_v12 = vcombine.low %v8390_v62, %v8394_v63  ;;  %v9330_v63 = vld [vmem:[%s12297_s3 + $0x80] sm:$0xff]  }
  0x42   :  { %1548 = vmatpush1.bf16.msra.mxu0 %v8438_v8  ;;  %1601 = vmatpush1.bf16.msra.mxu1 %v8440_v9  ;;  %v9865_v8 = vld [vmem:[%s12295_s0 + $0x18] sm:$0x3f]  }
  0x43   :  { %1549 = vmatprep.subr.bf16.mxu0 %v8447_v10  ;;  %1602 = vmatprep.subr.bf16.mxu1 %v8449_v11  ;;  %v8398_v9 = vld [vmem:[%s12294_s1 + $0x298] sm:$0xff]  ;;  %v8450_v11 = vcombine.low %v8389_v60, %v8393_v61  ;;  %v9329_v61 = vld [vmem:[%s12297_s3] sm:$0xff]  }
  0x44   :  { %v8402_v10 = vld [vmem:[%s12294_s1 + $0x2b8] sm:$0xff] }
  0x45   :  { %8340 = vmatmul.mubr.msk.bf16.gmra.mrb[12].mxu0 %vm456_vm0, %v9663_v19  ;;  %8342 = vmatmul.mubr.msk.bf16.gmra.mrb[12].mxu1 %vm456_vm0, %v9663_v19  ;;  %v8412_v19 = vld [vmem:[%s12294_s1 + $0x308] sm:$0xff]  ;;  %v8461_v1 = vcombine.high %v8398_v9, %v8402_v10  ;;  %v8460_v20 = vcombine.low %v8398_v9, %v8402_v10 }
  0x46   :  { %1550 = vmatpush1.bf16.msra.mxu0 %v8446_v15  ;;  %1603 = vmatpush1.bf16.msra.mxu1 %v8448_v16  ;;  %v8473_v34 = vcombine.high %v8412_v19, %v8416_v30  ;;  %v8472_v40 = vcombine.low %v8412_v19, %v8416_v30  ;;  %v8409_v15 = vld [vmem:[%s12294_s1 + $0x2f0] sm:$0xff]  ;;  %v8406_v16 = vld [vmem:[%s12294_s1 + $0x2d8] sm:$0xff] }
  0x47   :  { %1551 = vmatprep.subr.bf16.mxu0 %v8455_v17  ;;  %1604 = vmatprep.subr.bf16.mxu1 %v8457_v18  ;;  %v8410_v17 = vld [vmem:[%s12294_s1 + $0x2f8] sm:$0xff]  ;;  %v8458_v18 = vcombine.low %v8397_v6, %v8401_v7  ;;  %v8467_v21 = vcombine.high %v8405_v14, %v8409_v15  ;;  %v8421_v30 = vld [vmem:[%s12294_s1 + $0x350] sm:$0xff] }
  0x48   :  { %1577 = vmatprep.mubr.bf16.mxu0 %v9472_v3  ;;  %1630 = vmatprep.mubr.bf16.mxu1 %v9472_v3  ;;  %v8469_v22 = vcombine.high %v8406_v16, %v8410_v17  ;;  %v8468_v28 = vcombine.low %v8406_v16, %v8410_v17 }
  0x4a   :  { %1552 = vmatpush1.bf16.msra.mxu0 %v8454_v24  ;;  %1605 = vmatpush1.bf16.msra.mxu1 %v8456_v25  ;;  %v8417_v24 = vld [vmem:[%s12294_s1 + $0x330] sm:$0xff]  ;;  %v8414_v25 = vld [vmem:[%s12294_s1 + $0x318] sm:$0xff] }
  0x4b   :  { %1553 = vmatprep.subr.bf16.mxu0 %v8463_v26  ;;  %1606 = vmatprep.subr.bf16.mxu1 %v8465_v27  ;;  %v8418_v26 = vld [vmem:[%s12294_s1 + $0x338] sm:$0xff]  ;;  %v8466_v27 = vcombine.low %v8405_v14, %v8409_v15  ;;  %v8475_v29 = vcombine.high %v8413_v23, %v8417_v24  ;;  %v9333_v14 = vld [vmem:[%s12297_s3 + $0x8] sm:$0xff]  }
  0x4c   :  { %v8477_v19 = vcombine.high %v8414_v25, %v8418_v26  ;;  %v8476_v35 = vcombine.low %v8414_v25, %v8418_v26 }
  0x4e   :  { %1554 = vmatpush1.bf16.msra.mxu0 %v8462_v31  ;;  %1607 = vmatpush1.bf16.msra.mxu1 %v8464_v32  ;;  %v8425_v31 = vld [vmem:[%s12294_s1 + $0x370] sm:$0xff]  ;;  %v8422_v32 = vld [vmem:[%s12294_s1 + $0x358] sm:$0xff] }
  0x4f   :  { %1555 = vmatprep.subr.bf16.mxu0 %v8471_v33  ;;  %1608 = vmatprep.subr.bf16.mxu1 %v8473_v34  ;;  %v8426_v33 = vld [vmem:[%s12294_s1 + $0x378] sm:$0xff]  ;;  %v8474_v34 = vcombine.low %v8413_v23, %v8417_v24  ;;  %v8483_v36 = vcombine.high %v8421_v30, %v8425_v31  ;;  %v8482_v38 = vcombine.low %v8421_v30, %v8425_v31 }
  0x50   :  { %v8485_v37 = vcombine.high %v8422_v32, %v8426_v33 }
  0x52   :  { %1556 = vmatpush1.bf16.msra.mxu0 %v8470_v39  ;;  %1609 = vmatpush1.bf16.msra.mxu1 %v8472_v40  ;;  %v8484_v39 = vcombine.low %v8422_v32, %v8426_v33  ;;  %v12307_v40 = vmov 0  ;;  %v9335_v32 = vld [vmem:[%s12297_s3 + $0x50] sm:$0xff]  }
  0x53   :  { %1557 = vmatprep.subr.bf16.mxu0 %v8479_v41  ;;  %1610 = vmatprep.subr.bf16.mxu1 %v8481_v42  ;;  %v12308_v40 = vsel %vm9928_vm7, 4294967295, %v12307_v40 }
  0x54   :  { %12309 = vst [vmem:[#allocation8_spill] sm:$0xff] %v12308_v40 }
  0x56   :  { %1558 = vmatpush1.bf16.msra.mxu0 %v8478_v47  ;;  %1611 = vmatpush1.bf16.msra.mxu1 %v8480_v48 }
  0x57   :  { %1651 = vmatprep.subr.bf16.mxu0 %v8435_v49  ;;  %1704 = vmatprep.subr.bf16.mxu1 %v8437_v50 }
  0x59   :  { %8486 = vmatmul.mubr.msk.bf16.vlgmr.msra.gmra.mrb[16].mxu0 %vm456_vm0, %v9830_v53  ;;  %8488 = vmatmul.mubr.msk.bf16.vlgmr.msra.gmra.mrb[16].mxu1 %vm456_vm0, %v9830_v53 }
  0x5a   :  { %1652 = vmatpush1.bf16.msra.mxu0 %v8434_v56  ;;  %1705 = vmatpush1.bf16.msra.mxu1 %v8436_v57  ;;  %v9327_v56 = vld [vmem:[%s12297_s3 + $0x40] sm:$0xff]  }
  0x5b   :  { %1653 = vmatprep.subr.bf16.mxu0 %v8443_v58  ;;  %1706 = vmatprep.subr.bf16.mxu1 %v8445_v59  ;;  %v9328_v58 = vld [vmem:[%s12297_s3 + $0xc0] sm:$0xff]  }
  0x5c   :  { %1587 = vmatprep.mubr.bf16.mxu0 %v9472_v3  ;;  %1640 = vmatprep.mubr.bf16.mxu1 %v9472_v3 }
  0x5e   :  { %1654 = vmatpush1.bf16.msra.mxu0 %v8442_v0  ;;  %1707 = vmatpush1.bf16.msra.mxu1 %v8444_v2 }
  0x5f   :  { %1655 = vmatprep.subr.bf16.mxu0 %v8451_v4  ;;  %1708 = vmatprep.subr.bf16.mxu1 %v8453_v5  ;;  %v9331_v4 = vld [vmem:[%s12297_s3 + $0x48] sm:$0xff]  }
  0x61   :  { %8487 = vmatmul.mubr.msk.bf16.gmra.mrb[20].mxu0 %vm456_vm0, %v9865_v8  ;;  %8489 = vmatmul.mubr.msk.bf16.gmra.mrb[20].mxu1 %vm456_vm0, %v9865_v8 }
  0x62   :  { %1656 = vmatpush1.bf16.msra.mxu0 %v8450_v11  ;;  %1709 = vmatpush1.bf16.msra.mxu1 %v8452_v12 }
  0x63   :  { %1657 = vmatprep.subr.bf16.mxu0 %v8459_v13  ;;  %1710 = vmatprep.subr.bf16.mxu1 %v8461_v1  ;;  %v9332_v1 = vld [vmem:[%s12297_s3 + $0xc8] sm:$0xff]  }
  0x64   :  { %1683 = vmatprep.mubr.bf16.mxu0 %v9472_v3  ;;  %1736 = vmatprep.mubr.bf16.mxu1 %v9472_v3 }
  0x66   :  { %1658 = vmatpush1.bf16.msra.mxu0 %v8458_v18  ;;  %1711 = vmatpush1.bf16.msra.mxu1 %v8460_v20 }
  0x67   :  { %1659 = vmatprep.subr.bf16.mxu0 %v8467_v21  ;;  %1712 = vmatprep.subr.bf16.mxu1 %v8469_v22  ;;  %v9334_v22 = vld [vmem:[%s12297_s3 + $0x88] sm:$0xff]  }
  0x6a   :  { %1660 = vmatpush1.bf16.msra.mxu0 %v8466_v27  ;;  %1713 = vmatpush1.bf16.msra.mxu1 %v8468_v28 }
  0x6b   :  { %1661 = vmatprep.subr.bf16.mxu0 %v8475_v29  ;;  %1714 = vmatprep.subr.bf16.mxu1 %v8477_v19  ;;  %v4488_v19 = vld [vmem:[#allocation6 + $0x1b8] sm:$0xff] }
  0x6e   :  { %1662 = vmatpush1.bf16.msra.mxu0 %v8474_v34  ;;  %1715 = vmatpush1.bf16.msra.mxu1 %v8476_v35 }
  0x6f   :  { %1663 = vmatprep.subr.bf16.mxu0 %v8483_v36  ;;  %1716 = vmatprep.subr.bf16.mxu1 %v8485_v37  ;;  %v9336_v36 = vld [vmem:[%s12297_s3 + $0xd0] sm:$0xff]  }
  0x72   :  { %1664 = vmatpush1.bf16.msra.mxu0 %v8482_v38  ;;  %1717 = vmatpush1.bf16.msra.mxu1 %v8484_v39 }
  0x73   :  { %8794 = vmatprep.subr.bf16.mxu0 %v9327_v56  ;;  %8852 = vmatprep.subr.bf16.mxu1 %v9328_v58 }
  0x75   :  { %8490 = vmatmul.mubr.msk.bf16.vlgmr.msra.gmra.mrb[24].mxu0 %vm456_vm0, %v9830_v53  ;;  %8492 = vmatmul.mubr.msk.bf16.vlgmr.msra.gmra.mrb[24].mxu1 %vm456_vm0, %v9830_v53 }
  0x76   :  { %1693 = vmatprep.mubr.bf16.mxu0 %v9472_v3  ;;  %1746 = vmatprep.mubr.bf16.mxu1 %v9472_v3  ;;  %v126_v3 = vlaneseq }
  0x77   :  { %8795 = vmatpush3.bf16.msra.mxu0 %v9329_v61  ;;  %8853 = vmatpush3.bf16.msra.mxu1 %v9330_v63 }
  0x78   :  { %v9932_v41 = vshrl.u32 %v126_v3, 7  ;;  %8796 = vmatprep.subr.bf16.mxu0 %v9331_v4  ;;  %8854 = vmatprep.subr.bf16.mxu1 %v9332_v1 }
  0x7a   :  { %v128_v42 = vsub.s32 0, %v9932_v41  ;;  %v132_v43 = vsub.s32 1, %v9932_v41  ;;  %v136_v44 = vsub.s32 2, %v9932_v41  ;;  %v140_v45 = vsub.s32 3, %v9932_v41 }
  0x7b   :  { %v144_v51 = vsub.s32 4, %v9932_v41  ;;  %v148_v52 = vsub.s32 5, %v9932_v41  ;;  %v152_v60 = vsub.s32 6, %v9932_v41  ;;  %v156_v62 = vsub.s32 7, %v9932_v41  ;;  %8797 = vmatpush3.bf16.msra.mxu0 %v9333_v14  ;;  %8855 = vmatpush3.bf16.msra.mxu1 %v9334_v22  ;;  %v9339_v22 = vld [vmem:[%s12297_s3 + $0x58] sm:$0xff]  }
  0x7c   :  { %v9941_v47 = vrot.slane %v8427_v46, %v128_v42  ;;  %v9943_v48 = vrot.slane %v8427_v46, %v136_v44  ;;  %v9945_v49 = vrot.slane %v8427_v46, %v132_v43  ;;  %v9947_v50 = vrot.slane %v8427_v46, %v140_v45  ;;  %8798 = vmatprep.subr.bf16.mxu0 %v9335_v32 }
  0x7d   :  { %8491 = vmatmul.mubr.msk.bf16.gmra.mrb[28].mxu0 %vm456_vm0, %v9865_v8  ;;  %8493 = vmatmul.mubr.msk.bf16.gmra.mrb[28].mxu1 %vm456_vm0, %v9865_v8  ;;  %v9953_v53 = vrot.slane %v8427_v46, %v144_v51  ;;  %v9957_v54 = vrot.slane %v8427_v46, %v148_v52  ;;  %v9968_v57 = vrot.slane %v9962_v55, %v128_v42  ;;  %v9337_v42 = vld [vmem:[%s12297_s3 + $0x10] sm:$0xff]  }
  0x7e   :  { %v9974_v59 = vrot.slane %v9962_v55, %v132_v43  ;;  %v9985_v2 = vrot.slane %v9962_v55, %v136_v44  ;;  %v9998_v9 = vrot.slane %v9962_v55, %v140_v45  ;;  %8856 = vmatprep.subr.bf16.mxu1 %v9336_v36 }
  0x7f   :  { %8799 = vmatpush3.bf16.msra.mxu0 %v9337_v42 }
  0x80   :  { %8800 = vmatprep.subr.bf16.mxu0 %v9339_v22 }
  0xf4   :  { %v497_v0 = vpop.f32.mrb[0].mxu0  ;;  %v550_v8 = vpop.f32.mrb[0].mxu1 }
  0xf5   :  { %v498_v5 = vadd.f32 %v497_v0, %v9968_v57  ;;  %v499_v6 = vpop.f32.mrb[1].mxu0  ;;  %v551_v12 = vadd.f32 %v550_v8, %v9985_v2  ;;  %v552_v13 = vpop.f32.mrb[1].mxu1 }
  0xf6   :  { %v500_v10 = vadd.f32 %v499_v6, %v9974_v59  ;;  %v501_v11 = vpop.f32.mrb[2].mxu0  ;;  %v553_v20 = vadd.f32 %v552_v13, %v9998_v9  ;;  %v554_v21 = vpop.f32.mrb[2].mxu1 }
  0xf7   :  { %vm675_vm13 = vcmp.gt.f32.partialorder %v498_v5, 0.0  ;;  %v707_v15 = vmul.f32 0.2, %v498_v5  ;;  %v502_v17 = vadd.f32 %v501_v11, %v9968_v57  ;;  %v503_v18 = vpop.f32.mrb[3].mxu0  ;;  %vm677_vm0 = vcmp.gt.f32.partialorder %v551_v12, 0.0  ;;  %v556_v28 = vpop.f32.mrb[3].mxu1 }
  0xf8   :  { %vm676_vm15 = vcmp.gt.f32.partialorder %v500_v10, 0.0  ;;  %v708_v23 = vmul.f32 0.2, %v500_v10  ;;  %v709_v24 = vmul.f32 0.2, %v551_v12  ;;  %v504_v27 = vadd.f32 %v503_v18, %v9974_v59 }
  0xf9   :  { %v739_v25 = vsel %vm675_vm13, %v498_v5, %v707_v15  ;;  %vm683_vm4 = vcmp.gt.f32.partialorder %v502_v17, 0.0  ;;  %v715_v26 = vmul.f32 0.2, %v502_v17  ;;  %vm678_vm6 = vcmp.gt.f32.partialorder %v553_v20, 0.0  ;;  %v9338_v15 = vld [vmem:[%s12297_s3 + $0x90] sm:$0xff]  }
  0xfa   :  { %v740_v29 = vsel %vm676_vm15, %v500_v10, %v708_v23  ;;  %v741_v30 = vsel %vm677_vm0, %v551_v12, %v709_v24  ;;  %v710_v31 = vmul.f32 0.2, %v553_v20  ;;  %vm684_vm8 = vcmp.gt.f32.partialorder %v504_v27, 0.0  ;;  %8857 = vmatpush3.bf16.msra.mxu1 %v9338_v15 }
  0xfb   :  { %v8762_v33 = vpack.c.bf16 %v740_v29, %v739_v25  ;;  %v747_v34 = vsel %vm683_vm4, %v502_v17, %v715_v26  ;;  %v716_v35 = vmul.f32 0.2, %v504_v27  ;;  %v555_v38 = vadd.f32 %v554_v21, %v9985_v2 }
  0xfc   :  { %v742_v37 = vsel %vm678_vm6, %v553_v20, %v710_v31  ;;  %v557_v39 = vadd.f32 %v556_v28, %v9998_v9  ;;  %v507_v3 = vpop.f32.mrb[4].mxu0  ;;  %v560_v56 = vpop.f32.mrb[4].mxu1  ;;  %vm916_vm15 = vsmask.f32 4368  ;;  %v10082_v15 = vrot.slane %v9962_v55, %v144_v51 }
  0xfd   :  { %867 = vst [vmem:[#allocation2] sm:$0xff] %v8762_v33  ;;  %v896_v43 = vsel %vm10024_vm5, %v8762_v33, 0  ;;  %v748_v44 = vsel %vm684_vm8, %v504_v27, %v716_v35  ;;  %v8763_v45 = vpack.c.bf16 %v742_v37, %v741_v30  ;;  %v508_v46 = vadd.f32 %v507_v3, %v9968_v57  ;;  %v509_v58 = vpop.f32.mrb[5].mxu0  ;;  %v562_v0 = vpop.f32.mrb[5].mxu1  ;;  %v9341_v35 = vld [vmem:[%s12297_s3 + $0x18] sm:$0xff]  }
  0xfe   :  { %897 = vst [vmem:[#allocation3 + $0xc0] sm:$0xff] %v896_v43  ;;  %v8766_v61 = vpack.c.bf16 %v748_v44, %v747_v34  ;;  %vm685_vm9 = vcmp.gt.f32.partialorder %v555_v38, 0.0  ;;  %v717_v63 = vmul.f32 0.2, %v555_v38  ;;  %vm686_vm13 = vcmp.gt.f32.partialorder %v557_v39, 0.0  ;;  %v511_v4 = vpop.f32.mrb[6].mxu0  ;;  %8801 = vmatpush3.bf16.msra.mxu0 %v9341_v35 }
  0xff   :  { %868 = vst [vmem:[#allocation2 + $0x8] sm:$0xff] %v8763_v45  ;;  %v899_v5 = vsel %vm10024_vm5, %v8763_v45, 0  ;;  %v718_v6 = vmul.f32 0.2, %v557_v39  ;;  %vm691_vm0 = vcmp.gt.f32.partialorder %v508_v46, 0.0  ;;  %v513_v10 = vpop.f32.mrb[7].mxu0  ;;  %v561_v12 = vadd.f32 %v560_v56, %v9985_v2 }
 0x100   :  { %v723_v8 = vmul.f32 0.2, %v508_v46  ;;  %871 = vst [vmem:[#allocation2 + $0x20] sm:$0xff] %v8766_v61  ;;  %900 = vst [vmem:[#allocation3 + $0xc8] sm:$0xff] %v899_v5  ;;  %v749_v11 = vsel %vm685_vm9, %v555_v38, %v717_v63  ;;  %v510_v13 = vadd.f32 %v509_v58, %v9974_v59  ;;  %v563_v1 = vadd.f32 %v562_v0, %v9998_v9  ;;  %v564_v14 = vpop.f32.mrb[6].mxu1 }
 0x101   :  { %v750_v16 = vsel %vm686_vm13, %v557_v39, %v718_v6  ;;  %v512_v18 = vadd.f32 %v511_v4, %v9968_v57  ;;  %v514_v20 = vadd.f32 %v513_v10, %v9974_v59  ;;  %v566_v21 = vpop.f32.mrb[7].mxu1  ;;  %vm693_vm4 = vcmp.gt.f32.partialorder %v561_v12, 0.0  ;;  %v9340_v59 = vld [vmem:[%s12297_s3 + $0xd8] sm:$0xff]  }
 0x102   :  { %v755_v17 = vsel %vm691_vm0, %v508_v46, %v723_v8  ;;  %v8767_v23 = vpack.c.bf16 %v750_v16, %v749_v11  ;;  %v725_v24 = vmul.f32 0.2, %v561_v12  ;;  %vm692_vm6 = vcmp.gt.f32.partialorder %v510_v13, 0.0  ;;  %8858 = vmatprep.subr.bf16.mxu1 %v9340_v59 }
 0x103   :  { %v724_v25 = vmul.f32 0.2, %v510_v13  ;;  %vm694_vm8 = vcmp.gt.f32.partialorder %v563_v1, 0.0  ;;  %v726_v26 = vmul.f32 0.2, %v563_v1  ;;  %vm699_vm9 = vcmp.gt.f32.partialorder %v512_v18, 0.0 }
 0x104   :  { %v907_v27 = vld [vmem:[#allocation2] sm:$0x88]  ;;  %872 = vst [vmem:[#allocation2 + $0x28] sm:$0xff] %v8767_v23  ;;  %v757_v57 = vsel %vm693_vm4, %v561_v12, %v725_v24  ;;  %v731_v28 = vmul.f32 0.2, %v512_v18  ;;  %vm700_vm13 = vcmp.gt.f32.partialorder %v514_v20, 0.0  ;;  %v565_v34 = vadd.f32 %v564_v14, %v9985_v2 }
 0x105   :  { %v919_v29 = vshrl.u32 %v907_v27, 16  ;;  %v2211_v30 = vld [vmem:[#allocation3 + $0xc0] sm:$0xf]  ;;  %v2227_v31 = vld [vmem:[#allocation3 + $0xc4] sm:$0xf]  ;;  %v756_v32 = vsel %vm692_vm6, %v510_v13, %v724_v25  ;;  %v758_v33 = vsel %vm694_vm8, %v563_v1, %v726_v26  ;;  %v567_v2 = vadd.f32 %v566_v21, %v9998_v9  ;;  %v9342_v13 = vld [vmem:[%s12297_s3 + $0x98] sm:$0xff]  }
 0x106   :  { %vm1075_vm0 = vsmask.f32 7938  ;;  %2219 = vst [vmem:[#allocation4 + $0x18] sm:$0xf] %v2211_v30  ;;  %2236 = vst [vmem:[#allocation4 + $0x38] sm:$0xf] %v2227_v31  ;;  %v8770_v37 = vpack.c.bf16 %v756_v32, %v755_v17  ;;  %v8771_v38 = vpack.c.bf16 %v758_v33, %v757_v57  ;;  %v763_v45 = vsel %vm699_vm9, %v512_v18, %v731_v28  ;;  %8859 = vmatpush3.bf16.msra.mxu1 %v9342_v13 }
 0x107   :  { %v908_v36 = vld [vmem:[#allocation2 + $0x8] sm:$0x88]  ;;  %vm1077_vm4 = vsmask.f32 7954  ;;  %v732_v39 = vmul.f32 0.2, %v514_v20  ;;  %vm10072_vm9 = vmor %vm915_vm14, %vm916_vm15  ;;  %v10087_v16 = vrot.slane %v9962_v55, %v148_v52  ;;  %v10092_v17 = vrot.slane %v9962_v55, %v152_v60 }
 0x108   :  { %v8359_v3 = vrot.slane %v919_v29, 11  ;;  %v911_v42 = vld [vmem:[#allocation2 + $0x20] sm:$0x77]  ;;  %v987_v43 = vld [vmem:[#allocation2 + $0x20] sm:$0x88]  ;;  %v932_v44 = vshrl.u32 %v908_v36, 16  ;;  %v10100_v52 = vrot.slane %v9962_v55, %v156_v62  ;;  %vm10110_vm15 = vmand %vm888_vm10, %vm1075_vm0 }
 0x109   :  { %vm996_vm6 = vsmask.f32 5392  ;;  %v924_v46 = vshrl.u32 %v911_v42, 16  ;;  %v927_v56 = vshll.u32 %v911_v42, 16  ;;  %v999_v58 = vshrl.u32 %v987_v43, 16  ;;  %875 = vst [vmem:[#allocation2 + $0x40] sm:$0xff] %v8770_v37 }
 0x10a   :  { %v1002_v61 = vshll.u32 %v987_v43, 16  ;;  %v2244_v63 = vld [vmem:[#allocation3 + $0xc8] sm:$0xf]  ;;  %876 = vst [vmem:[#allocation2 + $0x48] sm:$0xff] %v8771_v38  ;;  %v10067_v0 = vrot.slane %v932_v44, 11  ;;  %v764_v5 = vsel %vm700_vm13, %v514_v20, %v732_v39  ;;  %vm701_vm8 = vcmp.gt.f32.partialorder %v565_v34, 0.0  ;;  %vm10127_vm10 = vmor %vm995_vm1, %vm996_vm6 }
 0x10b   :  { %2253 = vst [vmem:[#allocation4 + $0x58] sm:$0xf] %v2244_v63  ;;  %v2261_v4 = vld [vmem:[#allocation3 + $0xcc] sm:$0xf]  ;;  %v733_v6 = vmul.f32 0.2, %v565_v34  ;;  %v8774_v12 = vpack.c.bf16 %v764_v5, %v763_v45  ;;  %vm10139_vm1 = vmor %vm1108_vm2, %vm1109_vm3 }
 0x10c   :  { %v926_v8 = vrot.slane %v924_v46, 7  ;;  %v1001_v10 = vrot.slane %v999_v58, 6  ;;  %v1004_v11 = vrot.slane %v1002_v61, 7  ;;  %2270 = vst [vmem:[#allocation4 + $0x78] sm:$0xf] %v2261_v4  ;;  %vm702_vm13 = vcmp.gt.f32.partialorder %v567_v2, 0.0 }
 0x10d   :  { %v912_v1 = vld [vmem:[#allocation2 + $0x28] sm:$0x77]  ;;  %v988_v14 = vld [vmem:[#allocation2 + $0x28] sm:$0x88]  ;;  %v9343_v18 = vld [vmem:[%s12297_s3 + $0x60] sm:$0xff]   ;;  %v765_v28 = vsel %vm701_vm8, %v565_v34, %v733_v6 }
 0x10e   :  { %v929_v20 = vor.u32 %v927_v56, %v926_v8  ;;  %v1005_v21 = vor.u32 %v1004_v11, %v1001_v10  ;;  %v937_v22 = vshrl.u32 %v912_v1, 16  ;;  %v940_v23 = vshll.u32 %v912_v1, 16  ;;  %879 = vst [vmem:[#allocation2 + $0x60] sm:$0x33] %v8774_v12  ;;  %8802 = vmatprep.subr.bf16.mxu0 %v9343_v18  ;;  %vm10116_vm8 = vmand %vm891_vm11, %vm1077_vm4  ;;  %v9344_v10 = vld [vmem:[%s12297_s3 + $0xe0] sm:$0xff]  }
 0x10f   :  { %v1017_v51 = vshrl.u32 %v988_v14, 16  ;;  %v1020_v24 = vshll.u32 %v988_v14, 16  ;;  %v734_v25 = vmul.f32 0.2, %v567_v2  ;;  %vm10147_vm11 = vmor %vm10116_vm8, %vm10110_vm15  ;;  %8860 = vmatprep.subr.bf16.mxu1 %v9344_v10 }
 0x110   :  { %v930_v26 = vsel %vm10072_vm9, %v8359_v3, %v929_v20  ;;  %v1006_v27 = vrot.slane %v1005_v21, 4  ;;  %v939_v57 = vrot.slane %v937_v22, 7  ;;  %v991_v31 = vld [vmem:[#allocation2 + $0x40] sm:$0x77]  ;;  %v603_v39 = vpop.f32.mrb[8].mxu0  ;;  %v656_v56 = vpop.f32.mrb[8].mxu1 }
 0x111   :  { %v976_v59 = vsel %vm10024_vm5, %v930_v26, 0  ;;  %v1019_v29 = vrot.slane %v1017_v51, 6  ;;  %v1022_v30 = vrot.slane %v1020_v24, 7  ;;  %v1092_v32 = vld [vmem:[#allocation2 + $0x40] sm:$0xcc]  ;;  %v766_v33 = vsel %vm702_vm13, %v567_v2, %v734_v25  ;;  %v605_v46 = vpop.f32.mrb[9].mxu0 }
 0x112   :  { %977 = vst [vmem:[#allocation3 + $0xe0] sm:$0xff] %v976_v59  ;;  %v942_v55 = vor.u32 %v940_v23, %v939_v57  ;;  %v1008_v35 = vshrl.u32 %v991_v31, 16  ;;  %v1011_v36 = vshll.u32 %v991_v31, 16  ;;  %v8363_v34 = vrot.slane %v1092_v32, 10  ;;  %v992_v38 = vld [vmem:[#allocation2 + $0x48] sm:$0x77] }
 0x113   :  { %v1023_v3 = vor.u32 %v1022_v30, %v1019_v29  ;;  %v1026_v43 = vshrl.u32 %v992_v38, 16  ;;  %v1029_v44 = vshll.u32 %v992_v38, 16  ;;  %v10120_v45 = vld [vmem:[#allocation2 + $0x48] sm:$0xcc]  ;;  %v8775_v2 = vpack.c.bf16 %v766_v33, %v765_v28  ;;  %v607_v6 = vpop.f32.mrb[10].mxu0  ;;  %v658_v8 = vpop.f32.mrb[9].mxu1 }
 0x114   :  { %v943_v58 = vsel %vm10072_vm9, %v10067_v0, %v942_v55  ;;  %v1010_v63 = vrot.slane %v1008_v35, 6  ;;  %v1013_v4 = vrot.slane %v1011_v36, 7  ;;  %v8364_v5 = vrot.slane %v10120_v45, 10  ;;  %v609_v18 = vpop.f32.mrb[11].mxu0  ;;  %v660_v24 = vpop.f32.mrb[10].mxu1  ;;  %v9345_v29 = vld [vmem:[%s12297_s3 + $0x20] sm:$0xff]  }
 0x115   :  { %v979_v11 = vsel %vm10024_vm5, %v943_v58, 0  ;;  %v1024_v0 = vrot.slane %v1023_v3, 4  ;;  %v1028_v12 = vrot.slane %v1026_v43, 6  ;;  %v1031_v13 = vrot.slane %v1029_v44, 7  ;;  %v1096_v1 = vld [vmem:[#allocation2 + $0x60] sm:$0x33]  ;;  %8803 = vmatpush3.bf16.msra.mxu0 %v9345_v29 }
 0x116   :  { %880 = vst [vmem:[#allocation2 + $0x68] sm:$0x33] %v8775_v2  ;;  %980 = vst [vmem:[#allocation3 + $0xe8] sm:$0xff] %v979_v11  ;;  %v1014_v20 = vor.u32 %v1013_v4, %v1010_v63  ;;  %v1113_v22 = vrot.slane %v1096_v1, 6  ;;  %v604_v23 = vadd.f32 %v603_v39, %v10082_v15  ;;  %v606_v51 = vadd.f32 %v605_v46, %v10087_v16  ;;  %v10156_v59 = vpop.f32.mrb[11].mxu1  ;;  %v9346_v33 = vld [vmem:[%s12297_s3 + $0xa0] sm:$0xff]  }
 0x117   :  { %v1032_v25 = vor.u32 %v1031_v13, %v1028_v12  ;;  %v608_v26 = vadd.f32 %v607_v6, %v10082_v15  ;;  %v657_v57 = vadd.f32 %v656_v56, %v10092_v17  ;;  %v610_v28 = vadd.f32 %v609_v18, %v10087_v16  ;;  %8861 = vmatpush3.bf16.msra.mxu1 %v9346_v33 }
 0x118   :  { %v1015_v30 = vsel %vm10127_vm10, %v1006_v27, %v1014_v20  ;;  %v1114_v31 = vsel %vm10139_vm1, %v8363_v34, %v1113_v22  ;;  %vm679_vm3 = vcmp.gt.f32.partialorder %v604_v23, 0.0  ;;  %v711_v32 = vmul.f32 0.2, %v604_v23  ;;  %v9347_v34 = vld [vmem:[%s12297_s3 + $0x68] sm:$0xff]   ;;  %v613_v42 = vpop.f32.mrb[12].mxu0  ;;  %v666_v4 = vpop.f32.mrb[12].mxu1 }
 0x119   :  { %v2212_v55 = vld [vmem:[#allocation3 + $0xe0] sm:$0xf]  ;;  %v2228_v35 = vld [vmem:[#allocation3 + $0xe4] sm:$0xf]  ;;  %v1081_v36 = vsel %vm10147_vm11, %v1015_v30, 0  ;;  %v1033_v37 = vsel %vm10127_vm10, %v1024_v0, %v1032_v25  ;;  %v1133_v27 = vsel %vm10147_vm11, %v1114_v31, 0  ;;  %8804 = vmatprep.subr.bf16.mxu0 %v9347_v34  ;;  %v659_v58 = vadd.f32 %v658_v8, %v10100_v52 }
 0x11a   :  { %vm680_vm0 = vcmp.gt.f32.partialorder %v606_v51, 0.0  ;;  %2220 = vst [vmem:[#allocation4 + $0x1c] sm:$0xf] %v2212_v55  ;;  %2237 = vst [vmem:[#allocation4 + $0x3c] sm:$0xf] %v2228_v35  ;;  %v1084_v38 = vsel %vm10147_vm11, %v1033_v37, 0  ;;  %v743_v39 = vsel %vm679_vm3, %v604_v23, %v711_v32  ;;  %v661_v63 = vadd.f32 %v660_v24, %v10092_v17 }
 0x11b   :  { %1082 = vst [vmem:[#allocation3 + $0x40] sm:$0xff] %v1081_v36  ;;  %1134 = vst [vmem:[#allocation3 + $0x60] sm:$0xff] %v1133_v27  ;;  %v712_v3 = vmul.f32 0.2, %v606_v51  ;;  %vm687_vm4 = vcmp.gt.f32.partialorder %v608_v26, 0.0  ;;  %vm681_vm6 = vcmp.gt.f32.partialorder %v657_v57, 0.0  ;;  %v663_v45 = vadd.f32 %v10156_v59, %v10100_v52 }
 0x11c   :  { %1085 = vst [vmem:[#allocation3 + $0x48] sm:$0xff] %v1084_v38  ;;  %v719_v43 = vmul.f32 0.2, %v608_v26  ;;  %v713_v44 = vmul.f32 0.2, %v657_v57  ;;  %vm688_vm13 = vcmp.gt.f32.partialorder %v610_v28, 0.0  ;;  %v614_v31 = vadd.f32 %v613_v42, %v10082_v15 }
 0x11d   :  { %v1097_v2 = vld [vmem:[#allocation2 + $0x68] sm:$0x33]  ;;  %v744_v46 = vsel %vm680_vm0, %v606_v51, %v712_v3  ;;  %v720_v56 = vmul.f32 0.2, %v610_v28  ;;  %v615_v6 = vpop.f32.mrb[13].mxu0  ;;  %v668_v18 = vpop.f32.mrb[13].mxu1  ;;  %v667_v36 = vadd.f32 %v666_v4, %v10092_v17 }
 0x11e   :  { %v2245_v10 = vld [vmem:[#allocation3 + $0xe8] sm:$0xf]  ;;  %v2262_v11 = vld [vmem:[#allocation3 + $0xec] sm:$0xf]  ;;  %v1117_v0 = vrot.slane %v1097_v2, 6  ;;  %v8764_v12 = vpack.c.bf16 %v744_v46, %v743_v39  ;;  %v751_v13 = vsel %vm687_vm4, %v608_v26, %v719_v43  ;;  %v745_v1 = vsel %vm681_vm6, %v657_v57, %v713_v44  ;;  %v617_v8 = vpop.f32.mrb[14].mxu0 }
 0x11f   :  { %2254 = vst [vmem:[#allocation4 + $0x5c] sm:$0xf] %v2245_v10  ;;  %2271 = vst [vmem:[#allocation4 + $0x7c] sm:$0xf] %v2262_v11  ;;  %v752_v20 = vsel %vm688_vm13, %v610_v28, %v720_v56  ;;  %vm682_vm15 = vcmp.gt.f32.partialorder %v659_v58, 0.0  ;;  %vm689_vm8 = vcmp.gt.f32.partialorder %v661_v63, 0.0  ;;  %v616_v37 = vadd.f32 %v615_v6, %v10087_v16 }
 0x120   :  { %v714_v22 = vmul.f32 0.2, %v659_v58  ;;  %v670_v23 = vpop.f32.mrb[14].mxu1  ;;  %v1118_v51 = vsel %vm10139_vm1, %v8364_v5, %v1117_v0  ;;  %869 = vst [vmem:[#allocation2 + $0x10] sm:$0xff] %v8764_v12  ;;  %v902_v24 = vsel %vm10024_vm5, %v8764_v12, 0  ;;  %v8768_v25 = vpack.c.bf16 %v752_v20, %v751_v13  ;;  %v619_v57 = vpop.f32.mrb[15].mxu0 }
 0x121   :  { %v721_v26 = vmul.f32 0.2, %v661_v63  ;;  %v10192_v29 = vpop.f32.mrb[15].mxu1  ;;  %v1136_v28 = vsel %vm10147_vm11, %v1118_v51, 0  ;;  %903 = vst [vmem:[#allocation3 + $0xd0] sm:$0xff] %v902_v24  ;;  %v669_v38 = vadd.f32 %v668_v18, %v10100_v52  ;;  %v10204_v39 = vadd.f32 %v617_v8, %v10082_v15  ;;  %v9348_v56 = vld [vmem:[%s12297_s3 + $0xe8] sm:$0xff]  }
 0x122   :  { %v746_v30 = vsel %vm682_vm15, %v659_v58, %v714_v22  ;;  %v2207_v5 = vld [vmem:[#allocation3 + $0x40] sm:$0xf]  ;;  %v2223_v32 = vld [vmem:[#allocation3 + $0x44] sm:$0xf]  ;;  %1137 = vst [vmem:[#allocation3 + $0x68] sm:$0xff] %v1136_v28  ;;  %873 = vst [vmem:[#allocation2 + $0x30] sm:$0xff] %v8768_v25  ;;  %v10207_v3 = vadd.f32 %v619_v57, %v10087_v16  ;;  %v10210_v42 = vadd.f32 %v670_v23, %v10092_v17  ;;  %8862 = vmatprep.subr.bf16.mxu1 %v9348_v56 }
 0x123   :  { %v2208_v33 = vld [vmem:[#allocation3 + $0x60] sm:$0xf]  ;;  %v8765_v55 = vpack.c.bf16 %v746_v30, %v745_v1  ;;  %v753_v35 = vsel %vm689_vm8, %v661_v63, %v721_v26  ;;  %2215 = vst [vmem:[#allocation4 + $0x8] sm:$0xf] %v2207_v5  ;;  %2232 = vst [vmem:[#allocation4 + $0x28] sm:$0xf] %v2223_v32  ;;  %v673_v51 = vadd.f32 %v10192_v29, %v10100_v52 }
 0x124   :  { %v2240_v27 = vld [vmem:[#allocation3 + $0x48] sm:$0xf]  ;;  %v2257_v34 = vld [vmem:[#allocation3 + $0x4c] sm:$0xf]  ;;  %2216 = vst [vmem:[#allocation4 + $0xc] sm:$0xf] %v2208_v33 }
 0x125   :  { %v2224_v59 = vld [vmem:[#allocation3 + $0x64] sm:$0xf]  ;;  %2249 = vst [vmem:[#allocation4 + $0x48] sm:$0xf] %v2240_v27  ;;  %2266 = vst [vmem:[#allocation4 + $0x68] sm:$0xf] %v2257_v34 }
 0x126   :  { %2233 = vst [vmem:[#allocation4 + $0x2c] sm:$0xf] %v2224_v59  ;;  %870 = vst [vmem:[#allocation2 + $0x18] sm:$0xff] %v8765_v55  ;;  %v905_v43 = vsel %vm10024_vm5, %v8765_v55, 0  ;;  %vm690_vm3 = vcmp.gt.f32.partialorder %v663_v45, 0.0  ;;  %vm695_vm0 = vcmp.gt.f32.partialorder %v614_v31, 0.0 }
 0x127   :  { %v722_v44 = vmul.f32 0.2, %v663_v45  ;;  %906 = vst [vmem:[#allocation3 + $0xd8] sm:$0xff] %v905_v43  ;;  %v727_v2 = vmul.f32 0.2, %v614_v31  ;;  %vm697_vm4 = vcmp.gt.f32.partialorder %v667_v36, 0.0 }
 0x128   :  { %v729_v15 = vmul.f32 0.2, %v667_v36  ;;  %vm696_vm6 = vcmp.gt.f32.partialorder %v616_v37, 0.0  ;;  %v728_v46 = vmul.f32 0.2, %v616_v37  ;;  %vm698_vm13 = vcmp.gt.f32.partialorder %v669_v38, 0.0 }
 0x129   :  { %v754_v16 = vsel %vm690_vm3, %v663_v45, %v722_v44  ;;  %v730_v17 = vmul.f32 0.2, %v669_v38  ;;  %v909_v58 = vld [vmem:[#allocation2 + $0x10] sm:$0x88]  ;;  %v759_v4 = vsel %vm695_vm0, %v614_v31, %v727_v2  ;;  %vm703_vm15 = vcmp.gt.f32.partialorder %v10204_v39, 0.0  ;;  %v9349_v10 = vld [vmem:[%s12297_s3 + $0x28] sm:$0xff]  }
 0x12a   :  { %v8769_v63 = vpack.c.bf16 %v754_v16, %v753_v35  ;;  %v761_v6 = vsel %vm697_vm4, %v667_v36, %v729_v15  ;;  %v945_v11 = vshrl.u32 %v909_v58, 16  ;;  %v2278_v0 = vld [vmem:[#allocation3 + $0xd0] sm:$0xf]  ;;  %v2295_v12 = vld [vmem:[#allocation3 + $0xd4] sm:$0xf]  ;;  %v760_v13 = vsel %vm696_vm6, %v616_v37, %v728_v46  ;;  %8805 = vmatpush3.bf16.msra.mxu0 %v9349_v10  ;;  %v9350_v2 = vld [vmem:[%s12297_s3 + $0xa8] sm:$0xff]  }
 0x12b   :  { %v762_v1 = vsel %vm698_vm13, %v669_v38, %v730_v17  ;;  %vm704_vm8 = vcmp.gt.f32.partialorder %v10207_v3, 0.0  ;;  %v2241_v18 = vld [vmem:[#allocation3 + $0x68] sm:$0xf]  ;;  %v2258_v20 = vld [vmem:[#allocation3 + $0x6c] sm:$0xf]  ;;  %v8772_v8 = vpack.c.bf16 %v760_v13, %v759_v4  ;;  %vm705_vm3 = vcmp.gt.f32.partialorder %v10210_v42, 0.0  ;;  %8863 = vmatpush3.bf16.msra.mxu1 %v9350_v2 }
 0x12c   :  { %2287 = vst [vmem:[#allocation4 + $0x98] sm:$0xf] %v2278_v0  ;;  %2304 = vst [vmem:[#allocation4 + $0xb8] sm:$0xf] %v2295_v12  ;;  %v913_v22 = vld [vmem:[#allocation2 + $0x30] sm:$0x77]  ;;  %v8773_v23 = vpack.c.bf16 %v762_v1, %v761_v6 }
 0x12d   :  { %874 = vst [vmem:[#allocation2 + $0x38] sm:$0xff] %v8769_v63  ;;  %2250 = vst [vmem:[#allocation4 + $0x4c] sm:$0xf] %v2241_v18  ;;  %v8361_v24 = vrot.slane %v945_v11, 11  ;;  %v950_v25 = vshrl.u32 %v913_v22, 16  ;;  %v953_v26 = vshll.u32 %v913_v22, 16 }
 0x12e   :  { %2267 = vst [vmem:[#allocation4 + $0x6c] sm:$0xf] %v2258_v20  ;;  %v989_v57 = vld [vmem:[#allocation2 + $0x30] sm:$0x88]  ;;  %v910_v45 = vld [vmem:[#allocation2 + $0x18] sm:$0x88] }
 0x12f   :  { %v1035_v28 = vshrl.u32 %v989_v57, 16  ;;  %v1038_v30 = vshll.u32 %v989_v57, 16  ;;  %877 = vst [vmem:[#allocation2 + $0x50] sm:$0xff] %v8772_v8  ;;  %878 = vst [vmem:[#allocation2 + $0x58] sm:$0xff] %v8773_v23  ;;  %v735_v31 = vmul.f32 0.2, %v10204_v39 }
 0x130   :  { %v952_v5 = vrot.slane %v950_v25, 7  ;;  %v958_v32 = vshrl.u32 %v910_v45, 16  ;;  %v2312_v33 = vld [vmem:[#allocation3 + $0xd8] sm:$0xf]  ;;  %v2329_v52 = vld [vmem:[#allocation3 + $0xdc] sm:$0xf] }
 0x131   :  { %v1037_v29 = vrot.slane %v1035_v28, 6  ;;  %v1040_v55 = vrot.slane %v1038_v30, 7  ;;  %2321 = vst [vmem:[#allocation4 + $0xd8] sm:$0xf] %v2312_v33  ;;  %2338 = vst [vmem:[#allocation4 + $0xf8] sm:$0xf] %v2329_v52  ;;  %v767_v35 = vsel %vm703_vm15, %v10204_v39, %v735_v31 }
 0x132   :  { %v736_v36 = vmul.f32 0.2, %v10207_v3  ;;  %v955_v37 = vor.u32 %v953_v26, %v952_v5  ;;  %v10230_v27 = vrot.slane %v958_v32, 11  ;;  %v737_v34 = vmul.f32 0.2, %v10210_v42  ;;  %v1579_v44 = vpop.f32.mrb[16].mxu0 }
 0x133   :  { %vm706_vm0 = vcmp.gt.f32.partialorder %v673_v51, 0.0  ;;  %v1041_v59 = vor.u32 %v1040_v55, %v1037_v29  ;;  %v738_v43 = vmul.f32 0.2, %v673_v51  ;;  %v10245_v56 = vadd.f32 %v1579_v44, %v9941_v47  ;;  %v1581_v58 = vpop.f32.mrb[17].mxu0  ;;  %v9351_v12 = vld [vmem:[%s12297_s3 + $0x70] sm:$0xff]  }
 0x134   :  { %v768_v38 = vsel %vm704_vm8, %v10207_v3, %v736_v36  ;;  %v956_v39 = vsel %vm10072_vm9, %v8361_v24, %v955_v37  ;;  %v914_v15 = vld [vmem:[#allocation2 + $0x38] sm:$0x77]  ;;  %v990_v16 = vld [vmem:[#allocation2 + $0x38] sm:$0x88]  ;;  %v769_v17 = vsel %vm705_vm3, %v10210_v42, %v737_v34  ;;  %v1632_v3 = vpop.f32.mrb[16].mxu1  ;;  %v10249_v0 = vpop.f32.mrb[18].mxu0  ;;  %8806 = vmatprep.subr.bf16.mxu0 %v9351_v12 }
 0x135   :  { %v8776_v46 = vpack.c.bf16 %v768_v38, %v767_v35  ;;  %v982_v63 = vsel %vm10024_vm5, %v956_v39, 0  ;;  %v1042_v4 = vrot.slane %v1041_v59, 4  ;;  %v963_v6 = vshrl.u32 %v914_v15, 16  ;;  %v1634_v11 = vpop.f32.mrb[17].mxu1  ;;  %v1585_v29 = vpop.f32.mrb[19].mxu0  ;;  %v9352_v55 = vld [vmem:[%s12297_s3 + $0xf0] sm:$0xff]  }
 0x136   :  { %v966_v10 = vshll.u32 %v914_v15, 16  ;;  %983 = vst [vmem:[#allocation3 + $0xf0] sm:$0xff] %v982_v63  ;;  %v1053_v42 = vshrl.u32 %v990_v16, 16  ;;  %v1056_v13 = vshll.u32 %v990_v16, 16  ;;  %v993_v1 = vld [vmem:[#allocation2 + $0x50] sm:$0x77]  ;;  %v770_v20 = vsel %vm706_vm0, %v673_v51, %v738_v43  ;;  %8864 = vmatprep.subr.bf16.mxu1 %v9352_v55 }
 0x137   :  { %v10254_v18 = vld [vmem:[#allocation2 + $0x50] sm:$0xcc]  ;;  %881 = vst [vmem:[#allocation2 + $0x70] sm:$0x33] %v8776_v46  ;;  %v10258_v22 = vadd.f32 %v1632_v3, %v9943_v48  ;;  %v965_v8 = vrot.slane %v963_v6, 7  ;;  %v1044_v23 = vshrl.u32 %v993_v1, 16  ;;  %v8777_v34 = vpack.c.bf16 %v770_v20, %v769_v17 }
 0x138   :  { %v1047_v24 = vshll.u32 %v993_v1, 16  ;;  %v8365_v25 = vrot.slane %v10254_v18, 10  ;;  %v994_v26 = vld [vmem:[#allocation2 + $0x58] sm:$0x77]  ;;  %v1055_v57 = vrot.slane %v1053_v42, 6  ;;  %v1058_v28 = vrot.slane %v1056_v13, 7 }
 0x139   :  { %v1062_v30 = vshrl.u32 %v994_v26, 16  ;;  %v1065_v45 = vshll.u32 %v994_v26, 16  ;;  %v10261_v31 = vld [vmem:[#allocation2 + $0x58] sm:$0xcc]  ;;  %v968_v5 = vor.u32 %v966_v10, %v965_v8  ;;  %v1046_v32 = vrot.slane %v1044_v23, 6  ;;  %v1636_v52 = vpop.f32.mrb[18].mxu1 }
 0x13a   :  { %v1049_v33 = vrot.slane %v1047_v24, 7  ;;  %v8366_v51 = vrot.slane %v10261_v31, 10  ;;  %v1059_v35 = vor.u32 %v1058_v28, %v1055_v57  ;;  %v10267_v59 = vpop.f32.mrb[19].mxu1  ;;  %v9353_v38 = vld [vmem:[%s12297_s3 + $0x30] sm:$0xff]   ;;  %vm1757_vm4 = vcmp.gt.f32.partialorder %v10245_v56, 0.0  ;;  %v10277_v39 = vpop.f32.mrb[20].mxu0 }
 0x13b   :  { %v1064_v36 = vrot.slane %v1062_v30, 6  ;;  %v1067_v37 = vrot.slane %v1065_v45, 7  ;;  %v969_v43 = vsel %vm10072_vm9, %v10230_v27, %v968_v5  ;;  %v1789_v2 = vmul.f32 0.2, %v10245_v56  ;;  %882 = vst [vmem:[#allocation2 + $0x78] sm:$0x33] %v8777_v34  ;;  %8807 = vmatpush3.bf16.msra.mxu0 %v9353_v38 }
 0x13c   :  { %v1050_v44 = vor.u32 %v1049_v33, %v1046_v32  ;;  %v985_v15 = vsel %vm10024_vm5, %v969_v43, 0  ;;  %v1060_v16 = vrot.slane %v1059_v35, 4  ;;  %vm1759_vm6 = vcmp.gt.f32.partialorder %v10258_v22, 0.0  ;;  %v10282_v17 = vpop.f32.mrb[20].mxu1  ;;  %v10284_v3 = vpop.f32.mrb[21].mxu0  ;;  %v9355_v32 = vld [vmem:[%s12297_s3 + $0x78] sm:$0xff]  }
 0x13d   :  { %v1068_v46 = vor.u32 %v1067_v37, %v1064_v36  ;;  %v2279_v27 = vld [vmem:[#allocation3 + $0xf0] sm:$0xf]  ;;  %v2296_v63 = vld [vmem:[#allocation3 + $0xf4] sm:$0xf]  ;;  %986 = vst [vmem:[#allocation3 + $0xf8] sm:$0xff] %v985_v15  ;;  %v1821_v12 = vsel %vm1757_vm4, %v10245_v56, %v1789_v2  ;;  %v1582_v42 = vadd.f32 %v1581_v58, %v9945_v49  ;;  %v1635_v13 = vadd.f32 %v1634_v11, %v9947_v50  ;;  %v10298_v8 = vpop.f32.mrb[21].mxu1 }
 0x13e   :  { %v1051_v6 = vsel %vm10127_vm10, %v1042_v4, %v1050_v44  ;;  %v1098_v10 = vld [vmem:[#allocation2 + $0x70] sm:$0x33]  ;;  %2288 = vst [vmem:[#allocation4 + $0x9c] sm:$0xf] %v2279_v27  ;;  %2305 = vst [vmem:[#allocation4 + $0xbc] sm:$0xf] %v2296_v63  ;;  %v1584_v45 = vadd.f32 %v10249_v0, %v9941_v47  ;;  %v1586_v35 = vadd.f32 %v1585_v29, %v9945_v49  ;;  %8808 = vmatprep.subr.bf16.mxu0 %v9355_v32 }
 0x13f   :  { %v1087_v1 = vsel %vm10147_vm11, %v1051_v6, 0  ;;  %v1069_v18 = vsel %vm10127_vm10, %v1060_v16, %v1068_v46  ;;  %v1121_v20 = vrot.slane %v1098_v10, 6  ;;  %v1791_v4 = vmul.f32 0.2, %v10258_v22  ;;  %v10300_v23 = vpop.f32.mrb[22].mxu0  ;;  %v9354_v56 = vld [vmem:[%s12297_s3 + $0xb0] sm:$0xff]  }
 0x140   :  { %1088 = vst [vmem:[#allocation3 + $0x50] sm:$0xff] %v1087_v1  ;;  %v1090_v58 = vsel %vm10147_vm11, %v1069_v18, 0  ;;  %vm1758_vm13 = vcmp.gt.f32.partialorder %v1582_v42, 0.0  ;;  %v1790_v11 = vmul.f32 0.2, %v1582_v42  ;;  %vm1760_vm15 = vcmp.gt.f32.partialorder %v1635_v13, 0.0  ;;  %8865 = vmatpush3.bf16.msra.mxu1 %v9354_v56 }
 0x141   :  { %v10307_v24 = vpop.f32.mrb[22].mxu1  ;;  %v10309_v26 = vpop.f32.mrb[23].mxu0  ;;  %1091 = vst [vmem:[#allocation3 + $0x58] sm:$0xff] %v1090_v58  ;;  %v1122_v57 = vsel %vm10139_vm1, %v8365_v25, %v1121_v20  ;;  %v1823_v28 = vsel %vm1759_vm6, %v10258_v22, %v1791_v4  ;;  %v1792_v30 = vmul.f32 0.2, %v1635_v13  ;;  %v1637_v25 = vadd.f32 %v1636_v52, %v9943_v48  ;;  %v9356_v37 = vld [vmem:[%s12297_s3 + $0xf8] sm:$0xff]  }
 0x142   :  { %v10318_v5 = vpop.f32.mrb[23].mxu1  ;;  %v1139_v33 = vsel %vm10147_vm11, %v1122_v57, 0  ;;  %v1822_v55 = vsel %vm1758_vm13, %v1582_v42, %v1790_v11  ;;  %vm1765_vm8 = vcmp.gt.f32.partialorder %v1584_v45, 0.0  ;;  %v1797_v0 = vmul.f32 0.2, %v1584_v45  ;;  %8866 = vmatprep.subr.bf16.mxu1 %v9356_v37  ;;  %v9357_v46 = vld [vmem:[%s12297_s3 + $0x38] sm:$0xff]  }
 0x143   :  { %1140 = vst [vmem:[#allocation3 + $0x70] sm:$0xff] %v1139_v33  ;;  %v8778_v22 = vpack.c.bf16 %v1822_v55, %v1821_v12  ;;  %v1824_v36 = vsel %vm1760_vm15, %v1635_v13, %v1792_v30  ;;  %v1099_v34 = vld [vmem:[#allocation2 + $0x78] sm:$0x33]  ;;  %vm1767_vm3 = vcmp.gt.f32.partialorder %v1637_v25, 0.0  ;;  %v1799_v43 = vmul.f32 0.2, %v1637_v25  ;;  %8809 = vmatpush3.bf16.msra.mxu0 %v9357_v46 }
 0x144   :  { %v8779_v38 = vpack.c.bf16 %v1824_v36, %v1823_v28  ;;  %vm1766_vm0 = vcmp.gt.f32.partialorder %v1586_v35, 0.0  ;;  %v2313_v44 = vld [vmem:[#allocation3 + $0xf8] sm:$0xf]  ;;  %v2330_v52 = vld [vmem:[#allocation3 + $0xfc] sm:$0xf]  ;;  %v1125_v2 = vrot.slane %v1099_v34, 6  ;;  %v1829_v15 = vsel %vm1765_vm8, %v1584_v45, %v1797_v0 }
 0x145   :  { %1950 = vst [vmem:[#allocation2 + $0x80] sm:$0xff] %v8778_v22  ;;  %v1972_v29 = vsel %vm10024_vm5, %v8778_v22, 0  ;;  %v1639_v16 = vadd.f32 %v10267_v59, %v9947_v50  ;;  %2322 = vst [vmem:[#allocation4 + $0xdc] sm:$0xf] %v2313_v44  ;;  %v1831_v63 = vsel %vm1767_vm3, %v1637_v25, %v1799_v43  ;;  %v1798_v6 = vmul.f32 0.2, %v1586_v35 }
 0x146   :  { %2339 = vst [vmem:[#allocation4 + $0xfc] sm:$0xf] %v2330_v52  ;;  %1973 = vst [vmem:[#allocation3 + $0x80] sm:$0xff] %v1972_v29  ;;  %v1975_v27 = vsel %vm10024_vm5, %v8779_v38, 0  ;;  %v1590_v10 = vadd.f32 %v10277_v39, %v9941_v47  ;;  %v1126_v42 = vsel %vm10139_vm1, %v8366_v51, %v1125_v2  ;;  %v1643_v13 = vadd.f32 %v10282_v17, %v9943_v48  ;;  %v9358_v39 = vld [vmem:[%s12297_s3 + $0xb8] sm:$0xff]   ;;  %v9471_v44 = vld [vmem:[%s12296_s2 + $0x8] sm:$0xff] }
 0x147   :  { %1951 = vst [vmem:[#allocation2 + $0x88] sm:$0xff] %v8779_v38  ;;  %v2274_v12 = vld [vmem:[#allocation3 + $0x50] sm:$0xf]  ;;  %v2291_v59 = vld [vmem:[#allocation3 + $0x54] sm:$0xf]  ;;  %1976 = vst [vmem:[#allocation3 + $0x88] sm:$0xff] %v1975_v27  ;;  %v1592_v1 = vadd.f32 %v10284_v3, %v9945_v49  ;;  %v1830_v20 = vsel %vm1766_vm0, %v1586_v35, %v1798_v6  ;;  %v1645_v17 = vadd.f32 %v10298_v8, %v9947_v50  ;;  %8867 = vmatpush3.bf16.msra.mxu1 %v9358_v39 }
 0x148   :  { %vm1768_vm4 = vcmp.gt.f32.partialorder %v1639_v16, 0.0  ;;  %2283 = vst [vmem:[#allocation4 + $0x88] sm:$0xf] %v2274_v12  ;;  %2300 = vst [vmem:[#allocation4 + $0xa8] sm:$0xf] %v2291_v59  ;;  %v1142_v51 = vsel %vm10147_vm11, %v1126_v42, 0  ;;  %v8782_v3 = vpack.c.bf16 %v1830_v20, %v1829_v15  ;;  %v1594_v30 = vadd.f32 %v10300_v23, %v9941_v47 }
 0x149   :  { %v2308_v18 = vld [vmem:[#allocation3 + $0x58] sm:$0xf]  ;;  %v2325_v31 = vld [vmem:[#allocation3 + $0x5c] sm:$0xf]  ;;  %v1800_v4 = vmul.f32 0.2, %v1639_v16  ;;  %v1647_v45 = vadd.f32 %v10307_v24, %v9943_v48  ;;  %v1596_v48 = vadd.f32 %v10309_v26, %v9945_v49  ;;  %v1649_v43 = vadd.f32 %v10318_v5, %v9947_v50 }
 0x14a   :  { %2317 = vst [vmem:[#allocation4 + $0xc8] sm:$0xf] %v2308_v18  ;;  %2334 = vst [vmem:[#allocation4 + $0xe8] sm:$0xf] %v2325_v31  ;;  %vm1773_vm6 = vcmp.gt.f32.partialorder %v1590_v10, 0.0  ;;  %vm1775_vm13 = vcmp.gt.f32.partialorder %v1643_v13, 0.0  ;;  %v10375_v52 = vrot.slane %v9471_v44, %v152_v60  ;;  %v10381_v50 = vrot.slane %v9471_v44, %v156_v62 }
 0x14b   :  { %1143 = vst [vmem:[#allocation3 + $0x78] sm:$0xff] %v1142_v51  ;;  %v1805_v56 = vmul.f32 0.2, %v1590_v10  ;;  %v2275_v58 = vld [vmem:[#allocation3 + $0x70] sm:$0xf]  ;;  %v1832_v57 = vsel %vm1768_vm4, %v1639_v16, %v1800_v4  ;;  %1954 = vst [vmem:[#allocation2 + $0xa0] sm:$0xff] %v8782_v3 }
 0x14c   :  { %v2292_v11 = vld [vmem:[#allocation3 + $0x74] sm:$0xf]  ;;  %v1807_v28 = vmul.f32 0.2, %v1643_v13  ;;  %2284 = vst [vmem:[#allocation4 + $0x8c] sm:$0xf] %v2275_v58  ;;  %v8783_v8 = vpack.c.bf16 %v1832_v57, %v1831_v63 }
 0x14d   :  { %2301 = vst [vmem:[#allocation4 + $0xac] sm:$0xf] %v2292_v11  ;;  %v1837_v32 = vsel %vm1773_vm6, %v1590_v10, %v1805_v56  ;;  %vm1774_vm15 = vcmp.gt.f32.partialorder %v1592_v1, 0.0  ;;  %v1806_v33 = vmul.f32 0.2, %v1592_v1  ;;  %vm1776_vm8 = vcmp.gt.f32.partialorder %v1645_v17, 0.0 }
 0x14e   :  { %v1983_v55 = vld [vmem:[#allocation2 + $0x80] sm:$0x88]  ;;  %v1839_v25 = vsel %vm1775_vm13, %v1643_v13, %v1807_v28  ;;  %v1808_v35 = vmul.f32 0.2, %v1645_v17  ;;  %vm1781_vm3 = vcmp.gt.f32.partialorder %v1594_v30, 0.0  ;;  %1955 = vst [vmem:[#allocation2 + $0xa8] sm:$0xff] %v8783_v8 }
 0x14f   :  { %v1992_v22 = vshrl.u32 %v1983_v55, 16  ;;  %v2209_v36 = vld [vmem:[#allocation3 + $0x80] sm:$0xf]  ;;  %v2225_v0 = vld [vmem:[#allocation3 + $0x84] sm:$0xf]  ;;  %v1838_v47 = vsel %vm1774_vm15, %v1592_v1, %v1806_v33  ;;  %vm1783_vm0 = vcmp.gt.f32.partialorder %v1647_v45, 0.0 }
 0x150   :  { %2217 = vst [vmem:[#allocation4 + $0x10] sm:$0xf] %v2209_v36  ;;  %2234 = vst [vmem:[#allocation4 + $0x30] sm:$0xf] %v2225_v0  ;;  %v1984_v23 = vld [vmem:[#allocation2 + $0x88] sm:$0x88]  ;;  %v8786_v34 = vpack.c.bf16 %v1838_v47, %v1837_v32  ;;  %v1840_v38 = vsel %vm1776_vm8, %v1645_v17, %v1808_v35 }
 0x151   :  { %v2242_v24 = vld [vmem:[#allocation3 + $0x88] sm:$0xf]  ;;  %v2259_v37 = vld [vmem:[#allocation3 + $0x8c] sm:$0xf]  ;;  %v10377_v49 = vrot.slane %v1992_v22, 11  ;;  %v2005_v26 = vshrl.u32 %v1984_v23, 16  ;;  %v8787_v2 = vpack.c.bf16 %v1840_v38, %v1839_v25 }
 0x152   :  { %2251 = vst [vmem:[#allocation4 + $0x50] sm:$0xf] %v2242_v24  ;;  %2268 = vst [vmem:[#allocation4 + $0x70] sm:$0xf] %v2259_v37  ;;  %v1813_v29 = vmul.f32 0.2, %v1594_v30 }
 0x153   :  { %v2309_v15 = vld [vmem:[#allocation3 + $0x78] sm:$0xf]  ;;  %v2326_v16 = vld [vmem:[#allocation3 + $0x7c] sm:$0xf]  ;;  %1958 = vst [vmem:[#allocation2 + $0xc0] sm:$0xff] %v8786_v34  ;;  %v10383_v5 = vrot.slane %v2005_v26, 11 }
 0x154   :  { %v1815_v46 = vmul.f32 0.2, %v1647_v45  ;;  %2318 = vst [vmem:[#allocation4 + $0xcc] sm:$0xf] %v2309_v15  ;;  %2335 = vst [vmem:[#allocation4 + $0xec] sm:$0xf] %v2326_v16  ;;  %v1845_v60 = vsel %vm1781_vm3, %v1594_v30, %v1813_v29 }
 0x155   :  { %1959 = vst [vmem:[#allocation2 + $0xc8] sm:$0xff] %v8787_v2  ;;  %vm1782_vm4 = vcmp.gt.f32.partialorder %v1596_v48, 0.0  ;;  %v1814_v27 = vmul.f32 0.2, %v1596_v48  ;;  %v1685_v63 = vpop.f32.mrb[24].mxu0  ;;  %v1738_v6 = vpop.f32.mrb[24].mxu1 }
 0x156   :  { %v1987_v10 = vld [vmem:[#allocation2 + $0xa0] sm:$0x77]  ;;  %v2060_v12 = vld [vmem:[#allocation2 + $0xa0] sm:$0x88]  ;;  %v10387_v59 = vsel %vm1783_vm0, %v1647_v45, %v1815_v46  ;;  %vm1784_vm6 = vcmp.gt.f32.partialorder %v1649_v43, 0.0  ;;  %v10390_v41 = vadd.f32 %v1685_v63, %v9953_v53  ;;  %v10393_v62 = vadd.f32 %v1738_v6, %v10375_v52  ;;  %v1687_v42 = vpop.f32.mrb[25].mxu0 }
 0x157   :  { %v1997_v13 = vshrl.u32 %v1987_v10, 16  ;;  %v2000_v1 = vshll.u32 %v1987_v10, 16  ;;  %v2069_v39 = vshrl.u32 %v2060_v12, 16  ;;  %v2072_v18 = vshll.u32 %v2060_v12, 16  ;;  %v1740_v31 = vpop.f32.mrb[25].mxu1  ;;  %v10395_v51 = vpop.f32.mrb[26].mxu0 }
 0x158   :  { %v1988_v20 = vld [vmem:[#allocation2 + $0xa8] sm:$0x77]  ;;  %v2061_v4 = vld [vmem:[#allocation2 + $0xa8] sm:$0x88]  ;;  %v1846_v17 = vsel %vm1782_vm4, %v1596_v48, %v1814_v27  ;;  %v1816_v3 = vmul.f32 0.2, %v1649_v43  ;;  %v10399_v56 = vadd.f32 %v1687_v42, %v9957_v54  ;;  %v10402_v58 = vadd.f32 %v1740_v31, %v10381_v50 }
 0x159   :  { %v1999_v11 = vrot.slane %v1997_v13, 7  ;;  %v2071_v57 = vrot.slane %v2069_v39, 6  ;;  %v2074_v28 = vrot.slane %v2072_v18, 7  ;;  %v2010_v30 = vshrl.u32 %v1988_v20, 16  ;;  %v10404_v45 = vpop.f32.mrb[26].mxu1  ;;  %v10406_v8 = vpop.f32.mrb[27].mxu0 }
 0x15a   :  { %v2013_v32 = vshll.u32 %v1988_v20, 16  ;;  %v2087_v33 = vshrl.u32 %v2061_v4, 16  ;;  %v2090_v55 = vshll.u32 %v2061_v4, 16  ;;  %v8790_v25 = vpack.c.bf16 %v1846_v17, %v1845_v60  ;;  %v10408_v35 = vpop.f32.mrb[27].mxu1  ;;  %v2064_v47 = vld [vmem:[#allocation2 + $0xc0] sm:$0x77] }
 0x15b   :  { %v2002_v22 = vor.u32 %v2000_v1, %v1999_v11  ;;  %v2075_v36 = vor.u32 %v2074_v28, %v2071_v57  ;;  %v2012_v0 = vrot.slane %v2010_v30, 7  ;;  %v10410_v48 = vld [vmem:[#allocation2 + $0xc0] sm:$0xcc]  ;;  %v1848_v23 = vsel %vm1784_vm6, %v1649_v43, %v1816_v3  ;;  %v10419_v46 = vpop.f32.mrb[28].mxu0  ;;  %v10421_v60 = vpop.f32.mrb[28].mxu1 }
 0x15c   :  { %v2089_v24 = vrot.slane %v2087_v33, 6  ;;  %v2092_v37 = vrot.slane %v2090_v55, 7  ;;  %v2078_v34 = vshrl.u32 %v2064_v47, 16  ;;  %v2081_v38 = vshll.u32 %v2064_v47, 16  ;;  %v2065_v44 = vld [vmem:[#allocation2 + $0xc8] sm:$0x77] }
 0x15d   :  { %1962 = vst [vmem:[#allocation2 + $0xe0] sm:$0x33] %v8790_v25  ;;  %v2003_v26 = vsel %vm10072_vm9, %v10377_v49, %v2002_v22  ;;  %v2076_v2 = vrot.slane %v2075_v36, 4  ;;  %v2015_v29 = vor.u32 %v2013_v32, %v2012_v0  ;;  %v8514_v15 = vrot.slane %v10410_v48, 10  ;;  %v10417_v16 = vld [vmem:[#allocation2 + $0xc8] sm:$0xcc] }
 0x15e   :  { %v2049_v43 = vsel %vm10024_vm5, %v2003_v26, 0  ;;  %v2093_v27 = vor.u32 %v2092_v37, %v2089_v24  ;;  %v2080_v63 = vrot.slane %v2078_v34, 6  ;;  %v2083_v6 = vrot.slane %v2081_v38, 7  ;;  %v10425_v10 = vpop.f32.mrb[29].mxu0  ;;  %v10427_v12 = vpop.f32.mrb[29].mxu1  ;;  %v9359_v31 = vld [vmem:[%s12297_s3 + $0x140] sm:$0xff]  }
 0x15f   :  { %2050 = vst [vmem:[#allocation3 + $0xa0] sm:$0xff] %v2049_v43  ;;  %v2016_v49 = vsel %vm10072_vm9, %v10383_v5, %v2015_v29  ;;  %v2096_v42 = vshrl.u32 %v2065_v44, 16  ;;  %v2099_v13 = vshll.u32 %v2065_v44, 16  ;;  %v8515_v1 = vrot.slane %v10417_v16, 10  ;;  %v10433_v39 = vpop.f32.mrb[30].mxu0  ;;  %v10435_v18 = vpop.f32.mrb[30].mxu1  ;;  %8910 = vmatprep.subr.bf16.mxu0 %v9359_v31 }
 0x160   :  { %v2052_v20 = vsel %vm10024_vm5, %v2016_v49, 0  ;;  %v2094_v4 = vrot.slane %v2093_v27, 4  ;;  %v2084_v17 = vor.u32 %v2083_v6, %v2080_v63  ;;  %v8791_v3 = vpack.c.bf16 %v1848_v23, %v10387_v59  ;;  %v10443_v5 = vpop.f32.mrb[31].mxu0  ;;  %v10445_v11 = vpop.f32.mrb[31].mxu1  ;;  %v9361_v32 = vld [vmem:[%s12297_s3 + $0x1c0] sm:$0xff]  }
 0x161   :  { %2053 = vst [vmem:[#allocation3 + $0xa8] sm:$0xff] %v2052_v20  ;;  %v2098_v57 = vrot.slane %v2096_v42, 6  ;;  %v2101_v28 = vrot.slane %v2099_v13, 7  ;;  %vm1761_vm13 = vcmp.gt.f32.partialorder %v10390_v41, 0.0  ;;  %v1793_v30 = vmul.f32 0.2, %v10390_v41  ;;  %8968 = vmatprep.subr.bf16.mxu1 %v9361_v32 }
 0x162   :  { %v2085_v33 = vsel %vm10127_vm10, %v2076_v2, %v2084_v17  ;;  %1963 = vst [vmem:[#allocation2 + $0xe8] sm:$0x33] %v8791_v3  ;;  %vm1763_vm15 = vcmp.gt.f32.partialorder %v10393_v62, 0.0  ;;  %v1795_v59 = vmul.f32 0.2, %v10393_v62  ;;  %vm1762_vm8 = vcmp.gt.f32.partialorder %v10399_v56, 0.0 }
 0x163   :  { %v2145_v55 = vsel %vm10147_vm11, %v2085_v33, 0  ;;  %v2102_v25 = vor.u32 %v2101_v28, %v2098_v57  ;;  %v1825_v36 = vsel %vm1761_vm13, %v10390_v41, %v1793_v30  ;;  %v1794_v0 = vmul.f32 0.2, %v10399_v56  ;;  %v2411_v30 = vld [vmem:[#allocation5 + $0x4] sm:$0xf] }
 0x164   :  { %v2160_v22 = vld [vmem:[#allocation2 + $0xe0] sm:$0x33]  ;;  %2146 = vst [vmem:[#allocation3] sm:$0xff] %v2145_v55  ;;  %v1827_v48 = vsel %vm1763_vm15, %v10393_v62, %v1795_v59  ;;  %vm1764_vm3 = vcmp.gt.f32.partialorder %v10402_v58, 0.0  ;;  %v1796_v23 = vmul.f32 0.2, %v10402_v58  ;;  %v1690_v34 = vadd.f32 %v10395_v51, %v9953_v53 }
 0x165   :  { %v2174_v47 = vrot.slane %v2160_v22, 6  ;;  %v2103_v24 = vsel %vm10127_vm10, %v2094_v4, %v2102_v25  ;;  %v1826_v37 = vsel %vm1762_vm8, %v10399_v56, %v1794_v0  ;;  %v1743_v41 = vadd.f32 %v10404_v45, %v10375_v52  ;;  %v2397_v59 = vld [vmem:[#allocation4 + $0x8] sm:$0xf]  ;;  %v2417_v55 = vld [vmem:[#allocation5 + $0x84] sm:$0xf] }
 0x166   :  { %v2210_v38 = vld [vmem:[#allocation3 + $0xa0] sm:$0xf]  ;;  %v2226_v44 = vld [vmem:[#allocation3 + $0xa4] sm:$0xf]  ;;  %v2148_v62 = vsel %vm10147_vm11, %v2103_v24, 0  ;;  %v8780_v2 = vpack.c.bf16 %v1826_v37, %v1825_v36  ;;  %v1828_v29 = vsel %vm1764_vm3, %v10402_v58, %v1796_v23  ;;  %vm1769_vm0 = vcmp.gt.f32.partialorder %v1690_v34, 0.0 }
 0x167   :  { %v2175_v26 = vsel %vm10139_vm1, %v8514_v15, %v2174_v47  ;;  %2218 = vst [vmem:[#allocation4 + $0x14] sm:$0xf] %v2210_v38  ;;  %2235 = vst [vmem:[#allocation4 + $0x34] sm:$0xf] %v2226_v44  ;;  %v8781_v56 = vpack.c.bf16 %v1828_v29, %v1827_v48  ;;  %v1801_v45 = vmul.f32 0.2, %v1690_v34  ;;  %v1692_v58 = vadd.f32 %v10406_v8, %v9957_v54 }
 0x168   :  { %2149 = vst [vmem:[#allocation3 + $0x8] sm:$0xff] %v2148_v62  ;;  %v2194_v51 = vsel %vm10147_vm11, %v2175_v26, 0  ;;  %v2243_v43 = vld [vmem:[#allocation3 + $0xa8] sm:$0xf]  ;;  %v2260_v27 = vld [vmem:[#allocation3 + $0xac] sm:$0xf]  ;;  %v1745_v15 = vadd.f32 %v10408_v35, %v10381_v50  ;;  %v1696_v31 = vadd.f32 %v10419_v46, %v9953_v53  ;;  %v1749_v57 = vadd.f32 %v10421_v60, %v10375_v52 }
 0x169   :  { %2195 = vst [vmem:[#allocation3 + $0x20] sm:$0xff] %v2194_v51  ;;  %1952 = vst [vmem:[#allocation2 + $0x90] sm:$0xff] %v8780_v2  ;;  %v1978_v63 = vsel %vm10024_vm5, %v8780_v2, 0  ;;  %vm1771_vm4 = vcmp.gt.f32.partialorder %v1743_v41, 0.0  ;;  %v2161_v6 = vld [vmem:[#allocation2 + $0xe8] sm:$0x33]  ;;  %v1833_v42 = vsel %vm1769_vm0, %v1690_v34, %v1801_v45  ;;  %v10494_v28 = vadd.f32 %v10425_v10, %v9957_v54 }
 0x16a   :  { %2252 = vst [vmem:[#allocation4 + $0x54] sm:$0xf] %v2243_v43  ;;  %2269 = vst [vmem:[#allocation4 + $0x74] sm:$0xf] %v2260_v27  ;;  %v1981_v49 = vsel %vm10024_vm5, %v8781_v56, 0  ;;  %v2178_v20 = vrot.slane %v2161_v6, 6  ;;  %v1751_v23 = vadd.f32 %v10427_v12, %v10381_v50  ;;  %v1753_v38 = vadd.f32 %v10435_v18, %v10375_v52 }
 0x16b   :  { %1979 = vst [vmem:[#allocation3 + $0x90] sm:$0xff] %v1978_v63  ;;  %1953 = vst [vmem:[#allocation2 + $0x98] sm:$0xff] %v8781_v56  ;;  %v1803_v13 = vmul.f32 0.2, %v1743_v41  ;;  %vm1770_vm6 = vcmp.gt.f32.partialorder %v1692_v58, 0.0  ;;  %vm1772_vm13 = vcmp.gt.f32.partialorder %v1745_v15, 0.0  ;;  %v10511_v44 = vadd.f32 %v10443_v5, %v9957_v54 }
 0x16c   :  { %1982 = vst [vmem:[#allocation3 + $0x98] sm:$0xff] %v1981_v49  ;;  %v1802_v8 = vmul.f32 0.2, %v1692_v58  ;;  %v2205_v35 = vld [vmem:[#allocation3] sm:$0xf]  ;;  %v2179_v46 = vsel %vm10139_vm1, %v8515_v1, %v2178_v20  ;;  %vm1777_vm15 = vcmp.gt.f32.partialorder %v1696_v31, 0.0  ;;  %v10515_v62 = vadd.f32 %v10445_v11, %v10381_v50 }
 0x16d   :  { %v2221_v4 = vld [vmem:[#allocation3 + $0x4] sm:$0xf]  ;;  %v1835_v17 = vsel %vm1771_vm4, %v1743_v41, %v1803_v13  ;;  %v1804_v3 = vmul.f32 0.2, %v1745_v15  ;;  %2213 = vst [vmem:[#allocation4] sm:$0xf] %v2205_v35  ;;  %v1700_v41 = vadd.f32 %v10433_v39, %v9953_v53  ;;  %v2412_v53 = vsel %vm9993_vm12, %v2397_v59, %v2411_v30 }
 0x16e   :  { %2230 = vst [vmem:[#allocation4 + $0x20] sm:$0xf] %v2221_v4  ;;  %v1834_v32 = vsel %vm1770_vm6, %v1692_v58, %v1802_v8  ;;  %v1809_v33 = vmul.f32 0.2, %v1696_v31  ;;  %v2423_v25 = vld [vmem:[#allocation5 + $0x104] sm:$0xf] }
 0x16f   :  { %v2197_v60 = vsel %vm10147_vm11, %v2179_v46, 0  ;;  %v8784_v22 = vpack.c.bf16 %v1834_v32, %v1833_v42  ;;  %v1836_v10 = vsel %vm1772_vm13, %v1745_v15, %v1804_v3  ;;  %vm1779_vm8 = vcmp.gt.f32.partialorder %v1749_v57, 0.0  ;;  %v2399_v36 = vld [vmem:[#allocation4 + $0x28] sm:$0xf]  ;;  %v2255_v16 = vld [vmem:[#allocation3 + $0xc] sm:$0xf] }
 0x170   :  { %v2401_v0 = vld [vmem:[#allocation4 + $0x48] sm:$0xf]  ;;  %2198 = vst [vmem:[#allocation3 + $0x28] sm:$0xff] %v2197_v60  ;;  %v8785_v48 = vpack.c.bf16 %v1836_v10, %v1835_v17  ;;  %v1811_v1 = vmul.f32 0.2, %v1749_v57  ;;  %vm1778_vm3 = vcmp.gt.f32.partialorder %v10494_v28, 0.0  ;;  %v1841_v18 = vsel %vm1777_vm15, %v1696_v31, %v1809_v33 }
 0x171   :  { %v2238_v47 = vld [vmem:[#allocation3 + $0x8] sm:$0xf]  ;;  %2264 = vst [vmem:[#allocation4 + $0x60] sm:$0xf] %v2255_v16  ;;  %v2206_v24 = vld [vmem:[#allocation3 + $0x20] sm:$0xf]  ;;  %v2418_v11 = vsel %vm9993_vm12, %v2399_v36, %v2417_v55  ;;  %v2424_v29 = vsel %vm9993_vm12, %v2401_v0, %v2423_v25 }
 0x172   :  { %2247 = vst [vmem:[#allocation4 + $0x40] sm:$0xf] %v2238_v47  ;;  %v2222_v37 = vld [vmem:[#allocation3 + $0x24] sm:$0xf]  ;;  %v1985_v34 = vld [vmem:[#allocation2 + $0x90] sm:$0x88]  ;;  %v1843_v50 = vsel %vm1779_vm8, %v1749_v57, %v1811_v1 }
 0x173   :  { %1956 = vst [vmem:[#allocation2 + $0xb0] sm:$0xff] %v8784_v22  ;;  %2214 = vst [vmem:[#allocation4 + $0x4] sm:$0xf] %v2206_v24  ;;  %v2018_v12 = vshrl.u32 %v1985_v34, 16  ;;  %v2276_v26 = vld [vmem:[#allocation3 + $0x90] sm:$0xf] }
 0x174   :  { %2231 = vst [vmem:[#allocation4 + $0x24] sm:$0xf] %v2222_v37  ;;  %v2293_v2 = vld [vmem:[#allocation3 + $0x94] sm:$0xf]  ;;  %1957 = vst [vmem:[#allocation2 + $0xb8] sm:$0xff] %v8785_v48  ;;  %vm1780_vm0 = vcmp.gt.f32.partialorder %v1751_v23, 0.0 }
 0x175   :  { %2285 = vst [vmem:[#allocation4 + $0x90] sm:$0xf] %v2276_v26  ;;  %2302 = vst [vmem:[#allocation4 + $0xb0] sm:$0xf] %v2293_v2  ;;  %v1986_v52 = vld [vmem:[#allocation2 + $0x98] sm:$0x88] }
 0x176   :  { %v2310_v54 = vld [vmem:[#allocation3 + $0x98] sm:$0xf]  ;;  %v2327_v39 = vld [vmem:[#allocation3 + $0x9c] sm:$0xf]  ;;  %v2354_v5 = vld [vmem:[#allocation5] sm:$0xf] }
 0x177   :  { %2413 = vst [vmem:[#allocation5 + $0x4] sm:$0xf] %v2412_v53  ;;  %v10526_v51 = vrot.slane %v2018_v12, 11  ;;  %v2031_v56 = vshrl.u32 %v1986_v52, 16  ;;  %2319 = vst [vmem:[#allocation4 + $0xd0] sm:$0xf] %v2310_v54 }
 0x178   :  { %2336 = vst [vmem:[#allocation4 + $0xf0] sm:$0xf] %v2327_v39  ;;  %v1810_v45 = vmul.f32 0.2, %v10494_v28  ;;  %2419 = vst [vmem:[#allocation5 + $0x84] sm:$0xf] %v2418_v11 }
 0x179   :  { %2425 = vst [vmem:[#allocation5 + $0x104] sm:$0xf] %v2424_v29  ;;  %v1812_v43 = vmul.f32 0.2, %v1751_v23  ;;  %vm1785_vm4 = vcmp.gt.f32.partialorder %v1700_v41, 0.0  ;;  %vm1787_vm6 = vcmp.gt.f32.partialorder %v1753_v38, 0.0 }
 0x17a   :  { %v1817_v27 = vmul.f32 0.2, %v1700_v41  ;;  %v10529_v63 = vrot.slane %v2031_v56, 11  ;;  %v1842_v58 = vsel %vm1778_vm3, %v10494_v28, %v1810_v45  ;;  %v1819_v15 = vmul.f32 0.2, %v1753_v38  ;;  %v4370_v39 = vld [vmem:[#allocation6] sm:$0xff] }
 0x17b   :  { %vm1786_vm13 = vcmp.gt.f32.partialorder %v10511_v44, 0.0  ;;  %v2340_v6 = vld [vmem:[#allocation4] sm:$0xf]  ;;  %v2239_v49 = vld [vmem:[#allocation3 + $0x28] sm:$0xf]  ;;  %v8788_v13 = vpack.c.bf16 %v1842_v58, %v1841_v18  ;;  %v1844_v31 = vsel %vm1780_vm0, %v1751_v23, %v1812_v43  ;;  %vm1788_vm15 = vcmp.gt.f32.partialorder %v10515_v62, 0.0 }
 0x17c   :  { %v2256_v42 = vld [vmem:[#allocation3 + $0x2c] sm:$0xf]  ;;  %v1849_v20 = vsel %vm1785_vm4, %v1700_v41, %v1817_v27  ;;  %v1818_v8 = vmul.f32 0.2, %v10511_v44  ;;  %2248 = vst [vmem:[#allocation4 + $0x44] sm:$0xf] %v2239_v49  ;;  %v8789_v17 = vpack.c.bf16 %v1844_v31, %v1843_v50  ;;  %v1851_v3 = vsel %vm1787_vm6, %v1753_v38, %v1819_v15 }
 0x17d   :  { %2265 = vst [vmem:[#allocation4 + $0x64] sm:$0xf] %v2256_v42  ;;  %v1989_v35 = vld [vmem:[#allocation2 + $0xb0] sm:$0x77]  ;;  %v2062_v4 = vld [vmem:[#allocation2 + $0xb0] sm:$0x88]  ;;  %v2355_v57 = vsel %vm9993_vm12, %v2340_v6, %v2354_v5 }
 0x17e   :  { %v2023_v28 = vshrl.u32 %v1989_v35, 16  ;;  %v2026_v30 = vshll.u32 %v1989_v35, 16  ;;  %v2105_v46 = vshrl.u32 %v2062_v4, 16  ;;  %v2108_v32 = vshll.u32 %v2062_v4, 16  ;;  %v1990_v33 = vld [vmem:[#allocation2 + $0xb8] sm:$0x77] }
 0x17f   :  { %1960 = vst [vmem:[#allocation2 + $0xd0] sm:$0xff] %v8788_v13  ;;  %2356 = vst [vmem:[#allocation5] sm:$0xf] %v2355_v57  ;;  %v2360_v59 = vld [vmem:[#allocation5 + $0x80] sm:$0xf]  ;;  %v2036_v25 = vshrl.u32 %v1990_v33, 16  ;;  %v1850_v10 = vsel %vm1786_vm13, %v10511_v44, %v1818_v8 }
 0x180   :  { %v2366_v55 = vld [vmem:[#allocation5 + $0x100] sm:$0xf]  ;;  %v2039_v60 = vshll.u32 %v1990_v33, 16  ;;  %v2063_v22 = vld [vmem:[#allocation2 + $0xb8] sm:$0x88]  ;;  %1961 = vst [vmem:[#allocation2 + $0xd8] sm:$0xff] %v8789_v17  ;;  %v8792_v37 = vpack.c.bf16 %v1850_v10, %v1849_v20 }
 0x181   :  { %v1820_v36 = vmul.f32 0.2, %v10515_v62  ;;  %v2025_v0 = vrot.slane %v2023_v28, 7  ;;  %v2107_v47 = vrot.slane %v2105_v46, 6  ;;  %v2110_v16 = vrot.slane %v2108_v32, 7 }
 0x182   :  { %v2123_v48 = vshrl.u32 %v2063_v22, 16  ;;  %v2342_v1 = vld [vmem:[#allocation4 + $0x20] sm:$0xf]  ;;  %v2038_v23 = vrot.slane %v2036_v25, 7  ;;  %v2126_v24 = vshll.u32 %v2063_v22, 16  ;;  %vm4588_vm8 = vcmask 1043459  }
 0x183   :  { %v1852_v34 = vsel %vm1788_vm15, %v10515_v62, %v1820_v36  ;;  %v2344_v41 = vld [vmem:[#allocation4 + $0x40] sm:$0xf]  ;;  %v2028_v38 = vor.u32 %v2026_v30, %v2025_v0  ;;  %v2111_v12 = vor.u32 %v2110_v16, %v2107_v47  ;;  %1964 = vst [vmem:[#allocation2 + $0xf0] sm:$0x33] %v8792_v37  ;;  %v2361_v52 = vsel %vm9993_vm12, %v2342_v1, %v2360_v59  ;;  %v2467_v11 = vld [vmem:[#allocation5 + $0x8] sm:$0xf] }
 0x184   :  { %v2125_v26 = vrot.slane %v2123_v48, 6  ;;  %v8793_v2 = vpack.c.bf16 %v1852_v34, %v1851_v3  ;;  %v2041_v44 = vor.u32 %v2039_v60, %v2038_v23  ;;  %v2128_v53 = vrot.slane %v2126_v24, 7  ;;  %2362 = vst [vmem:[#allocation5 + $0x80] sm:$0xf] %v2361_v52  ;;  %v2453_v50 = vld [vmem:[#allocation4 + $0x20] sm:$0xf] }
 0x185   :  { %v2367_v54 = vsel %vm9993_vm12, %v2344_v41, %v2366_v55  ;;  %v2029_v18 = vsel %vm10072_vm9, %v10526_v51, %v2028_v38  ;;  %v10554_v62 = vrot.slane %v2111_v12, 4  ;;  %vm4589_vm3 = vsmask.f32 7950  ;;  %v2455_v5 = vld [vmem:[#allocation4 + $0x40] sm:$0xf] }
 0x186   :  { %1965 = vst [vmem:[#allocation2 + $0xf8] sm:$0x33] %v8793_v2  ;;  %2368 = vst [vmem:[#allocation5 + $0x100] sm:$0xf] %v2367_v54  ;;  %v2473_v29 = vld [vmem:[#allocation5 + $0x88] sm:$0xf]  ;;  %v2042_v45 = vsel %vm10072_vm9, %v10529_v63, %v2041_v44  ;;  %v2129_v43 = vor.u32 %v2128_v53, %v2125_v26  ;;  %v2468_v25 = vsel %vm9993_vm12, %v2453_v50, %v2467_v11 }
 0x187   :  { %v2055_v56 = vsel %vm10024_vm5, %v2029_v18, 0  ;;  %v2066_v51 = vld [vmem:[#allocation2 + $0xd0] sm:$0x77]  ;;  %v4362_v58 = vld [vmem:[#allocation5] sm:$0xff]  ;;  %vm4591_vm0 = vcmask 1047559   ;;  %v2058_v20 = vsel %vm10024_vm5, %v2042_v45, 0  ;;  %v2474_v60 = vsel %vm9993_vm12, %v2455_v5, %v2473_v29  ;;  %vm10574_vm4 = vmand %vm4588_vm8, %vm4589_vm3 }
 0x188   :  { %v10561_v27 = vld [vmem:[#allocation2 + $0xd0] sm:$0xcc]  ;;  %v2457_v15 = vld [vmem:[#allocation4 + $0x60] sm:$0xf]  ;;  %v2479_v6 = vld [vmem:[#allocation5 + $0x108] sm:$0xf]  ;;  %v4371_v30 = vsel %vm10024_vm5, %v4362_v58, %v4370_v39 }
 0x189   :  { %v2510_v49 = vld [vmem:[#allocation4 + $0x28] sm:$0xf]  ;;  %v2524_v13 = vld [vmem:[#allocation5 + $0xc] sm:$0xf]  ;;  %2056 = vst [vmem:[#allocation3 + $0xb0] sm:$0xff] %v2055_v56  ;;  %v2114_v8 = vshrl.u32 %v2066_v51, 16  ;;  %v2480_v16 = vsel %vm9993_vm12, %v2457_v15, %v2479_v6 }
 0x18a   :  { %v2512_v42 = vld [vmem:[#allocation4 + $0x48] sm:$0xf]  ;;  %v2530_v31 = vld [vmem:[#allocation5 + $0x8c] sm:$0xf]  ;;  %v2117_v35 = vshll.u32 %v2066_v51, 16  ;;  %v8516_v9 = vrot.slane %v10561_v27, 10  ;;  %v2525_v48 = vsel %vm9993_vm12, %v2510_v49, %v2524_v13 }
 0x18b   :  { %v2067_v63 = vld [vmem:[#allocation2 + $0xd8] sm:$0x77]  ;;  %v2514_v4 = vld [vmem:[#allocation4 + $0x68] sm:$0xf]  ;;  %2059 = vst [vmem:[#allocation3 + $0xb8] sm:$0xff] %v2058_v20  ;;  %v2130_v17 = vrot.slane %v2129_v43, 4  ;;  %v2531_v1 = vsel %vm9993_vm12, %v2512_v42, %v2530_v31 }
 0x18c   :  { %v2132_v3 = vshrl.u32 %v2067_v63, 16  ;;  %v2135_v57 = vshll.u32 %v2067_v63, 16  ;;  %v2159_v28 = vld [vmem:[#allocation2 + $0xd8] sm:$0xcc]  ;;  %v2116_v46 = vrot.slane %v2114_v8, 6  ;;  %v2119_v32 = vrot.slane %v2117_v35, 7 }
 0x18d   :  { %v8517_v33 = vrot.slane %v2159_v28, 10  ;;  %4372 = vst [vmem:[#allocation6] sm:$0xff] %v4371_v30  ;;  %vm4592_vm9 = vsmask.f32 7966  ;;  %v2536_v22 = vld [vmem:[#allocation5 + $0x10c] sm:$0xf] }
 0x18e   :  { %v2134_v59 = vrot.slane %v2132_v3, 6  ;;  %v2137_v55 = vrot.slane %v2135_v57, 7  ;;  %v2346_v10 = vld [vmem:[#allocation4 + $0x60] sm:$0xf]  ;;  %v2120_v36 = vor.u32 %v2119_v32, %v2116_v46  ;;  %v2162_v0 = vld [vmem:[#allocation2 + $0xf0] sm:$0x33]  ;;  %v2537_v12 = vsel %vm9993_vm12, %v2514_v4, %v2536_v22  ;;  %vm10593_vm6 = vmand %vm4591_vm0, %vm4592_vm9 }
 0x18f   :  { %2469 = vst [vmem:[#allocation5 + $0x8] sm:$0xf] %v2468_v25  ;;  %2475 = vst [vmem:[#allocation5 + $0x88] sm:$0xf] %v2474_v60  ;;  %v2372_v23 = vld [vmem:[#allocation5 + $0x180] sm:$0xf] }
 0x190   :  { %v2138_v24 = vor.u32 %v2137_v55, %v2134_v59  ;;  %v2182_v37 = vrot.slane %v2162_v0, 6  ;;  %v2163_v34 = vld [vmem:[#allocation2 + $0xf8] sm:$0x33]  ;;  %v4492_v41 = vld [vmem:[#allocation5 + $0x80] sm:$0xff]  ;;  %2481 = vst [vmem:[#allocation5 + $0x108] sm:$0xf] %v2480_v16  ;;  %v2373_v26 = vsel %vm9993_vm12, %v2346_v10, %v2372_v23  ;;  %v2121_v2 = vsel %vm10127_vm10, %v10554_v62, %v2120_v36 }
 0x191   :  { %v4661_v38 = vld [vmem:[#allocation5 + $0x100] sm:$0xff]  ;;  %2526 = vst [vmem:[#allocation5 + $0xc] sm:$0xf] %v2525_v48  ;;  %2532 = vst [vmem:[#allocation5 + $0x8c] sm:$0xf] %v2531_v1  ;;  %v2186_v44 = vrot.slane %v2163_v34, 6 }
 0x192   :  { %v4501_v53 = vshll.u32 %v4492_v41, 16  ;;  %v4532_v52 = vshrl.u32 %v4492_v41, 16  ;;  %2538 = vst [vmem:[#allocation5 + $0x10c] sm:$0xf] %v2537_v12  ;;  %2374 = vst [vmem:[#allocation5 + $0x180] sm:$0xf] %v2373_v26  ;;  %v2139_v5 = vsel %vm10127_vm10, %v2130_v17, %v2138_v24  ;;  %v2183_v62 = vsel %vm10139_vm1, %v8516_v9, %v2182_v37 }
 0x193   :  { %v2277_v39 = vld [vmem:[#allocation3 + $0xb0] sm:$0xf]  ;;  %v2294_v18 = vld [vmem:[#allocation3 + $0xb4] sm:$0xf]  ;;  %v2151_v50 = vsel %vm10147_vm11, %v2121_v2, 0  ;;  %v4677_v11 = vrot.slane %v4661_v38, 5  ;;  %v2187_v51 = vsel %vm10139_vm1, %v8517_v33, %v2186_v44  ;;  %vm10615_vm10 = vmor %vm10593_vm6, %vm10574_vm4 }
 0x194   :  { %2286 = vst [vmem:[#allocation4 + $0x94] sm:$0xf] %v2277_v39  ;;  %2303 = vst [vmem:[#allocation4 + $0xb4] sm:$0xf] %v2294_v18  ;;  %v2311_v29 = vld [vmem:[#allocation3 + $0xb8] sm:$0xf] }
 0x195   :  { %v2328_v56 = vld [vmem:[#allocation3 + $0xbc] sm:$0xf]  ;;  %2152 = vst [vmem:[#allocation3 + $0x10] sm:$0xff] %v2151_v50  ;;  %v2154_v45 = vsel %vm10147_vm11, %v2139_v5, 0  ;;  %v2200_v43 = vsel %vm10147_vm11, %v2183_v62, 0  ;;  %v4503_v61 = vrot.slane %v4501_v53, 5 }
 0x196   :  { %v4373_v27 = vld [vmem:[#allocation6 + $0x8] sm:$0xff]  ;;  %2320 = vst [vmem:[#allocation4 + $0xd4] sm:$0xf] %v2311_v29  ;;  %2337 = vst [vmem:[#allocation4 + $0xf4] sm:$0xf] %v2328_v56  ;;  %v2203_v58 = vsel %vm10147_vm11, %v2187_v51, 0 }
 0x197   :  { %2155 = vst [vmem:[#allocation3 + $0x18] sm:$0xff] %v2154_v45  ;;  %2201 = vst [vmem:[#allocation3 + $0x30] sm:$0xff] %v2200_v43  ;;  %v4534_v15 = vrot.slane %v4532_v52, 4  ;;  %v4595_v14 = vld [vmem:[#allocation6] sm:$0x88]  ;;  %vm4717_vm1 = vcmask 1042432  }
 0x198   :  { %4709 = vst [vmem:[#allocation6 + $0x40] sm:$0x88] %v4677_v11  ;;  %v2403_v49 = vld [vmem:[#allocation4 + $0x68] sm:$0xf]  ;;  %2204 = vst [vmem:[#allocation3 + $0x38] sm:$0xff] %v2203_v58  ;;  %v4596_v42 = vsel %vm10615_vm10, %v4503_v61, %v4595_v14  ;;  %vm4720_vm15 = vcmask 1046532  }
 0x199   :  { %v2405_v13 = vld [vmem:[#allocation4 + $0x88] sm:$0xf]  ;;  %v2429_v31 = vld [vmem:[#allocation5 + $0x184] sm:$0xf]  ;;  %v4535_v8 = vor.u32 %v4534_v15, %v4503_v61  ;;  %4597 = vst [vmem:[#allocation6] sm:$0x88] %v4596_v42 }
 0x19a   :  { %v2435_v20 = vld [vmem:[#allocation5 + $0x204] sm:$0xf]  ;;  %v2430_v35 = vsel %vm9993_vm12, %v2403_v49, %v2429_v31  ;;  %v4363_v63 = vld [vmem:[#allocation5 + $0x8] sm:$0xff]  ;;  %vm4718_vm13 = vsmask.f32 2304  ;;  %v4685_v46 = vrot.slane %v4677_v11, 4 }
 0x19b   :  { %v2436_v9 = vsel %vm9993_vm12, %v2405_v13, %v2435_v20  ;;  %v4493_v4 = vld [vmem:[#allocation5 + $0x88] sm:$0xff]  ;;  %2431 = vst [vmem:[#allocation5 + $0x184] sm:$0xf] %v2430_v35  ;;  %v4536_v17 = vrot.slane %v4535_v8, 4  ;;  %v4374_v3 = vsel %vm10024_vm5, %v4363_v63, %v4373_v27  ;;  %vm10628_vm8 = vmand %vm4717_vm1, %vm4718_vm13  ;;  %vm4721_vm3 = vsmask.f32 6400 }
 0x19c   :  { %2437 = vst [vmem:[#allocation5 + $0x204] sm:$0xf] %v2436_v9  ;;  %v4505_v57 = vshll.u32 %v4493_v4, 16  ;;  %v4537_v28 = vshrl.u32 %v4493_v4, 16  ;;  %v4662_v30 = vld [vmem:[#allocation5 + $0x108] sm:$0xff]  ;;  %4375 = vst [vmem:[#allocation6 + $0x8] sm:$0xff] %v4374_v3 }
 0x19d   :  { %v4678_v32 = vrot.slane %v4662_v30, 5  ;;  %v4724_v59 = vld [vmem:[#allocation6 + $0x80] sm:$0x77]  ;;  %vm4975_vm0 = vsmask.f32 7946  ;;  %vm10633_vm9 = vmand %vm4720_vm15, %vm4721_vm3  ;;  %vm4974_vm6 = vcmask 1043458  }
 0x19e   :  { %v2272_v55 = vld [vmem:[#allocation3 + $0x10] sm:$0xf]  ;;  %v2289_v25 = vld [vmem:[#allocation3 + $0x14] sm:$0xf]  ;;  %4619 = vst [vmem:[#allocation6 + $0x40] sm:$0x77] %v4536_v17  ;;  %vm10641_vm4 = vmor %vm10633_vm9, %vm10628_vm8 }
 0x19f   :  { %v4507_v60 = vrot.slane %v4505_v57, 5  ;;  %v4539_v22 = vrot.slane %v4537_v28, 4  ;;  %2281 = vst [vmem:[#allocation4 + $0x80] sm:$0xf] %v2272_v55  ;;  %2298 = vst [vmem:[#allocation4 + $0xa0] sm:$0xf] %v2289_v25  ;;  %v4725_v26 = vsel %vm10641_vm4, %v4685_v46, %v4724_v59 }
 0x1a0   :  { %v2306_v36 = vld [vmem:[#allocation3 + $0x18] sm:$0xf]  ;;  %v2323_v0 = vld [vmem:[#allocation3 + $0x1c] sm:$0xf]  ;;  %v2273_v47 = vld [vmem:[#allocation3 + $0x30] sm:$0xf] }
 0x1a1   :  { %4710 = vst [vmem:[#allocation6 + $0x48] sm:$0x88] %v4678_v32  ;;  %2315 = vst [vmem:[#allocation4 + $0xc0] sm:$0xf] %v2306_v36  ;;  %v2290_v16 = vld [vmem:[#allocation3 + $0x34] sm:$0xf]  ;;  %v4540_v23 = vor.u32 %v4539_v22, %v4507_v60 }
 0x1a2   :  { %2332 = vst [vmem:[#allocation4 + $0xe0] sm:$0xf] %v2323_v0  ;;  %2282 = vst [vmem:[#allocation4 + $0x84] sm:$0xf] %v2273_v47  ;;  %v2307_v48 = vld [vmem:[#allocation3 + $0x38] sm:$0xf] }
 0x1a3   :  { %v2324_v1 = vld [vmem:[#allocation3 + $0x3c] sm:$0xf]  ;;  %2299 = vst [vmem:[#allocation4 + $0xa4] sm:$0xf] %v2290_v16  ;;  %2316 = vst [vmem:[#allocation4 + $0xc4] sm:$0xf] %v2307_v48 }
 0x1a4   :  { %2333 = vst [vmem:[#allocation4 + $0xe4] sm:$0xf] %v2324_v1  ;;  %v5741_v24 = vld [vmem:[#allocation6] sm:$0xff]  ;;  %v4686_v37 = vrot.slane %v4678_v32, 4  ;;  %vm4977_vm1 = vcmask 1047558   ;;  %v4541_v38 = vrot.slane %v4540_v23, 4  ;;  %vm10649_vm15 = vmand %vm4974_vm6, %vm4975_vm0 }
 0x1a5   :  { %v2516_v41 = vld [vmem:[#allocation4 + $0x88] sm:$0xf]  ;;  %v2378_v12 = vld [vmem:[#allocation5 + $0x200] sm:$0xf]  ;;  %vm4978_vm13 = vsmask.f32 7962 }
 0x1a6   :  { %v4878_v2 = vld [vmem:[#allocation5 + $0x180] sm:$0xff]  ;;  %v2485_v44 = vld [vmem:[#allocation5 + $0x188] sm:$0xf]  ;;  %4726 = vst [vmem:[#allocation6 + $0x80] sm:$0x77] %v4725_v26  ;;  %vm10664_vm8 = vmand %vm4977_vm1, %vm4978_vm13  ;;  %vm5405_vm0 = vcmask 1043457  }
 0x1a7   :  { %v2491_v53 = vld [vmem:[#allocation5 + $0x208] sm:$0xf]  ;;  %v4887_v54 = vshrl.u32 %v4878_v2, 16  ;;  %v4890_v39 = vshll.u32 %v4878_v2, 16  ;;  %v2542_v18 = vld [vmem:[#allocation5 + $0x18c] sm:$0xf]  ;;  %vm10686_vm3 = vmor %vm10664_vm8, %vm10649_vm15 }
 0x1a8   :  { %v2518_v52 = vld [vmem:[#allocation4 + $0xa8] sm:$0xf]  ;;  %v2548_v50 = vld [vmem:[#allocation5 + $0x20c] sm:$0xf]  ;;  %4620 = vst [vmem:[#allocation6 + $0x48] sm:$0x77] %v4541_v38  ;;  %v2543_v11 = vsel %vm9993_vm12, %v2516_v41, %v2542_v18 }
 0x1a9   :  { %v4598_v5 = vld [vmem:[#allocation6 + $0x8] sm:$0x88]  ;;  %v2549_v29 = vsel %vm9993_vm12, %v2518_v52, %v2548_v50  ;;  %v4727_v56 = vld [vmem:[#allocation6 + $0x88] sm:$0x77]  ;;  %v9360_v45 = vld [vmem:[%s12297_s3 + $0x100] sm:$0xff]   ;;  %v4889_v61 = vrot.slane %v4887_v54, 5 }
 0x1aa   :  { %v5749_v43 = vld [vmem:[#allocation6 + $0x40] sm:$0xff]  ;;  %v4599_v51 = vsel %vm10615_vm10, %v4507_v60, %v4598_v5  ;;  %v4892_v27 = vrot.slane %v4890_v39, 6  ;;  %2544 = vst [vmem:[#allocation5 + $0x18c] sm:$0xf] %v2543_v11  ;;  %2550 = vst [vmem:[#allocation5 + $0x20c] sm:$0xf] %v2549_v29  ;;  %v4728_v15 = vsel %vm10641_vm4, %v4686_v37, %v4727_v56 }
 0x1ab   :  { %v9363_v14 = vld [vmem:[%s12297_s3 + $0x148] sm:$0xff]   ;;  %v8519_v49 = vcombine.low %v5741_v24, %v5749_v43  ;;  %v8520_v42 = vcombine.high %v5741_v24, %v5749_v43  ;;  %4600 = vst [vmem:[#allocation6 + $0x8] sm:$0x88] %v4599_v51  ;;  %v2348_v13 = vld [vmem:[#allocation4 + $0x80] sm:$0xf]  ;;  %v9367_v25 = vld [vmem:[%s12297_s3 + $0x150] sm:$0xff]  }
 0x1ac   :  { %v2459_v31 = vld [vmem:[#allocation4 + $0x80] sm:$0xf]  ;;  %4729 = vst [vmem:[#allocation6 + $0x88] sm:$0x77] %v4728_v15  ;;  %v2379_v8 = vsel %vm9993_vm12, %v2348_v13, %v2378_v12  ;;  %v4893_v35 = vor.u32 %v4892_v27, %v4889_v61  ;;  %v9364_v4 = vld [vmem:[%s12297_s3 + $0x108] sm:$0xff]   ;;  %v9368_v47 = vld [vmem:[%s12297_s3 + $0x110] sm:$0xff]  }
 0x1ad   :  { %v2461_v20 = vld [vmem:[#allocation4 + $0xa0] sm:$0xf]  ;;  %v2486_v9 = vsel %vm9993_vm12, %v2459_v31, %v2485_v44  ;;  %7444 = vmatprep.mubr.bf16.mxu0 %v8520_v42  ;;  %2380 = vst [vmem:[#allocation5 + $0x200] sm:$0xf] %v2379_v8  ;;  %v2407_v55 = vld [vmem:[#allocation4 + $0xa8] sm:$0xf] }
 0x1ae   :  { %v2492_v63 = vsel %vm9993_vm12, %v2461_v20, %v2491_v53  ;;  %2487 = vst [vmem:[#allocation5 + $0x188] sm:$0xf] %v2486_v9  ;;  %7445 = vmatmul.mubr.bf16.vlgmr.msra.gmra.mrb[32].mxu0 %v8519_v49  ;;  %v4950_v17 = vrot.slane %v4893_v35, 4  ;;  %v2350_v57 = vld [vmem:[#allocation4 + $0xa0] sm:$0xf]  ;;  %v9365_v24 = vld [vmem:[%s12297_s3 + $0x1c8] sm:$0xff]  }
 0x1af   :  { %2493 = vst [vmem:[#allocation5 + $0x208] sm:$0xf] %v2492_v63  ;;  %v4981_v28 = vld [vmem:[#allocation6 + $0x80] sm:$0xcc]  ;;  %8911 = vmatpush3.bf16.msra.mxu0 %v9360_v45  ;;  %v2409_v10 = vld [vmem:[#allocation4 + $0xc8] sm:$0xf] }
 0x1b0   :  { %v2352_v30 = vld [vmem:[#allocation4 + $0xc0] sm:$0xf]  ;;  %v4982_v32 = vsel %vm10686_vm3, %v4893_v35, %v4981_v28  ;;  %5005 = vst [vmem:[#allocation6 + $0xc0] sm:$0x33] %v4950_v17  ;;  %8912 = vmatprep.subr.bf16.mxu0 %v9363_v14  ;;  %v2441_v36 = vld [vmem:[#allocation5 + $0x284] sm:$0xf] }
 0x1b1   :  { %v2384_v46 = vld [vmem:[#allocation5 + $0x280] sm:$0xf]  ;;  %4983 = vst [vmem:[#allocation6 + $0x80] sm:$0xcc] %v4982_v32  ;;  %v2447_v0 = vld [vmem:[#allocation5 + $0x304] sm:$0xf]  ;;  %v2442_v1 = vsel %vm9993_vm12, %v2407_v55, %v2441_v36 }
 0x1b2   :  { %v2385_v33 = vsel %vm9993_vm12, %v2350_v57, %v2384_v46  ;;  %v2390_v59 = vld [vmem:[#allocation5 + $0x300] sm:$0xf]  ;;  %v5742_v16 = vld [vmem:[#allocation6 + $0x8] sm:$0xff]  ;;  %v2448_v23 = vsel %vm9993_vm12, %v2409_v10, %v2447_v0  ;;  %v9371_v37 = vld [vmem:[%s12297_s3 + $0x158] sm:$0xff]   ;;  %2443 = vst [vmem:[#allocation5 + $0x284] sm:$0xf] %v2442_v1 }
 0x1b3   :  { %v9362_v60 = vld [vmem:[%s12297_s3 + $0x180] sm:$0xff]   ;;  %2386 = vst [vmem:[#allocation5 + $0x280] sm:$0xf] %v2385_v33  ;;  %v2391_v22 = vsel %vm9993_vm12, %v2352_v30, %v2390_v59  ;;  %v5750_v48 = vld [vmem:[#allocation6 + $0x48] sm:$0xff]  ;;  %2449 = vst [vmem:[#allocation5 + $0x304] sm:$0xf] %v2448_v23  ;;  %8913 = vmatpush3.bf16.msra.mxu0 %v9364_v4 }
 0x1b4   :  { %2392 = vst [vmem:[#allocation5 + $0x300] sm:$0xf] %v2391_v22  ;;  %v8521_v41 = vcombine.low %v5742_v16, %v5750_v48  ;;  %v8522_v38 = vcombine.high %v5742_v16, %v5750_v48  ;;  %vm5406_vm9 = vsmask.f32 7942  ;;  %v2463_v12 = vld [vmem:[#allocation4 + $0xc0] sm:$0xf]  ;;  %8914 = vmatprep.subr.bf16.mxu0 %v9367_v25 }
 0x1b5   :  { %v2465_v26 = vld [vmem:[#allocation4 + $0xe0] sm:$0xf]  ;;  %v4879_v44 = vld [vmem:[#allocation5 + $0x188] sm:$0xff]  ;;  %vm5408_vm6 = vcmask 1047557   ;;  %vm5409_vm1 = vsmask.f32 7958  ;;  %vm10728_vm13 = vmand %vm5405_vm0, %vm5406_vm9 }
 0x1b6   :  { %v5095_v2 = vld [vmem:[#allocation5 + $0x200] sm:$0xff]  ;;  %v5096_v53 = vld [vmem:[#allocation5 + $0x208] sm:$0xff]  ;;  %7532 = vmatprep.mubr.bf16.mxu1 %v8522_v38  ;;  %v4895_v54 = vshrl.u32 %v4879_v44, 16  ;;  %v4898_v39 = vshll.u32 %v4879_v44, 16  ;;  %v9372_v62 = vld [vmem:[%s12297_s3 + $0x118] sm:$0xff]   ;;  %vm5582_vm0 = vcmask 1040384  }
 0x1b7   :  { %v5111_v52 = vrot.slane %v5095_v2, 6  ;;  %v5112_v18 = vrot.slane %v5096_v53, 6  ;;  %v2497_v50 = vld [vmem:[#allocation5 + $0x288] sm:$0xf]  ;;  %7533 = vmatmul.mubr.bf16.vlgmr.msra.gmra.mrb[32].mxu1 %v8521_v41  ;;  %v5155_v11 = vld [vmem:[#allocation6 + $0x100] sm:$0x33]  ;;  %8915 = vmatpush3.bf16.msra.mxu0 %v9368_v47  ;;  %vm10734_vm15 = vmand %vm5408_vm6, %vm5409_vm1 }
 0x1b8   :  { %v9366_v5 = vld [vmem:[%s12297_s3 + $0x188] sm:$0xff]   ;;  %v2498_v29 = vsel %vm9993_vm12, %v2463_v12, %v2497_v50  ;;  %v9369_v43 = vld [vmem:[%s12297_s3 + $0x1d0] sm:$0xff]   ;;  %v4897_v61 = vrot.slane %v4895_v54, 5  ;;  %v4900_v27 = vrot.slane %v4898_v39, 6  ;;  %8969 = vmatpush3.bf16.msra.mxu1 %v9362_v60  ;;  %8916 = vmatprep.subr.bf16.mxu0 %v9371_v37  ;;  %v2341_v17 = vld [vmem:[#allocation4 + $0x4] sm:$0xf] }
 0x1b9   :  { %v2503_v56 = vld [vmem:[#allocation5 + $0x308] sm:$0xf]  ;;  %v5119_v51 = vrot.slane %v5111_v52, 4  ;;  %5143 = vst [vmem:[#allocation6 + $0xc0] sm:$0xcc] %v5111_v52  ;;  %v5120_v58 = vrot.slane %v5112_v18, 4  ;;  %8970 = vmatprep.subr.bf16.mxu1 %v9365_v24  ;;  %vm10768_vm8 = vmor %vm10734_vm15, %vm10728_vm13 }
 0x1ba   :  { %v2520_v45 = vld [vmem:[#allocation4 + $0xc8] sm:$0xf]  ;;  %5144 = vst [vmem:[#allocation6 + $0xc8] sm:$0xcc] %v5112_v18  ;;  %2499 = vst [vmem:[#allocation5 + $0x288] sm:$0xf] %v2498_v29  ;;  %v2504_v13 = vsel %vm9993_vm12, %v2465_v26, %v2503_v56  ;;  %v4901_v8 = vor.u32 %v4900_v27, %v4897_v61 }
 0x1bb   :  { %v2522_v14 = vld [vmem:[#allocation4 + $0xe8] sm:$0xf]  ;;  %v2554_v31 = vld [vmem:[#allocation5 + $0x28c] sm:$0xf]  ;;  %v5156_v35 = vsel %vm9928_vm7, %v5119_v51, %v5155_v11  ;;  %2505 = vst [vmem:[#allocation5 + $0x308] sm:$0xf] %v2504_v13  ;;  %8917 = vmatpush3.bf16.msra.mxu0 %v9372_v62  ;;  %vm10812_vm1 = vmand %vm5582_vm0, %vm915_vm14 }
 0x1bc   :  { %v4984_v49 = vld [vmem:[#allocation6 + $0x88] sm:$0xcc]  ;;  %v2555_v9 = vsel %vm9993_vm12, %v2520_v45, %v2554_v31  ;;  %v5158_v4 = vld [vmem:[#allocation6 + $0x108] sm:$0x33]  ;;  %v2343_v57 = vld [vmem:[#allocation4 + $0x24] sm:$0xf]  ;;  %8971 = vmatpush3.bf16.msra.mxu1 %v9366_v5 }
 0x1bd   :  { %v2560_v20 = vld [vmem:[#allocation5 + $0x30c] sm:$0xf]  ;;  %v9370_v28 = vld [vmem:[%s12297_s3 + $0x190] sm:$0xff]   ;;  %5157 = vst [vmem:[#allocation6 + $0x100] sm:$0x33] %v5156_v35  ;;  %v5309_v30 = vld [vmem:[#allocation5 + $0x280] sm:$0xff]  ;;  %v5159_v32 = vsel %vm9928_vm7, %v5120_v58, %v5158_v4  ;;  %v4985_v55 = vsel %vm10686_vm3, %v4901_v8, %v4984_v49  ;;  %8972 = vmatprep.subr.bf16.mxu1 %v9369_v43 }
 0x1be   :  { %v2561_v63 = vsel %vm9993_vm12, %v2522_v14, %v2560_v20  ;;  %v10749_v46 = vld [vmem:[#allocation5 + $0x300] sm:$0xff]  ;;  %2556 = vst [vmem:[#allocation5 + $0x28c] sm:$0xf] %v2555_v9  ;;  %v4951_v59 = vrot.slane %v4901_v8, 4  ;;  %v5318_v25 = vshrl.u32 %v5309_v30, 16  ;;  %v5321_v60 = vshll.u32 %v5309_v30, 16 }
 0x1bf   :  { %2562 = vst [vmem:[#allocation5 + $0x30c] sm:$0xf] %v2561_v63  ;;  %v2345_v33 = vld [vmem:[#allocation4 + $0x44] sm:$0xf]  ;;  %5160 = vst [vmem:[#allocation6 + $0x108] sm:$0x33] %v5159_v32 }
 0x1c0   :  { %v2357_v22 = vld [vmem:[#allocation5 + $0x40] sm:$0xf]  ;;  %v9373_v10 = vld [vmem:[%s12297_s3 + $0x1d8] sm:$0xff]   ;;  %4986 = vst [vmem:[#allocation6 + $0x88] sm:$0xcc] %v4985_v55  ;;  %v5542_v0 = vrot.slane %v10749_v46, 7  ;;  %8973 = vmatpush3.bf16.msra.mxu1 %v9370_v28 }
 0x1c1   :  { %v5757_v36 = vld [vmem:[#allocation6 + $0x80] sm:$0xff]  ;;  %v2358_v47 = vsel %vm9993_vm12, %v2341_v17, %v2357_v22  ;;  %5006 = vst [vmem:[#allocation6 + $0xc8] sm:$0x33] %v4951_v59  ;;  %v5320_v23 = vrot.slane %v5318_v25, 6  ;;  %v5323_v24 = vrot.slane %v5321_v60, 7  ;;  %v12350_v37 = vmov 0  ;;  %8974 = vmatprep.subr.bf16.mxu1 %v9373_v10 }
 0x1c2   :  { %v2363_v16 = vld [vmem:[#allocation5 + $0xc0] sm:$0xf]  ;;  %v12351_v37 = vsel %vm10768_vm8, 4294967295, %v12350_v37  ;;  %2359 = vst [vmem:[#allocation5 + $0x40] sm:$0xf] %v2358_v47  ;;  %v9374_v2 = vld [vmem:[%s12297_s3 + $0x198] sm:$0xff]  }
 0x1c3   :  { %v2369_v48 = vld [vmem:[#allocation5 + $0x140] sm:$0xf]  ;;  %12352 = vst [vmem:[#allocation9_spill] sm:$0xff] %v12351_v37  ;;  %v2364_v41 = vsel %vm9993_vm12, %v2343_v57, %v2363_v16  ;;  %v2398_v12 = vld [vmem:[#allocation4 + $0xc] sm:$0xf]  ;;  %v5324_v18 = vor.u32 %v5323_v24, %v5320_v23  ;;  %vm5584_vm6 = vcmask 1044484  }
 0x1c4   :  { %v9375_v1 = vld [vmem:[%s12297_s3 + $0x160] sm:$0xff]   ;;  %v2370_v38 = vsel %vm9993_vm12, %v2345_v33, %v2369_v48  ;;  %v2400_v26 = vld [vmem:[#allocation4 + $0x2c] sm:$0xf]  ;;  %5574 = vst [vmem:[#allocation6 + $0x140] sm:$0xee] %v5542_v0  ;;  %8975 = vmatpush3.bf16.msra.mxu1 %v9374_v2 }
 0x1c5   :  { %v5765_v44 = vld [vmem:[#allocation6 + $0xc0] sm:$0xff]  ;;  %2365 = vst [vmem:[#allocation5 + $0xc0] sm:$0xf] %v2364_v41  ;;  %2371 = vst [vmem:[#allocation5 + $0x140] sm:$0xf] %v2370_v38  ;;  %8918 = vmatprep.subr.bf16.mxu0 %v9375_v1  ;;  %v5381_v56 = vrot.slane %v5324_v18, 4 }
 0x1c6   :  { %v2402_v53 = vld [vmem:[#allocation4 + $0x4c] sm:$0xf]  ;;  %v2414_v52 = vld [vmem:[#allocation5 + $0x44] sm:$0xf]  ;;  %v8536_v54 = vcombine.high %v5757_v36, %v5765_v44  ;;  %v8535_v39 = vcombine.low %v5757_v36, %v5765_v44  ;;  %vm5585_vm9 = vsmask.f32 4352 }
 0x1c7   :  { %v2415_v50 = vsel %vm9993_vm12, %v2398_v12, %v2414_v52  ;;  %v2420_v5 = vld [vmem:[#allocation5 + $0xc4] sm:$0xf]  ;;  %v5310_v43 = vld [vmem:[#allocation5 + $0x288] sm:$0xff]  ;;  %5436 = vst [vmem:[#allocation6 + $0x140] sm:$0x11] %v5381_v56  ;;  %vm10836_vm14 = vmand %vm5584_vm6, %vm5585_vm9 }
 0x1c8   :  { %v2426_v62 = vld [vmem:[#allocation5 + $0x144] sm:$0xf]  ;;  %2416 = vst [vmem:[#allocation5 + $0x44] sm:$0xf] %v2415_v50  ;;  %v2421_v11 = vsel %vm9993_vm12, %v2400_v26, %v2420_v5  ;;  %7452 = vmatprep.mubr.bf16.mxu0 %v8536_v54  ;;  %v10787_v51 = vld [vmem:[#allocation5 + $0x308] sm:$0xff]  ;;  %v5326_v27 = vshrl.u32 %v5310_v43, 16  ;;  %vm10860_vm13 = vmor %vm10836_vm14, %vm10812_vm1 }
 0x1c9   :  { %v2427_v29 = vsel %vm9993_vm12, %v2402_v53, %v2426_v62  ;;  %v5412_v45 = vld [vmem:[#allocation6 + $0x100] sm:$0xee]  ;;  %2422 = vst [vmem:[#allocation5 + $0xc4] sm:$0xf] %v2421_v11  ;;  %7453 = vmatmul.mubr.bf16.gmra.mrb[36].mxu0 %v8535_v39  ;;  %v5329_v58 = vshll.u32 %v5310_v43, 16  ;;  %v5543_v15 = vrot.slane %v10787_v51, 7 }
 0x1ca   :  { %2428 = vst [vmem:[#allocation5 + $0x144] sm:$0xf] %v2427_v29  ;;  %v5413_v61 = vsel %vm10768_vm8, %v5324_v18, %v5412_v45  ;;  %v9376_v14 = vld [vmem:[%s12297_s3 + $0x120] sm:$0xff]   ;;  %v5758_v49 = vld [vmem:[#allocation6 + $0x88] sm:$0xff]  ;;  %v5328_v8 = vrot.slane %v5326_v27, 6 }
 0x1cb   :  { %5414 = vst [vmem:[#allocation6 + $0x100] sm:$0xee] %v5413_v61  ;;  %v5415_v42 = vld [vmem:[#allocation6 + $0x108] sm:$0xee]  ;;  %v2454_v13 = vld [vmem:[#allocation4 + $0x24] sm:$0xf]  ;;  %8919 = vmatpush3.bf16.msra.mxu0 %v9376_v14 }
 0x1cc   :  { %v2456_v31 = vld [vmem:[#allocation4 + $0x44] sm:$0xf]  ;;  %v5766_v20 = vld [vmem:[#allocation6 + $0xc8] sm:$0xff]  ;;  %v5331_v35 = vrot.slane %v5329_v58, 7  ;;  %5575 = vst [vmem:[#allocation6 + $0x148] sm:$0xee] %v5543_v15 }
 0x1cd   :  { %v4636_v9 = vld [vmem:[#allocation6 + $0x1c0] sm:$0xff]  ;;  %v8538_v4 = vcombine.high %v5758_v49, %v5766_v20  ;;  %v8537_v17 = vcombine.low %v5758_v49, %v5766_v20  ;;  %v2470_v57 = vld [vmem:[#allocation5 + $0x48] sm:$0xf]  ;;  %v2511_v25 = vld [vmem:[#allocation4 + $0x2c] sm:$0xf] }
 0x1ce   :  { %v2458_v63 = vld [vmem:[#allocation4 + $0x64] sm:$0xf]  ;;  %v2476_v28 = vld [vmem:[#allocation5 + $0xc8] sm:$0xf]  ;;  %v5332_v32 = vor.u32 %v5331_v35, %v5328_v8  ;;  %v2471_v33 = vsel %vm9993_vm12, %v2454_v13, %v2470_v57  ;;  %v2513_v60 = vld [vmem:[#allocation4 + $0x4c] sm:$0xf] }
 0x1cf   :  { %v2482_v30 = vld [vmem:[#allocation5 + $0x148] sm:$0xf]  ;;  %v2477_v59 = vsel %vm9993_vm12, %v2456_v31, %v2476_v28  ;;  %v2515_v22 = vld [vmem:[#allocation4 + $0x6c] sm:$0xf]  ;;  %7540 = vmatprep.mubr.bf16.mxu1 %v8538_v4  ;;  %v4395_v10 = vld [vmem:[#allocation5 + $0x40] sm:$0xff] }
 0x1d0   :  { %v2483_v55 = vsel %vm9993_vm12, %v2458_v63, %v2482_v30  ;;  %2472 = vst [vmem:[#allocation5 + $0x48] sm:$0xf] %v2471_v33  ;;  %2478 = vst [vmem:[#allocation5 + $0xc8] sm:$0xf] %v2477_v59  ;;  %v2527_v36 = vld [vmem:[#allocation5 + $0x4c] sm:$0xf]  ;;  %7541 = vmatmul.mubr.bf16.gmra.mrb[36].mxu1 %v8537_v17  ;;  %v5416_v48 = vsel %vm10768_vm8, %v5332_v32, %v5415_v42 }
 0x1d1   :  { %2484 = vst [vmem:[#allocation5 + $0x148] sm:$0xf] %v2483_v55  ;;  %v2533_v47 = vld [vmem:[#allocation5 + $0xcc] sm:$0xf]  ;;  %v5382_v16 = vrot.slane %v5332_v32, 4  ;;  %v4404_v1 = vshrl.u32 %v4395_v10, 16  ;;  %v2528_v53 = vsel %vm9993_vm12, %v2511_v25, %v2527_v36 }
 0x1d2   :  { %v4407_v23 = vshll.u32 %v4395_v10, 16  ;;  %v4628_v24 = vld [vmem:[#allocation5 + $0xc0] sm:$0xff]  ;;  %5417 = vst [vmem:[#allocation6 + $0x108] sm:$0xee] %v5416_v48  ;;  %v2534_v52 = vsel %vm9993_vm12, %v2513_v60, %v2533_v47  ;;  %v2539_v54 = vld [vmem:[#allocation5 + $0x14c] sm:$0xf] }
 0x1d3   :  { %v4749_v41 = vld [vmem:[#allocation5 + $0x140] sm:$0xff]  ;;  %v4637_v26 = vsel %vm10024_vm5, %v4628_v24, %v4636_v9  ;;  %5437 = vst [vmem:[#allocation6 + $0x148] sm:$0x11] %v5382_v16  ;;  %v4406_v5 = vrot.slane %v4404_v1, 7  ;;  %2529 = vst [vmem:[#allocation5 + $0x4c] sm:$0xf] %v2528_v53  ;;  %v2540_v62 = vsel %vm9993_vm12, %v2515_v22, %v2539_v54 }
 0x1d4   :  { %v9377_v38 = vld [vmem:[%s12297_s3 + $0x1e0] sm:$0xff]   ;;  %v4758_v2 = vshll.u32 %v4749_v41, 16  ;;  %4638 = vst [vmem:[#allocation6 + $0x1c0] sm:$0xff] %v4637_v26  ;;  %2535 = vst [vmem:[#allocation5 + $0xcc] sm:$0xf] %v2534_v52  ;;  %v4789_v11 = vshrl.u32 %v4749_v41, 16 }
 0x1d5   :  { %v4467_v12 = vld [vmem:[#allocation6 + $0x180] sm:$0xff]  ;;  %8976 = vmatprep.subr.bf16.mxu1 %v9377_v38  ;;  %2541 = vst [vmem:[#allocation5 + $0x14c] sm:$0xf] %v2540_v62  ;;  %v9381_v43 = vld [vmem:[%s12297_s3 + $0x168] sm:$0xff]   ;;  %v4409_v61 = vor.u32 %v4407_v23, %v4406_v5  ;;  %v5550_v33 = vrot.slane %v5542_v0, 4 }
 0x1d6   :  { %v9379_v39 = vld [vmem:[%s12297_s3 + $0x1a0] sm:$0xff]   ;;  %v4760_v45 = vrot.slane %v4758_v2, 5  ;;  %8920 = vmatprep.subr.bf16.mxu0 %v9381_v43  ;;  %v4639_v13 = vld [vmem:[#allocation6 + $0x1c8] sm:$0xff]  ;;  %v4791_v57 = vrot.slane %v4789_v11, 4  ;;  %v4329_v37 = vld [vmem:[#allocation5 + $0xfc] sm:$0xf] }
 0x1d7   :  { %v5773_v18 = vld [vmem:[#allocation6 + $0x100] sm:$0xff]  ;;  %8977 = vmatpush3.bf16.msra.mxu1 %v9379_v39  ;;  %v4468_v42 = vsel %vm10147_vm11, %v4409_v61, %v4467_v12  ;;  %v2404_v8 = vld [vmem:[#allocation4 + $0x6c] sm:$0xf]  ;;  %v2488_v54 = vld [vmem:[#allocation5 + $0x1c8] sm:$0xf] }
 0x1d8   :  { %v5781_v50 = vld [vmem:[#allocation6 + $0x140] sm:$0xff]  ;;  %v2406_v35 = vld [vmem:[#allocation4 + $0x8c] sm:$0xf]  ;;  %4469 = vst [vmem:[#allocation6 + $0x180] sm:$0xff] %v4468_v42  ;;  %v4792_v60 = vor.u32 %v4791_v57, %v4760_v45  ;;  %v2494_v39 = vld [vmem:[#allocation5 + $0x248] sm:$0xf] }
 0x1d9   :  { %v8552_v29 = vcombine.high %v5773_v18, %v5781_v50  ;;  %v8551_v56 = vcombine.low %v5773_v18, %v5781_v50  ;;  %v2347_v27 = vld [vmem:[#allocation4 + $0x64] sm:$0xf]  ;;  %v2375_v14 = vld [vmem:[#allocation5 + $0x1c0] sm:$0xf]  ;;  %v9382_v28 = vld [vmem:[%s12297_s3 + $0x128] sm:$0xff]  }
 0x1da   :  { %v2349_v58 = vld [vmem:[#allocation4 + $0x84] sm:$0xf]  ;;  %v2381_v49 = vld [vmem:[#allocation5 + $0x240] sm:$0xf]  ;;  %v2376_v31 = vsel %vm9993_vm12, %v2347_v27, %v2375_v14  ;;  %v5774_v30 = vld [vmem:[#allocation6 + $0x108] sm:$0xff]  ;;  %8921 = vmatpush3.bf16.msra.mxu0 %v9382_v28  ;;  %v4793_v24 = vrot.slane %v4792_v60, 4 }
 0x1db   :  { %7460 = vmatprep.mubr.bf16.mxu0 %v8552_v29  ;;  %v2382_v20 = vsel %vm9993_vm12, %v2349_v58, %v2381_v49  ;;  %v2432_v9 = vld [vmem:[#allocation5 + $0x1c4] sm:$0xf]  ;;  %2377 = vst [vmem:[#allocation5 + $0x1c0] sm:$0xf] %v2376_v31  ;;  %v5782_v59 = vld [vmem:[#allocation6 + $0x148] sm:$0xff] }
 0x1dc   :  { %7461 = vmatmul.mubr.bf16.gmra.mrb[40].mxu0 %v8551_v56  ;;  %2383 = vst [vmem:[#allocation5 + $0x240] sm:$0xf] %v2382_v20  ;;  %v2433_v4 = vsel %vm9993_vm12, %v2404_v8, %v2432_v9  ;;  %v2438_v17 = vld [vmem:[#allocation5 + $0x244] sm:$0xf]  ;;  %v4396_v25 = vld [vmem:[#allocation5 + $0x48] sm:$0xff]  ;;  %v8554_v22 = vcombine.high %v5774_v30, %v5782_v59  ;;  %v8553_v36 = vcombine.low %v5774_v30, %v5782_v59  ;;  %v5551_v9 = vrot.slane %v5543_v15, 4 }
 0x1dd   :  { %2434 = vst [vmem:[#allocation5 + $0x1c4] sm:$0xf] %v2433_v4  ;;  %v2439_v32 = vsel %vm9993_vm12, %v2406_v35, %v2438_v17  ;;  %v4845_v55 = vld [vmem:[#allocation6 + $0x1c0] sm:$0x88]  ;;  %v4411_v47 = vshrl.u32 %v4396_v25, 16  ;;  %v4629_v16 = vld [vmem:[#allocation5 + $0xc8] sm:$0xff] }
 0x1de   :  { %2440 = vst [vmem:[#allocation5 + $0x244] sm:$0xf] %v2439_v32  ;;  %v4846_v10 = vsel %vm10615_vm10, %v4760_v45, %v4845_v55  ;;  %v4750_v48 = vld [vmem:[#allocation5 + $0x148] sm:$0xff]  ;;  %v4414_v1 = vshll.u32 %v4396_v25, 16  ;;  %v4640_v46 = vsel %vm10024_vm5, %v4629_v16, %v4639_v13  ;;  %7548 = vmatprep.mubr.bf16.mxu1 %v8554_v22  ;;  %v2460_v26 = vld [vmem:[#allocation4 + $0x84] sm:$0xf] }
 0x1df   :  { %4847 = vst [vmem:[#allocation6 + $0x1c0] sm:$0x88] %v4846_v10  ;;  %v4470_v23 = vld [vmem:[#allocation6 + $0x188] sm:$0xff]  ;;  %v4762_v0 = vshll.u32 %v4750_v48, 16  ;;  %v4413_v12 = vrot.slane %v4411_v47, 7  ;;  %4641 = vst [vmem:[#allocation6 + $0x1c8] sm:$0xff] %v4640_v46  ;;  %7549 = vmatmul.mubr.bf16.gmra.mrb[40].mxu1 %v8553_v36  ;;  %v2489_v5 = vsel %vm9993_vm12, %v2460_v26, %v2488_v54 }
 0x1e0   :  { %v9383_v41 = vld [vmem:[%s12297_s3 + $0x1e8] sm:$0xff]   ;;  %v2462_v2 = vld [vmem:[#allocation4 + $0xa4] sm:$0xf]  ;;  %v4794_v53 = vshrl.u32 %v4750_v48, 16  ;;  %4869 = vst [vmem:[#allocation6 + $0x200] sm:$0x77] %v4793_v24 }
 0x1e1   :  { %v4764_v52 = vrot.slane %v4762_v0, 5  ;;  %8978 = vmatprep.subr.bf16.mxu1 %v9383_v41  ;;  %v9384_v44 = vld [vmem:[%s12297_s3 + $0x1a8] sm:$0xff]   ;;  %v5588_v18 = vld [vmem:[#allocation6 + $0x180] sm:$0x11]  ;;  %v4416_v50 = vor.u32 %v4414_v1, %v4413_v12  ;;  %v2495_v62 = vsel %vm9993_vm12, %v2462_v2, %v2494_v39  ;;  %2490 = vst [vmem:[#allocation5 + $0x1c8] sm:$0xf] %v2489_v5 }
 0x1e2   :  { %v2517_v11 = vld [vmem:[#allocation4 + $0x8c] sm:$0xf]  ;;  %v5589_v56 = vsel %vm10860_vm13, %v5550_v33, %v5588_v18  ;;  %2496 = vst [vmem:[#allocation5 + $0x248] sm:$0xf] %v2495_v62  ;;  %v4796_v27 = vrot.slane %v4794_v53, 4  ;;  %8979 = vmatpush3.bf16.msra.mxu1 %v9384_v44  ;;  %v9386_v30 = vld [vmem:[%s12297_s3 + $0x170] sm:$0xff]  }
 0x1e3   :  { %v2519_v29 = vld [vmem:[#allocation4 + $0xac] sm:$0xf]  ;;  %5590 = vst [vmem:[#allocation6 + $0x180] sm:$0x11] %v5589_v56  ;;  %v4471_v58 = vsel %vm10147_vm11, %v4416_v50, %v4470_v23  ;;  %v5070_v49 = vld [vmem:[#allocation6 + $0x240] sm:$0x77]  ;;  %8922 = vmatprep.subr.bf16.mxu0 %v9386_v30 }
 0x1e4   :  { %v5014_v45 = vld [vmem:[#allocation5 + $0x1c0] sm:$0xff]  ;;  %v2545_v43 = vld [vmem:[#allocation5 + $0x1cc] sm:$0xf]  ;;  %4472 = vst [vmem:[#allocation6 + $0x188] sm:$0xff] %v4471_v58  ;;  %v4797_v35 = vor.u32 %v4796_v27, %v4764_v52  ;;  %v3585_v40 = vld [vmem:[#allocation4 + $0x74] sm:$0xf] }
 0x1e5   :  { %v2551_v61 = vld [vmem:[#allocation5 + $0x24c] sm:$0xf]  ;;  %v5030_v14 = vrot.slane %v5014_v45, 5  ;;  %v5180_v42 = vld [vmem:[#allocation5 + $0x240] sm:$0xff]  ;;  %v2546_v13 = vsel %vm9993_vm12, %v2517_v11, %v2545_v43  ;;  %v2500_v45 = vld [vmem:[#allocation5 + $0x2c8] sm:$0xf] }
 0x1e6   :  { %v2552_v31 = vsel %vm9993_vm12, %v2519_v29, %v2551_v61  ;;  %v5189_v20 = vshrl.u32 %v5180_v42, 16  ;;  %v5192_v8 = vshll.u32 %v5180_v42, 16  ;;  %2547 = vst [vmem:[#allocation5 + $0x1cc] sm:$0xf] %v2546_v13  ;;  %v4848_v4 = vld [vmem:[#allocation6 + $0x1c8] sm:$0x88] }
 0x1e7   :  { %2553 = vst [vmem:[#allocation5 + $0x24c] sm:$0xf] %v2552_v31  ;;  %v5038_v63 = vrot.slane %v5030_v14, 4  ;;  %5062 = vst [vmem:[#allocation6 + $0x200] sm:$0x88] %v5030_v14  ;;  %v4798_v28 = vrot.slane %v4797_v35, 4  ;;  %v4849_v32 = vsel %vm10615_vm10, %v4764_v52, %v4848_v4 }
 0x1e8   :  { %v5191_v17 = vrot.slane %v5189_v20, 5  ;;  %v5194_v57 = vrot.slane %v5192_v8, 6  ;;  %v2351_v59 = vld [vmem:[#allocation4 + $0xa4] sm:$0xf]  ;;  %4850 = vst [vmem:[#allocation6 + $0x1c8] sm:$0x88] %v4849_v32 }
 0x1e9   :  { %v5071_v33 = vsel %vm10641_vm4, %v5038_v63, %v5070_v49  ;;  %v2353_v55 = vld [vmem:[#allocation4 + $0xc4] sm:$0xf]  ;;  %4870 = vst [vmem:[#allocation6 + $0x208] sm:$0x77] %v4798_v28  ;;  %v2387_v15 = vld [vmem:[#allocation5 + $0x2c0] sm:$0xf] }
 0x1ea   :  { %5072 = vst [vmem:[#allocation6 + $0x240] sm:$0x77] %v5071_v33  ;;  %v5195_v51 = vor.u32 %v5194_v57, %v5191_v17  ;;  %v2393_v25 = vld [vmem:[#allocation5 + $0x340] sm:$0xf]  ;;  %v2408_v60 = vld [vmem:[#allocation4 + $0xac] sm:$0xf]  ;;  %v2388_v22 = vsel %vm9993_vm12, %v2351_v59, %v2387_v15 }
 0x1eb   :  { %v2394_v10 = vsel %vm9993_vm12, %v2353_v55, %v2393_v25  ;;  %v2410_v36 = vld [vmem:[#allocation4 + $0xcc] sm:$0xf]  ;;  %v2444_v47 = vld [vmem:[#allocation5 + $0x2c4] sm:$0xf]  ;;  %2389 = vst [vmem:[#allocation5 + $0x2c0] sm:$0xf] %v2388_v22 }
 0x1ec   :  { %v2450_v16 = vld [vmem:[#allocation5 + $0x344] sm:$0xf]  ;;  %2395 = vst [vmem:[#allocation5 + $0x340] sm:$0xf] %v2394_v10  ;;  %v2445_v23 = vsel %vm9993_vm12, %v2408_v60, %v2444_v47  ;;  %v5252_v0 = vrot.slane %v5195_v51, 4  ;;  %v9387_v29 = vld [vmem:[%s12297_s3 + $0x130] sm:$0xff]  }
 0x1ed   :  { %v5789_v48 = vld [vmem:[#allocation6 + $0x180] sm:$0xff]  ;;  %v2451_v46 = vsel %vm9993_vm12, %v2410_v36, %v2450_v16  ;;  %v5591_v41 = vld [vmem:[#allocation6 + $0x188] sm:$0x11]  ;;  %2446 = vst [vmem:[#allocation5 + $0x2c4] sm:$0xf] %v2445_v23  ;;  %8923 = vmatpush3.bf16.msra.mxu0 %v9387_v29  ;;  %v9389_v15 = vld [vmem:[%s12297_s3 + $0x1f0] sm:$0xff]  }
 0x1ee   :  { %v5797_v1 = vld [vmem:[#allocation6 + $0x1c0] sm:$0xff]  ;;  %v5015_v26 = vld [vmem:[#allocation5 + $0x1c8] sm:$0xff]  ;;  %2452 = vst [vmem:[#allocation5 + $0x344] sm:$0xf] %v2451_v46  ;;  %v5592_v52 = vsel %vm10860_vm13, %v5551_v9, %v5591_v41  ;;  %5300 = vst [vmem:[#allocation6 + $0x280] sm:$0x33] %v5252_v0  ;;  %8980 = vmatprep.subr.bf16.mxu1 %v9389_v15 }
 0x1ef   :  { %v8568_v24 = vcombine.high %v5789_v48, %v5797_v1  ;;  %v8567_v12 = vcombine.low %v5789_v48, %v5797_v1  ;;  %v5073_v2 = vld [vmem:[#allocation6 + $0x248] sm:$0x77]  ;;  %v5031_v54 = vrot.slane %v5015_v26, 5  ;;  %5593 = vst [vmem:[#allocation6 + $0x188] sm:$0x11] %v5592_v52  ;;  %v5805_v25 = vld [vmem:[#allocation6 + $0x200] sm:$0xff] }
 0x1f0   :  { %v5181_v53 = vld [vmem:[#allocation5 + $0x248] sm:$0xff]  ;;  %v2464_v18 = vld [vmem:[#allocation4 + $0xc4] sm:$0xf]  ;;  %v9390_v10 = vld [vmem:[%s12297_s3 + $0x1b0] sm:$0xff]  }
 0x1f1   :  { %v5197_v39 = vshrl.u32 %v5181_v53, 16  ;;  %v5200_v44 = vshll.u32 %v5181_v53, 16  ;;  %7468 = vmatprep.mubr.bf16.mxu0 %v8568_v24  ;;  %v5039_v50 = vrot.slane %v5031_v54, 4  ;;  %5063 = vst [vmem:[#allocation6 + $0x208] sm:$0x88] %v5031_v54  ;;  %v2501_v58 = vsel %vm9993_vm12, %v2464_v18, %v2500_v45  ;;  %v5798_v57 = vld [vmem:[#allocation6 + $0x1c8] sm:$0xff]  ;;  %8981 = vmatpush3.bf16.msra.mxu1 %v9390_v10 }
 0x1f2   :  { %7469 = vmatmul.mubr.bf16.gmra.mrb[44].mxu0 %v8567_v12  ;;  %v2466_v11 = vld [vmem:[#allocation4 + $0xe4] sm:$0xf]  ;;  %v2506_v14 = vld [vmem:[#allocation5 + $0x348] sm:$0xf]  ;;  %v2521_v49 = vld [vmem:[#allocation4 + $0xcc] sm:$0xf] }
 0x1f3   :  { %v5199_v5 = vrot.slane %v5197_v39, 5  ;;  %v5202_v62 = vrot.slane %v5200_v44, 6  ;;  %v5276_v56 = vld [vmem:[#allocation6 + $0x240] sm:$0xcc]  ;;  %v5074_v61 = vsel %vm10641_vm4, %v5039_v50, %v5073_v2  ;;  %v2523_v42 = vld [vmem:[#allocation4 + $0xec] sm:$0xf]  ;;  %v2507_v13 = vsel %vm9993_vm12, %v2466_v11, %v2506_v14 }
 0x1f4   :  { %v5277_v43 = vsel %vm10686_vm3, %v5195_v51, %v5276_v56  ;;  %5075 = vst [vmem:[#allocation6 + $0x248] sm:$0x77] %v5074_v61  ;;  %2502 = vst [vmem:[#allocation5 + $0x2c8] sm:$0xf] %v2501_v58  ;;  %v2557_v31 = vld [vmem:[#allocation5 + $0x2cc] sm:$0xf] }
 0x1f5   :  { %v5203_v27 = vor.u32 %v5202_v62, %v5199_v5  ;;  %5278 = vst [vmem:[#allocation6 + $0x240] sm:$0xcc] %v5277_v43  ;;  %v2563_v20 = vld [vmem:[#allocation5 + $0x34c] sm:$0xf]  ;;  %v5445_v8 = vld [vmem:[#allocation5 + $0x2c0] sm:$0xff]  ;;  %v2558_v63 = vsel %vm9993_vm12, %v2521_v49, %v2557_v31  ;;  %v9391_v44 = vld [vmem:[%s12297_s3 + $0x178] sm:$0xff]  }
 0x1f6   :  { %v5501_v35 = vld [vmem:[#allocation6 + $0x2c0] sm:$0x33]  ;;  %2508 = vst [vmem:[#allocation5 + $0x348] sm:$0xf] %v2507_v13  ;;  %v2564_v4 = vsel %vm9993_vm12, %v2523_v42, %v2563_v20  ;;  %v5461_v28 = vrot.slane %v5445_v8, 6  ;;  %v5790_v33 = vld [vmem:[#allocation6 + $0x188] sm:$0xff]  ;;  %8924 = vmatprep.subr.bf16.mxu0 %v9391_v44 }
 0x1f7   :  { %v5613_v9 = vld [vmem:[#allocation5 + $0x340] sm:$0xff]  ;;  %v5253_v17 = vrot.slane %v5203_v27, 4  ;;  %2559 = vst [vmem:[#allocation5 + $0x2cc] sm:$0xf] %v2558_v63  ;;  %2565 = vst [vmem:[#allocation5 + $0x34c] sm:$0xf] %v2564_v4  ;;  %v8570_v59 = vcombine.high %v5790_v33, %v5798_v57  ;;  %v8569_v60 = vcombine.low %v5790_v33, %v5798_v57 }
 0x1f8   :  { %v5622_v30 = vshrl.u32 %v5613_v9, 16  ;;  %v5625_v32 = vshll.u32 %v5613_v9, 16  ;;  %v5469_v55 = vrot.slane %v5461_v28, 4  ;;  %5493 = vst [vmem:[#allocation6 + $0x280] sm:$0xcc] %v5461_v28  ;;  %v5806_v5 = vld [vmem:[#allocation6 + $0x208] sm:$0xff] }
 0x1f9   :  { %5301 = vst [vmem:[#allocation6 + $0x288] sm:$0x33] %v5253_v17  ;;  %7556 = vmatprep.mubr.bf16.mxu1 %v8570_v59  ;;  %v5504_v53 = vld [vmem:[#allocation6 + $0x2c8] sm:$0x33]  ;;  %v2567_v18 = vld [vmem:[#allocation4 + $0x10] sm:$0xf] }
 0x1fa   :  { %v5624_v51 = vrot.slane %v5622_v30, 6  ;;  %v5627_v22 = vrot.slane %v5625_v32, 7  ;;  %v5502_v36 = vsel %vm9928_vm7, %v5469_v55, %v5501_v35  ;;  %7557 = vmatmul.mubr.bf16.gmra.mrb[44].mxu1 %v8569_v60  ;;  %v2569_v50 = vld [vmem:[#allocation4 + $0x30] sm:$0xf]  ;;  %v2624_v14 = vld [vmem:[#allocation4 + $0x18] sm:$0xf] }
 0x1fb   :  { %v5279_v16 = vld [vmem:[#allocation6 + $0x248] sm:$0xcc]  ;;  %5503 = vst [vmem:[#allocation6 + $0x2c0] sm:$0x33] %v5502_v36  ;;  %v2571_v56 = vld [vmem:[#allocation4 + $0x50] sm:$0xf] }
 0x1fc   :  { %v5813_v47 = vld [vmem:[#allocation6 + $0x240] sm:$0xff]  ;;  %v5628_v48 = vor.u32 %v5627_v22, %v5624_v51  ;;  %v5280_v23 = vsel %vm10686_vm3, %v5203_v27, %v5279_v16  ;;  %v2581_v45 = vld [vmem:[#allocation5 + $0x10] sm:$0xf]  ;;  %v2626_v20 = vld [vmem:[#allocation4 + $0x38] sm:$0xf] }
 0x1fd   :  { %v8584_v1 = vcombine.high %v5805_v25, %v5813_v47  ;;  %5281 = vst [vmem:[#allocation6 + $0x248] sm:$0xcc] %v5280_v23  ;;  %v8583_v46 = vcombine.low %v5805_v25, %v5813_v47  ;;  %v2582_v61 = vsel %vm9993_vm12, %v2567_v18, %v2581_v45  ;;  %v2587_v27 = vld [vmem:[#allocation5 + $0x90] sm:$0xf]  ;;  %v2628_v8 = vld [vmem:[#allocation4 + $0x58] sm:$0xf] }
 0x1fe   :  { %v5446_v0 = vld [vmem:[#allocation5 + $0x2c8] sm:$0xff]  ;;  %v5685_v41 = vrot.slane %v5628_v48, 4  ;;  %v2593_v58 = vld [vmem:[#allocation5 + $0x110] sm:$0xf]  ;;  %2583 = vst [vmem:[#allocation5 + $0x10] sm:$0xf] %v2582_v61  ;;  %v2588_v13 = vsel %vm9993_vm12, %v2569_v50, %v2587_v27 }
 0x1ff   :  { %v5614_v24 = vld [vmem:[#allocation5 + $0x348] sm:$0xff]  ;;  %7476 = vmatprep.mubr.bf16.mxu0 %v8584_v1  ;;  %v5462_v12 = vrot.slane %v5446_v0, 6  ;;  %v2594_v31 = vsel %vm9993_vm12, %v2571_v56, %v2593_v58  ;;  %2589 = vst [vmem:[#allocation5 + $0x90] sm:$0xf] %v2588_v13  ;;  %v2638_v9 = vld [vmem:[#allocation5 + $0x14] sm:$0xf] }
 0x200   :  { %v5630_v26 = vshrl.u32 %v5614_v24, 16  ;;  %v5633_v2 = vshll.u32 %v5614_v24, 16  ;;  %7477 = vmatmul.mubr.bf16.gmra.mrb[48].mxu0 %v8583_v46  ;;  %5733 = vst [vmem:[#allocation6 + $0x300] sm:$0x11] %v5685_v41  ;;  %2595 = vst [vmem:[#allocation5 + $0x110] sm:$0xf] %v2594_v31  ;;  %v2639_v57 = vsel %vm9993_vm12, %v2624_v14, %v2638_v9 }
 0x201   :  { %v5470_v52 = vrot.slane %v5462_v12, 4  ;;  %5494 = vst [vmem:[#allocation6 + $0x288] sm:$0xcc] %v5462_v12  ;;  %v2644_v63 = vld [vmem:[#allocation5 + $0x94] sm:$0xf]  ;;  %v5821_v55 = vld [vmem:[#allocation6 + $0x280] sm:$0xff] }
 0x202   :  { %v5632_v54 = vrot.slane %v5630_v26, 6  ;;  %v5635_v39 = vrot.slane %v5633_v2, 7  ;;  %v5709_v62 = vld [vmem:[#allocation6 + $0x2c0] sm:$0xee]  ;;  %v2650_v4 = vld [vmem:[#allocation5 + $0x114] sm:$0xf]  ;;  %v2645_v28 = vsel %vm9993_vm12, %v2626_v20, %v2644_v63 }
 0x203   :  { %v5505_v11 = vsel %vm9928_vm7, %v5470_v52, %v5504_v53  ;;  %v5710_v43 = vsel %vm10768_vm8, %v5628_v48, %v5709_v62  ;;  %v2651_v30 = vsel %vm9993_vm12, %v2628_v8, %v2650_v4  ;;  %2640 = vst [vmem:[#allocation5 + $0x14] sm:$0xf] %v2639_v57  ;;  %2646 = vst [vmem:[#allocation5 + $0x94] sm:$0xf] %v2645_v28  ;;  %v2681_v32 = vld [vmem:[#allocation4 + $0x30] sm:$0xf] }
 0x204   :  { %v5636_v29 = vor.u32 %v5635_v39, %v5632_v54  ;;  %5506 = vst [vmem:[#allocation6 + $0x2c8] sm:$0x33] %v5505_v11  ;;  %v5814_v49 = vld [vmem:[#allocation6 + $0x248] sm:$0xff]  ;;  %5711 = vst [vmem:[#allocation6 + $0x2c0] sm:$0xee] %v5710_v43  ;;  %v4376_v10 = vld [vmem:[#allocation6 + $0x10] sm:$0xff] }
 0x205   :  { %v8586_v35 = vcombine.high %v5806_v5, %v5814_v49  ;;  %v8585_v17 = vcombine.low %v5806_v5, %v5814_v49  ;;  %2652 = vst [vmem:[#allocation5 + $0x114] sm:$0xf] %v2651_v30  ;;  %v2683_v33 = vld [vmem:[#allocation4 + $0x50] sm:$0xf]  ;;  %v2695_v15 = vld [vmem:[#allocation5 + $0x18] sm:$0xf] }
 0x206   :  { %v5686_v42 = vrot.slane %v5636_v29, 4  ;;  %v2685_v59 = vld [vmem:[#allocation4 + $0x70] sm:$0xf]  ;;  %v2701_v25 = vld [vmem:[#allocation5 + $0x98] sm:$0xf]  ;;  %v2696_v36 = vsel %vm9993_vm12, %v2681_v32, %v2695_v15 }
 0x207   :  { %7564 = vmatprep.mubr.bf16.mxu1 %v8586_v35  ;;  %v10942_v51 = vld [vmem:[#allocation6 + $0x300] sm:$0x11]  ;;  %v2707_v60 = vld [vmem:[#allocation5 + $0x118] sm:$0xf]  ;;  %v2702_v47 = vsel %vm9993_vm12, %v2683_v33, %v2701_v25  ;;  %2697 = vst [vmem:[#allocation5 + $0x18] sm:$0xf] %v2696_v36 }
 0x208   :  { %5734 = vst [vmem:[#allocation6 + $0x308] sm:$0x11] %v5686_v42  ;;  %7565 = vmatmul.mubr.bf16.gmra.mrb[48].mxu1 %v8585_v17  ;;  %v2708_v16 = vsel %vm9993_vm12, %v2685_v59, %v2707_v60  ;;  %v2738_v48 = vld [vmem:[#allocation4 + $0x38] sm:$0xf]  ;;  %2703 = vst [vmem:[#allocation5 + $0x98] sm:$0xf] %v2702_v47  ;;  %v8616_v39 = vcombine.high %v10942_v51, %v10942_v51  ;;  %v8615_v20 = vcombine.low %v10942_v51, %v10942_v51 }
 0x209   :  { %v2740_v1 = vld [vmem:[#allocation4 + $0x58] sm:$0xf]  ;;  %2709 = vst [vmem:[#allocation5 + $0x118] sm:$0xf] %v2708_v16  ;;  %v2752_v24 = vld [vmem:[#allocation5 + $0x1c] sm:$0xf] }
 0x20a   :  { %v2742_v0 = vld [vmem:[#allocation4 + $0x78] sm:$0xf]  ;;  %v2753_v12 = vsel %vm9993_vm12, %v2738_v48, %v2752_v24  ;;  %v2758_v26 = vld [vmem:[#allocation5 + $0x9c] sm:$0xf]  ;;  %v4364_v44 = vld [vmem:[#allocation5 + $0x10] sm:$0xff] }
 0x20b   :  { %v5712_v22 = vld [vmem:[#allocation6 + $0x2c8] sm:$0xee]  ;;  %v5829_v23 = vld [vmem:[#allocation6 + $0x2c0] sm:$0xff]  ;;  %v2764_v2 = vld [vmem:[#allocation5 + $0x11c] sm:$0xf]  ;;  %v2759_v52 = vsel %vm9993_vm12, %v2740_v1, %v2758_v26  ;;  %v4377_v62 = vsel %vm10024_vm5, %v4364_v44, %v4376_v10 }
 0x20c   :  { %v5713_v46 = vsel %vm10768_vm8, %v5636_v29, %v5712_v22  ;;  %v8600_v41 = vcombine.high %v5821_v55, %v5829_v23  ;;  %v8599_v53 = vcombine.low %v5821_v55, %v5829_v23  ;;  %2754 = vst [vmem:[#allocation5 + $0x1c] sm:$0xf] %v2753_v12  ;;  %v2765_v54 = vsel %vm9993_vm12, %v2742_v0, %v2764_v2  ;;  %v4494_v18 = vld [vmem:[#allocation5 + $0x90] sm:$0xff]  ;;  %v9392_v45 = vld [vmem:[%s12297_s3 + $0x138] sm:$0xff]   ;;  %v5822_v27 = vld [vmem:[#allocation6 + $0x288] sm:$0xff] }
 0x20d   :  { %5714 = vst [vmem:[#allocation6 + $0x2c8] sm:$0xee] %v5713_v46  ;;  %v4663_v50 = vld [vmem:[#allocation5 + $0x110] sm:$0xff]  ;;  %2760 = vst [vmem:[#allocation5 + $0x9c] sm:$0xf] %v2759_v52  ;;  %v4509_v11 = vshll.u32 %v4494_v18, 16  ;;  %8925 = vmatpush3.bf16.msra.mxu0 %v9392_v45 }
 0x20e   :  { %7484 = vmatprep.mubr.bf16.mxu0 %v8600_v41  ;;  %2766 = vst [vmem:[#allocation5 + $0x11c] sm:$0xf] %v2765_v54  ;;  %v4542_v29 = vshrl.u32 %v4494_v18, 16  ;;  %v4679_v56 = vrot.slane %v4663_v50, 5  ;;  %4378 = vst [vmem:[#allocation6 + $0x10] sm:$0xff] %v4377_v62  ;;  %v4379_v43 = vld [vmem:[#allocation6 + $0x18] sm:$0xff] }
 0x20f   :  { %7485 = vmatmul.mubr.bf16.gmra.mrb[52].mxu0 %v8599_v53  ;;  %v10960_v5 = vld [vmem:[#allocation6 + $0x308] sm:$0x11]  ;;  %v9393_v61 = vld [vmem:[%s12297_s3 + $0x1f8] sm:$0xff]   ;;  %v4511_v58 = vrot.slane %v4509_v11, 5  ;;  %v2573_v42 = vld [vmem:[#allocation4 + $0x70] sm:$0xf] }
 0x210   :  { %7492 = vmatprep.mubr.bf16.mxu0 %v8616_v39  ;;  %v4544_v14 = vrot.slane %v4542_v29, 4  ;;  %4711 = vst [vmem:[#allocation6 + $0x50] sm:$0x88] %v4679_v56  ;;  %v9394_v49 = vld [vmem:[%s12297_s3 + $0x1b8] sm:$0xff]   ;;  %8982 = vmatprep.subr.bf16.mxu1 %v9393_v61  ;;  %v2575_v13 = vld [vmem:[#allocation4 + $0x90] sm:$0xf]  ;;  %v8618_v4 = vcombine.high %v10960_v5, %v10960_v5 }
 0x211   :  { %8983 = vmatpush3.bf16.msra.mxu1 %v9394_v49  ;;  %v2599_v35 = vld [vmem:[#allocation5 + $0x190] sm:$0xf]  ;;  %v2630_v30 = vld [vmem:[#allocation4 + $0x78] sm:$0xf]  ;;  %v4687_v55 = vrot.slane %v4679_v56, 4  ;;  %v9395_v48 = vld [vmem:[%s12297_s3 + $0x240] sm:$0xff]  }
 0x212   :  { %v4545_v8 = vor.u32 %v4544_v14, %v4511_v58  ;;  %v2605_v9 = vld [vmem:[#allocation5 + $0x210] sm:$0xf]  ;;  %v2600_v57 = vsel %vm9993_vm12, %v2573_v42, %v2599_v35  ;;  %v2632_v32 = vld [vmem:[#allocation4 + $0x98] sm:$0xf]  ;;  %v2656_v60 = vld [vmem:[#allocation5 + $0x194] sm:$0xf]  ;;  %9026 = vmatprep.subr.bf16.mxu0 %v9395_v48 }
 0x213   :  { %v4365_v17 = vld [vmem:[#allocation5 + $0x18] sm:$0xff]  ;;  %v2606_v28 = vsel %vm9993_vm12, %v2575_v13, %v2605_v9  ;;  %2601 = vst [vmem:[#allocation5 + $0x190] sm:$0xf] %v2600_v57  ;;  %v2657_v47 = vsel %vm9993_vm12, %v2630_v30, %v2656_v60  ;;  %v2662_v16 = vld [vmem:[#allocation5 + $0x214] sm:$0xf]  ;;  %v9397_v13 = vld [vmem:[%s12297_s3 + $0x2c0] sm:$0xff]  }
 0x214   :  { %v5830_v31 = vld [vmem:[#allocation6 + $0x2c8] sm:$0xff]  ;;  %v4546_v59 = vrot.slane %v4545_v8, 4  ;;  %v4380_v51 = vsel %vm10024_vm5, %v4365_v17, %v4379_v43  ;;  %v4495_v15 = vld [vmem:[#allocation5 + $0x98] sm:$0xff]  ;;  %2607 = vst [vmem:[#allocation5 + $0x210] sm:$0xf] %v2606_v28  ;;  %v2663_v23 = vsel %vm9993_vm12, %v2632_v32, %v2662_v16  ;;  %9084 = vmatprep.subr.bf16.mxu1 %v9397_v13 }
 0x215   :  { %v8602_v63 = vcombine.high %v5822_v27, %v5830_v31  ;;  %v8601_v33 = vcombine.low %v5822_v27, %v5830_v31  ;;  %v4664_v25 = vld [vmem:[#allocation5 + $0x118] sm:$0xff]  ;;  %4381 = vst [vmem:[#allocation6 + $0x18] sm:$0xff] %v4380_v51  ;;  %v4513_v22 = vshll.u32 %v4495_v15, 16  ;;  %v4547_v10 = vshrl.u32 %v4495_v15, 16  ;;  %v4601_v1 = vld [vmem:[#allocation6 + $0x10] sm:$0x88] }
 0x216   :  { %v4680_v36 = vrot.slane %v4664_v25, 5  ;;  %4621 = vst [vmem:[#allocation6 + $0x50] sm:$0x77] %v4546_v59  ;;  %2658 = vst [vmem:[#allocation5 + $0x194] sm:$0xf] %v2657_v47  ;;  %v4602_v24 = vsel %vm10615_vm10, %v4511_v58, %v4601_v1  ;;  %v8617_v31 = vcombine.low %v10960_v5, %v10960_v5 }
 0x217   :  { %7572 = vmatprep.mubr.bf16.mxu1 %v8602_v63  ;;  %7493 = vmatmul.mubr.bf16.gmra.mrb[56].mxu0 %v8615_v20  ;;  %v4730_v46 = vld [vmem:[#allocation6 + $0x90] sm:$0x77]  ;;  %v4515_v41 = vrot.slane %v4513_v22, 5  ;;  %v4549_v12 = vrot.slane %v4547_v10, 4  ;;  %2664 = vst [vmem:[#allocation5 + $0x214] sm:$0xf] %v2663_v23 }
 0x218   :  { %7573 = vmatmul.mubr.bf16.gmra.mrb[52].mxu1 %v8601_v33  ;;  %v2687_v0 = vld [vmem:[#allocation4 + $0x90] sm:$0xf]  ;;  %v4688_v26 = vrot.slane %v4680_v36, 4  ;;  %4712 = vst [vmem:[#allocation6 + $0x58] sm:$0x88] %v4680_v36  ;;  %v4731_v53 = vsel %vm10641_vm4, %v4687_v55, %v4730_v46  ;;  %v9396_v55 = vld [vmem:[%s12297_s3 + $0x200] sm:$0xff]  }
 0x219   :  { %7580 = vmatprep.mubr.bf16.mxu1 %v8618_v4  ;;  %v2689_v2 = vld [vmem:[#allocation4 + $0xb0] sm:$0xf]  ;;  %4603 = vst [vmem:[#allocation6 + $0x10] sm:$0x88] %v4602_v24  ;;  %v2713_v52 = vld [vmem:[#allocation5 + $0x198] sm:$0xf]  ;;  %v4550_v44 = vor.u32 %v4549_v12, %v4515_v41 }
 0x21a   :  { %v2719_v54 = vld [vmem:[#allocation5 + $0x218] sm:$0xf]  ;;  %4732 = vst [vmem:[#allocation6 + $0x90] sm:$0x77] %v4731_v53  ;;  %v2714_v18 = vsel %vm9993_vm12, %v2687_v0, %v2713_v52  ;;  %v2770_v11 = vld [vmem:[#allocation5 + $0x19c] sm:$0xf] }
 0x21b   :  { %v2744_v39 = vld [vmem:[#allocation4 + $0x98] sm:$0xf]  ;;  %v2720_v50 = vsel %vm9993_vm12, %v2689_v2, %v2719_v54  ;;  %v2776_v29 = vld [vmem:[#allocation5 + $0x21c] sm:$0xf]  ;;  %2715 = vst [vmem:[#allocation5 + $0x198] sm:$0xf] %v2714_v18 }
 0x21c   :  { %v2746_v62 = vld [vmem:[#allocation4 + $0xb8] sm:$0xf]  ;;  %2721 = vst [vmem:[#allocation5 + $0x218] sm:$0xf] %v2720_v50  ;;  %v2771_v56 = vsel %vm9993_vm12, %v2744_v39, %v2770_v11  ;;  %v2577_v61 = vld [vmem:[#allocation4 + $0xb0] sm:$0xf] }
 0x21d   :  { %v2777_v45 = vsel %vm9993_vm12, %v2746_v62, %v2776_v29  ;;  %v4733_v43 = vld [vmem:[#allocation6 + $0x98] sm:$0x77]  ;;  %v2579_v27 = vld [vmem:[#allocation4 + $0xd0] sm:$0xf]  ;;  %v4551_v58 = vrot.slane %v4550_v44, 4  ;;  %v9398_v62 = vld [vmem:[%s12297_s3 + $0x280] sm:$0xff]  }
 0x21e   :  { %2772 = vst [vmem:[#allocation5 + $0x19c] sm:$0xf] %v2771_v56  ;;  %2778 = vst [vmem:[#allocation5 + $0x21c] sm:$0xf] %v2777_v45  ;;  %v4734_v14 = vsel %vm10641_vm4, %v4688_v26, %v4733_v43  ;;  %v2611_v49 = vld [vmem:[#allocation5 + $0x290] sm:$0xf] }
 0x21f   :  { %v2617_v42 = vld [vmem:[#allocation5 + $0x310] sm:$0xf]  ;;  %v4604_v20 = vld [vmem:[#allocation6 + $0x18] sm:$0x88]  ;;  %4735 = vst [vmem:[#allocation6 + $0x98] sm:$0x77] %v4734_v14  ;;  %v2612_v8 = vsel %vm9993_vm12, %v2577_v61, %v2611_v49 }
 0x220   :  { %v2618_v35 = vsel %vm9993_vm12, %v2579_v27, %v2617_v42  ;;  %v2634_v9 = vld [vmem:[#allocation4 + $0xb8] sm:$0xf]  ;;  %v4605_v4 = vsel %vm10615_vm10, %v4515_v41, %v4604_v20  ;;  %4622 = vst [vmem:[#allocation6 + $0x58] sm:$0x77] %v4551_v58  ;;  %v4880_v17 = vld [vmem:[#allocation5 + $0x190] sm:$0xff]  ;;  %7581 = vmatmul.mubr.bf16.gmra.mrb[56].mxu1 %v8617_v31 }
 0x221   :  { %v2636_v63 = vld [vmem:[#allocation4 + $0xd8] sm:$0xf]  ;;  %2613 = vst [vmem:[#allocation5 + $0x290] sm:$0xf] %v2612_v8  ;;  %2619 = vst [vmem:[#allocation5 + $0x310] sm:$0xf] %v2618_v35 }
 0x222   :  { %v2668_v57 = vld [vmem:[#allocation5 + $0x294] sm:$0xf]  ;;  %4606 = vst [vmem:[#allocation6 + $0x18] sm:$0x88] %v4605_v4  ;;  %v4903_v28 = vshrl.u32 %v4880_v17, 16  ;;  %v4906_v30 = vshll.u32 %v4880_v17, 16 }
 0x223   :  { %v5751_v5 = vld [vmem:[#allocation6 + $0x50] sm:$0xff]  ;;  %v2669_v33 = vsel %vm9993_vm12, %v2634_v9, %v2668_v57  ;;  %v2725_v41 = vld [vmem:[#allocation5 + $0x298] sm:$0xf]  ;;  %v2782_v42 = vld [vmem:[#allocation5 + $0x29c] sm:$0xf] }
 0x224   :  { %v5097_v32 = vld [vmem:[#allocation5 + $0x210] sm:$0xff]  ;;  %2670 = vst [vmem:[#allocation5 + $0x294] sm:$0xf] %v2669_v33  ;;  %v4905_v10 = vrot.slane %v4903_v28, 5  ;;  %v4908_v36 = vrot.slane %v4906_v30, 6  ;;  %v9399_v4 = vld [vmem:[%s12297_s3 + $0x248] sm:$0xff]  }
 0x225   :  { %v2674_v59 = vld [vmem:[#allocation5 + $0x314] sm:$0xf]  ;;  %v5113_v15 = vrot.slane %v5097_v32, 6  ;;  %v2691_v1 = vld [vmem:[#allocation4 + $0xd0] sm:$0xf]  ;;  %v4881_v0 = vld [vmem:[#allocation5 + $0x198] sm:$0xff] }
 0x226   :  { %v5743_v51 = vld [vmem:[#allocation6 + $0x10] sm:$0xff]  ;;  %v2675_v25 = vsel %vm9993_vm12, %v2636_v63, %v2674_v59  ;;  %v4909_v46 = vor.u32 %v4908_v36, %v4905_v10  ;;  %v5098_v24 = vld [vmem:[#allocation5 + $0x218] sm:$0xff]  ;;  %v4911_v12 = vshrl.u32 %v4881_v0, 16  ;;  %v4914_v26 = vshll.u32 %v4881_v0, 16  ;;  %v9400_v28 = vld [vmem:[%s12297_s3 + $0x208] sm:$0xff]  }
 0x227   :  { %v5161_v60 = vld [vmem:[#allocation6 + $0x110] sm:$0x33]  ;;  %v8524_v22 = vcombine.high %v5743_v51, %v5751_v5  ;;  %v4987_v47 = vld [vmem:[#allocation6 + $0x90] sm:$0xcc]  ;;  %2676 = vst [vmem:[#allocation5 + $0x314] sm:$0xf] %v2675_v25  ;;  %v8523_v16 = vcombine.low %v5743_v51, %v5751_v5  ;;  %v2726_v44 = vsel %vm9993_vm12, %v2691_v1, %v2725_v41 }
 0x228   :  { %v5121_v48 = vrot.slane %v5113_v15, 4  ;;  %5145 = vst [vmem:[#allocation6 + $0xd0] sm:$0xcc] %v5113_v15  ;;  %v2693_v23 = vld [vmem:[#allocation4 + $0xf0] sm:$0xf]  ;;  %v5114_v2 = vrot.slane %v5098_v24, 6  ;;  %v4988_v39 = vsel %vm10686_vm3, %v4909_v46, %v4987_v47 }
 0x229   :  { %7620 = vmatprep.mubr.bf16.mxu0 %v8524_v22  ;;  %v5752_v52 = vld [vmem:[#allocation6 + $0x58] sm:$0xff]  ;;  %v4952_v54 = vrot.slane %v4909_v46, 4  ;;  %4989 = vst [vmem:[#allocation6 + $0x90] sm:$0xcc] %v4988_v39  ;;  %v4913_v29 = vrot.slane %v4911_v12, 5  ;;  %v4916_v56 = vrot.slane %v4914_v26, 6 }
 0x22a   :  { %7621 = vmatmul.mubr.bf16.vlgmr.msra.gmra.mrb[60].mxu0 %v8523_v16  ;;  %v5162_v53 = vsel %vm9928_vm7, %v5121_v48, %v5161_v60  ;;  %v2731_v18 = vld [vmem:[#allocation5 + $0x318] sm:$0xf]  ;;  %v5122_v45 = vrot.slane %v5114_v2, 4  ;;  %5146 = vst [vmem:[#allocation6 + $0xd8] sm:$0xcc] %v5114_v2 }
 0x22b   :  { %5163 = vst [vmem:[#allocation6 + $0x110] sm:$0x33] %v5162_v53  ;;  %v2748_v50 = vld [vmem:[#allocation4 + $0xd8] sm:$0xf]  ;;  %9027 = vmatpush3.bf16.msra.mxu0 %v9396_v55  ;;  %2727 = vst [vmem:[#allocation5 + $0x298] sm:$0xf] %v2726_v44  ;;  %v2732_v43 = vsel %vm9993_vm12, %v2693_v23, %v2731_v18  ;;  %v4917_v31 = vor.u32 %v4916_v56, %v4913_v29 }
 0x22c   :  { %v5744_v11 = vld [vmem:[#allocation6 + $0x18] sm:$0xff]  ;;  %5007 = vst [vmem:[#allocation6 + $0xd0] sm:$0x33] %v4952_v54  ;;  %v5311_v49 = vld [vmem:[#allocation5 + $0x290] sm:$0xff]  ;;  %2733 = vst [vmem:[#allocation5 + $0x318] sm:$0xf] %v2732_v43  ;;  %v2783_v9 = vsel %vm9993_vm12, %v2748_v50, %v2782_v42  ;;  %9028 = vmatprep.subr.bf16.mxu0 %v9399_v4 }
 0x22d   :  { %v2750_v61 = vld [vmem:[#allocation4 + $0xf8] sm:$0xf]  ;;  %v8525_v27 = vcombine.low %v5744_v11, %v5752_v52  ;;  %v8526_v58 = vcombine.high %v5744_v11, %v5752_v52  ;;  %v2788_v13 = vld [vmem:[#allocation5 + $0x31c] sm:$0xf]  ;;  %v5334_v20 = vshrl.u32 %v5311_v49, 16  ;;  %v5337_v8 = vshll.u32 %v5311_v49, 16 }
 0x22e   :  { %v4990_v14 = vld [vmem:[#allocation6 + $0x98] sm:$0xcc]  ;;  %v11033_v35 = vld [vmem:[#allocation5 + $0x310] sm:$0xff]  ;;  %v5164_v63 = vld [vmem:[#allocation6 + $0x118] sm:$0x33]  ;;  %v2789_v57 = vsel %vm9993_vm12, %v2750_v61, %v2788_v13  ;;  %v4953_v30 = vrot.slane %v4917_v31, 4 }
 0x22f   :  { %7708 = vmatprep.mubr.bf16.mxu1 %v8526_v58  ;;  %v5544_v17 = vrot.slane %v11033_v35, 7  ;;  %2784 = vst [vmem:[#allocation5 + $0x29c] sm:$0xf] %v2783_v9  ;;  %v5165_v5 = vsel %vm9928_vm7, %v5122_v45, %v5164_v63  ;;  %v4991_v32 = vsel %vm10686_vm3, %v4917_v31, %v4990_v14  ;;  %v5336_v33 = vrot.slane %v5334_v20, 6  ;;  %2790 = vst [vmem:[#allocation5 + $0x31c] sm:$0xf] %v2789_v57 }
 0x230   :  { %7709 = vmatmul.mubr.bf16.vlgmr.msra.gmra.mrb[60].mxu1 %v8525_v27  ;;  %v5339_v59 = vrot.slane %v5337_v8, 7  ;;  %5166 = vst [vmem:[#allocation6 + $0x118] sm:$0x33] %v5165_v5  ;;  %4992 = vst [vmem:[#allocation6 + $0x98] sm:$0xcc] %v4991_v32  ;;  %9029 = vmatpush3.bf16.msra.mxu0 %v9400_v28  ;;  %v5759_v25 = vld [vmem:[#allocation6 + $0x90] sm:$0xff] }
 0x231   :  { %5576 = vst [vmem:[#allocation6 + $0x150] sm:$0xee] %v5544_v17  ;;  %9085 = vmatpush3.bf16.msra.mxu1 %v9398_v62  ;;  %5008 = vst [vmem:[#allocation6 + $0xd8] sm:$0x33] %v4953_v30  ;;  %v2568_v15 = vld [vmem:[#allocation4 + $0x14] sm:$0xf] }
 0x232   :  { %v5340_v55 = vor.u32 %v5339_v59, %v5336_v33  ;;  %v5418_v51 = vld [vmem:[#allocation6 + $0x110] sm:$0xee]  ;;  %v2625_v24 = vld [vmem:[#allocation4 + $0x1c] sm:$0xf]  ;;  %v9401_v50 = vld [vmem:[%s12297_s3 + $0x2c8] sm:$0xff]  }
 0x233   :  { %v2570_v60 = vld [vmem:[#allocation4 + $0x34] sm:$0xf]  ;;  %v2584_v16 = vld [vmem:[#allocation5 + $0x50] sm:$0xf]  ;;  %v2627_v41 = vld [vmem:[#allocation4 + $0x3c] sm:$0xf]  ;;  %9086 = vmatprep.subr.bf16.mxu1 %v9401_v50 }
 0x234   :  { %v2572_v22 = vld [vmem:[#allocation4 + $0x54] sm:$0xf]  ;;  %v5383_v36 = vrot.slane %v5340_v55, 4  ;;  %v5419_v47 = vsel %vm10768_vm8, %v5340_v55, %v5418_v51  ;;  %v2590_v48 = vld [vmem:[#allocation5 + $0xd0] sm:$0xf]  ;;  %v2585_v23 = vsel %vm9993_vm12, %v2568_v15, %v2584_v16  ;;  %v9402_v49 = vld [vmem:[%s12297_s3 + $0x288] sm:$0xff]  }
 0x235   :  { %v5767_v10 = vld [vmem:[#allocation6 + $0xd0] sm:$0xff]  ;;  %5420 = vst [vmem:[#allocation6 + $0x110] sm:$0xee] %v5419_v47  ;;  %v2591_v46 = vsel %vm9993_vm12, %v2570_v60, %v2590_v48  ;;  %2586 = vst [vmem:[#allocation5 + $0x50] sm:$0xf] %v2585_v23  ;;  %9087 = vmatpush3.bf16.msra.mxu1 %v9402_v49 }
 0x236   :  { %v8540_v1 = vcombine.high %v5759_v25, %v5767_v10  ;;  %v2596_v0 = vld [vmem:[#allocation5 + $0x150] sm:$0xf]  ;;  %v8539_v12 = vcombine.low %v5759_v25, %v5767_v10  ;;  %5438 = vst [vmem:[#allocation6 + $0x150] sm:$0x11] %v5383_v36  ;;  %v5312_v26 = vld [vmem:[#allocation5 + $0x298] sm:$0xff] }
 0x237   :  { %2592 = vst [vmem:[#allocation5 + $0xd0] sm:$0xf] %v2591_v46  ;;  %v2597_v2 = vsel %vm9993_vm12, %v2572_v22, %v2596_v0  ;;  %v2629_v53 = vld [vmem:[#allocation4 + $0x5c] sm:$0xf]  ;;  %v2641_v52 = vld [vmem:[#allocation5 + $0x54] sm:$0xf] }
 0x238   :  { %7628 = vmatprep.mubr.bf16.mxu0 %v8540_v1  ;;  %v5342_v54 = vshrl.u32 %v5312_v26, 16  ;;  %v5345_v39 = vshll.u32 %v5312_v26, 16  ;;  %v11060_v44 = vld [vmem:[#allocation5 + $0x318] sm:$0xff]  ;;  %2598 = vst [vmem:[#allocation5 + $0x150] sm:$0xf] %v2597_v2  ;;  %v2642_v18 = vsel %vm9993_vm12, %v2625_v24, %v2641_v52  ;;  %v9403_v13 = vld [vmem:[%s12297_s3 + $0x250] sm:$0xff]  }
 0x239   :  { %v5760_v62 = vld [vmem:[#allocation6 + $0x98] sm:$0xff]  ;;  %7629 = vmatmul.mubr.bf16.gmra.mrb[64].mxu0 %v8539_v12  ;;  %v5545_v29 = vrot.slane %v11060_v44, 7  ;;  %2643 = vst [vmem:[#allocation5 + $0x54] sm:$0xf] %v2642_v18  ;;  %v2647_v56 = vld [vmem:[#allocation5 + $0xd4] sm:$0xf]  ;;  %9030 = vmatprep.subr.bf16.mxu0 %v9403_v13 }
 0x23a   :  { %v5421_v11 = vld [vmem:[#allocation6 + $0x118] sm:$0xee]  ;;  %v2653_v45 = vld [vmem:[#allocation5 + $0x154] sm:$0xf]  ;;  %v5344_v61 = vrot.slane %v5342_v54, 6  ;;  %v5347_v27 = vrot.slane %v5345_v39, 7  ;;  %v2648_v58 = vsel %vm9993_vm12, %v2627_v41, %v2647_v56 }
 0x23b   :  { %v5768_v43 = vld [vmem:[#allocation6 + $0xd8] sm:$0xff]  ;;  %v2654_v14 = vsel %vm9993_vm12, %v2629_v53, %v2653_v45  ;;  %5577 = vst [vmem:[#allocation6 + $0x158] sm:$0xee] %v5545_v29  ;;  %2649 = vst [vmem:[#allocation5 + $0xd4] sm:$0xf] %v2648_v58  ;;  %v4642_v32 = vld [vmem:[#allocation6 + $0x1d0] sm:$0xff] }
 0x23c   :  { %v8542_v42 = vcombine.high %v5760_v62, %v5768_v43  ;;  %2655 = vst [vmem:[#allocation5 + $0x154] sm:$0xf] %v2654_v14  ;;  %v8541_v31 = vcombine.low %v5760_v62, %v5768_v43  ;;  %v5348_v20 = vor.u32 %v5347_v27, %v5344_v61  ;;  %v2682_v8 = vld [vmem:[#allocation4 + $0x34] sm:$0xf]  ;;  %v2698_v57 = vld [vmem:[#allocation5 + $0x58] sm:$0xf] }
 0x23d   :  { %v2684_v9 = vld [vmem:[#allocation4 + $0x54] sm:$0xf]  ;;  %v2699_v33 = vsel %vm9993_vm12, %v2682_v8, %v2698_v57  ;;  %v2704_v59 = vld [vmem:[#allocation5 + $0xd8] sm:$0xf]  ;;  %v2739_v60 = vld [vmem:[#allocation4 + $0x3c] sm:$0xf] }
 0x23e   :  { %7716 = vmatprep.mubr.bf16.mxu1 %v8542_v42  ;;  %v5775_v63 = vld [vmem:[#allocation6 + $0x110] sm:$0xff]  ;;  %v5384_v28 = vrot.slane %v5348_v20, 4  ;;  %v5422_v30 = vsel %vm10768_vm8, %v5348_v20, %v5421_v11  ;;  %v2710_v55 = vld [vmem:[#allocation5 + $0x158] sm:$0xf]  ;;  %2700 = vst [vmem:[#allocation5 + $0x58] sm:$0xf] %v2699_v33  ;;  %v2705_v15 = vsel %vm9993_vm12, %v2684_v9, %v2704_v59 }
 0x23f   :  { %v2686_v4 = vld [vmem:[#allocation4 + $0x74] sm:$0xf]  ;;  %7717 = vmatmul.mubr.bf16.gmra.mrb[64].mxu1 %v8541_v31  ;;  %5423 = vst [vmem:[#allocation6 + $0x118] sm:$0xee] %v5422_v30  ;;  %v2741_v22 = vld [vmem:[#allocation4 + $0x5c] sm:$0xf] }
 0x240   :  { %v5783_v5 = vld [vmem:[#allocation6 + $0x150] sm:$0xff]  ;;  %v2711_v25 = vsel %vm9993_vm12, %v2686_v4, %v2710_v55  ;;  %v2743_v10 = vld [vmem:[#allocation4 + $0x7c] sm:$0xf]  ;;  %5439 = vst [vmem:[#allocation6 + $0x158] sm:$0x11] %v5384_v28  ;;  %v5552_v4 = vrot.slane %v5544_v17, 4 }
 0x241   :  { %v8556_v51 = vcombine.high %v5775_v63, %v5783_v5  ;;  %v8555_v36 = vcombine.low %v5775_v63, %v5783_v5  ;;  %v4397_v47 = vld [vmem:[#allocation5 + $0x50] sm:$0xff]  ;;  %2706 = vst [vmem:[#allocation5 + $0xd8] sm:$0xf] %v2705_v15  ;;  %2712 = vst [vmem:[#allocation5 + $0x158] sm:$0xf] %v2711_v25  ;;  %v4645_v62 = vld [vmem:[#allocation6 + $0x1d8] sm:$0xff] }
 0x242   :  { %v2755_v16 = vld [vmem:[#allocation5 + $0x5c] sm:$0xf]  ;;  %v4418_v1 = vshrl.u32 %v4397_v47, 16  ;;  %v4421_v24 = vshll.u32 %v4397_v47, 16  ;;  %v4473_v41 = vld [vmem:[#allocation6 + $0x190] sm:$0xff] }
 0x243   :  { %v2761_v48 = vld [vmem:[#allocation5 + $0xdc] sm:$0xf]  ;;  %7636 = vmatprep.mubr.bf16.mxu0 %v8556_v51  ;;  %v2756_v23 = vsel %vm9993_vm12, %v2739_v60, %v2755_v16  ;;  %v4630_v12 = vld [vmem:[#allocation5 + $0xd0] sm:$0xff] }
 0x244   :  { %v2762_v46 = vsel %vm9993_vm12, %v2741_v22, %v2761_v48  ;;  %v2767_v0 = vld [vmem:[#allocation5 + $0x15c] sm:$0xf]  ;;  %7637 = vmatmul.mubr.bf16.gmra.mrb[68].mxu0 %v8555_v36  ;;  %v4751_v26 = vld [vmem:[#allocation5 + $0x150] sm:$0xff]  ;;  %2757 = vst [vmem:[#allocation5 + $0x5c] sm:$0xf] %v2756_v23  ;;  %v4420_v53 = vrot.slane %v4418_v1, 7  ;;  %v4643_v52 = vsel %vm10024_vm5, %v4630_v12, %v4642_v32 }
 0x245   :  { %2763 = vst [vmem:[#allocation5 + $0xdc] sm:$0xf] %v2762_v46  ;;  %v2768_v2 = vsel %vm9993_vm12, %v2743_v10, %v2767_v0  ;;  %v4766_v54 = vshll.u32 %v4751_v26, 16  ;;  %4644 = vst [vmem:[#allocation6 + $0x1d0] sm:$0xff] %v4643_v52  ;;  %v2574_v39 = vld [vmem:[#allocation4 + $0x74] sm:$0xf] }
 0x246   :  { %2769 = vst [vmem:[#allocation5 + $0x15c] sm:$0xf] %v2768_v2  ;;  %v4423_v18 = vor.u32 %v4421_v24, %v4420_v53  ;;  %v2576_v11 = vld [vmem:[#allocation4 + $0x94] sm:$0xf]  ;;  %v2602_v56 = vld [vmem:[#allocation5 + $0x1d0] sm:$0xf] }
 0x247   :  { %v4768_v50 = vrot.slane %v4766_v54, 5  ;;  %v4799_v45 = vshrl.u32 %v4751_v26, 16  ;;  %v5776_v43 = vld [vmem:[#allocation6 + $0x118] sm:$0xff]  ;;  %v2603_v61 = vsel %vm9993_vm12, %v2574_v39, %v2602_v56  ;;  %v2608_v27 = vld [vmem:[#allocation5 + $0x250] sm:$0xf] }
 0x248   :  { %v2631_v58 = vld [vmem:[#allocation4 + $0x7c] sm:$0xf]  ;;  %v4474_v49 = vsel %vm10147_vm11, %v4423_v18, %v4473_v41  ;;  %2604 = vst [vmem:[#allocation5 + $0x1d0] sm:$0xf] %v2603_v61  ;;  %v2609_v42 = vsel %vm9993_vm12, %v2576_v11, %v2608_v27  ;;  %v2659_v31 = vld [vmem:[#allocation5 + $0x1d4] sm:$0xf] }
 0x249   :  { %v5784_v14 = vld [vmem:[#allocation6 + $0x158] sm:$0xff]  ;;  %v4801_v20 = vrot.slane %v4799_v45, 4  ;;  %4475 = vst [vmem:[#allocation6 + $0x190] sm:$0xff] %v4474_v49  ;;  %2610 = vst [vmem:[#allocation5 + $0x250] sm:$0xf] %v2609_v42  ;;  %v2660_v9 = vsel %vm9993_vm12, %v2631_v58, %v2659_v31  ;;  %v9404_v35 = vld [vmem:[%s12297_s3 + $0x210] sm:$0xff]  }
 0x24a   :  { %v2633_v13 = vld [vmem:[#allocation4 + $0x9c] sm:$0xf]  ;;  %v8558_v8 = vcombine.high %v5776_v43, %v5784_v14  ;;  %v2665_v63 = vld [vmem:[#allocation5 + $0x254] sm:$0xf]  ;;  %v8557_v57 = vcombine.low %v5776_v43, %v5784_v14  ;;  %2661 = vst [vmem:[#allocation5 + $0x1d4] sm:$0xf] %v2660_v9  ;;  %9031 = vmatpush3.bf16.msra.mxu0 %v9404_v35 }
 0x24b   :  { %v4398_v5 = vld [vmem:[#allocation5 + $0x58] sm:$0xff]  ;;  %v2666_v30 = vsel %vm9993_vm12, %v2633_v13, %v2665_v63  ;;  %v4802_v32 = vor.u32 %v4801_v20, %v4768_v50  ;;  %v9405_v36 = vld [vmem:[%s12297_s3 + $0x2d0] sm:$0xff]   ;;  %v5553_v9 = vrot.slane %v5545_v29, 4 }
 0x24c   :  { %v4631_v28 = vld [vmem:[#allocation5 + $0xd8] sm:$0xff]  ;;  %7724 = vmatprep.mubr.bf16.mxu1 %v8558_v8  ;;  %v4425_v33 = vshrl.u32 %v4398_v5, 16  ;;  %v4428_v59 = vshll.u32 %v4398_v5, 16  ;;  %2667 = vst [vmem:[#allocation5 + $0x254] sm:$0xf] %v2666_v30  ;;  %9088 = vmatprep.subr.bf16.mxu1 %v9405_v36  ;;  %v9406_v18 = vld [vmem:[%s12297_s3 + $0x290] sm:$0xff]  }
 0x24d   :  { %v4646_v55 = vsel %vm10024_vm5, %v4631_v28, %v4645_v62  ;;  %v4752_v51 = vld [vmem:[#allocation5 + $0x158] sm:$0xff]  ;;  %v4851_v17 = vld [vmem:[#allocation6 + $0x1d0] sm:$0x88]  ;;  %7725 = vmatmul.mubr.bf16.gmra.mrb[68].mxu1 %v8557_v57  ;;  %v4803_v60 = vrot.slane %v4802_v32, 4  ;;  %v5076_v56 = vld [vmem:[#allocation6 + $0x250] sm:$0x77] }
 0x24e   :  { %v4476_v15 = vld [vmem:[#allocation6 + $0x198] sm:$0xff]  ;;  %4647 = vst [vmem:[#allocation6 + $0x1d8] sm:$0xff] %v4646_v55  ;;  %v4770_v25 = vshll.u32 %v4752_v51, 16  ;;  %v4852_v22 = vsel %vm10615_vm10, %v4768_v50, %v4851_v17  ;;  %v4427_v10 = vrot.slane %v4425_v33, 7  ;;  %v2688_v47 = vld [vmem:[#allocation4 + $0x94] sm:$0xf]  ;;  %9089 = vmatpush3.bf16.msra.mxu1 %v9406_v18 }
 0x24f   :  { %v2690_v16 = vld [vmem:[#allocation4 + $0xb4] sm:$0xf]  ;;  %4853 = vst [vmem:[#allocation6 + $0x1d0] sm:$0x88] %v4852_v22  ;;  %4871 = vst [vmem:[#allocation6 + $0x210] sm:$0x77] %v4803_v60 }
 0x250   :  { %v4772_v48 = vrot.slane %v4770_v25, 5  ;;  %v2716_v1 = vld [vmem:[#allocation5 + $0x1d8] sm:$0xf]  ;;  %v4804_v46 = vshrl.u32 %v4752_v51, 16  ;;  %v4430_v0 = vor.u32 %v4428_v59, %v4427_v10  ;;  %v2745_v12 = vld [vmem:[#allocation4 + $0x9c] sm:$0xf] }
 0x251   :  { %v2722_v23 = vld [vmem:[#allocation5 + $0x258] sm:$0xf]  ;;  %v2717_v24 = vsel %vm9993_vm12, %v2688_v47, %v2716_v1  ;;  %v2747_v26 = vld [vmem:[#allocation4 + $0xbc] sm:$0xf]  ;;  %v5594_v53 = vld [vmem:[#allocation6 + $0x190] sm:$0x11] }
 0x252   :  { %v2723_v41 = vsel %vm9993_vm12, %v2690_v16, %v2722_v23  ;;  %v2773_v2 = vld [vmem:[#allocation5 + $0x1dc] sm:$0xf]  ;;  %2718 = vst [vmem:[#allocation5 + $0x1d8] sm:$0xf] %v2717_v24  ;;  %v4806_v39 = vrot.slane %v4804_v46, 4  ;;  %v5595_v50 = vsel %vm10860_vm13, %v5552_v4, %v5594_v53  ;;  %v4477_v62 = vsel %vm10147_vm11, %v4430_v0, %v4476_v15  ;;  %v5016_v11 = vld [vmem:[#allocation5 + $0x1d0] sm:$0xff] }
 0x253   :  { %2724 = vst [vmem:[#allocation5 + $0x258] sm:$0xf] %v2723_v41  ;;  %v2774_v52 = vsel %vm9993_vm12, %v2745_v12, %v2773_v2  ;;  %v2779_v54 = vld [vmem:[#allocation5 + $0x25c] sm:$0xf]  ;;  %5596 = vst [vmem:[#allocation6 + $0x190] sm:$0x11] %v5595_v50 }
 0x254   :  { %2775 = vst [vmem:[#allocation5 + $0x1dc] sm:$0xf] %v2774_v52  ;;  %v2780_v45 = vsel %vm9993_vm12, %v2747_v26, %v2779_v54  ;;  %4478 = vst [vmem:[#allocation6 + $0x198] sm:$0xff] %v4477_v62  ;;  %v5032_v43 = vrot.slane %v5016_v11, 5  ;;  %v5182_v61 = vld [vmem:[#allocation5 + $0x250] sm:$0xff]  ;;  %v4807_v27 = vor.u32 %v4806_v39, %v4772_v48  ;;  %v9407_v20 = vld [vmem:[%s12297_s3 + $0x258] sm:$0xff]  }
 0x255   :  { %2781 = vst [vmem:[#allocation5 + $0x25c] sm:$0xf] %v2780_v45  ;;  %v4854_v58 = vld [vmem:[#allocation6 + $0x1d8] sm:$0x88]  ;;  %v5205_v14 = vshrl.u32 %v5182_v61, 16  ;;  %v5208_v49 = vshll.u32 %v5182_v61, 16  ;;  %9032 = vmatprep.subr.bf16.mxu0 %v9407_v20 }
 0x256   :  { %v4855_v42 = vsel %vm10615_vm10, %v4772_v48, %v4854_v58  ;;  %v5040_v13 = vrot.slane %v5032_v43, 4  ;;  %5064 = vst [vmem:[#allocation6 + $0x210] sm:$0x88] %v5032_v43  ;;  %v4808_v31 = vrot.slane %v4807_v27, 4  ;;  %v9408_v8 = vld [vmem:[%s12297_s3 + $0x218] sm:$0xff]   ;;  %v5799_v33 = vld [vmem:[#allocation6 + $0x1d0] sm:$0xff] }
 0x257   :  { %4856 = vst [vmem:[#allocation6 + $0x1d8] sm:$0x88] %v4855_v42  ;;  %v5207_v63 = vrot.slane %v5205_v14, 5  ;;  %v5210_v4 = vrot.slane %v5208_v49, 6  ;;  %v9409_v57 = vld [vmem:[%s12297_s3 + $0x2d8] sm:$0xff]   ;;  %9033 = vmatpush3.bf16.msra.mxu0 %v9408_v8  ;;  %v9411_v2 = vld [vmem:[%s12297_s3 + $0x260] sm:$0xff]  }
 0x258   :  { %v5077_v5 = vsel %vm10641_vm4, %v5040_v13, %v5076_v56  ;;  %4872 = vst [vmem:[#allocation6 + $0x218] sm:$0x77] %v4808_v31  ;;  %v2578_v28 = vld [vmem:[#allocation4 + $0xb4] sm:$0xf]  ;;  %v2614_v32 = vld [vmem:[#allocation5 + $0x2d0] sm:$0xf]  ;;  %9090 = vmatprep.subr.bf16.mxu1 %v9409_v57  ;;  %9034 = vmatprep.subr.bf16.mxu0 %v9411_v2 }
 0x259   :  { %v2580_v30 = vld [vmem:[#allocation4 + $0xd4] sm:$0xf]  ;;  %5078 = vst [vmem:[#allocation6 + $0x250] sm:$0x77] %v5077_v5  ;;  %v5211_v59 = vor.u32 %v5210_v4, %v5207_v63  ;;  %v2615_v44 = vsel %vm9993_vm12, %v2578_v28, %v2614_v32  ;;  %v2620_v29 = vld [vmem:[#allocation5 + $0x350] sm:$0xf] }
 0x25a   :  { %v2635_v55 = vld [vmem:[#allocation4 + $0xbc] sm:$0xf]  ;;  %2616 = vst [vmem:[#allocation5 + $0x2d0] sm:$0xf] %v2615_v44  ;;  %v2621_v17 = vsel %vm9993_vm12, %v2580_v30, %v2620_v29  ;;  %v2671_v15 = vld [vmem:[#allocation5 + $0x2d4] sm:$0xf] }
 0x25b   :  { %v2637_v51 = vld [vmem:[#allocation4 + $0xdc] sm:$0xf]  ;;  %v2677_v25 = vld [vmem:[#allocation5 + $0x354] sm:$0xf]  ;;  %2622 = vst [vmem:[#allocation5 + $0x350] sm:$0xf] %v2621_v17  ;;  %v2672_v47 = vsel %vm9993_vm12, %v2635_v55, %v2671_v15 }
 0x25c   :  { %v5017_v35 = vld [vmem:[#allocation5 + $0x1d8] sm:$0xff]  ;;  %v5791_v60 = vld [vmem:[#allocation6 + $0x190] sm:$0xff]  ;;  %v2678_v16 = vsel %vm9993_vm12, %v2637_v51, %v2677_v25  ;;  %v5254_v48 = vrot.slane %v5211_v59, 4  ;;  %2673 = vst [vmem:[#allocation5 + $0x2d4] sm:$0xf] %v2672_v47  ;;  %v9412_v50 = vld [vmem:[%s12297_s3 + $0x220] sm:$0xff]  }
 0x25d   :  { %v5597_v22 = vld [vmem:[#allocation6 + $0x198] sm:$0x11]  ;;  %v5033_v10 = vrot.slane %v5017_v35, 5  ;;  %v8572_v1 = vcombine.high %v5791_v60, %v5799_v33  ;;  %2679 = vst [vmem:[#allocation5 + $0x354] sm:$0xf] %v2678_v16  ;;  %v8571_v41 = vcombine.low %v5791_v60, %v5799_v33  ;;  %9035 = vmatpush3.bf16.msra.mxu0 %v9412_v50  ;;  %v9413_v32 = vld [vmem:[%s12297_s3 + $0x2e0] sm:$0xff]  }
 0x25e   :  { %v5183_v36 = vld [vmem:[#allocation5 + $0x258] sm:$0xff]  ;;  %v5598_v23 = vsel %vm10860_vm13, %v5553_v9, %v5597_v22  ;;  %5302 = vst [vmem:[#allocation6 + $0x290] sm:$0x33] %v5254_v48  ;;  %v2692_v39 = vld [vmem:[#allocation4 + $0xd4] sm:$0xf]  ;;  %v9415_v51 = vld [vmem:[%s12297_s3 + $0x2a0] sm:$0xff]  }
 0x25f   :  { %v5079_v46 = vld [vmem:[#allocation6 + $0x258] sm:$0x77]  ;;  %v5213_v0 = vshrl.u32 %v5183_v36, 16  ;;  %5599 = vst [vmem:[#allocation6 + $0x198] sm:$0x11] %v5598_v23  ;;  %v5041_v12 = vrot.slane %v5033_v10, 4  ;;  %7644 = vmatprep.mubr.bf16.mxu0 %v8572_v1 }
 0x260   :  { %v9410_v24 = vld [vmem:[%s12297_s3 + $0x298] sm:$0xff]   ;;  %5065 = vst [vmem:[#allocation6 + $0x218] sm:$0x88] %v5033_v10  ;;  %v5216_v26 = vshll.u32 %v5183_v36, 16  ;;  %7645 = vmatmul.mubr.bf16.gmra.mrb[72].mxu0 %v8571_v41  ;;  %v2694_v18 = vld [vmem:[#allocation4 + $0xf4] sm:$0xf] }
 0x261   :  { %v5215_v53 = vrot.slane %v5213_v0, 5  ;;  %9091 = vmatpush3.bf16.msra.mxu1 %v9410_v24  ;;  %v5080_v52 = vsel %vm10641_vm4, %v5041_v12, %v5079_v46  ;;  %v5282_v62 = vld [vmem:[#allocation6 + $0x250] sm:$0xcc]  ;;  %v2728_v11 = vld [vmem:[#allocation5 + $0x2d8] sm:$0xf]  ;;  %v9417_v22 = vld [vmem:[%s12297_s3 + $0x268] sm:$0xff]  }
 0x262   :  { %v5218_v54 = vrot.slane %v5216_v26, 6  ;;  %5081 = vst [vmem:[#allocation6 + $0x258] sm:$0x77] %v5080_v52  ;;  %v2734_v56 = vld [vmem:[#allocation5 + $0x358] sm:$0xf]  ;;  %v5283_v45 = vsel %vm10686_vm3, %v5211_v59, %v5282_v62  ;;  %v2729_v61 = vsel %vm9993_vm12, %v2692_v39, %v2728_v11  ;;  %9092 = vmatprep.subr.bf16.mxu1 %v9413_v32  ;;  %v5807_v35 = vld [vmem:[#allocation6 + $0x210] sm:$0xff]  ;;  %9036 = vmatprep.subr.bf16.mxu0 %v9417_v22 }
 0x263   :  { %v2735_v27 = vsel %vm9993_vm12, %v2694_v18, %v2734_v56  ;;  %v2749_v58 = vld [vmem:[#allocation4 + $0xdc] sm:$0xf]  ;;  %5284 = vst [vmem:[#allocation6 + $0x250] sm:$0xcc] %v5283_v45  ;;  %2730 = vst [vmem:[#allocation5 + $0x2d8] sm:$0xf] %v2729_v61 }
 0x264   :  { %v5219_v43 = vor.u32 %v5218_v54, %v5215_v53  ;;  %v2751_v14 = vld [vmem:[#allocation4 + $0xfc] sm:$0xf]  ;;  %2736 = vst [vmem:[#allocation5 + $0x358] sm:$0xf] %v2735_v27  ;;  %v5447_v31 = vld [vmem:[#allocation5 + $0x2d0] sm:$0xff]  ;;  %v9418_v1 = vld [vmem:[%s12297_s3 + $0x228] sm:$0xff]  }
 0x265   :  { %v2785_v49 = vld [vmem:[#allocation5 + $0x2dc] sm:$0xf]  ;;  %v5507_v20 = vld [vmem:[#allocation6 + $0x2d0] sm:$0x33]  ;;  %v5463_v5 = vrot.slane %v5447_v31, 6  ;;  %9093 = vmatpush3.bf16.msra.mxu1 %v9415_v51  ;;  %v9419_v24 = vld [vmem:[%s12297_s3 + $0x2e8] sm:$0xff]   ;;  %9037 = vmatpush3.bf16.msra.mxu0 %v9418_v1 }
 0x266   :  { %v2786_v42 = vsel %vm9993_vm12, %v2749_v58, %v2785_v49  ;;  %v2791_v13 = vld [vmem:[#allocation5 + $0x35c] sm:$0xf]  ;;  %v5615_v8 = vld [vmem:[#allocation5 + $0x350] sm:$0xff]  ;;  %v5255_v63 = vrot.slane %v5219_v43, 4  ;;  %9094 = vmatprep.subr.bf16.mxu1 %v9419_v24  ;;  %v9420_v2 = vld [vmem:[%s12297_s3 + $0x2a8] sm:$0xff]  }
 0x267   :  { %2787 = vst [vmem:[#allocation5 + $0x2dc] sm:$0xf] %v2786_v42  ;;  %v2792_v9 = vsel %vm9993_vm12, %v2751_v14, %v2791_v13  ;;  %v5792_v4 = vld [vmem:[#allocation6 + $0x198] sm:$0xff]  ;;  %v5638_v28 = vshrl.u32 %v5615_v8, 16  ;;  %v5641_v30 = vshll.u32 %v5615_v8, 16  ;;  %v5471_v44 = vrot.slane %v5463_v5, 4 }
 0x268   :  { %v5800_v57 = vld [vmem:[#allocation6 + $0x1d8] sm:$0xff]  ;;  %2793 = vst [vmem:[#allocation5 + $0x35c] sm:$0xf] %v2792_v9  ;;  %5303 = vst [vmem:[#allocation6 + $0x298] sm:$0x33] %v5255_v63  ;;  %v9422_v39 = vld [vmem:[%s12297_s3 + $0x270] sm:$0xff]  }
 0x269   :  { %v8574_v33 = vcombine.high %v5792_v4, %v5800_v57  ;;  %v8573_v59 = vcombine.low %v5792_v4, %v5800_v57  ;;  %5495 = vst [vmem:[#allocation6 + $0x290] sm:$0xcc] %v5463_v5  ;;  %v5640_v29 = vrot.slane %v5638_v28, 6  ;;  %v5643_v55 = vrot.slane %v5641_v30, 7  ;;  %v5285_v17 = vld [vmem:[#allocation6 + $0x258] sm:$0xcc]  ;;  %9095 = vmatpush3.bf16.msra.mxu1 %v9420_v2  ;;  %9038 = vmatprep.subr.bf16.mxu0 %v9422_v39 }
 0x26a   :  { %v5286_v15 = vsel %vm10686_vm3, %v5219_v43, %v5285_v17  ;;  %v5508_v25 = vsel %vm9928_vm7, %v5471_v44, %v5507_v20  ;;  %v5815_v10 = vld [vmem:[#allocation6 + $0x250] sm:$0xff]  ;;  %v5510_v16 = vld [vmem:[#allocation6 + $0x2d8] sm:$0x33]  ;;  %v2794_v62 = vld [vmem:[#allocation4] sm:$0xf] }
 0x26b   :  { %7732 = vmatprep.mubr.bf16.mxu1 %v8574_v33  ;;  %v5644_v60 = vor.u32 %v5643_v55, %v5640_v29  ;;  %5287 = vst [vmem:[#allocation6 + $0x258] sm:$0xcc] %v5286_v15  ;;  %5509 = vst [vmem:[#allocation6 + $0x2d0] sm:$0x33] %v5508_v25  ;;  %v8588_v36 = vcombine.high %v5807_v35, %v5815_v10  ;;  %v8587_v23 = vcombine.low %v5807_v35, %v5815_v10  ;;  %v5808_v53 = vld [vmem:[#allocation6 + $0x218] sm:$0xff]  ;;  %v9423_v18 = vld [vmem:[%s12297_s3 + $0x230] sm:$0xff]  }
 0x26c   :  { %7733 = vmatmul.mubr.bf16.gmra.mrb[72].mxu1 %v8573_v59  ;;  %v2796_v43 = vld [vmem:[#allocation4 + $0x20] sm:$0xf]  ;;  %v2809_v61 = vshrl.u32 %v2794_v62, 16  ;;  %9039 = vmatpush3.bf16.msra.mxu0 %v9423_v18  ;;  %v2812_v42 = vshll.u32 %v2794_v62, 16  ;;  %v9425_v57 = vld [vmem:[%s12297_s3 + $0x2f0] sm:$0xff]  }
 0x26d   :  { %v5687_v48 = vrot.slane %v5644_v60, 4  ;;  %7652 = vmatprep.mubr.bf16.mxu0 %v8588_v36  ;;  %v2798_v49 = vld [vmem:[#allocation4 + $0x40] sm:$0xf]  ;;  %v2827_v20 = vshrl.u32 %v2796_v43, 16  ;;  %v2830_v8 = vshll.u32 %v2796_v43, 16  ;;  %v9426_v32 = vld [vmem:[%s12297_s3 + $0x2b0] sm:$0xff]   ;;  %9096 = vmatprep.subr.bf16.mxu1 %v9425_v57 }
 0x26e   :  { %v5448_v47 = vld [vmem:[#allocation5 + $0x2d8] sm:$0xff]  ;;  %7653 = vmatmul.mubr.bf16.gmra.mrb[76].mxu0 %v8587_v23  ;;  %v2811_v31 = vrot.slane %v2809_v61, 4  ;;  %v2814_v9 = vrot.slane %v2812_v42, 5  ;;  %v2845_v63 = vshrl.u32 %v2798_v49, 16  ;;  %v2848_v4 = vshll.u32 %v2798_v49, 16  ;;  %9097 = vmatpush3.bf16.msra.mxu1 %v9426_v32 }
 0x26f   :  { %v5464_v46 = vrot.slane %v5448_v47, 6  ;;  %v5616_v0 = vld [vmem:[#allocation5 + $0x358] sm:$0xff]  ;;  %5735 = vst [vmem:[#allocation6 + $0x310] sm:$0x11] %v5687_v48  ;;  %v2829_v5 = vrot.slane %v2827_v20, 4  ;;  %v2832_v28 = vrot.slane %v2830_v8, 5 }
 0x270   :  { %v5646_v41 = vshrl.u32 %v5616_v0, 16  ;;  %v5649_v12 = vshll.u32 %v5616_v0, 16  ;;  %v2948_v30 = vld [vmem:[#allocation5 + $0x20] sm:$0xf]  ;;  %v2815_v33 = vor.u32 %v2814_v9, %v2811_v31  ;;  %v2847_v59 = vrot.slane %v2845_v63, 4  ;;  %v5823_v22 = vld [vmem:[#allocation6 + $0x290] sm:$0xff] }
 0x271   :  { %v5472_v26 = vrot.slane %v5464_v46, 4  ;;  %5496 = vst [vmem:[#allocation6 + $0x298] sm:$0xcc] %v5464_v46  ;;  %v2850_v44 = vrot.slane %v2848_v4, 5  ;;  %v2954_v29 = vld [vmem:[#allocation5 + $0xa0] sm:$0xf]  ;;  %v2833_v35 = vor.u32 %v2832_v28, %v2829_v5 }
 0x272   :  { %v5648_v52 = vrot.slane %v5646_v41, 6  ;;  %v5651_v54 = vrot.slane %v5649_v12, 7  ;;  %v5816_v11 = vld [vmem:[#allocation6 + $0x258] sm:$0xff]  ;;  %v5715_v56 = vld [vmem:[#allocation6 + $0x2d0] sm:$0xee]  ;;  %v2816_v47 = vrot.slane %v2815_v33, 4 }
 0x273   :  { %v5511_v50 = vsel %vm9928_vm7, %v5472_v26, %v5510_v16  ;;  %v8590_v27 = vcombine.high %v5808_v53, %v5816_v11  ;;  %v5716_v58 = vsel %vm10768_vm8, %v5644_v60, %v5715_v56  ;;  %v8589_v14 = vcombine.low %v5808_v53, %v5816_v11  ;;  %v2990_v55 = vld [vmem:[#allocation4 + $0x8] sm:$0xf]  ;;  %v9427_v23 = vld [vmem:[%s12297_s3 + $0x278] sm:$0xff]   ;;  %v2960_v24 = vld [vmem:[#allocation5 + $0x120] sm:$0xf] }
 0x274   :  { %5512 = vst [vmem:[#allocation6 + $0x2d8] sm:$0x33] %v5511_v50  ;;  %v5652_v45 = vor.u32 %v5651_v54, %v5648_v52  ;;  %5717 = vst [vmem:[#allocation6 + $0x2d0] sm:$0xee] %v5716_v58  ;;  %v2992_v51 = vld [vmem:[#allocation4 + $0x28] sm:$0xf]  ;;  %v2851_v16 = vor.u32 %v2850_v44, %v2847_v59  ;;  %v2949_v52 = vsel %vm9993_vm12, %v2816_v47, %v2948_v30  ;;  %9040 = vmatprep.subr.bf16.mxu0 %v9427_v23 }
 0x275   :  { %7740 = vmatprep.mubr.bf16.mxu1 %v8590_v27  ;;  %v2994_v17 = vld [vmem:[#allocation4 + $0x48] sm:$0xf]  ;;  %v3005_v15 = vshrl.u32 %v2990_v55, 16  ;;  %v3008_v25 = vshll.u32 %v2990_v55, 16  ;;  %v3023_v60 = vshrl.u32 %v2992_v51, 16  ;;  %v3026_v48 = vshll.u32 %v2992_v51, 16 }
 0x276   :  { %v5688_v13 = vrot.slane %v5652_v45, 4  ;;  %7741 = vmatmul.mubr.bf16.gmra.mrb[76].mxu1 %v8589_v14  ;;  %v11217_v36 = vld [vmem:[#allocation6 + $0x310] sm:$0x11]  ;;  %v3041_v1 = vshrl.u32 %v2994_v17, 16  ;;  %v2834_v0 = vrot.slane %v2833_v35, 4  ;;  %v9428_v26 = vld [vmem:[%s12297_s3 + $0x238] sm:$0xff]  }
 0x277   :  { %v3007_v41 = vrot.slane %v3005_v15, 4  ;;  %v3010_v12 = vrot.slane %v3008_v25, 5  ;;  %v2852_v53 = vrot.slane %v2851_v16, 4  ;;  %v3025_v54 = vrot.slane %v3023_v60, 4  ;;  %v3144_v18 = vld [vmem:[#allocation5 + $0x24] sm:$0xf]  ;;  %9041 = vmatpush3.bf16.msra.mxu0 %v9428_v26 }
 0x278   :  { %5736 = vst [vmem:[#allocation6 + $0x318] sm:$0x11] %v5688_v13  ;;  %v3028_v39 = vrot.slane %v3026_v48, 5  ;;  %2950 = vst [vmem:[#allocation5 + $0x20] sm:$0xf] %v2949_v52  ;;  %v2955_v11 = vsel %vm9993_vm12, %v2834_v0, %v2954_v29  ;;  %v3043_v58 = vrot.slane %v3041_v1, 4  ;;  %v8620_v49 = vcombine.high %v11217_v36, %v11217_v36 }
 0x279   :  { %v3011_v56 = vor.u32 %v3010_v12, %v3007_v41  ;;  %2956 = vst [vmem:[#allocation5 + $0xa0] sm:$0xf] %v2955_v11  ;;  %v2961_v61 = vsel %vm9993_vm12, %v2852_v53, %v2960_v24  ;;  %v3044_v14 = vshll.u32 %v2994_v17, 16  ;;  %v3186_v13 = vld [vmem:[#allocation4 + $0x20] sm:$0xf]  ;;  %v9429_v31 = vld [vmem:[%s12297_s3 + $0x2f8] sm:$0xff]   ;;  %v8619_v8 = vcombine.low %v11217_v36, %v11217_v36 }
 0x27a   :  { %v3029_v27 = vor.u32 %v3028_v39, %v3025_v54  ;;  %2962 = vst [vmem:[#allocation5 + $0x120] sm:$0xf] %v2961_v61  ;;  %v3188_v4 = vld [vmem:[#allocation4 + $0x40] sm:$0xf]  ;;  %v3201_v28 = vshrl.u32 %v3186_v13, 16  ;;  %v3204_v30 = vshll.u32 %v3186_v13, 16  ;;  %9098 = vmatprep.subr.bf16.mxu1 %v9429_v31 }
 0x27b   :  { %v5718_v10 = vld [vmem:[#allocation6 + $0x2d8] sm:$0xee]  ;;  %v5831_v2 = vld [vmem:[#allocation6 + $0x2d0] sm:$0xff]  ;;  %v3012_v42 = vrot.slane %v3011_v56, 4  ;;  %v3046_v63 = vrot.slane %v3044_v14, 5  ;;  %v3219_v32 = vshrl.u32 %v3188_v4, 16 }
 0x27c   :  { %v5719_v46 = vsel %vm10768_vm8, %v5652_v45, %v5718_v10  ;;  %v8604_v50 = vcombine.high %v5823_v22, %v5831_v2  ;;  %v8603_v62 = vcombine.low %v5823_v22, %v5831_v2  ;;  %v3150_v45 = vld [vmem:[#allocation5 + $0xa4] sm:$0xf]  ;;  %v3030_v9 = vrot.slane %v3029_v27, 4  ;;  %v3190_v57 = vld [vmem:[#allocation4 + $0x60] sm:$0xf]  ;;  %v9430_v33 = vld [vmem:[%s12297_s3 + $0x2b8] sm:$0xff]  }
 0x27d   :  { %5720 = vst [vmem:[#allocation6 + $0x2d8] sm:$0xee] %v5719_v46  ;;  %v3145_v5 = vsel %vm9993_vm12, %v3012_v42, %v3144_v18  ;;  %v5824_v59 = vld [vmem:[#allocation6 + $0x298] sm:$0xff]  ;;  %v3047_v44 = vor.u32 %v3046_v63, %v3043_v58  ;;  %v3156_v55 = vld [vmem:[#allocation5 + $0x124] sm:$0xf]  ;;  %v3222_v51 = vshll.u32 %v3188_v4, 16  ;;  %9099 = vmatpush3.bf16.msra.mxu1 %v9430_v33 }
 0x27e   :  { %7660 = vmatprep.mubr.bf16.mxu0 %v8604_v50  ;;  %3146 = vst [vmem:[#allocation5 + $0x24] sm:$0xf] %v3145_v5  ;;  %v3151_v29 = vsel %vm9993_vm12, %v3030_v9, %v3150_v45  ;;  %v3237_v35 = vshrl.u32 %v3190_v57, 16  ;;  %v3203_v15 = vrot.slane %v3201_v28, 4  ;;  %v3206_v25 = vrot.slane %v3204_v30, 5  ;;  %v9431_v10 = vld [vmem:[%s12297_s3 + $0x340] sm:$0xff]  }
 0x27f   :  { %v11231_v43 = vld [vmem:[#allocation6 + $0x318] sm:$0x11]  ;;  %7661 = vmatmul.mubr.bf16.gmra.mrb[80].mxu0 %v8603_v62  ;;  %3152 = vst [vmem:[#allocation5 + $0xa4] sm:$0xf] %v3151_v29  ;;  %v3221_v60 = vrot.slane %v3219_v32, 4  ;;  %v3240_v22 = vshll.u32 %v3190_v57, 16  ;;  %9142 = vmatprep.subr.bf16.mxu0 %v9431_v10 }
 0x280   :  { %v8622_v20 = vcombine.high %v11231_v43, %v11231_v43  ;;  %7668 = vmatprep.mubr.bf16.mxu0 %v8620_v49  ;;  %v3048_v16 = vrot.slane %v3047_v44, 4  ;;  %v3224_v48 = vrot.slane %v3222_v51, 5  ;;  %v3382_v1 = vld [vmem:[#allocation4 + $0x28] sm:$0xf]  ;;  %v4382_v46 = vld [vmem:[#allocation6 + $0x20] sm:$0xff]  ;;  %v3207_v0 = vor.u32 %v3206_v25, %v3203_v15 }
 0x281   :  { %v3384_v23 = vld [vmem:[#allocation4 + $0x48] sm:$0xf]  ;;  %v3239_v24 = vrot.slane %v3237_v35, 4  ;;  %v3242_v41 = vrot.slane %v3240_v22, 5  ;;  %v3397_v26 = vshrl.u32 %v3382_v1, 16  ;;  %v3400_v39 = vshll.u32 %v3382_v1, 16 }
 0x282   :  { %v3386_v12 = vld [vmem:[#allocation4 + $0x68] sm:$0xf]  ;;  %v3157_v2 = vsel %vm9993_vm12, %v3048_v16, %v3156_v55  ;;  %v3225_v53 = vor.u32 %v3224_v48, %v3221_v60  ;;  %v3415_v18 = vshrl.u32 %v3384_v23, 16  ;;  %v3208_v50 = vrot.slane %v3207_v0, 4  ;;  %v9433_v61 = vld [vmem:[%s12297_s3 + $0x3c0] sm:$0xff]  }
 0x283   :  { %v3340_v52 = vld [vmem:[#allocation5 + $0x28] sm:$0xf]  ;;  %3158 = vst [vmem:[#allocation5 + $0x124] sm:$0xf] %v3157_v2  ;;  %v3243_v62 = vor.u32 %v3242_v41, %v3239_v24  ;;  %v3399_v56 = vrot.slane %v3397_v26, 4  ;;  %v3418_v45 = vshll.u32 %v3384_v23, 16  ;;  %9200 = vmatprep.subr.bf16.mxu1 %v9433_v61 }
 0x284   :  { %v5832_v17 = vld [vmem:[#allocation6 + $0x2d8] sm:$0xff]  ;;  %v3346_v54 = vld [vmem:[#allocation5 + $0xa8] sm:$0xf]  ;;  %v3226_v27 = vrot.slane %v3225_v53, 4  ;;  %v3402_v58 = vrot.slane %v3400_v39, 5  ;;  %v3417_v14 = vrot.slane %v3415_v18, 4  ;;  %v3341_v31 = vsel %vm9993_vm12, %v3208_v50, %v3340_v52 }
 0x285   :  { %v8606_v36 = vcombine.high %v5824_v59, %v5832_v17  ;;  %v8605_v47 = vcombine.low %v5824_v59, %v5832_v17  ;;  %v3352_v11 = vld [vmem:[#allocation5 + $0x128] sm:$0xf]  ;;  %v3433_v49 = vshrl.u32 %v3386_v12, 16  ;;  %v4366_v42 = vld [vmem:[#allocation5 + $0x20] sm:$0xff]  ;;  %v3244_v13 = vrot.slane %v3243_v62, 4 }
 0x286   :  { %v3420_v9 = vrot.slane %v3418_v45, 5  ;;  %v3436_v63 = vshll.u32 %v3386_v12, 16  ;;  %v3536_v4 = vld [vmem:[#allocation5 + $0x2c] sm:$0xf]  ;;  %v4383_v57 = vsel %vm10024_vm5, %v4366_v42, %v4382_v46  ;;  %v4496_v5 = vld [vmem:[#allocation5 + $0xa0] sm:$0xff]  ;;  %v8621_v17 = vcombine.low %v11231_v43, %v11231_v43 }
 0x287   :  { %7748 = vmatprep.mubr.bf16.mxu1 %v8606_v36  ;;  %7669 = vmatmul.mubr.bf16.gmra.mrb[84].mxu0 %v8619_v8  ;;  %3342 = vst [vmem:[#allocation5 + $0x28] sm:$0xf] %v3341_v31  ;;  %v3403_v8 = vor.u32 %v3402_v58, %v3399_v56  ;;  %v3435_v28 = vrot.slane %v3433_v49, 4  ;;  %v3542_v30 = vld [vmem:[#allocation5 + $0xac] sm:$0xf]  ;;  %4384 = vst [vmem:[#allocation6 + $0x20] sm:$0xff] %v4383_v57  ;;  %v3353_v59 = vsel %vm9993_vm12, %v3244_v13, %v3352_v11 }
 0x288   :  { %7749 = vmatmul.mubr.bf16.gmra.mrb[80].mxu1 %v8605_v47  ;;  %v4517_v32 = vshll.u32 %v4496_v5, 16  ;;  %v4552_v33 = vshrl.u32 %v4496_v5, 16  ;;  %v3421_v44 = vor.u32 %v3420_v9, %v3417_v14  ;;  %3354 = vst [vmem:[#allocation5 + $0x128] sm:$0xf] %v3353_v59  ;;  %v3438_v55 = vrot.slane %v3436_v63, 5 }
 0x289   :  { %7756 = vmatprep.mubr.bf16.mxu1 %v8622_v20  ;;  %v3347_v20 = vsel %vm9993_vm12, %v3226_v27, %v3346_v54  ;;  %v3404_v29 = vrot.slane %v3403_v8, 4  ;;  %v2800_v25 = vld [vmem:[#allocation4 + $0x60] sm:$0xf]  ;;  %v3548_v46 = vld [vmem:[#allocation5 + $0x12c] sm:$0xf] }
 0x28a   :  { %3348 = vst [vmem:[#allocation5 + $0xa8] sm:$0xf] %v3347_v20  ;;  %v4519_v51 = vrot.slane %v4517_v32, 5  ;;  %v4554_v35 = vrot.slane %v4552_v33, 4  ;;  %v3422_v15 = vrot.slane %v3421_v44, 4  ;;  %v4665_v60 = vld [vmem:[#allocation5 + $0x120] sm:$0xff]  ;;  %v3439_v22 = vor.u32 %v3438_v55, %v3435_v28 }
 0x28b   :  { %v3537_v10 = vsel %vm9993_vm12, %v3404_v29, %v3536_v4  ;;  %v2802_v36 = vld [vmem:[#allocation4 + $0x80] sm:$0xf]  ;;  %v2863_v47 = vshrl.u32 %v2800_v25, 16  ;;  %v2866_v16 = vshll.u32 %v2800_v25, 16  ;;  %v4681_v1 = vrot.slane %v4665_v60, 5  ;;  %v4385_v27 = vld [vmem:[#allocation6 + $0x28] sm:$0xff] }
 0x28c   :  { %v4555_v48 = vor.u32 %v4554_v35, %v4519_v51  ;;  %3538 = vst [vmem:[#allocation5 + $0x2c] sm:$0xf] %v3537_v10  ;;  %v3543_v23 = vsel %vm9993_vm12, %v3422_v15, %v3542_v30  ;;  %v2881_v0 = vshrl.u32 %v2802_v36, 16  ;;  %v3440_v43 = vrot.slane %v3439_v22, 4  ;;  %v2996_v26 = vld [vmem:[#allocation4 + $0x68] sm:$0xf] }
 0x28d   :  { %3544 = vst [vmem:[#allocation5 + $0xac] sm:$0xf] %v3543_v23  ;;  %v2865_v24 = vrot.slane %v2863_v47, 4  ;;  %v2868_v41 = vrot.slane %v2866_v16, 5  ;;  %v2884_v12 = vshll.u32 %v2802_v36, 16  ;;  %v4689_v53 = vrot.slane %v4681_v1, 4 }
 0x28e   :  { %v4556_v2 = vrot.slane %v4555_v48, 4  ;;  %4713 = vst [vmem:[#allocation6 + $0x60] sm:$0x88] %v4681_v1  ;;  %v2883_v52 = vrot.slane %v2881_v0, 4  ;;  %v2998_v54 = vld [vmem:[#allocation4 + $0x88] sm:$0xf]  ;;  %v3549_v50 = vsel %vm9993_vm12, %v3440_v43, %v3548_v46 }
 0x28f   :  { %v3059_v39 = vshrl.u32 %v2996_v26, 16  ;;  %v4607_v18 = vld [vmem:[#allocation6 + $0x20] sm:$0x88]  ;;  %v2869_v62 = vor.u32 %v2868_v41, %v2865_v24  ;;  %v2886_v11 = vrot.slane %v2884_v12, 5  ;;  %v3062_v45 = vshll.u32 %v2996_v26, 16 }
 0x290   :  { %7757 = vmatmul.mubr.bf16.gmra.mrb[84].mxu1 %v8621_v17  ;;  %v2966_v56 = vld [vmem:[#allocation5 + $0x1a0] sm:$0xf]  ;;  %v4608_v61 = vsel %vm10615_vm10, %v4519_v51, %v4607_v18  ;;  %4623 = vst [vmem:[#allocation6 + $0x60] sm:$0x77] %v4556_v2  ;;  %3550 = vst [vmem:[#allocation5 + $0x12c] sm:$0xf] %v3549_v50 }
 0x291   :  { %v2972_v58 = vld [vmem:[#allocation5 + $0x220] sm:$0xf]  ;;  %v3061_v14 = vrot.slane %v3059_v39, 4  ;;  %v3077_v49 = vshrl.u32 %v2998_v54, 16  ;;  %v3080_v42 = vshll.u32 %v2998_v54, 16  ;;  %v2870_v13 = vrot.slane %v2869_v62, 4 }
 0x292   :  { %4609 = vst [vmem:[#allocation6 + $0x20] sm:$0x88] %v4608_v61  ;;  %v2887_v31 = vor.u32 %v2886_v11, %v2883_v52  ;;  %v3064_v9 = vrot.slane %v3062_v45, 5  ;;  %v4736_v63 = vld [vmem:[#allocation6 + $0xa0] sm:$0x77] }
 0x293   :  { %v3192_v4 = vld [vmem:[#allocation4 + $0x80] sm:$0xf]  ;;  %v3079_v57 = vrot.slane %v3077_v49, 4  ;;  %v3082_v5 = vrot.slane %v3080_v42, 5  ;;  %v4737_v20 = vsel %vm10641_vm4, %v4689_v53, %v4736_v63  ;;  %v4367_v30 = vld [vmem:[#allocation5 + $0x28] sm:$0xff]  ;;  %v2967_v33 = vsel %vm9993_vm12, %v2870_v13, %v2966_v56 }
 0x294   :  { %v3194_v8 = vld [vmem:[#allocation4 + $0xa0] sm:$0xf]  ;;  %v3255_v28 = vshrl.u32 %v3192_v4, 16  ;;  %v2888_v32 = vrot.slane %v2887_v31, 4  ;;  %v3065_v59 = vor.u32 %v3064_v9, %v3061_v14  ;;  %v3162_v44 = vld [vmem:[#allocation5 + $0x1a4] sm:$0xf]  ;;  %v4386_v55 = vsel %vm10024_vm5, %v4367_v30, %v4385_v27 }
 0x295   :  { %4738 = vst [vmem:[#allocation6 + $0xa0] sm:$0x77] %v4737_v20  ;;  %v3258_v29 = vshll.u32 %v3192_v4, 16  ;;  %v4497_v51 = vld [vmem:[#allocation5 + $0xa8] sm:$0xff]  ;;  %2968 = vst [vmem:[#allocation5 + $0x1a0] sm:$0xf] %v2967_v33  ;;  %v3083_v35 = vor.u32 %v3082_v5, %v3079_v57 }
 0x296   :  { %v3168_v17 = vld [vmem:[#allocation5 + $0x224] sm:$0xf]  ;;  %v3257_v15 = vrot.slane %v3255_v28, 4  ;;  %v3273_v25 = vshrl.u32 %v3194_v8, 16  ;;  %4387 = vst [vmem:[#allocation6 + $0x28] sm:$0xff] %v4386_v55  ;;  %v4521_v60 = vshll.u32 %v4497_v51, 16  ;;  %v2973_v10 = vsel %vm9993_vm12, %v2888_v32, %v2972_v58 }
 0x297   :  { %v4557_v22 = vshrl.u32 %v4497_v51, 16  ;;  %v3066_v36 = vrot.slane %v3065_v59, 4  ;;  %v3388_v47 = vld [vmem:[#allocation4 + $0x88] sm:$0xf]  ;;  %2974 = vst [vmem:[#allocation5 + $0x220] sm:$0xf] %v2973_v10 }
 0x298   :  { %v3084_v16 = vrot.slane %v3083_v35, 4  ;;  %v3260_v48 = vrot.slane %v3258_v29, 5  ;;  %v3275_v1 = vrot.slane %v3273_v25, 4  ;;  %v3276_v23 = vshll.u32 %v3194_v8, 16  ;;  %v4666_v43 = vld [vmem:[#allocation5 + $0x128] sm:$0xff]  ;;  %v5753_v26 = vld [vmem:[#allocation6 + $0x60] sm:$0xff] }
 0x299   :  { %v4523_v46 = vrot.slane %v4521_v60, 5  ;;  %v4559_v0 = vrot.slane %v4557_v22, 4  ;;  %v3163_v24 = vsel %vm9993_vm12, %v3066_v36, %v3162_v44  ;;  %v3451_v41 = vshrl.u32 %v3388_v47, 16  ;;  %v5745_v12 = vld [vmem:[#allocation6 + $0x20] sm:$0xff]  ;;  %v3390_v39 = vld [vmem:[#allocation4 + $0xa8] sm:$0xf] }
 0x29a   :  { %v4682_v2 = vrot.slane %v4666_v43, 5  ;;  %3164 = vst [vmem:[#allocation5 + $0x1a4] sm:$0xf] %v3163_v24  ;;  %v3169_v53 = vsel %vm9993_vm12, %v3084_v16, %v3168_v17  ;;  %v3261_v52 = vor.u32 %v3260_v48, %v3257_v15  ;;  %v3278_v54 = vrot.slane %v3276_v23, 5  ;;  %v3358_v11 = vld [vmem:[#allocation5 + $0x1a8] sm:$0xf] }
 0x29b   :  { %v8527_v18 = vcombine.low %v5745_v12, %v5753_v26  ;;  %v8528_v50 = vcombine.high %v5745_v12, %v5753_v26  ;;  %v4560_v62 = vor.u32 %v4559_v0, %v4523_v46  ;;  %3170 = vst [vmem:[#allocation5 + $0x224] sm:$0xf] %v3169_v53  ;;  %v3453_v56 = vrot.slane %v3451_v41, 4  ;;  %v4739_v45 = vld [vmem:[#allocation6 + $0xa8] sm:$0x77]  ;;  %v9432_v61 = vld [vmem:[%s12297_s3 + $0x300] sm:$0xff]  }
 0x29c   :  { %v4690_v27 = vrot.slane %v4682_v2, 4  ;;  %4714 = vst [vmem:[#allocation6 + $0x68] sm:$0x88] %v4682_v2  ;;  %v3262_v58 = vrot.slane %v3261_v52, 4  ;;  %v3279_v14 = vor.u32 %v3278_v54, %v3275_v1  ;;  %v3364_v49 = vld [vmem:[#allocation5 + $0x228] sm:$0xf] }
 0x29d   :  { %v3454_v42 = vshll.u32 %v3388_v47, 16  ;;  %v9435_v13 = vld [vmem:[%s12297_s3 + $0x348] sm:$0xff]   ;;  %7796 = vmatprep.mubr.bf16.mxu0 %v8528_v50  ;;  %v4561_v31 = vrot.slane %v4560_v62, 4  ;;  %v3469_v9 = vshrl.u32 %v3390_v39, 16  ;;  %v3472_v63 = vshll.u32 %v3390_v39, 16  ;;  %v9439_v60 = vld [vmem:[%s12297_s3 + $0x350] sm:$0xff]  }
 0x29e   :  { %v2804_v4 = vld [vmem:[#allocation4 + $0xa0] sm:$0xf]  ;;  %v4610_v57 = vld [vmem:[#allocation6 + $0x28] sm:$0x88]  ;;  %7797 = vmatmul.mubr.bf16.vlgmr.msra.gmra.mrb[88].mxu0 %v8527_v18  ;;  %v3280_v5 = vrot.slane %v3279_v14, 4  ;;  %v3359_v20 = vsel %vm9993_vm12, %v3262_v58, %v3358_v11  ;;  %v4740_v28 = vsel %vm10641_vm4, %v4690_v27, %v4739_v45  ;;  %v9440_v24 = vld [vmem:[%s12297_s3 + $0x310] sm:$0xff]  }
 0x29f   :  { %v3456_v8 = vrot.slane %v3454_v42, 5  ;;  %v2806_v30 = vld [vmem:[#allocation4 + $0xc0] sm:$0xf]  ;;  %v4611_v32 = vsel %vm10615_vm10, %v4523_v46, %v4610_v57  ;;  %4624 = vst [vmem:[#allocation6 + $0x68] sm:$0x77] %v4561_v31  ;;  %v3471_v33 = vrot.slane %v3469_v9, 4  ;;  %9143 = vmatpush3.bf16.msra.mxu0 %v9432_v61 }
 0x2a0   :  { %3360 = vst [vmem:[#allocation5 + $0x1a8] sm:$0xf] %v3359_v20  ;;  %v3474_v59 = vrot.slane %v3472_v63, 5  ;;  %v3554_v44 = vld [vmem:[#allocation5 + $0x1ac] sm:$0xf]  ;;  %v2899_v29 = vshrl.u32 %v2804_v4, 16  ;;  %v3365_v51 = vsel %vm9993_vm12, %v3280_v5, %v3364_v49  ;;  %9144 = vmatprep.subr.bf16.mxu0 %v9435_v13 }
 0x2a1   :  { %4741 = vst [vmem:[#allocation6 + $0xa8] sm:$0x77] %v4740_v28  ;;  %v9436_v55 = vld [vmem:[%s12297_s3 + $0x308] sm:$0xff]   ;;  %4612 = vst [vmem:[#allocation6 + $0x28] sm:$0x88] %v4611_v32  ;;  %v3457_v35 = vor.u32 %v3456_v8, %v3453_v56  ;;  %v2902_v17 = vshll.u32 %v2804_v4, 16 }
 0x2a2   :  { %v2917_v15 = vshrl.u32 %v2806_v30, 16  ;;  %v11306_v25 = vld [vmem:[#allocation4 + $0xa8] sm:$0xf]  ;;  %v4882_v22 = vld [vmem:[#allocation5 + $0x1a0] sm:$0xff]  ;;  %3366 = vst [vmem:[#allocation5 + $0x228] sm:$0xf] %v3365_v51  ;;  %v3475_v10 = vor.u32 %v3474_v59, %v3471_v33 }
 0x2a3   :  { %v3560_v36 = vld [vmem:[#allocation5 + $0x22c] sm:$0xf]  ;;  %v2901_v47 = vrot.slane %v2899_v29, 4  ;;  %v2920_v16 = vshll.u32 %v2806_v30, 16  ;;  %v3095_v48 = vshrl.u32 %v11306_v25, 16  ;;  %v4919_v1 = vshrl.u32 %v4882_v22, 16  ;;  %9145 = vmatpush3.bf16.msra.mxu0 %v9436_v55 }
 0x2a4   :  { %v4922_v23 = vshll.u32 %v4882_v22, 16  ;;  %v5099_v46 = vld [vmem:[#allocation5 + $0x220] sm:$0xff]  ;;  %v3458_v0 = vrot.slane %v3457_v35, 4  ;;  %v2904_v43 = vrot.slane %v2902_v17, 5  ;;  %v3476_v26 = vrot.slane %v3475_v10, 4  ;;  %9146 = vmatprep.subr.bf16.mxu0 %v9439_v60  ;;  %v9443_v56 = vld [vmem:[%s12297_s3 + $0x358] sm:$0xff]  }
 0x2a5   :  { %v4993_v41 = vld [vmem:[#allocation6 + $0xa0] sm:$0xcc]  ;;  %v5115_v12 = vrot.slane %v5099_v46, 6  ;;  %v2919_v2 = vrot.slane %v2917_v15, 4  ;;  %v2922_v53 = vrot.slane %v2920_v16, 5  ;;  %v4921_v54 = vrot.slane %v4919_v1, 5 }
 0x2a6   :  { %v3002_v52 = vld [vmem:[#allocation4 + $0xc8] sm:$0xf]  ;;  %v4924_v39 = vrot.slane %v4922_v23, 6  ;;  %v3555_v18 = vsel %vm9993_vm12, %v3458_v0, %v3554_v44  ;;  %v2905_v50 = vor.u32 %v2904_v43, %v2901_v47  ;;  %v2978_v62 = vld [vmem:[#allocation5 + $0x2a0] sm:$0xf]  ;;  %v3561_v61 = vsel %vm9993_vm12, %v3476_v26, %v3560_v36  ;;  %v9444_v8 = vld [vmem:[%s12297_s3 + $0x318] sm:$0xff]  }
 0x2a7   :  { %v5167_v11 = vld [vmem:[#allocation6 + $0x120] sm:$0x33]  ;;  %v5123_v45 = vrot.slane %v5115_v12, 4  ;;  %5147 = vst [vmem:[#allocation6 + $0xe0] sm:$0xcc] %v5115_v12  ;;  %v2923_v27 = vor.u32 %v2922_v53, %v2919_v2  ;;  %v3097_v58 = vrot.slane %v3095_v48, 4  ;;  %9147 = vmatpush3.bf16.msra.mxu0 %v9440_v24 }
 0x2a8   :  { %3556 = vst [vmem:[#allocation5 + $0x1ac] sm:$0xf] %v3555_v18  ;;  %v5754_v14 = vld [vmem:[#allocation6 + $0x68] sm:$0xff]  ;;  %v4925_v49 = vor.u32 %v4924_v39, %v4921_v54  ;;  %3562 = vst [vmem:[#allocation5 + $0x22c] sm:$0xf] %v3561_v61  ;;  %v2906_v42 = vrot.slane %v2905_v50, 4  ;;  %9148 = vmatprep.subr.bf16.mxu0 %v9443_v56 }
 0x2a9   :  { %v2984_v13 = vld [vmem:[#allocation5 + $0x320] sm:$0xf]  ;;  %v3098_v31 = vshll.u32 %v11306_v25, 16  ;;  %v3113_v9 = vshrl.u32 %v3002_v52, 16  ;;  %v5746_v63 = vld [vmem:[#allocation6 + $0x28] sm:$0xff]  ;;  %v2924_v4 = vrot.slane %v2923_v27, 4  ;;  %v5168_v5 = vsel %vm9928_vm7, %v5123_v45, %v5167_v11 }
 0x2aa   :  { %v3116_v57 = vshll.u32 %v3002_v52, 16  ;;  %v3196_v20 = vld [vmem:[#allocation4 + $0xc0] sm:$0xf]  ;;  %v8529_v28 = vcombine.low %v5746_v63, %v5754_v14  ;;  %v8530_v30 = vcombine.high %v5746_v63, %v5754_v14  ;;  %v4954_v32 = vrot.slane %v4925_v49, 4  ;;  %5169 = vst [vmem:[#allocation6 + $0x120] sm:$0x33] %v5168_v5 }
 0x2ab   :  { %v4994_v33 = vsel %vm10686_vm3, %v4925_v49, %v4993_v41  ;;  %v3198_v59 = vld [vmem:[#allocation4 + $0xe0] sm:$0xf]  ;;  %v2979_v29 = vsel %vm9993_vm12, %v2906_v42, %v2978_v62  ;;  %v2985_v55 = vsel %vm9993_vm12, %v2924_v4, %v2984_v13  ;;  %v3100_v51 = vrot.slane %v3098_v31, 5  ;;  %v3392_v17 = vld [vmem:[#allocation4 + $0xc8] sm:$0xf]  ;;  %v9441_v46 = vld [vmem:[%s12297_s3 + $0x3d0] sm:$0xff]   ;;  %9149 = vmatpush3.bf16.msra.mxu0 %v9444_v8 }
 0x2ac   :  { %v9434_v44 = vld [vmem:[%s12297_s3 + $0x380] sm:$0xff]   ;;  %4995 = vst [vmem:[#allocation6 + $0xa0] sm:$0xcc] %v4994_v33  ;;  %v3115_v35 = vrot.slane %v3113_v9, 4  ;;  %v9437_v15 = vld [vmem:[%s12297_s3 + $0x3c8] sm:$0xff]   ;;  %7884 = vmatprep.mubr.bf16.mxu1 %v8530_v30  ;;  %v3118_v25 = vrot.slane %v3116_v57, 5 }
 0x2ad   :  { %5009 = vst [vmem:[#allocation6 + $0xe0] sm:$0x33] %v4954_v32  ;;  %2980 = vst [vmem:[#allocation5 + $0x2a0] sm:$0xf] %v2979_v29  ;;  %v3291_v60 = vshrl.u32 %v3196_v20, 16  ;;  %v3294_v22 = vshll.u32 %v3196_v20, 16  ;;  %7885 = vmatmul.mubr.bf16.vlgmr.msra.gmra.mrb[88].mxu1 %v8529_v28  ;;  %v3101_v47 = vor.u32 %v3100_v51, %v3097_v58 }
 0x2ae   :  { %2986 = vst [vmem:[#allocation5 + $0x320] sm:$0xf] %v2985_v55  ;;  %v3309_v10 = vshrl.u32 %v3198_v59, 16  ;;  %v9438_v36 = vld [vmem:[%s12297_s3 + $0x388] sm:$0xff]   ;;  %v3174_v16 = vld [vmem:[#allocation5 + $0x2a4] sm:$0xf]  ;;  %v3119_v43 = vor.u32 %v3118_v25, %v3115_v35  ;;  %9201 = vmatpush3.bf16.msra.mxu1 %v9434_v44 }
 0x2af   :  { %v3312_v48 = vshll.u32 %v3198_v59, 16  ;;  %v3487_v1 = vshrl.u32 %v3392_v17, 16  ;;  %v3490_v23 = vshll.u32 %v3392_v17, 16  ;;  %v4883_v0 = vld [vmem:[#allocation5 + $0x1a8] sm:$0xff]  ;;  %v3180_v24 = vld [vmem:[#allocation5 + $0x324] sm:$0xf]  ;;  %9202 = vmatprep.subr.bf16.mxu1 %v9437_v15 }
 0x2b0   :  { %v3293_v41 = vrot.slane %v3291_v60, 4  ;;  %v3296_v12 = vrot.slane %v3294_v22, 5  ;;  %v3311_v26 = vrot.slane %v3309_v10, 4  ;;  %v4927_v2 = vshrl.u32 %v4883_v0, 16  ;;  %v5100_v52 = vld [vmem:[#allocation5 + $0x228] sm:$0xff]  ;;  %v9447_v50 = vld [vmem:[%s12297_s3 + $0x360] sm:$0xff]  }
 0x2b1   :  { %v4930_v53 = vshll.u32 %v4883_v0, 16  ;;  %v3102_v54 = vrot.slane %v3101_v47, 4  ;;  %v3314_v39 = vrot.slane %v3312_v48, 5  ;;  %v3370_v18 = vld [vmem:[#allocation5 + $0x2a8] sm:$0xf]  ;;  %v5116_v62 = vrot.slane %v5100_v52, 6  ;;  %9150 = vmatprep.subr.bf16.mxu0 %v9447_v50 }
 0x2b2   :  { %v3120_v11 = vrot.slane %v3119_v43, 4  ;;  %v3297_v56 = vor.u32 %v3296_v12, %v3293_v41  ;;  %v3376_v45 = vld [vmem:[#allocation5 + $0x328] sm:$0xf]  ;;  %v3489_v27 = vrot.slane %v3487_v1, 4  ;;  %v9442_v58 = vld [vmem:[%s12297_s3 + $0x390] sm:$0xff]   ;;  %v9448_v14 = vld [vmem:[%s12297_s3 + $0x320] sm:$0xff]   ;;  %9203 = vmatpush3.bf16.msra.mxu1 %v9438_v36 }
 0x2b3   :  { %v3394_v61 = vld [vmem:[#allocation4 + $0xe8] sm:$0xf]  ;;  %v4929_v49 = vrot.slane %v4927_v2, 5  ;;  %v4932_v42 = vrot.slane %v4930_v53, 6  ;;  %v3175_v13 = vsel %vm9993_vm12, %v3102_v54, %v3174_v16  ;;  %v3315_v31 = vor.u32 %v3314_v39, %v3311_v26  ;;  %v9445_v63 = vld [vmem:[%s12297_s3 + $0x3d8] sm:$0xff]   ;;  %v5761_v4 = vld [vmem:[#allocation6 + $0xa0] sm:$0xff]  ;;  %9151 = vmatpush3.bf16.msra.mxu0 %v9448_v14  ;;  %9204 = vmatprep.subr.bf16.mxu1 %v9441_v46 }
 0x2b4   :  { %v5170_v9 = vld [vmem:[#allocation6 + $0x128] sm:$0x33]  ;;  %v4996_v57 = vld [vmem:[#allocation6 + $0xa8] sm:$0xcc]  ;;  %v5124_v5 = vrot.slane %v5116_v62, 4  ;;  %v3181_v20 = vsel %vm9993_vm12, %v3120_v11, %v3180_v24  ;;  %v3298_v8 = vrot.slane %v3297_v56, 4 }
 0x2b5   :  { %5148 = vst [vmem:[#allocation6 + $0xe8] sm:$0xcc] %v5116_v62  ;;  %3176 = vst [vmem:[#allocation5 + $0x2a4] sm:$0xf] %v3175_v13  ;;  %v3492_v28 = vrot.slane %v3490_v23, 5  ;;  %v5769_v30 = vld [vmem:[#allocation6 + $0xe0] sm:$0xff]  ;;  %v4933_v32 = vor.u32 %v4932_v42, %v4929_v49 }
 0x2b6   :  { %3182 = vst [vmem:[#allocation5 + $0x324] sm:$0xf] %v3181_v20  ;;  %v3316_v33 = vrot.slane %v3315_v31, 4  ;;  %v3505_v59 = vshrl.u32 %v3394_v61, 16  ;;  %v3508_v44 = vshll.u32 %v3394_v61, 16  ;;  %v8544_v55 = vcombine.high %v5761_v4, %v5769_v30  ;;  %9205 = vmatpush3.bf16.msra.mxu1 %v9442_v58  ;;  %v9446_v46 = vld [vmem:[%s12297_s3 + $0x398] sm:$0xff]  }
 0x2b7   :  { %v3566_v29 = vld [vmem:[#allocation5 + $0x2ac] sm:$0xf]  ;;  %v8543_v51 = vcombine.low %v5761_v4, %v5769_v30  ;;  %v3371_v35 = vsel %vm9993_vm12, %v3298_v8, %v3370_v18  ;;  %v3493_v17 = vor.u32 %v3492_v28, %v3489_v27  ;;  %v4955_v15 = vrot.slane %v4933_v32, 4  ;;  %v2795_v10 = vld [vmem:[#allocation4 + $0x4] sm:$0xf]  ;;  %9206 = vmatprep.subr.bf16.mxu1 %v9445_v63 }
 0x2b8   :  { %v4997_v25 = vsel %vm10686_vm3, %v4933_v32, %v4996_v57  ;;  %3372 = vst [vmem:[#allocation5 + $0x2a8] sm:$0xf] %v3371_v35  ;;  %v3377_v60 = vsel %vm9993_vm12, %v3316_v33, %v3376_v45  ;;  %v3507_v22 = vrot.slane %v3505_v59, 4  ;;  %v2797_v36 = vld [vmem:[#allocation4 + $0x24] sm:$0xf]  ;;  %7804 = vmatprep.mubr.bf16.mxu0 %v8544_v55  ;;  %v3510_v16 = vrot.slane %v3508_v44, 5 }
 0x2b9   :  { %4998 = vst [vmem:[#allocation6 + $0xa8] sm:$0xcc] %v4997_v25  ;;  %3378 = vst [vmem:[#allocation5 + $0x328] sm:$0xf] %v3377_v60  ;;  %v3494_v47 = vrot.slane %v3493_v17, 4  ;;  %v5171_v48 = vsel %vm9928_vm7, %v5124_v5, %v5170_v9  ;;  %v2818_v23 = vshrl.u32 %v2795_v10, 16  ;;  %7805 = vmatmul.mubr.bf16.gmra.mrb[92].mxu0 %v8543_v51 }
 0x2ba   :  { %v2799_v1 = vld [vmem:[#allocation4 + $0x44] sm:$0xf]  ;;  %5010 = vst [vmem:[#allocation6 + $0xe8] sm:$0x33] %v4955_v15  ;;  %5172 = vst [vmem:[#allocation6 + $0x128] sm:$0x33] %v5171_v48  ;;  %v3511_v26 = vor.u32 %v3510_v16, %v3507_v22  ;;  %9207 = vmatpush3.bf16.msra.mxu1 %v9446_v46 }
 0x2bb   :  { %v2821_v0 = vshll.u32 %v2795_v10, 16  ;;  %v2836_v43 = vshrl.u32 %v2797_v36, 16  ;;  %v2839_v24 = vshll.u32 %v2797_v36, 16  ;;  %v2854_v41 = vshrl.u32 %v2799_v1, 16  ;;  %v9449_v12 = vld [vmem:[%s12297_s3 + $0x3e0] sm:$0xff]   ;;  %v9453_v42 = vld [vmem:[%s12297_s3 + $0x368] sm:$0xff]  }
 0x2bc   :  { %v3567_v2 = vsel %vm9993_vm12, %v3494_v47, %v3566_v29  ;;  %v3572_v53 = vld [vmem:[#allocation5 + $0x32c] sm:$0xf]  ;;  %v2820_v52 = vrot.slane %v2818_v23, 4  ;;  %v2857_v54 = vshll.u32 %v2799_v1, 16  ;;  %v5313_v39 = vld [vmem:[#allocation5 + $0x2a0] sm:$0xff]  ;;  %v3512_v58 = vrot.slane %v3511_v26, 4  ;;  %9208 = vmatprep.subr.bf16.mxu1 %v9449_v12  ;;  %9152 = vmatprep.subr.bf16.mxu0 %v9453_v42 }
 0x2bd   :  { %3568 = vst [vmem:[#allocation5 + $0x2ac] sm:$0xf] %v3567_v2  ;;  %v2823_v18 = vrot.slane %v2821_v0, 5  ;;  %v2838_v50 = vrot.slane %v2836_v43, 4  ;;  %v2841_v62 = vrot.slane %v2839_v24, 5  ;;  %v2856_v11 = vrot.slane %v2854_v41, 4 }
 0x2be   :  { %v9451_v56 = vld [vmem:[%s12297_s3 + $0x3a0] sm:$0xff]   ;;  %v5350_v45 = vshrl.u32 %v5313_v39, 16  ;;  %v5353_v61 = vshll.u32 %v5313_v39, 16  ;;  %v2859_v14 = vrot.slane %v2857_v54, 5  ;;  %v2991_v4 = vld [vmem:[#allocation4 + $0xc] sm:$0xf]  ;;  %v3573_v28 = vsel %vm9993_vm12, %v3512_v58, %v3572_v53 }
 0x2bf   :  { %v11381_v27 = vld [vmem:[#allocation5 + $0x320] sm:$0xff]  ;;  %v2824_v9 = vor.u32 %v2823_v18, %v2820_v52  ;;  %v2842_v63 = vor.u32 %v2841_v62, %v2838_v50  ;;  %v2993_v57 = vld [vmem:[#allocation4 + $0x2c] sm:$0xf]  ;;  %3574 = vst [vmem:[#allocation5 + $0x32c] sm:$0xf] %v3573_v28  ;;  %v3014_v55 = vshrl.u32 %v2991_v4, 16  ;;  %9209 = vmatpush3.bf16.msra.mxu1 %v9451_v56 }
 0x2c0   :  { %v2951_v49 = vld [vmem:[#allocation5 + $0x60] sm:$0xf]  ;;  %v5546_v31 = vrot.slane %v11381_v27, 7  ;;  %v9454_v5 = vld [vmem:[%s12297_s3 + $0x328] sm:$0xff]   ;;  %v5352_v20 = vrot.slane %v5350_v45, 6  ;;  %v5355_v8 = vrot.slane %v5353_v61, 7  ;;  %v2860_v30 = vor.u32 %v2859_v14, %v2856_v11 }
 0x2c1   :  { %v5424_v13 = vld [vmem:[#allocation6 + $0x120] sm:$0xee]  ;;  %v5762_v59 = vld [vmem:[#allocation6 + $0xa8] sm:$0xff]  ;;  %v2825_v44 = vrot.slane %v2824_v9, 4  ;;  %v2843_v29 = vrot.slane %v2842_v63, 4  ;;  %9153 = vmatpush3.bf16.msra.mxu0 %v9454_v5  ;;  %v3017_v25 = vshll.u32 %v2991_v4, 16 }
 0x2c2   :  { %v2957_v32 = vld [vmem:[#allocation5 + $0xe0] sm:$0xf]  ;;  %5578 = vst [vmem:[#allocation6 + $0x160] sm:$0xee] %v5546_v31  ;;  %v9455_v51 = vld [vmem:[%s12297_s3 + $0x3e8] sm:$0xff]   ;;  %v5356_v17 = vor.u32 %v5355_v8, %v5352_v20  ;;  %v2861_v15 = vrot.slane %v2860_v30, 4 }
 0x2c3   :  { %v2963_v33 = vld [vmem:[#allocation5 + $0x160] sm:$0xf]  ;;  %v5770_v35 = vld [vmem:[#allocation6 + $0xe8] sm:$0xff]  ;;  %v3032_v60 = vshrl.u32 %v2993_v57, 16  ;;  %v2952_v36 = vsel %vm9993_vm12, %v2825_v44, %v2951_v49  ;;  %v2958_v47 = vsel %vm9993_vm12, %v2843_v29, %v2957_v32  ;;  %9210 = vmatprep.subr.bf16.mxu1 %v9455_v51  ;;  %v3016_v0 = vrot.slane %v3014_v55, 4  ;;  %v9458_v39 = vld [vmem:[%s12297_s3 + $0x370] sm:$0xff]  }
 0x2c4   :  { %v8546_v22 = vcombine.high %v5762_v59, %v5770_v35  ;;  %v8545_v10 = vcombine.low %v5762_v59, %v5770_v35  ;;  %v2995_v16 = vld [vmem:[#allocation4 + $0x4c] sm:$0xf]  ;;  %v5385_v48 = vrot.slane %v5356_v17, 4  ;;  %v5425_v1 = vsel %vm10768_vm8, %v5356_v17, %v5424_v13  ;;  %2953 = vst [vmem:[#allocation5 + $0x60] sm:$0xf] %v2952_v36  ;;  %9154 = vmatprep.subr.bf16.mxu0 %v9458_v39 }
 0x2c5   :  { %v5314_v23 = vld [vmem:[#allocation5 + $0x2a8] sm:$0xff]  ;;  %2959 = vst [vmem:[#allocation5 + $0xe0] sm:$0xf] %v2958_v47  ;;  %v2964_v46 = vsel %vm9993_vm12, %v2861_v15, %v2963_v33  ;;  %5426 = vst [vmem:[#allocation6 + $0x120] sm:$0xee] %v5425_v1  ;;  %v3019_v12 = vrot.slane %v3017_v25, 5 }
 0x2c6   :  { %v9456_v43 = vld [vmem:[%s12297_s3 + $0x3a8] sm:$0xff]   ;;  %7892 = vmatprep.mubr.bf16.mxu1 %v8546_v22  ;;  %v5358_v24 = vshrl.u32 %v5314_v23, 16  ;;  %v5361_v41 = vshll.u32 %v5314_v23, 16  ;;  %2965 = vst [vmem:[#allocation5 + $0x160] sm:$0xf] %v2964_v46  ;;  %v3034_v26 = vrot.slane %v3032_v60, 4 }
 0x2c7   :  { %5440 = vst [vmem:[#allocation6 + $0x160] sm:$0x11] %v5385_v48  ;;  %7893 = vmatmul.mubr.bf16.gmra.mrb[92].mxu1 %v8545_v10  ;;  %v3035_v2 = vshll.u32 %v2993_v57, 16  ;;  %v3050_v53 = vshrl.u32 %v2995_v16, 16  ;;  %v3053_v52 = vshll.u32 %v2995_v16, 16  ;;  %v3020_v62 = vor.u32 %v3019_v12, %v3016_v0  ;;  %v11411_v61 = vld [vmem:[#allocation5 + $0x328] sm:$0xff] }
 0x2c8   :  { %v3147_v54 = vld [vmem:[#allocation5 + $0x64] sm:$0xf]  ;;  %v5360_v18 = vrot.slane %v5358_v24, 6  ;;  %v5363_v50 = vrot.slane %v5361_v41, 7  ;;  %9211 = vmatpush3.bf16.msra.mxu1 %v9456_v43  ;;  %v5427_v45 = vld [vmem:[#allocation6 + $0x128] sm:$0xee] }
 0x2c9   :  { %v3187_v11 = vld [vmem:[#allocation4 + $0x24] sm:$0xf]  ;;  %v3037_v58 = vrot.slane %v3035_v2, 5  ;;  %v3052_v14 = vrot.slane %v3050_v53, 4  ;;  %v3055_v49 = vrot.slane %v3053_v52, 5  ;;  %v5547_v13 = vrot.slane %v11411_v61, 7 }
 0x2ca   :  { %v3189_v56 = vld [vmem:[#allocation4 + $0x44] sm:$0xf]  ;;  %v5364_v42 = vor.u32 %v5363_v50, %v5360_v18  ;;  %v3021_v9 = vrot.slane %v3020_v62, 4  ;;  %v3210_v4 = vshrl.u32 %v3187_v11, 16  ;;  %v9459_v57 = vld [vmem:[%s12297_s3 + $0x330] sm:$0xff]   ;;  %v3213_v30 = vshll.u32 %v3187_v11, 16 }
 0x2cb   :  { %v3153_v63 = vld [vmem:[#allocation5 + $0xe4] sm:$0xf]  ;;  %v3038_v5 = vor.u32 %v3037_v58, %v3034_v26  ;;  %v3056_v20 = vor.u32 %v3055_v49, %v3052_v14  ;;  %v3228_v32 = vshrl.u32 %v3189_v56, 16  ;;  %5579 = vst [vmem:[#allocation6 + $0x168] sm:$0xee] %v5547_v13  ;;  %9155 = vmatpush3.bf16.msra.mxu0 %v9459_v57  ;;  %v3231_v10 = vshll.u32 %v3189_v56, 16 }
 0x2cc   :  { %v3159_v8 = vld [vmem:[#allocation5 + $0x164] sm:$0xf]  ;;  %v5386_v33 = vrot.slane %v5364_v42, 4  ;;  %v5428_v59 = vsel %vm10768_vm8, %v5364_v42, %v5427_v45  ;;  %v3148_v44 = vsel %vm9993_vm12, %v3021_v9, %v3147_v54  ;;  %v3383_v29 = vld [vmem:[#allocation4 + $0x2c] sm:$0xf]  ;;  %v3212_v15 = vrot.slane %v3210_v4, 4 }
 0x2cd   :  { %v3191_v28 = vld [vmem:[#allocation4 + $0x64] sm:$0xf]  ;;  %v3385_v55 = vld [vmem:[#allocation4 + $0x4c] sm:$0xf]  ;;  %5429 = vst [vmem:[#allocation6 + $0x128] sm:$0xee] %v5428_v59 }
 0x2ce   :  { %v5777_v51 = vld [vmem:[#allocation6 + $0x120] sm:$0xff]  ;;  %v3039_v35 = vrot.slane %v3038_v5, 4  ;;  %v3057_v17 = vrot.slane %v3056_v20, 4  ;;  %3149 = vst [vmem:[#allocation5 + $0x64] sm:$0xf] %v3148_v44  ;;  %v3215_v25 = vrot.slane %v3213_v30, 5 }
 0x2cf   :  { %v5785_v60 = vld [vmem:[#allocation6 + $0x160] sm:$0xff]  ;;  %5441 = vst [vmem:[#allocation6 + $0x168] sm:$0x11] %v5386_v33  ;;  %v3230_v22 = vrot.slane %v3228_v32, 4  ;;  %v3246_v36 = vshrl.u32 %v3191_v28, 16  ;;  %v3249_v47 = vshll.u32 %v3191_v28, 16 }
 0x2d0   :  { %v9461_v16 = vld [vmem:[%s12297_s3 + $0x3f0] sm:$0xff]   ;;  %v8560_v48 = vcombine.high %v5777_v51, %v5785_v60  ;;  %v8559_v1 = vcombine.low %v5777_v51, %v5785_v60  ;;  %v3154_v23 = vsel %vm9993_vm12, %v3039_v35, %v3153_v63  ;;  %v3160_v46 = vsel %vm9993_vm12, %v3057_v17, %v3159_v8  ;;  %v11430_v0 = vld [vmem:[#allocation4 + $0x6c] sm:$0xf]  ;;  %v3343_v26 = vld [vmem:[#allocation5 + $0x68] sm:$0xf] }
 0x2d1   :  { %3155 = vst [vmem:[#allocation5 + $0xe4] sm:$0xf] %v3154_v23  ;;  %3161 = vst [vmem:[#allocation5 + $0x164] sm:$0xf] %v3160_v46  ;;  %v3216_v43 = vor.u32 %v3215_v25, %v3212_v15  ;;  %v3233_v24 = vrot.slane %v3231_v10, 5  ;;  %v3248_v41 = vrot.slane %v3246_v36, 4  ;;  %9212 = vmatprep.subr.bf16.mxu1 %v9461_v16 }
 0x2d2   :  { %v3251_v12 = vrot.slane %v3249_v47, 5  ;;  %v9462_v2 = vld [vmem:[%s12297_s3 + $0x3b0] sm:$0xff]   ;;  %7812 = vmatprep.mubr.bf16.mxu0 %v8560_v48  ;;  %v3349_v53 = vld [vmem:[#allocation5 + $0xe8] sm:$0xf]  ;;  %v3406_v54 = vshrl.u32 %v3383_v29, 16  ;;  %v3409_v39 = vshll.u32 %v3383_v29, 16 }
 0x2d3   :  { %v3355_v52 = vld [vmem:[#allocation5 + $0x168] sm:$0xf]  ;;  %v3424_v18 = vshrl.u32 %v3385_v55, 16  ;;  %v3427_v50 = vshll.u32 %v3385_v55, 16  ;;  %7813 = vmatmul.mubr.bf16.gmra.mrb[96].mxu0 %v8559_v1  ;;  %v3217_v62 = vrot.slane %v3216_v43, 4  ;;  %v3234_v11 = vor.u32 %v3233_v24, %v3230_v22  ;;  %9213 = vmatpush3.bf16.msra.mxu1 %v9462_v2  ;;  %v4648_v4 = vld [vmem:[#allocation6 + $0x1e0] sm:$0xff] }
 0x2d4   :  { %v3252_v56 = vor.u32 %v3251_v12, %v3248_v41  ;;  %v3442_v45 = vshrl.u32 %v11430_v0, 16  ;;  %v3408_v58 = vrot.slane %v3406_v54, 4  ;;  %v3411_v14 = vrot.slane %v3409_v39, 5  ;;  %v5778_v9 = vld [vmem:[#allocation6 + $0x128] sm:$0xff]  ;;  %v9463_v55 = vld [vmem:[%s12297_s3 + $0x378] sm:$0xff]   ;;  %v4479_v1 = vld [vmem:[#allocation6 + $0x1a0] sm:$0xff] }
 0x2d5   :  { %v3426_v49 = vrot.slane %v3424_v18, 4  ;;  %v3429_v42 = vrot.slane %v3427_v50, 5  ;;  %v4399_v63 = vld [vmem:[#allocation5 + $0x60] sm:$0xff]  ;;  %v3235_v57 = vrot.slane %v3234_v11, 4  ;;  %v3344_v20 = vsel %vm9993_vm12, %v3217_v62, %v3343_v26  ;;  %v3539_v28 = vld [vmem:[#allocation5 + $0x6c] sm:$0xf]  ;;  %9156 = vmatprep.subr.bf16.mxu0 %v9463_v55 }
 0x2d6   :  { %v3253_v5 = vrot.slane %v3252_v56, 4  ;;  %v3444_v8 = vrot.slane %v3442_v45, 4  ;;  %v3545_v30 = vld [vmem:[#allocation5 + $0xec] sm:$0xf]  ;;  %v4432_v33 = vshrl.u32 %v4399_v63, 16  ;;  %v4435_v59 = vshll.u32 %v4399_v63, 16 }
 0x2d7   :  { %v5786_v32 = vld [vmem:[#allocation6 + $0x168] sm:$0xff]  ;;  %3345 = vst [vmem:[#allocation5 + $0x68] sm:$0xf] %v3344_v20  ;;  %v3412_v44 = vor.u32 %v3411_v14, %v3408_v58  ;;  %v3430_v29 = vor.u32 %v3429_v42, %v3426_v49  ;;  %v3350_v17 = vsel %vm9993_vm12, %v3235_v57, %v3349_v53  ;;  %v2801_v25 = vld [vmem:[#allocation4 + $0x64] sm:$0xf]  ;;  %v3445_v48 = vshll.u32 %v11430_v0, 16 }
 0x2d8   :  { %v8562_v51 = vcombine.high %v5778_v9, %v5786_v32  ;;  %v8561_v35 = vcombine.low %v5778_v9, %v5786_v32  ;;  %v3356_v15 = vsel %vm9993_vm12, %v3253_v5, %v3355_v52  ;;  %v2803_v60 = vld [vmem:[#allocation4 + $0x84] sm:$0xf]  ;;  %v4434_v22 = vrot.slane %v4432_v33, 7  ;;  %3351 = vst [vmem:[#allocation5 + $0xe8] sm:$0xf] %v3350_v17  ;;  %v9464_v24 = vld [vmem:[%s12297_s3 + $0x338] sm:$0xff]  }
 0x2d9   :  { %v4632_v10 = vld [vmem:[#allocation5 + $0xe0] sm:$0xff]  ;;  %3357 = vst [vmem:[#allocation5 + $0x168] sm:$0xf] %v3356_v15  ;;  %v3413_v47 = vrot.slane %v3412_v44, 4  ;;  %v3431_v16 = vrot.slane %v3430_v29, 4  ;;  %v2872_v46 = vshrl.u32 %v2801_v25, 16  ;;  %9157 = vmatpush3.bf16.msra.mxu0 %v9464_v24 }
 0x2da   :  { %v11445_v36 = vld [vmem:[#allocation5 + $0x160] sm:$0xff]  ;;  %7900 = vmatprep.mubr.bf16.mxu1 %v8562_v51  ;;  %v4649_v23 = vsel %vm10024_vm5, %v4632_v10, %v4648_v4  ;;  %v2875_v43 = vshll.u32 %v2801_v25, 16  ;;  %v4437_v41 = vor.u32 %v4435_v59, %v4434_v22  ;;  %v3447_v12 = vrot.slane %v3445_v48, 5  ;;  %v2997_v2 = vld [vmem:[#allocation4 + $0x6c] sm:$0xf]  ;;  %v9465_v53 = vld [vmem:[%s12297_s3 + $0x3f8] sm:$0xff]  }
 0x2db   :  { %4650 = vst [vmem:[#allocation6 + $0x1e0] sm:$0xff] %v4649_v23  ;;  %7901 = vmatmul.mubr.bf16.gmra.mrb[96].mxu1 %v8561_v35  ;;  %v3540_v26 = vsel %vm9993_vm12, %v3413_v47, %v3539_v28  ;;  %v3546_v0 = vsel %vm9993_vm12, %v3431_v16, %v3545_v30  ;;  %v4774_v52 = vshll.u32 %v11445_v36, 16  ;;  %v2874_v54 = vrot.slane %v2872_v46, 4  ;;  %v2999_v50 = vld [vmem:[#allocation4 + $0x8c] sm:$0xf]  ;;  %9214 = vmatprep.subr.bf16.mxu1 %v9465_v53  ;;  %v9466_v4 = vld [vmem:[%s12297_s3 + $0x3b8] sm:$0xff]  }
 0x2dc   :  { %3541 = vst [vmem:[#allocation5 + $0x6c] sm:$0xf] %v3540_v26  ;;  %3547 = vst [vmem:[#allocation5 + $0xec] sm:$0xf] %v3546_v0  ;;  %v2877_v39 = vrot.slane %v2875_v43, 5  ;;  %v2890_v18 = vshrl.u32 %v2803_v60, 16  ;;  %v4480_v62 = vsel %vm10147_vm11, %v4437_v41, %v4479_v1  ;;  %v3448_v11 = vor.u32 %v3447_v12, %v3444_v8  ;;  %9215 = vmatpush3.bf16.msra.mxu1 %v9466_v4 }
 0x2dd   :  { %v3551_v56 = vld [vmem:[#allocation5 + $0x16c] sm:$0xf]  ;;  %v2893_v45 = vshll.u32 %v2803_v60, 16  ;;  %v3068_v58 = vshrl.u32 %v2997_v2, 16  ;;  %4481 = vst [vmem:[#allocation6 + $0x1a0] sm:$0xff] %v4480_v62  ;;  %v3071_v9 = vshll.u32 %v2997_v2, 16 }
 0x2de   :  { %v2878_v14 = vor.u32 %v2877_v39, %v2874_v54  ;;  %v2892_v49 = vrot.slane %v2890_v18, 4  ;;  %v2969_v42 = vld [vmem:[#allocation5 + $0x1e0] sm:$0xf]  ;;  %v3086_v63 = vshrl.u32 %v2999_v50, 16  ;;  %v3449_v57 = vrot.slane %v3448_v11, 4  ;;  %v4651_v5 = vld [vmem:[#allocation6 + $0x1e8] sm:$0xff] }
 0x2df   :  { %v2895_v20 = vrot.slane %v2893_v45, 5  ;;  %v3070_v28 = vrot.slane %v3068_v58, 4  ;;  %v3089_v30 = vshll.u32 %v2999_v50, 16  ;;  %v2975_v32 = vld [vmem:[#allocation5 + $0x260] sm:$0xf]  ;;  %v3073_v33 = vrot.slane %v3071_v9, 5 }
 0x2e0   :  { %v2879_v8 = vrot.slane %v2878_v14, 4  ;;  %v3088_v59 = vrot.slane %v3086_v63, 4  ;;  %v4809_v44 = vshrl.u32 %v11445_v36, 16  ;;  %v4776_v29 = vrot.slane %v4774_v52, 5  ;;  %v3165_v17 = vld [vmem:[#allocation5 + $0x1e4] sm:$0xf] }
 0x2e1   :  { %v3552_v55 = vsel %vm9993_vm12, %v3449_v57, %v3551_v56  ;;  %v2896_v51 = vor.u32 %v2895_v20, %v2892_v49  ;;  %v3091_v35 = vrot.slane %v3089_v30, 5  ;;  %v5554_v15 = vrot.slane %v5546_v31, 4  ;;  %v3193_v47 = vld [vmem:[#allocation4 + $0x84] sm:$0xf]  ;;  %v3389_v62 = vld [vmem:[#allocation4 + $0x8c] sm:$0xf] }
 0x2e2   :  { %v4857_v25 = vld [vmem:[#allocation6 + $0x1e0] sm:$0x88]  ;;  %3553 = vst [vmem:[#allocation5 + $0x16c] sm:$0xf] %v3552_v55  ;;  %v2970_v60 = vsel %vm9993_vm12, %v2879_v8, %v2969_v42  ;;  %v3074_v22 = vor.u32 %v3073_v33, %v3070_v28  ;;  %v4811_v10 = vrot.slane %v4809_v44, 4  ;;  %v3264_v43 = vshrl.u32 %v3193_v47, 16 }
 0x2e3   :  { %v4858_v36 = vsel %vm10615_vm10, %v4776_v29, %v4857_v25  ;;  %v4400_v16 = vld [vmem:[#allocation5 + $0x68] sm:$0xff]  ;;  %v2897_v1 = vrot.slane %v2896_v51, 4  ;;  %2971 = vst [vmem:[#allocation5 + $0x1e0] sm:$0xf] %v2970_v60  ;;  %v3092_v23 = vor.u32 %v3091_v35, %v3088_v59  ;;  %v3171_v46 = vld [vmem:[#allocation5 + $0x264] sm:$0xf] }
 0x2e4   :  { %v4633_v48 = vld [vmem:[#allocation5 + $0xe8] sm:$0xff]  ;;  %4859 = vst [vmem:[#allocation6 + $0x1e0] sm:$0x88] %v4858_v36  ;;  %v4439_v27 = vshrl.u32 %v4400_v16, 16  ;;  %v4442_v31 = vshll.u32 %v4400_v16, 16  ;;  %v3075_v41 = vrot.slane %v3074_v22, 4  ;;  %v4812_v53 = vor.u32 %v4811_v10, %v4776_v29 }
 0x2e5   :  { %v4652_v24 = vsel %vm10024_vm5, %v4633_v48, %v4651_v5  ;;  %v3195_v12 = vld [vmem:[#allocation4 + $0xa4] sm:$0xf]  ;;  %v2976_v0 = vsel %vm9993_vm12, %v2897_v1, %v2975_v32  ;;  %v3093_v2 = vrot.slane %v3092_v23, 4  ;;  %v3266_v52 = vrot.slane %v3264_v43, 4  ;;  %v3391_v11 = vld [vmem:[#allocation4 + $0xac] sm:$0xf] }
 0x2e6   :  { %v5600_v26 = vld [vmem:[#allocation6 + $0x1a0] sm:$0x11]  ;;  %4653 = vst [vmem:[#allocation6 + $0x1e8] sm:$0xff] %v4652_v24  ;;  %v4441_v39 = vrot.slane %v4439_v27, 7  ;;  %2977 = vst [vmem:[#allocation5 + $0x260] sm:$0xf] %v2976_v0  ;;  %v3166_v18 = vsel %vm9993_vm12, %v3075_v41, %v3165_v17 }
 0x2e7   :  { %v5601_v54 = vsel %vm10860_vm13, %v5554_v15, %v5600_v26  ;;  %v3267_v50 = vshll.u32 %v3193_v47, 16  ;;  %v4482_v56 = vld [vmem:[#allocation6 + $0x1a8] sm:$0xff]  ;;  %3167 = vst [vmem:[#allocation5 + $0x1e4] sm:$0xf] %v3166_v18  ;;  %v3172_v45 = vsel %vm9993_vm12, %v3093_v2, %v3171_v46  ;;  %v4813_v58 = vrot.slane %v4812_v53, 4 }
 0x2e8   :  { %5602 = vst [vmem:[#allocation6 + $0x1a0] sm:$0x11] %v5601_v54  ;;  %v3282_v14 = vshrl.u32 %v3195_v12, 16  ;;  %v3285_v49 = vshll.u32 %v3195_v12, 16  ;;  %v4444_v42 = vor.u32 %v4442_v31, %v4441_v39  ;;  %3173 = vst [vmem:[#allocation5 + $0x264] sm:$0xf] %v3172_v45 }
 0x2e9   :  { %v3269_v9 = vrot.slane %v3267_v50, 5  ;;  %v3460_v63 = vshrl.u32 %v3389_v62, 16  ;;  %v3463_v4 = vshll.u32 %v3389_v62, 16  ;;  %v4754_v57 = vld [vmem:[#allocation5 + $0x168] sm:$0xff]  ;;  %4873 = vst [vmem:[#allocation6 + $0x220] sm:$0x77] %v4813_v58 }
 0x2ea   :  { %v3284_v5 = vrot.slane %v3282_v14, 4  ;;  %v3287_v20 = vrot.slane %v3285_v49, 5  ;;  %v3361_v28 = vld [vmem:[#allocation5 + $0x1e8] sm:$0xf]  ;;  %v3478_v30 = vshrl.u32 %v3391_v11, 16  ;;  %v3481_v8 = vshll.u32 %v3391_v11, 16 }
 0x2eb   :  { %v4483_v32 = vsel %vm10147_vm11, %v4444_v42, %v4482_v56  ;;  %v4778_v33 = vshll.u32 %v4754_v57, 16  ;;  %v3270_v59 = vor.u32 %v3269_v9, %v3266_v52  ;;  %v3367_v44 = vld [vmem:[#allocation5 + $0x268] sm:$0xf]  ;;  %v3462_v29 = vrot.slane %v3460_v63, 4  ;;  %v5801_v10 = vld [vmem:[#allocation6 + $0x1e0] sm:$0xff] }
 0x2ec   :  { %4484 = vst [vmem:[#allocation6 + $0x1a8] sm:$0xff] %v4483_v32  ;;  %v3288_v55 = vor.u32 %v3287_v20, %v3284_v5  ;;  %v3465_v51 = vrot.slane %v3463_v4, 5  ;;  %v3480_v35 = vrot.slane %v3478_v30, 4  ;;  %v3483_v17 = vrot.slane %v3481_v8, 5  ;;  %v3557_v48 = vld [vmem:[#allocation5 + $0x1ec] sm:$0xf] }
 0x2ed   :  { %v4780_v15 = vrot.slane %v4778_v33, 5  ;;  %v4860_v25 = vld [vmem:[#allocation6 + $0x1e8] sm:$0x88]  ;;  %v3271_v60 = vrot.slane %v3270_v59, 4  ;;  %v4814_v22 = vshrl.u32 %v4754_v57, 16  ;;  %v5555_v23 = vrot.slane %v5547_v13, 4 }
 0x2ee   :  { %v3289_v47 = vrot.slane %v3288_v55, 4  ;;  %v3466_v36 = vor.u32 %v3465_v51, %v3462_v29  ;;  %v3484_v16 = vor.u32 %v3483_v17, %v3480_v35  ;;  %v3563_v1 = vld [vmem:[#allocation5 + $0x26c] sm:$0xf]  ;;  %v5018_v27 = vld [vmem:[#allocation5 + $0x1e0] sm:$0xff]  ;;  %v3589_v6 = vld [vmem:[#allocation4 + $0xb4] sm:$0xf] }
 0x2ef   :  { %v5793_v46 = vld [vmem:[#allocation6 + $0x1a0] sm:$0xff]  ;;  %v4861_v43 = vsel %vm10615_vm10, %v4780_v15, %v4860_v25  ;;  %v3362_v31 = vsel %vm9993_vm12, %v3271_v60, %v3361_v28  ;;  %v4816_v24 = vrot.slane %v4814_v22, 4  ;;  %v5034_v26 = vrot.slane %v5018_v27, 5  ;;  %v3001_v5 = vld [vmem:[#allocation4 + $0xac] sm:$0xf] }
 0x2f0   :  { %v8576_v41 = vcombine.high %v5793_v46, %v5801_v10  ;;  %4862 = vst [vmem:[#allocation6 + $0x1e8] sm:$0x88] %v4861_v43  ;;  %v8575_v12 = vcombine.low %v5793_v46, %v5801_v10  ;;  %v5184_v0 = vld [vmem:[#allocation5 + $0x260] sm:$0xff]  ;;  %3363 = vst [vmem:[#allocation5 + $0x1e8] sm:$0xf] %v3362_v31  ;;  %v3368_v2 = vsel %vm9993_vm12, %v3289_v47, %v3367_v44  ;;  %v3467_v54 = vrot.slane %v3466_v36, 4 }
 0x2f1   :  { %v2805_v61 = vld [vmem:[#allocation4 + $0xa4] sm:$0xf]  ;;  %v5221_v53 = vshrl.u32 %v5184_v0, 16  ;;  %v5224_v52 = vshll.u32 %v5184_v0, 16  ;;  %3369 = vst [vmem:[#allocation5 + $0x268] sm:$0xf] %v3368_v2  ;;  %v4817_v50 = vor.u32 %v4816_v24, %v4780_v15 }
 0x2f2   :  { %v5082_v13 = vld [vmem:[#allocation6 + $0x260] sm:$0x77]  ;;  %v3485_v39 = vrot.slane %v3484_v16, 4  ;;  %7820 = vmatprep.mubr.bf16.mxu0 %v8576_v41  ;;  %v5042_v18 = vrot.slane %v5034_v26, 4  ;;  %5066 = vst [vmem:[#allocation6 + $0x220] sm:$0x88] %v5034_v26  ;;  %v3558_v49 = vsel %vm9993_vm12, %v3467_v54, %v3557_v48 }
 0x2f3   :  { %v2807_v62 = vld [vmem:[#allocation4 + $0xc4] sm:$0xf]  ;;  %v2908_v11 = vshrl.u32 %v2805_v61, 16  ;;  %v2911_v56 = vshll.u32 %v2805_v61, 16  ;;  %v5603_v45 = vld [vmem:[#allocation6 + $0x1a8] sm:$0x11]  ;;  %7821 = vmatmul.mubr.bf16.gmra.mrb[100].mxu0 %v8575_v12 }
 0x2f4   :  { %v5223_v58 = vrot.slane %v5221_v53, 5  ;;  %v5226_v14 = vrot.slane %v5224_v52, 6  ;;  %v3564_v42 = vsel %vm9993_vm12, %v3485_v39, %v3563_v1  ;;  %v5604_v9 = vsel %vm10860_vm13, %v5555_v23, %v5603_v45  ;;  %3559 = vst [vmem:[#allocation5 + $0x1ec] sm:$0xf] %v3558_v49  ;;  %v3003_v20 = vld [vmem:[#allocation4 + $0xcc] sm:$0xf] }
 0x2f5   :  { %v5083_v63 = vsel %vm10641_vm4, %v5042_v18, %v5082_v13  ;;  %3565 = vst [vmem:[#allocation5 + $0x26c] sm:$0xf] %v3564_v42  ;;  %v4818_v4 = vrot.slane %v4817_v50, 4  ;;  %v2910_v57 = vrot.slane %v2908_v11, 4  ;;  %5605 = vst [vmem:[#allocation6 + $0x1a8] sm:$0x11] %v5604_v9 }
 0x2f6   :  { %5084 = vst [vmem:[#allocation6 + $0x260] sm:$0x77] %v5083_v63  ;;  %v5227_v28 = vor.u32 %v5226_v14, %v5223_v58  ;;  %v2913_v30 = vrot.slane %v2911_v56, 5  ;;  %v2926_v8 = vshrl.u32 %v2807_v62, 16  ;;  %v2929_v32 = vshll.u32 %v2807_v62, 16 }
 0x2f7   :  { %4874 = vst [vmem:[#allocation6 + $0x228] sm:$0x77] %v4818_v4  ;;  %v3104_v33 = vshrl.u32 %v3001_v5, 16  ;;  %v3107_v59 = vshll.u32 %v3001_v5, 16  ;;  %v3122_v44 = vshrl.u32 %v3003_v20, 16  ;;  %v3125_v29 = vshll.u32 %v3003_v20, 16 }
 0x2f8   :  { %v2914_v55 = vor.u32 %v2913_v30, %v2910_v57  ;;  %v2928_v51 = vrot.slane %v2926_v8, 4  ;;  %v2931_v35 = vrot.slane %v2929_v32, 5  ;;  %v2981_v17 = vld [vmem:[#allocation5 + $0x2e0] sm:$0xf]  ;;  %v5256_v15 = vrot.slane %v5227_v28, 4  ;;  %v5802_v43 = vld [vmem:[#allocation6 + $0x1e8] sm:$0xff] }
 0x2f9   :  { %v2987_v25 = vld [vmem:[#allocation5 + $0x360] sm:$0xf]  ;;  %v3106_v60 = vrot.slane %v3104_v33, 4  ;;  %v3109_v22 = vrot.slane %v3107_v59, 5  ;;  %v3124_v10 = vrot.slane %v3122_v44, 4  ;;  %v3127_v47 = vrot.slane %v3125_v29, 5 }
 0x2fa   :  { %v2915_v36 = vrot.slane %v2914_v55, 4  ;;  %v2932_v16 = vor.u32 %v2931_v35, %v2928_v51  ;;  %5304 = vst [vmem:[#allocation6 + $0x2a0] sm:$0x33] %v5256_v15  ;;  %v3197_v23 = vld [vmem:[#allocation4 + $0xc4] sm:$0xf]  ;;  %v3695_v38 = vshll.u32 %v3589_v6, 16 }
 0x2fb   :  { %v3110_v48 = vor.u32 %v3109_v22, %v3106_v60  ;;  %v3128_v1 = vor.u32 %v3127_v47, %v3124_v10  ;;  %v3199_v46 = vld [vmem:[#allocation4 + $0xe4] sm:$0xf]  ;;  %v5019_v27 = vld [vmem:[#allocation5 + $0x1e8] sm:$0xff]  ;;  %v3300_v12 = vshrl.u32 %v3197_v23, 16  ;;  %v3303_v26 = vshll.u32 %v3197_v23, 16 }
 0x2fc   :  { %v5185_v31 = vld [vmem:[#allocation5 + $0x268] sm:$0xff]  ;;  %v2933_v24 = vrot.slane %v2932_v16, 4  ;;  %v2982_v41 = vsel %vm9993_vm12, %v2915_v36, %v2981_v17  ;;  %v5035_v61 = vrot.slane %v5019_v27, 5  ;;  %v3177_v62 = vld [vmem:[#allocation5 + $0x2e4] sm:$0xf]  ;;  %v3318_v4 = vshrl.u32 %v3199_v46, 16 }
 0x2fd   :  { %v5794_v0 = vld [vmem:[#allocation6 + $0x1a8] sm:$0xff]  ;;  %v5288_v2 = vld [vmem:[#allocation6 + $0x260] sm:$0xcc]  ;;  %v5229_v13 = vshrl.u32 %v5185_v31, 16  ;;  %v5232_v53 = vshll.u32 %v5185_v31, 16  ;;  %v3111_v14 = vrot.slane %v3110_v48, 4 }
 0x2fe   :  { %2983 = vst [vmem:[#allocation5 + $0x2e0] sm:$0xf] %v2982_v41  ;;  %v8578_v52 = vcombine.high %v5794_v0, %v5802_v43  ;;  %v5289_v54 = vsel %vm10686_vm3, %v5227_v28, %v5288_v2  ;;  %v8577_v39 = vcombine.low %v5794_v0, %v5802_v43  ;;  %v5085_v18 = vld [vmem:[#allocation6 + $0x268] sm:$0x77]  ;;  %v2988_v50 = vsel %vm9993_vm12, %v2933_v24, %v2987_v25  ;;  %v3183_v11 = vld [vmem:[#allocation5 + $0x364] sm:$0xf] }
 0x2ff   :  { %5290 = vst [vmem:[#allocation6 + $0x260] sm:$0xcc] %v5289_v54  ;;  %v5043_v56 = vrot.slane %v5035_v61, 4  ;;  %5067 = vst [vmem:[#allocation6 + $0x228] sm:$0x88] %v5035_v61  ;;  %v5231_v45 = vrot.slane %v5229_v13, 5  ;;  %v3178_v28 = vsel %vm9993_vm12, %v3111_v14, %v3177_v62 }
 0x300   :  { %v5234_v58 = vrot.slane %v5232_v53, 6  ;;  %2989 = vst [vmem:[#allocation5 + $0x360] sm:$0xf] %v2988_v50  ;;  %v3393_v49 = vld [vmem:[#allocation4 + $0xcc] sm:$0xf]  ;;  %7908 = vmatprep.mubr.bf16.mxu1 %v8578_v52  ;;  %v3129_v42 = vrot.slane %v3128_v1, 4 }
 0x301   :  { %v3302_v9 = vrot.slane %v3300_v12, 4  ;;  %v3305_v63 = vrot.slane %v3303_v26, 5  ;;  %v3395_v57 = vld [vmem:[#allocation4 + $0xec] sm:$0xf]  ;;  %7909 = vmatmul.mubr.bf16.gmra.mrb[100].mxu1 %v8577_v39  ;;  %v5086_v5 = vsel %vm10641_vm4, %v5043_v56, %v5085_v18  ;;  %v3321_v30 = vshll.u32 %v3199_v46, 16  ;;  %v5809_v22 = vld [vmem:[#allocation6 + $0x220] sm:$0xff] }
 0x302   :  { %v5235_v20 = vor.u32 %v5234_v58, %v5231_v45  ;;  %v3373_v8 = vld [vmem:[#allocation5 + $0x2e8] sm:$0xf]  ;;  %5087 = vst [vmem:[#allocation6 + $0x268] sm:$0x77] %v5086_v5  ;;  %3179 = vst [vmem:[#allocation5 + $0x2e4] sm:$0xf] %v3178_v28  ;;  %v3184_v32 = vsel %vm9993_vm12, %v3129_v42, %v3183_v11 }
 0x303   :  { %v3306_v33 = vor.u32 %v3305_v63, %v3302_v9  ;;  %v3320_v59 = vrot.slane %v3318_v4, 4  ;;  %v3496_v44 = vshrl.u32 %v3393_v49, 16  ;;  %3185 = vst [vmem:[#allocation5 + $0x364] sm:$0xf] %v3184_v32  ;;  %v3323_v29 = vrot.slane %v3321_v30, 5 }
 0x304   :  { %v3499_v55 = vshll.u32 %v3393_v49, 16  ;;  %v3514_v51 = vshrl.u32 %v3395_v57, 16  ;;  %v3517_v35 = vshll.u32 %v3395_v57, 16  ;;  %v3379_v15 = vld [vmem:[#allocation5 + $0x368] sm:$0xf]  ;;  %v5257_v60 = vrot.slane %v5235_v20, 4 }
 0x305   :  { %v3307_v17 = vrot.slane %v3306_v33, 4  ;;  %v3498_v25 = vrot.slane %v3496_v44, 4  ;;  %v3324_v10 = vor.u32 %v3323_v29, %v3320_v59  ;;  %v3569_v23 = vld [vmem:[#allocation5 + $0x2ec] sm:$0xf]  ;;  %v5513_v0 = vld [vmem:[#allocation6 + $0x2e0] sm:$0x33] }
 0x306   :  { %v3501_v47 = vrot.slane %v3499_v55, 5  ;;  %v3516_v36 = vrot.slane %v3514_v51, 4  ;;  %v3519_v16 = vrot.slane %v3517_v35, 5  ;;  %v5817_v48 = vld [vmem:[#allocation6 + $0x260] sm:$0xff]  ;;  %5305 = vst [vmem:[#allocation6 + $0x2a8] sm:$0x33] %v5257_v60 }
 0x307   :  { %v3374_v1 = vsel %vm9993_vm12, %v3307_v17, %v3373_v8  ;;  %v8592_v46 = vcombine.high %v5809_v22, %v5817_v48  ;;  %v3325_v43 = vrot.slane %v3324_v10, 4  ;;  %v3575_v31 = vld [vmem:[#allocation5 + $0x36c] sm:$0xf]  ;;  %v8591_v24 = vcombine.low %v5809_v22, %v5817_v48  ;;  %v3578_v14 = vld [vmem:[#allocation4 + $0x10] sm:$0xf] }
 0x308   :  { %3375 = vst [vmem:[#allocation5 + $0x2e8] sm:$0xf] %v3374_v1  ;;  %v3502_v27 = vor.u32 %v3501_v47, %v3498_v25  ;;  %v3520_v41 = vor.u32 %v3519_v16, %v3516_v36  ;;  %v3580_v49 = vld [vmem:[#allocation4 + $0x30] sm:$0xf]  ;;  %v3593_v63 = vshrl.u32 %v3578_v14, 16  ;;  %v3596_v4 = vshll.u32 %v3578_v14, 16 }
 0x309   :  { %7828 = vmatprep.mubr.bf16.mxu0 %v8592_v46  ;;  %v5291_v12 = vld [vmem:[#allocation6 + $0x268] sm:$0xcc]  ;;  %v5449_v26 = vld [vmem:[#allocation5 + $0x2e0] sm:$0xff]  ;;  %v3380_v2 = vsel %vm9993_vm12, %v3325_v43, %v3379_v15  ;;  %v3582_v9 = vld [vmem:[#allocation4 + $0x50] sm:$0xf]  ;;  %v3611_v57 = vshrl.u32 %v3580_v49, 16 }
 0x30a   :  { %v3503_v61 = vrot.slane %v3502_v27, 4  ;;  %v5292_v13 = vsel %vm10686_vm3, %v5235_v20, %v5291_v12  ;;  %7829 = vmatmul.mubr.bf16.gmra.mrb[104].mxu0 %v8591_v24  ;;  %v5465_v53 = vrot.slane %v5449_v26, 6  ;;  %v5617_v52 = vld [vmem:[#allocation5 + $0x360] sm:$0xff]  ;;  %3381 = vst [vmem:[#allocation5 + $0x368] sm:$0xf] %v3380_v2  ;;  %v3521_v54 = vrot.slane %v3520_v41, 4 }
 0x30b   :  { %5293 = vst [vmem:[#allocation6 + $0x268] sm:$0xcc] %v5292_v13  ;;  %v5654_v39 = vshrl.u32 %v5617_v52, 16  ;;  %v5657_v18 = vshll.u32 %v5617_v52, 16  ;;  %v3614_v5 = vshll.u32 %v3580_v49, 16  ;;  %v3629_v20 = vshrl.u32 %v3582_v9, 16 }
 0x30c   :  { %v3570_v50 = vsel %vm9993_vm12, %v3503_v61, %v3569_v23  ;;  %v5473_v62 = vrot.slane %v5465_v53, 4  ;;  %5497 = vst [vmem:[#allocation6 + $0x2a0] sm:$0xcc] %v5465_v53  ;;  %v3576_v11 = vsel %vm9993_vm12, %v3521_v54, %v3575_v31  ;;  %v3632_v28 = vshll.u32 %v3582_v9, 16  ;;  %v5810_v59 = vld [vmem:[#allocation6 + $0x228] sm:$0xff] }
 0x30d   :  { %3571 = vst [vmem:[#allocation5 + $0x2ec] sm:$0xf] %v3570_v50  ;;  %v5656_v56 = vrot.slane %v5654_v39, 6  ;;  %v5659_v45 = vrot.slane %v5657_v18, 7  ;;  %3577 = vst [vmem:[#allocation5 + $0x36c] sm:$0xf] %v3576_v11 }
 0x30e   :  { %v5514_v58 = vsel %vm9928_vm7, %v5473_v62, %v5513_v0  ;;  %v3595_v8 = vrot.slane %v3593_v63, 4  ;;  %v3598_v32 = vrot.slane %v3596_v4, 5  ;;  %v3613_v33 = vrot.slane %v3611_v57, 4  ;;  %v5516_v15 = vld [vmem:[#allocation6 + $0x2e8] sm:$0x33] }
 0x30f   :  { %5515 = vst [vmem:[#allocation6 + $0x2e0] sm:$0x33] %v5514_v58  ;;  %v5660_v42 = vor.u32 %v5659_v45, %v5656_v56  ;;  %v3616_v29 = vrot.slane %v3614_v5, 5  ;;  %v3631_v55 = vrot.slane %v3629_v20, 4  ;;  %v3634_v51 = vrot.slane %v3632_v28, 5 }
 0x310   :  { %v3599_v25 = vor.u32 %v3598_v32, %v3595_v8  ;;  %v3732_v60 = vld [vmem:[#allocation5 + $0x30] sm:$0xf]  ;;  %v3774_v22 = vld [vmem:[#allocation4 + $0x18] sm:$0xf]  ;;  %v3928_v9 = vld [vmem:[#allocation5 + $0x34] sm:$0xf] }
 0x311   :  { %v5689_v30 = vrot.slane %v5660_v42, 4  ;;  %v3617_v16 = vor.u32 %v3616_v29, %v3613_v33  ;;  %v3635_v48 = vor.u32 %v3634_v51, %v3631_v55  ;;  %v3738_v1 = vld [vmem:[#allocation5 + $0xb0] sm:$0xf]  ;;  %v3776_v31 = vld [vmem:[#allocation4 + $0x38] sm:$0xf]  ;;  %v3789_v24 = vshrl.u32 %v3774_v22, 16 }
 0x312   :  { %v5818_v44 = vld [vmem:[#allocation6 + $0x268] sm:$0xff]  ;;  %v3744_v23 = vld [vmem:[#allocation5 + $0x130] sm:$0xf]  ;;  %v3600_v27 = vrot.slane %v3599_v25, 4  ;;  %v3792_v2 = vshll.u32 %v3774_v22, 16  ;;  %v3807_v45 = vshrl.u32 %v3776_v31, 16 }
 0x313   :  { %v8594_v35 = vcombine.high %v5810_v59, %v5818_v44  ;;  %5737 = vst [vmem:[#allocation6 + $0x320] sm:$0x11] %v5689_v30  ;;  %v8593_v10 = vcombine.low %v5810_v59, %v5818_v44  ;;  %v3618_v26 = vrot.slane %v3617_v16, 4  ;;  %v3636_v0 = vrot.slane %v3635_v48, 4  ;;  %v3778_v54 = vld [vmem:[#allocation4 + $0x58] sm:$0xf] }
 0x314   :  { %v5450_v17 = vld [vmem:[#allocation5 + $0x2e8] sm:$0xff]  ;;  %v3733_v52 = vsel %vm9993_vm12, %v3600_v27, %v3732_v60  ;;  %v3791_v62 = vrot.slane %v3789_v24, 4  ;;  %v3794_v56 = vrot.slane %v3792_v2, 5  ;;  %v3810_v58 = vshll.u32 %v3776_v31, 16  ;;  %v3970_v5 = vld [vmem:[#allocation4 + $0x30] sm:$0xf] }
 0x315   :  { %v5466_v47 = vrot.slane %v5450_v17, 6  ;;  %v5618_v36 = vld [vmem:[#allocation5 + $0x368] sm:$0xff]  ;;  %7916 = vmatprep.mubr.bf16.mxu1 %v8594_v35  ;;  %3734 = vst [vmem:[#allocation5 + $0x30] sm:$0xf] %v3733_v52  ;;  %v3739_v18 = vsel %vm9993_vm12, %v3618_v26, %v3738_v1  ;;  %v3745_v50 = vsel %vm9993_vm12, %v3636_v0, %v3744_v23  ;;  %v3825_v49 = vshrl.u32 %v3778_v54, 16  ;;  %v11541_v51 = vpop.f32.mrb[32].mxu0 }
 0x316   :  { %v5662_v46 = vshrl.u32 %v5618_v36, 16  ;;  %v5665_v43 = vshll.u32 %v5618_v36, 16  ;;  %v5721_v41 = vld [vmem:[#allocation6 + $0x2e0] sm:$0xee]  ;;  %7917 = vmatmul.mubr.bf16.gmra.mrb[104].mxu1 %v8593_v10  ;;  %3740 = vst [vmem:[#allocation5 + $0xb0] sm:$0xf] %v3739_v18  ;;  %v3795_v57 = vor.u32 %v3794_v56, %v3791_v62 }
 0x317   :  { %v5474_v12 = vrot.slane %v5466_v47, 4  ;;  %5498 = vst [vmem:[#allocation6 + $0x2a8] sm:$0xcc] %v5466_v47  ;;  %v5722_v61 = vsel %vm10768_vm8, %v5660_v42, %v5721_v41  ;;  %3746 = vst [vmem:[#allocation5 + $0x130] sm:$0xf] %v3745_v50  ;;  %v3828_v42 = vshll.u32 %v3778_v54, 16 }
 0x318   :  { %v5664_v13 = vrot.slane %v5662_v46, 6  ;;  %v5667_v53 = vrot.slane %v5665_v43, 7  ;;  %5723 = vst [vmem:[#allocation6 + $0x2e0] sm:$0xee] %v5722_v61  ;;  %v3972_v20 = vld [vmem:[#allocation4 + $0x50] sm:$0xf] }
 0x319   :  { %v5517_v39 = vsel %vm9928_vm7, %v5474_v12, %v5516_v15  ;;  %v3809_v28 = vrot.slane %v3807_v45, 4  ;;  %v3812_v30 = vrot.slane %v3810_v58, 5  ;;  %v3827_v8 = vrot.slane %v3825_v49, 4  ;;  %v3974_v33 = vld [vmem:[#allocation4 + $0x70] sm:$0xf]  ;;  %v5825_v35 = vld [vmem:[#allocation6 + $0x2a0] sm:$0xff] }
 0x31a   :  { %5518 = vst [vmem:[#allocation6 + $0x2e8] sm:$0x33] %v5517_v39  ;;  %v5668_v11 = vor.u32 %v5667_v53, %v5664_v13  ;;  %v11537_v14 = vld [vmem:[#allocation6 + $0x320] sm:$0x11]  ;;  %v3830_v32 = vrot.slane %v3828_v42, 5  ;;  %v3796_v59 = vrot.slane %v3795_v57, 4 }
 0x31b   :  { %v8624_v63 = vcombine.high %v11537_v14, %v11537_v14  ;;  %v3985_v44 = vshrl.u32 %v3970_v5, 16  ;;  %v3988_v29 = vshll.u32 %v3970_v5, 16  ;;  %v4003_v55 = vshrl.u32 %v3972_v20, 16  ;;  %v3934_v25 = vld [vmem:[#allocation5 + $0xb4] sm:$0xf]  ;;  %v8868_v45 = vpop.f32.mrb[32].mxu1 }
 0x31c   :  { %v5690_v4 = vrot.slane %v5668_v11, 4  ;;  %v3813_v17 = vor.u32 %v3812_v30, %v3809_v28  ;;  %v3831_v15 = vor.u32 %v3830_v32, %v3827_v8  ;;  %v4006_v60 = vshll.u32 %v3972_v20, 16  ;;  %v3940_v36 = vld [vmem:[#allocation5 + $0x134] sm:$0xf]  ;;  %v4166_v24 = vld [vmem:[#allocation4 + $0x38] sm:$0xf] }
 0x31d   :  { %v4021_v22 = vshrl.u32 %v3974_v33, 16  ;;  %v3929_v47 = vsel %vm9993_vm12, %v3796_v59, %v3928_v9  ;;  %v3987_v16 = vrot.slane %v3985_v44, 4  ;;  %v3990_v48 = vrot.slane %v3988_v29, 5  ;;  %v4168_v2 = vld [vmem:[#allocation4 + $0x58] sm:$0xf]  ;;  %v4388_v5 = vld [vmem:[#allocation6 + $0x30] sm:$0xff] }
 0x31e   :  { %5738 = vst [vmem:[#allocation6 + $0x328] sm:$0x11] %v5690_v4  ;;  %v4005_v1 = vrot.slane %v4003_v55, 4  ;;  %v3814_v27 = vrot.slane %v3813_v17, 4  ;;  %v3832_v31 = vrot.slane %v3831_v15, 4  ;;  %v4008_v26 = vrot.slane %v4006_v60, 5 }
 0x31f   :  { %v5833_v10 = vld [vmem:[#allocation6 + $0x2e0] sm:$0xff]  ;;  %3930 = vst [vmem:[#allocation5 + $0x34] sm:$0xf] %v3929_v47  ;;  %v3991_v12 = vor.u32 %v3990_v48, %v3987_v16  ;;  %v4023_v0 = vrot.slane %v4021_v22, 4  ;;  %v4170_v61 = vld [vmem:[#allocation4 + $0x78] sm:$0xf]  ;;  %v8623_v57 = vcombine.low %v11537_v14, %v11537_v14 }
 0x320   :  { %v8608_v23 = vcombine.high %v5825_v35, %v5833_v10  ;;  %v8607_v43 = vcombine.low %v5825_v35, %v5833_v10  ;;  %v3935_v13 = vsel %vm9993_vm12, %v3814_v27, %v3934_v25  ;;  %v3941_v53 = vsel %vm9993_vm12, %v3832_v31, %v3940_v36  ;;  %v4124_v54 = vld [vmem:[#allocation5 + $0x38] sm:$0xf]  ;;  %v8811_v59 = vpop.f32.mrb[33].mxu0  ;;  %v5826_v44 = vld [vmem:[#allocation6 + $0x2a8] sm:$0xff]  ;;  %v4320_v14 = vld [vmem:[#allocation5 + $0x3c] sm:$0xf] }
 0x321   :  { %v5724_v46 = vld [vmem:[#allocation6 + $0x2e8] sm:$0xee]  ;;  %v4024_v52 = vshll.u32 %v3974_v33, 16  ;;  %v4181_v39 = vshrl.u32 %v4166_v24, 16  ;;  %3936 = vst [vmem:[#allocation5 + $0xb4] sm:$0xf] %v3935_v13  ;;  %v4009_v50 = vor.u32 %v4008_v26, %v4005_v1  ;;  %v11560_v15 = vadd.f32 %v8811_v59, %v11541_v51 }
 0x322   :  { %v5725_v41 = vsel %vm10768_vm8, %v5668_v11, %v5724_v46  ;;  %7836 = vmatprep.mubr.bf16.mxu0 %v8608_v23  ;;  %3942 = vst [vmem:[#allocation5 + $0x134] sm:$0xf] %v3941_v53  ;;  %v3992_v18 = vrot.slane %v3991_v12, 4  ;;  %v4130_v62 = vld [vmem:[#allocation5 + $0xb8] sm:$0xf]  ;;  %v4184_v11 = vshll.u32 %v4166_v24, 16 }
 0x323   :  { %5726 = vst [vmem:[#allocation6 + $0x2e8] sm:$0xee] %v5725_v41  ;;  %7837 = vmatmul.mubr.bf16.gmra.mrb[108].mxu0 %v8607_v43  ;;  %v4199_v56 = vshrl.u32 %v4168_v2, 16  ;;  %v4026_v49 = vrot.slane %v4024_v52, 5  ;;  %v4183_v42 = vrot.slane %v4181_v39, 4  ;;  %v4202_v9 = vshll.u32 %v4168_v2, 16 }
 0x324   :  { %7844 = vmatprep.mubr.bf16.mxu0 %v8624_v63  ;;  %v4217_v4 = vshrl.u32 %v4170_v61, 16  ;;  %v4010_v20 = vrot.slane %v4009_v50, 4  ;;  %v4125_v28 = vsel %vm9993_vm12, %v3992_v18, %v4124_v54  ;;  %v4136_v30 = vld [vmem:[#allocation5 + $0x138] sm:$0xf]  ;;  %v4186_v32 = vrot.slane %v4184_v11, 5  ;;  %v8869_v25 = vpop.f32.mrb[33].mxu1 }
 0x325   :  { %v11551_v58 = vld [vmem:[#allocation6 + $0x328] sm:$0x11]  ;;  %v4027_v8 = vor.u32 %v4026_v49, %v4023_v0  ;;  %4126 = vst [vmem:[#allocation5 + $0x38] sm:$0xf] %v4125_v28  ;;  %v4201_v33 = vrot.slane %v4199_v56, 4  ;;  %v4204_v63 = vrot.slane %v4202_v9, 5  ;;  %v11570_v46 = vadd.f32 %v8869_v25, %v8868_v45 }
 0x326   :  { %v4368_v29 = vld [vmem:[#allocation5 + $0x30] sm:$0xff]  ;;  %v4131_v55 = vsel %vm9993_vm12, %v4010_v20, %v4130_v62  ;;  %v4219_v35 = vrot.slane %v4217_v4, 4  ;;  %v4220_v17 = vshll.u32 %v4170_v61, 16  ;;  %v4187_v10 = vor.u32 %v4186_v32, %v4183_v42  ;;  %v4326_v36 = vld [vmem:[#allocation5 + $0xbc] sm:$0xf]  ;;  %v11564_v16 = vpop.f32.mrb[34].mxu0 }
 0x327   :  { %v4389_v60 = vsel %vm10024_vm5, %v4368_v29, %v4388_v5  ;;  %v4028_v22 = vrot.slane %v4027_v8, 4  ;;  %4132 = vst [vmem:[#allocation5 + $0xb8] sm:$0xf] %v4131_v55  ;;  %v4205_v47 = vor.u32 %v4204_v63, %v4201_v33  ;;  %v8626_v1 = vcombine.high %v11551_v58, %v11551_v58  ;;  %v3584_v26 = vld [vmem:[#allocation4 + $0x70] sm:$0xf]  ;;  %v11574_v0 = vpop.f32.mrb[34].mxu1 }
 0x328   :  { %4390 = vst [vmem:[#allocation6 + $0x30] sm:$0xff] %v4389_v60  ;;  %v8625_v51 = vcombine.low %v11551_v58, %v11551_v58  ;;  %v4222_v23 = vrot.slane %v4220_v17, 5  ;;  %v4498_v31 = vld [vmem:[#allocation5 + $0xb0] sm:$0xff]  ;;  %v4188_v12 = vrot.slane %v4187_v10, 4  ;;  %v4332_v18 = vld [vmem:[#allocation5 + $0x13c] sm:$0xf] }
 0x329   :  { %v4667_v24 = vld [vmem:[#allocation5 + $0x130] sm:$0xff]  ;;  %v4137_v41 = vsel %vm9993_vm12, %v4028_v22, %v4136_v30  ;;  %v4525_v2 = vshll.u32 %v4498_v31, 16  ;;  %v4562_v61 = vshrl.u32 %v4498_v31, 16  ;;  %v4206_v53 = vrot.slane %v4205_v47, 4  ;;  %v3780_v42 = vld [vmem:[#allocation4 + $0x78] sm:$0xf] }
 0x32a   :  { %v5834_v48 = vld [vmem:[#allocation6 + $0x2e8] sm:$0xff]  ;;  %v4683_v13 = vrot.slane %v4667_v24, 5  ;;  %4138 = vst [vmem:[#allocation5 + $0x138] sm:$0xf] %v4137_v41  ;;  %v3586_v52 = vld [vmem:[#allocation4 + $0x90] sm:$0xf]  ;;  %v4223_v54 = vor.u32 %v4222_v23, %v4219_v35  ;;  %v4321_v39 = vsel %vm9993_vm12, %v4188_v12, %v4320_v14 }
 0x32b   :  { %v8610_v43 = vcombine.high %v5826_v44, %v5834_v48  ;;  %v8609_v27 = vcombine.low %v5826_v44, %v5834_v48  ;;  %7845 = vmatmul.mubr.bf16.gmra.mrb[112].mxu0 %v8623_v57  ;;  %v3647_v50 = vshrl.u32 %v3584_v26, 16  ;;  %v3650_v62 = vshll.u32 %v3584_v26, 16  ;;  %4322 = vst [vmem:[#allocation5 + $0x3c] sm:$0xf] %v4321_v39  ;;  %v11580_v9 = vpop.f32.mrb[35].mxu0  ;;  %v11582_v63 = vpop.f32.mrb[35].mxu1 }
 0x32c   :  { %v4527_v11 = vrot.slane %v4525_v2, 5  ;;  %v4564_v56 = vrot.slane %v4562_v61, 4  ;;  %v4691_v45 = vrot.slane %v4683_v13, 4  ;;  %4715 = vst [vmem:[#allocation6 + $0x70] sm:$0x88] %v4683_v13  ;;  %v4327_v49 = vsel %vm9993_vm12, %v4206_v53, %v4326_v36  ;;  %v4391_v60 = vld [vmem:[#allocation6 + $0x38] sm:$0xff] }
 0x32d   :  { %7924 = vmatprep.mubr.bf16.mxu1 %v8610_v43  ;;  %v4224_v4 = vrot.slane %v4223_v54, 4  ;;  %4328 = vst [vmem:[#allocation5 + $0xbc] sm:$0xf] %v4327_v49  ;;  %v3649_v57 = vrot.slane %v3647_v50, 4  ;;  %v3652_v5 = vrot.slane %v3650_v62, 5  ;;  %v3665_v20 = vshrl.u32 %v3586_v52, 16 }
 0x32e   :  { %7925 = vmatmul.mubr.bf16.gmra.mrb[108].mxu1 %v8609_v27  ;;  %v3782_v28 = vld [vmem:[#allocation4 + $0x98] sm:$0xf]  ;;  %v4565_v30 = vor.u32 %v4564_v56, %v4527_v11  ;;  %v3668_v8 = vshll.u32 %v3586_v52, 16  ;;  %v3843_v32 = vshrl.u32 %v3780_v42, 16  ;;  %v3846_v33 = vshll.u32 %v3780_v42, 16 }
 0x32f   :  { %7932 = vmatprep.mubr.bf16.mxu1 %v8626_v1  ;;  %v4613_v59 = vld [vmem:[#allocation6 + $0x30] sm:$0x88]  ;;  %v4333_v44 = vsel %vm9993_vm12, %v4224_v4, %v4332_v18  ;;  %v3653_v29 = vor.u32 %v3652_v5, %v3649_v57  ;;  %v3667_v55 = vrot.slane %v3665_v20, 4  ;;  %v3861_v17 = vshrl.u32 %v3782_v28, 16  ;;  %v4742_v47 = vld [vmem:[#allocation6 + $0xb0] sm:$0x77] }
 0x330   :  { %v3750_v35 = vld [vmem:[#allocation5 + $0x1b0] sm:$0xf]  ;;  %v4566_v14 = vrot.slane %v4565_v30, 4  ;;  %v4614_v25 = vsel %vm10615_vm10, %v4527_v11, %v4613_v59  ;;  %4334 = vst [vmem:[#allocation5 + $0x13c] sm:$0xf] %v4333_v44  ;;  %v3670_v22 = vrot.slane %v3668_v8, 5  ;;  %v4743_v31 = vsel %vm10641_vm4, %v4691_v45, %v4742_v47 }
 0x331   :  { %v3845_v10 = vrot.slane %v3843_v32, 4  ;;  %4615 = vst [vmem:[#allocation6 + $0x30] sm:$0x88] %v4614_v25  ;;  %v3654_v36 = vrot.slane %v3653_v29, 4  ;;  %v3848_v48 = vrot.slane %v3846_v33, 5  ;;  %v3863_v1 = vrot.slane %v3861_v17, 4 }
 0x332   :  { %v3864_v23 = vshll.u32 %v3782_v28, 16  ;;  %v3976_v43 = vld [vmem:[#allocation4 + $0x90] sm:$0xf]  ;;  %4625 = vst [vmem:[#allocation6 + $0x70] sm:$0x77] %v4566_v14  ;;  %v3671_v27 = vor.u32 %v3670_v22, %v3667_v55  ;;  %v4369_v26 = vld [vmem:[#allocation5 + $0x38] sm:$0xff] }
 0x333   :  { %v3978_v24 = vld [vmem:[#allocation4 + $0xb0] sm:$0xf]  ;;  %v4039_v41 = vshrl.u32 %v3976_v43, 16  ;;  %v4042_v12 = vshll.u32 %v3976_v43, 16  ;;  %v3751_v2 = vsel %vm9993_vm12, %v3654_v36, %v3750_v35  ;;  %v3849_v13 = vor.u32 %v3848_v48, %v3845_v10  ;;  %4744 = vst [vmem:[#allocation6 + $0xb0] sm:$0x77] %v4743_v31 }
 0x334   :  { %v3756_v61 = vld [vmem:[#allocation5 + $0x230] sm:$0xf]  ;;  %v3866_v53 = vrot.slane %v3864_v23, 5  ;;  %v4057_v52 = vshrl.u32 %v3978_v24, 16  ;;  %v4392_v54 = vsel %vm10024_vm5, %v4369_v26, %v4391_v60  ;;  %v4499_v39 = vld [vmem:[#allocation5 + $0xb8] sm:$0xff]  ;;  %v3672_v18 = vrot.slane %v3671_v27, 4 }
 0x335   :  { %3752 = vst [vmem:[#allocation5 + $0x1b0] sm:$0xf] %v3751_v2  ;;  %v3946_v50 = vld [vmem:[#allocation5 + $0x1b4] sm:$0xf]  ;;  %v4041_v62 = vrot.slane %v4039_v41, 4  ;;  %v4044_v11 = vrot.slane %v4042_v12, 5 }
 0x336   :  { %7933 = vmatmul.mubr.bf16.gmra.mrb[112].mxu1 %v8625_v51  ;;  %4393 = vst [vmem:[#allocation6 + $0x38] sm:$0xff] %v4392_v54  ;;  %v4529_v56 = vshll.u32 %v4499_v39, 16  ;;  %v4567_v45 = vshrl.u32 %v4499_v39, 16  ;;  %v3850_v49 = vrot.slane %v3849_v13, 4  ;;  %v3867_v42 = vor.u32 %v3866_v53, %v3863_v1  ;;  %v4172_v4 = vld [vmem:[#allocation4 + $0x98] sm:$0xf] }
 0x337   :  { %v3757_v57 = vsel %vm9993_vm12, %v3672_v18, %v3756_v61  ;;  %v3952_v58 = vld [vmem:[#allocation5 + $0x234] sm:$0xf]  ;;  %v4045_v51 = vor.u32 %v4044_v11, %v4041_v62  ;;  %v4059_v5 = vrot.slane %v4057_v52, 4  ;;  %v4060_v20 = vshll.u32 %v3978_v24, 16  ;;  %v4174_v28 = vld [vmem:[#allocation4 + $0xb8] sm:$0xf] }
 0x338   :  { %v4531_v30 = vrot.slane %v4529_v56, 5  ;;  %v4569_v8 = vrot.slane %v4567_v45, 4  ;;  %v4668_v32 = vld [vmem:[#allocation5 + $0x138] sm:$0xff]  ;;  %3758 = vst [vmem:[#allocation5 + $0x230] sm:$0xf] %v3757_v57  ;;  %v3868_v33 = vrot.slane %v3867_v42, 4  ;;  %v3947_v59 = vsel %vm9993_vm12, %v3850_v49, %v3946_v50 }
 0x339   :  { %v4142_v44 = vld [vmem:[#allocation5 + $0x1b8] sm:$0xf]  ;;  %v5747_v29 = vld [vmem:[#allocation6 + $0x30] sm:$0xff]  ;;  %v4684_v55 = vrot.slane %v4668_v32, 5  ;;  %3948 = vst [vmem:[#allocation5 + $0x1b4] sm:$0xf] %v3947_v59 }
 0x33a   :  { %v4046_v35 = vrot.slane %v4045_v51, 4  ;;  %v4062_v17 = vrot.slane %v4060_v20, 5  ;;  %v4235_v14 = vshrl.u32 %v4172_v4, 16  ;;  %v5755_v25 = vld [vmem:[#allocation6 + $0x70] sm:$0xff]  ;;  %v4570_v60 = vor.u32 %v4569_v8, %v4531_v30  ;;  %v4745_v36 = vld [vmem:[#allocation6 + $0xb8] sm:$0x77] }
 0x33b   :  { %v3953_v22 = vsel %vm9993_vm12, %v3868_v33, %v3952_v58  ;;  %v4238_v10 = vshll.u32 %v4172_v4, 16  ;;  %v4253_v47 = vshrl.u32 %v4174_v28, 16  ;;  %v8531_v48 = vcombine.low %v5747_v29, %v5755_v25  ;;  %4716 = vst [vmem:[#allocation6 + $0x78] sm:$0x88] %v4684_v55  ;;  %v4148_v27 = vld [vmem:[#allocation5 + $0x238] sm:$0xf] }
 0x33c   :  { %v8532_v1 = vcombine.high %v5747_v29, %v5755_v25  ;;  %v4692_v23 = vrot.slane %v4684_v55, 4  ;;  %3954 = vst [vmem:[#allocation5 + $0x234] sm:$0xf] %v3953_v22  ;;  %v4063_v43 = vor.u32 %v4062_v17, %v4059_v5  ;;  %v3588_v31 = vld [vmem:[#allocation4 + $0xb0] sm:$0xf]  ;;  %v4571_v24 = vrot.slane %v4570_v60, 4 }
 0x33d   :  { %v4143_v41 = vsel %vm9993_vm12, %v4046_v35, %v4142_v44  ;;  %v4237_v12 = vrot.slane %v4235_v14, 4  ;;  %v4240_v26 = vrot.slane %v4238_v10, 5  ;;  %v3590_v2 = vld [vmem:[#allocation4 + $0xd0] sm:$0xf]  ;;  %v4616_v61 = vld [vmem:[#allocation6 + $0x38] sm:$0x88] }
 0x33e   :  { %7972 = vmatprep.mubr.bf16.mxu0 %v8532_v1  ;;  %v4064_v13 = vrot.slane %v4063_v43, 4  ;;  %4144 = vst [vmem:[#allocation5 + $0x1b8] sm:$0xf] %v4143_v41  ;;  %v4255_v53 = vrot.slane %v4253_v47, 4  ;;  %v4256_v52 = vshll.u32 %v4174_v28, 16  ;;  %v4746_v54 = vsel %vm10641_vm4, %v4692_v23, %v4745_v36  ;;  %v11611_v57 = vpop.f32.mrb[36].mxu0 }
 0x33f   :  { %v4617_v39 = vsel %vm10615_vm10, %v4531_v30, %v4616_v61  ;;  %4626 = vst [vmem:[#allocation6 + $0x78] sm:$0x77] %v4571_v24  ;;  %7973 = vmatmul.mubr.bf16.vlgmr.msra.gmra.mrb[116].mxu0 %v8531_v48  ;;  %v4241_v18 = vor.u32 %v4240_v26, %v4237_v12  ;;  %4747 = vst [vmem:[#allocation6 + $0xb8] sm:$0x77] %v4746_v54  ;;  %v3683_v50 = vshrl.u32 %v3588_v31, 16  ;;  %v3686_v62 = vshll.u32 %v3588_v31, 16 }
 0x340   :  { %v3784_v11 = vld [vmem:[#allocation4 + $0xb8] sm:$0xf]  ;;  %4618 = vst [vmem:[#allocation6 + $0x38] sm:$0x88] %v4617_v39  ;;  %v4149_v56 = vsel %vm9993_vm12, %v4064_v13, %v4148_v27  ;;  %v4258_v45 = vrot.slane %v4256_v52, 5  ;;  %v3701_v42 = vshrl.u32 %v3590_v2, 16 }
 0x341   :  { %v4338_v49 = vld [vmem:[#allocation5 + $0x1bc] sm:$0xf]  ;;  %v3704_v4 = vshll.u32 %v3590_v2, 16  ;;  %v4884_v58 = vld [vmem:[#allocation5 + $0x1b0] sm:$0xff]  ;;  %4150 = vst [vmem:[#allocation5 + $0x238] sm:$0xf] %v4149_v56 }
 0x342   :  { %v4242_v51 = vrot.slane %v4241_v18, 4  ;;  %v4344_v5 = vld [vmem:[#allocation5 + $0x23c] sm:$0xf]  ;;  %v3685_v20 = vrot.slane %v3683_v50, 4  ;;  %v3688_v28 = vrot.slane %v3686_v62, 5  ;;  %v3879_v30 = vshrl.u32 %v3784_v11, 16 }
 0x343   :  { %v11613_v8 = vpop.f32.mrb[37].mxu0  ;;  %v4935_v32 = vshrl.u32 %v4884_v58, 16  ;;  %v4938_v33 = vshll.u32 %v4884_v58, 16  ;;  %v4259_v59 = vor.u32 %v4258_v45, %v4255_v53  ;;  %v3703_v44 = vrot.slane %v3701_v42, 4  ;;  %v3786_v29 = vld [vmem:[#allocation4 + $0xd8] sm:$0xf] }
 0x344   :  { %v11615_v55 = vpop.f32.mrb[38].mxu0  ;;  %v4999_v35 = vld [vmem:[#allocation6 + $0xb0] sm:$0xcc]  ;;  %v4339_v14 = vsel %vm9993_vm12, %v4242_v51, %v4338_v49  ;;  %v3689_v25 = vor.u32 %v3688_v28, %v3685_v20  ;;  %v3706_v60 = vrot.slane %v3704_v4, 5  ;;  %v3881_v10 = vrot.slane %v3879_v30, 4  ;;  %v11627_v4 = vpop.f32.mrb[36].mxu1 }
 0x345   :  { %v5101_v17 = vld [vmem:[#allocation5 + $0x230] sm:$0xff]  ;;  %v11619_v47 = vpop.f32.mrb[39].mxu0  ;;  %v4937_v36 = vrot.slane %v4935_v32, 5  ;;  %v4940_v48 = vrot.slane %v4938_v33, 6  ;;  %v4260_v23 = vrot.slane %v4259_v59, 4  ;;  %v3882_v24 = vshll.u32 %v3784_v11, 16 }
 0x346   :  { %v3762_v22 = vld [vmem:[#allocation5 + $0x2b0] sm:$0xf]  ;;  %v5117_v1 = vrot.slane %v5101_v17, 6  ;;  %4340 = vst [vmem:[#allocation5 + $0x1bc] sm:$0xf] %v4339_v14  ;;  %v3690_v27 = vrot.slane %v3689_v25, 4  ;;  %v3707_v31 = vor.u32 %v3706_v60, %v3703_v44 }
 0x347   :  { %v3768_v43 = vld [vmem:[#allocation5 + $0x330] sm:$0xf]  ;;  %v3897_v41 = vshrl.u32 %v3786_v29, 16  ;;  %v5756_v26 = vld [vmem:[#allocation6 + $0x78] sm:$0xff]  ;;  %v4941_v2 = vor.u32 %v4940_v48, %v4937_v36  ;;  %v4345_v13 = vsel %vm9993_vm12, %v4260_v23, %v4344_v5  ;;  %v3900_v53 = vshll.u32 %v3786_v29, 16  ;;  %v11633_v30 = vpop.f32.mrb[37].mxu1 }
 0x348   :  { %v5173_v12 = vld [vmem:[#allocation6 + $0x130] sm:$0x33]  ;;  %v5125_v61 = vrot.slane %v5117_v1, 4  ;;  %5149 = vst [vmem:[#allocation6 + $0xf0] sm:$0xcc] %v5117_v1  ;;  %v5748_v54 = vld [vmem:[#allocation6 + $0x38] sm:$0xff]  ;;  %v3763_v18 = vsel %vm9993_vm12, %v3690_v27, %v3762_v22 }
 0x349   :  { %v3980_v52 = vld [vmem:[#allocation4 + $0xd0] sm:$0xf]  ;;  %4346 = vst [vmem:[#allocation5 + $0x23c] sm:$0xf] %v4345_v13  ;;  %v3708_v39 = vrot.slane %v3707_v31, 4  ;;  %v3884_v50 = vrot.slane %v3882_v24, 5  ;;  %v8533_v56 = vcombine.low %v5748_v54, %v5756_v26  ;;  %v8534_v45 = vcombine.high %v5748_v54, %v5756_v26 }
 0x34a   :  { %v3899_v62 = vrot.slane %v3897_v41, 4  ;;  %v3982_v11 = vld [vmem:[#allocation4 + $0xf0] sm:$0xf]  ;;  %v4956_v49 = vrot.slane %v4941_v2, 4  ;;  %v5000_v42 = vsel %vm10686_vm3, %v4941_v2, %v4999_v35  ;;  %3764 = vst [vmem:[#allocation5 + $0x2b0] sm:$0xf] %v3763_v18  ;;  %v5174_v20 = vsel %vm9928_vm7, %v5125_v61, %v5173_v12 }
 0x34b   :  { %5001 = vst [vmem:[#allocation6 + $0xb0] sm:$0xcc] %v5000_v42  ;;  %v3769_v58 = vsel %vm9993_vm12, %v3708_v39, %v3768_v43  ;;  %v3885_v51 = vor.u32 %v3884_v50, %v3881_v10  ;;  %v3902_v5 = vrot.slane %v3900_v53, 5  ;;  %v4176_v28 = vld [vmem:[#allocation4 + $0xd8] sm:$0xf]  ;;  %8060 = vmatprep.mubr.bf16.mxu1 %v8534_v45  ;;  %v4075_v33 = vshrl.u32 %v3980_v52, 16 }
 0x34c   :  { %5011 = vst [vmem:[#allocation6 + $0xf0] sm:$0x33] %v4956_v49  ;;  %3770 = vst [vmem:[#allocation5 + $0x330] sm:$0xf] %v3769_v58  ;;  %v3958_v32 = vld [vmem:[#allocation5 + $0x2b4] sm:$0xf]  ;;  %8061 = vmatmul.mubr.bf16.vlgmr.msra.gmra.mrb[116].mxu1 %v8533_v56 }
 0x34d   :  { %5175 = vst [vmem:[#allocation6 + $0x130] sm:$0x33] %v5174_v20  ;;  %v4078_v59 = vshll.u32 %v3980_v52, 16  ;;  %v4093_v44 = vshrl.u32 %v3982_v11, 16  ;;  %v4096_v29 = vshll.u32 %v3982_v11, 16  ;;  %v4885_v35 = vld [vmem:[#allocation5 + $0x1b8] sm:$0xff]  ;;  %v3903_v14 = vor.u32 %v3902_v5, %v3899_v62 }
 0x34e   :  { %v3886_v17 = vrot.slane %v3885_v51, 4  ;;  %v4271_v25 = vshrl.u32 %v4176_v28, 16  ;;  %v4274_v60 = vshll.u32 %v4176_v28, 16  ;;  %v4943_v22 = vshrl.u32 %v4885_v35, 16  ;;  %v3964_v36 = vld [vmem:[#allocation5 + $0x334] sm:$0xf] }
 0x34f   :  { %v4946_v10 = vshll.u32 %v4885_v35, 16  ;;  %v4077_v48 = vrot.slane %v4075_v33, 4  ;;  %v4080_v1 = vrot.slane %v4078_v59, 5  ;;  %v3904_v23 = vrot.slane %v3903_v14, 4  ;;  %v4178_v24 = vld [vmem:[#allocation4 + $0xf8] sm:$0xf] }
 0x350   :  { %v3959_v43 = vsel %vm9993_vm12, %v3886_v17, %v3958_v32  ;;  %v4095_v27 = vrot.slane %v4093_v44, 4  ;;  %v4098_v31 = vrot.slane %v4096_v29, 5  ;;  %v11637_v41 = vpop.f32.mrb[38].mxu1  ;;  %v4945_v12 = vrot.slane %v4943_v22, 5  ;;  %v5102_v2 = vld [vmem:[#allocation5 + $0x238] sm:$0xff] }
 0x351   :  { %v4948_v26 = vrot.slane %v4946_v10, 6  ;;  %3960 = vst [vmem:[#allocation5 + $0x2b4] sm:$0xf] %v3959_v43  ;;  %v4081_v61 = vor.u32 %v4080_v1, %v4077_v48  ;;  %v4273_v13 = vrot.slane %v4271_v25, 4  ;;  %v3579_v53 = vld [vmem:[#allocation4 + $0x14] sm:$0xf]  ;;  %v3965_v39 = vsel %vm9993_vm12, %v3904_v23, %v3964_v36 }
 0x352   :  { %v5002_v52 = vld [vmem:[#allocation6 + $0xb8] sm:$0xcc]  ;;  %v5118_v54 = vrot.slane %v5102_v2, 6  ;;  %v4099_v18 = vor.u32 %v4098_v31, %v4095_v27  ;;  %v4276_v11 = vrot.slane %v4274_v60, 5  ;;  %3966 = vst [vmem:[#allocation5 + $0x334] sm:$0xf] %v3965_v39 }
 0x353   :  { %v4154_v50 = vld [vmem:[#allocation5 + $0x2b8] sm:$0xf]  ;;  %v4949_v56 = vor.u32 %v4948_v26, %v4945_v12  ;;  %v4082_v45 = vrot.slane %v4081_v61, 4  ;;  %v4289_v49 = vshrl.u32 %v4178_v24, 16  ;;  %v4292_v42 = vshll.u32 %v4178_v24, 16  ;;  %v5763_v5 = vld [vmem:[#allocation6 + $0xb0] sm:$0xff] }
 0x354   :  { %v4160_v62 = vld [vmem:[#allocation5 + $0x338] sm:$0xf]  ;;  %v4350_v58 = vld [vmem:[#allocation5 + $0x2bc] sm:$0xf]  ;;  %v5771_v20 = vld [vmem:[#allocation6 + $0xf0] sm:$0xff]  ;;  %v5126_v28 = vrot.slane %v5118_v54, 4  ;;  %v4277_v33 = vor.u32 %v4276_v11, %v4273_v13 }
 0x355   :  { %v5176_v51 = vld [vmem:[#allocation6 + $0x138] sm:$0x33]  ;;  %5150 = vst [vmem:[#allocation6 + $0xf8] sm:$0xcc] %v5118_v54  ;;  %v4100_v32 = vrot.slane %v4099_v18, 4  ;;  %v3602_v59 = vshrl.u32 %v3579_v53, 16  ;;  %v8548_v44 = vcombine.high %v5763_v5, %v5771_v20  ;;  %v5003_v35 = vsel %vm10686_vm3, %v4949_v56, %v5002_v52 }
 0x356   :  { %v4957_v29 = vrot.slane %v4949_v56, 4  ;;  %v8547_v17 = vcombine.low %v5763_v5, %v5771_v20  ;;  %v3581_v14 = vld [vmem:[#allocation4 + $0x34] sm:$0xf]  ;;  %v11643_v60 = vpop.f32.mrb[39].mxu1  ;;  %5004 = vst [vmem:[#allocation6 + $0xb8] sm:$0xcc] %v5003_v35  ;;  %v4155_v22 = vsel %vm9993_vm12, %v4082_v45, %v4154_v50  ;;  %v5177_v23 = vsel %vm9928_vm7, %v5126_v28, %v5176_v51 }
 0x357   :  { %v3583_v25 = vld [vmem:[#allocation4 + $0x54] sm:$0xf]  ;;  %v4161_v10 = vsel %vm9993_vm12, %v4100_v32, %v4160_v62  ;;  %v4278_v36 = vrot.slane %v4277_v33, 4  ;;  %v4291_v48 = vrot.slane %v4289_v49, 4  ;;  %7980 = vmatprep.mubr.bf16.mxu0 %v8548_v44  ;;  %4156 = vst [vmem:[#allocation5 + $0x2b8] sm:$0xf] %v4155_v22 }
 0x358   :  { %5012 = vst [vmem:[#allocation6 + $0xf8] sm:$0x33] %v4957_v29  ;;  %4162 = vst [vmem:[#allocation5 + $0x338] sm:$0xf] %v4161_v10  ;;  %v4294_v1 = vrot.slane %v4292_v42, 5  ;;  %v3604_v43 = vrot.slane %v3602_v59, 4  ;;  %7981 = vmatmul.mubr.bf16.gmra.mrb[120].mxu0 %v8547_v17 }
 0x359   :  { %v3605_v27 = vshll.u32 %v3579_v53, 16  ;;  %v11651_v31 = vpop.f32.mrb[40].mxu0  ;;  %v5315_v24 = vld [vmem:[#allocation5 + $0x2b0] sm:$0xff]  ;;  %v4351_v12 = vsel %vm9993_vm12, %v4278_v36, %v4350_v58  ;;  %v4356_v26 = vld [vmem:[#allocation5 + $0x33c] sm:$0xf]  ;;  %v3620_v2 = vshrl.u32 %v3581_v14, 16 }
 0x35a   :  { %5178 = vst [vmem:[#allocation6 + $0x138] sm:$0x33] %v5177_v23  ;;  %v3623_v61 = vshll.u32 %v3581_v14, 16  ;;  %v3638_v13 = vshrl.u32 %v3583_v25, 16  ;;  %v5366_v52 = vshrl.u32 %v5315_v24, 16  ;;  %v5369_v54 = vshll.u32 %v5315_v24, 16 }
 0x35b   :  { %v4295_v39 = vor.u32 %v4294_v1, %v4291_v48  ;;  %4352 = vst [vmem:[#allocation5 + $0x2bc] sm:$0xf] %v4351_v12  ;;  %v3607_v18 = vrot.slane %v3605_v27, 5  ;;  %v3775_v50 = vld [vmem:[#allocation4 + $0x1c] sm:$0xf]  ;;  %v11655_v62 = vpop.f32.mrb[41].mxu0 }
 0x35c   :  { %v5532_v53 = vld [vmem:[#allocation5 + $0x330] sm:$0xff]  ;;  %v3622_v11 = vrot.slane %v3620_v2, 4  ;;  %v3625_v56 = vrot.slane %v3623_v61, 5  ;;  %v3640_v45 = vrot.slane %v3638_v13, 4  ;;  %v3641_v49 = vshll.u32 %v3583_v25, 16  ;;  %v11657_v42 = vpop.f32.mrb[42].mxu0 }
 0x35d   :  { %v5368_v58 = vrot.slane %v5366_v52, 6  ;;  %v5371_v51 = vrot.slane %v5369_v54, 7  ;;  %v5548_v5 = vrot.slane %v5532_v53, 7  ;;  %v4296_v20 = vrot.slane %v4295_v39, 4  ;;  %v5430_v28 = vld [vmem:[#allocation6 + $0x130] sm:$0xee] }
 0x35e   :  { %v3608_v32 = vor.u32 %v3607_v18, %v3604_v43  ;;  %v3626_v33 = vor.u32 %v3625_v56, %v3622_v11  ;;  %v3643_v59 = vrot.slane %v3641_v49, 5  ;;  %v3735_v44 = vld [vmem:[#allocation5 + $0x70] sm:$0xf]  ;;  %v3798_v29 = vshrl.u32 %v3775_v50, 16  ;;  %v5764_v35 = vld [vmem:[#allocation6 + $0xb8] sm:$0xff]  ;;  %v11663_v36 = vpop.f32.mrb[40].mxu1 }
 0x35f   :  { %v5372_v17 = vor.u32 %v5371_v51, %v5368_v58  ;;  %v11659_v14 = vrot.slane %v5548_v5, 4  ;;  %5580 = vst [vmem:[#allocation6 + $0x170] sm:$0xee] %v5548_v5  ;;  %v4357_v25 = vsel %vm9993_vm12, %v4296_v20, %v4356_v26  ;;  %v3741_v22 = vld [vmem:[#allocation5 + $0xf0] sm:$0xf]  ;;  %v3801_v10 = vshll.u32 %v3775_v50, 16 }
 0x360   :  { %v5772_v48 = vld [vmem:[#allocation6 + $0xf8] sm:$0xff]  ;;  %4358 = vst [vmem:[#allocation5 + $0x33c] sm:$0xf] %v4357_v25  ;;  %v3609_v1 = vrot.slane %v3608_v32, 4  ;;  %v3627_v23 = vrot.slane %v3626_v33, 4  ;;  %v3644_v43 = vor.u32 %v3643_v59, %v3640_v45  ;;  %v3800_v24 = vrot.slane %v3798_v29, 4 }
 0x361   :  { %v3777_v27 = vld [vmem:[#allocation4 + $0x3c] sm:$0xf]  ;;  %v8550_v12 = vcombine.high %v5764_v35, %v5772_v48  ;;  %v5387_v2 = vrot.slane %v5372_v17, 4  ;;  %v5431_v61 = vsel %vm10768_vm8, %v5372_v17, %v5430_v28  ;;  %v8549_v13 = vcombine.low %v5764_v35, %v5772_v48  ;;  %v3747_v52 = vld [vmem:[#allocation5 + $0x170] sm:$0xf]  ;;  %v11667_v26 = vpop.f32.mrb[43].mxu0 }
 0x362   :  { %v3779_v54 = vld [vmem:[#allocation4 + $0x5c] sm:$0xf]  ;;  %5432 = vst [vmem:[#allocation6 + $0x130] sm:$0xee] %v5431_v61  ;;  %v3645_v18 = vrot.slane %v3644_v43, 4  ;;  %v3736_v50 = vsel %vm9993_vm12, %v3609_v1, %v3735_v44  ;;  %v3742_v53 = vsel %vm9993_vm12, %v3627_v23, %v3741_v22  ;;  %v3803_v11 = vrot.slane %v3801_v10, 5 }
 0x363   :  { %v5316_v39 = vld [vmem:[#allocation5 + $0x2b8] sm:$0xff]  ;;  %v11673_v56 = vpop.f32.mrb[41].mxu1  ;;  %8068 = vmatprep.mubr.bf16.mxu1 %v8550_v12  ;;  %5442 = vst [vmem:[#allocation6 + $0x170] sm:$0x11] %v5387_v2  ;;  %3737 = vst [vmem:[#allocation5 + $0x70] sm:$0xf] %v3736_v50 }
 0x364   :  { %v5374_v45 = vshrl.u32 %v5316_v39, 16  ;;  %v5377_v49 = vshll.u32 %v5316_v39, 16  ;;  %3743 = vst [vmem:[#allocation5 + $0xf0] sm:$0xf] %v3742_v53  ;;  %v3816_v58 = vshrl.u32 %v3777_v27, 16  ;;  %v3819_v51 = vshll.u32 %v3777_v27, 16  ;;  %8069 = vmatmul.mubr.bf16.gmra.mrb[120].mxu1 %v8549_v13 }
 0x365   :  { %v3971_v5 = vld [vmem:[#allocation4 + $0x34] sm:$0xf]  ;;  %v3748_v20 = vsel %vm9993_vm12, %v3645_v18, %v3747_v52  ;;  %v3804_v28 = vor.u32 %v3803_v11, %v3800_v24  ;;  %v3834_v32 = vshrl.u32 %v3779_v54, 16  ;;  %v3837_v33 = vshll.u32 %v3779_v54, 16  ;;  %v5433_v22 = vld [vmem:[#allocation6 + $0x138] sm:$0xee] }
 0x366   :  { %v3973_v59 = vld [vmem:[#allocation4 + $0x54] sm:$0xf]  ;;  %v5376_v44 = vrot.slane %v5374_v45, 6  ;;  %v5379_v29 = vrot.slane %v5377_v49, 7  ;;  %3749 = vst [vmem:[#allocation5 + $0x170] sm:$0xf] %v3748_v20 }
 0x367   :  { %v3818_v35 = vrot.slane %v3816_v58, 4  ;;  %v3821_v17 = vrot.slane %v3819_v51, 5  ;;  %v3931_v25 = vld [vmem:[#allocation5 + $0x74] sm:$0xf]  ;;  %v3805_v10 = vrot.slane %v3804_v28, 4  ;;  %v3836_v48 = vrot.slane %v3834_v32, 4 }
 0x368   :  { %v3839_v1 = vrot.slane %v3837_v33, 5  ;;  %v3937_v23 = vld [vmem:[#allocation5 + $0xf4] sm:$0xf]  ;;  %v3994_v43 = vshrl.u32 %v3971_v5, 16  ;;  %v5380_v27 = vor.u32 %v5379_v29, %v5376_v44  ;;  %v5533_v12 = vld [vmem:[#allocation5 + $0x338] sm:$0xff]  ;;  %v3997_v24 = vshll.u32 %v3971_v5, 16 }
 0x369   :  { %v3822_v2 = vor.u32 %v3821_v17, %v3818_v35  ;;  %v3943_v61 = vld [vmem:[#allocation5 + $0x174] sm:$0xf]  ;;  %v4012_v13 = vshrl.u32 %v3973_v59, 16  ;;  %v11677_v52 = vpop.f32.mrb[42].mxu1  ;;  %v5549_v54 = vrot.slane %v5533_v12, 7  ;;  %v3932_v18 = vsel %vm9993_vm12, %v3805_v10, %v3931_v25 }
 0x36a   :  { %v3840_v39 = vor.u32 %v3839_v1, %v3836_v48  ;;  %v3975_v50 = vld [vmem:[#allocation4 + $0x74] sm:$0xf]  ;;  %v3996_v53 = vrot.slane %v3994_v43, 4  ;;  %v4167_v11 = vld [vmem:[#allocation4 + $0x3c] sm:$0xf]  ;;  %v5388_v49 = vrot.slane %v5380_v27, 4  ;;  %v5434_v58 = vsel %vm10768_vm8, %v5380_v27, %v5433_v22 }
 0x36b   :  { %v5779_v45 = vld [vmem:[#allocation6 + $0x130] sm:$0xff]  ;;  %v3823_v51 = vrot.slane %v3822_v2, 4  ;;  %3933 = vst [vmem:[#allocation5 + $0x74] sm:$0xf] %v3932_v18  ;;  %v3999_v20 = vrot.slane %v3997_v24, 5  ;;  %v11683_v32 = vrot.slane %v5549_v54, 4 }
 0x36c   :  { %v4169_v5 = vld [vmem:[#allocation4 + $0x5c] sm:$0xf]  ;;  %v5787_v28 = vld [vmem:[#allocation6 + $0x170] sm:$0xff]  ;;  %5435 = vst [vmem:[#allocation6 + $0x138] sm:$0xee] %v5434_v58  ;;  %v3841_v33 = vrot.slane %v3840_v39, 4 }
 0x36d   :  { %5581 = vst [vmem:[#allocation6 + $0x178] sm:$0xee] %v5549_v54  ;;  %v4014_v44 = vrot.slane %v4012_v13, 4  ;;  %v4015_v29 = vshll.u32 %v3973_v59, 16  ;;  %v11685_v35 = vpop.f32.mrb[43].mxu1  ;;  %v8564_v17 = vcombine.high %v5779_v45, %v5787_v28  ;;  %v8563_v25 = vcombine.low %v5779_v45, %v5787_v28  ;;  %v11691_v2 = vpop.f32.mrb[44].mxu0 }
 0x36e   :  { %5443 = vst [vmem:[#allocation6 + $0x178] sm:$0x11] %v5388_v49  ;;  %v3938_v22 = vsel %vm9993_vm12, %v3823_v51, %v3937_v23  ;;  %v4000_v10 = vor.u32 %v3999_v20, %v3996_v53  ;;  %v3944_v48 = vsel %vm9993_vm12, %v3841_v33, %v3943_v61  ;;  %v4030_v43 = vshrl.u32 %v3975_v50, 16  ;;  %v4127_v12 = vld [vmem:[#allocation5 + $0x78] sm:$0xf]  ;;  %v11693_v61 = vpop.f32.mrb[45].mxu0 }
 0x36f   :  { %3939 = vst [vmem:[#allocation5 + $0xf4] sm:$0xf] %v3938_v22  ;;  %v4017_v1 = vrot.slane %v4015_v29, 5  ;;  %v4033_v27 = vshll.u32 %v3975_v50, 16  ;;  %7988 = vmatprep.mubr.bf16.mxu0 %v8564_v17  ;;  %3945 = vst [vmem:[#allocation5 + $0x174] sm:$0xf] %v3944_v48 }
 0x370   :  { %v4001_v59 = vrot.slane %v4000_v10, 4  ;;  %v4171_v24 = vld [vmem:[#allocation4 + $0x7c] sm:$0xf]  ;;  %v4190_v13 = vshrl.u32 %v4167_v11, 16  ;;  %v4193_v54 = vshll.u32 %v4167_v11, 16  ;;  %v4208_v39 = vshrl.u32 %v4169_v5, 16  ;;  %7989 = vmatmul.mubr.bf16.gmra.mrb[124].mxu0 %v8563_v25 }
 0x371   :  { %v4018_v23 = vor.u32 %v4017_v1, %v4014_v44  ;;  %v4032_v18 = vrot.slane %v4030_v43, 4  ;;  %v4035_v53 = vrot.slane %v4033_v27, 5  ;;  %v4133_v45 = vld [vmem:[#allocation5 + $0xf8] sm:$0xf]  ;;  %v4211_v49 = vshll.u32 %v4169_v5, 16  ;;  %v4654_v58 = vld [vmem:[#allocation6 + $0x1f0] sm:$0xff] }
 0x372   :  { %v4128_v50 = vsel %vm9993_vm12, %v4001_v59, %v4127_v12  ;;  %v4139_v51 = vld [vmem:[#allocation5 + $0x178] sm:$0xf]  ;;  %v4192_v20 = vrot.slane %v4190_v13, 4  ;;  %v4195_v28 = vrot.slane %v4193_v54, 5  ;;  %v4210_v33 = vrot.slane %v4208_v39, 4  ;;  %v11697_v29 = vpop.f32.mrb[46].mxu0 }
 0x373   :  { %12359 = vst [vmem:[#allocation10_spill] sm:$0xff] %v11697_v29  ;;  %v4401_v11 = vld [vmem:[#allocation5 + $0x70] sm:$0xff]  ;;  %v4019_v17 = vrot.slane %v4018_v23, 4  ;;  %v4036_v25 = vor.u32 %v4035_v53, %v4032_v18  ;;  %4129 = vst [vmem:[#allocation5 + $0x78] sm:$0xf] %v4128_v50  ;;  %v4213_v44 = vrot.slane %v4211_v49, 5 }
 0x374   :  { %v4226_v22 = vshrl.u32 %v4171_v24, 16  ;;  %v4323_v10 = vld [vmem:[#allocation5 + $0x7c] sm:$0xf]  ;;  %v4446_v48 = vshrl.u32 %v4401_v11, 16  ;;  %v4449_v1 = vshll.u32 %v4401_v11, 16  ;;  %v4196_v43 = vor.u32 %v4195_v28, %v4192_v20  ;;  %v11701_v23 = vpop.f32.mrb[44].mxu1 }
 0x375   :  { %v5780_v5 = vld [vmem:[#allocation6 + $0x138] sm:$0xff]  ;;  %v4229_v27 = vshll.u32 %v4171_v24, 16  ;;  %v4037_v59 = vrot.slane %v4036_v25, 4  ;;  %v4134_v13 = vsel %vm9993_vm12, %v4019_v17, %v4133_v45  ;;  %v4214_v54 = vor.u32 %v4213_v44, %v4210_v33  ;;  %12360 = vst [vmem:[#allocation11_spill] sm:$0xff] %v11701_v23  ;;  %v3587_v11 = vld [vmem:[#allocation4 + $0x94] sm:$0xf] }
 0x376   :  { %v5788_v12 = vld [vmem:[#allocation6 + $0x178] sm:$0xff]  ;;  %v4228_v39 = vrot.slane %v4226_v22, 4  ;;  %v4448_v53 = vrot.slane %v4446_v48, 7  ;;  %v4634_v49 = vld [vmem:[#allocation5 + $0xf0] sm:$0xff]  ;;  %4135 = vst [vmem:[#allocation5 + $0xf8] sm:$0xf] %v4134_v13 }
 0x377   :  { %v8566_v18 = vcombine.high %v5780_v5, %v5788_v12  ;;  %v8565_v50 = vcombine.low %v5780_v5, %v5788_v12  ;;  %v4197_v29 = vrot.slane %v4196_v43, 4  ;;  %v11703_v20 = vpop.f32.mrb[47].mxu0  ;;  %v4485_v24 = vld [vmem:[#allocation6 + $0x1b0] sm:$0xff]  ;;  %v4655_v28 = vsel %vm10024_vm5, %v4634_v49, %v4654_v58  ;;  %v11709_v44 = vpop.f32.mrb[45].mxu1  ;;  %v3781_v12 = vld [vmem:[#allocation4 + $0x7c] sm:$0xf] }
 0x378   :  { %v4755_v25 = vld [vmem:[#allocation5 + $0x170] sm:$0xff]  ;;  %v4140_v45 = vsel %vm9993_vm12, %v4037_v59, %v4139_v51  ;;  %v4215_v33 = vrot.slane %v4214_v54, 4  ;;  %v4231_v17 = vrot.slane %v4229_v27, 5  ;;  %12361 = vst [vmem:[#allocation12_spill] sm:$0xff] %v11709_v44  ;;  %v4451_v22 = vor.u32 %v4449_v1, %v4448_v53  ;;  %4656 = vst [vmem:[#allocation6 + $0x1f0] sm:$0xff] %v4655_v28 }
 0x379   :  { %8076 = vmatprep.mubr.bf16.mxu1 %v8566_v18  ;;  %v4782_v5 = vshll.u32 %v4755_v25, 16  ;;  %4141 = vst [vmem:[#allocation5 + $0x178] sm:$0xf] %v4140_v45  ;;  %v4324_v48 = vsel %vm9993_vm12, %v4197_v29, %v4323_v10  ;;  %v3656_v43 = vshrl.u32 %v3585_v40, 16  ;;  %v3659_v59 = vshll.u32 %v3585_v40, 16  ;;  %v11717_v29 = vpop.f32.mrb[46].mxu1 }
 0x37a   :  { %8077 = vmatmul.mubr.bf16.gmra.mrb[124].mxu1 %v8565_v50  ;;  %v4232_v58 = vor.u32 %v4231_v17, %v4228_v39  ;;  %4325 = vst [vmem:[#allocation5 + $0x7c] sm:$0xf] %v4324_v48  ;;  %v4330_v51 = vsel %vm9993_vm12, %v4215_v33, %v4329_v37  ;;  %v3674_v27 = vshrl.u32 %v3587_v11, 16  ;;  %v3783_v13 = vld [vmem:[#allocation4 + $0x9c] sm:$0xf]  ;;  %v4486_v1 = vsel %vm10147_vm11, %v4451_v22, %v4485_v24 }
 0x37b   :  { %v4784_v54 = vrot.slane %v4782_v5, 5  ;;  %4331 = vst [vmem:[#allocation5 + $0xfc] sm:$0xf] %v4330_v51  ;;  %v4335_v18 = vld [vmem:[#allocation5 + $0x17c] sm:$0xf]  ;;  %v3658_v53 = vrot.slane %v3656_v43, 4 }
 0x37c   :  { %v3677_v49 = vshll.u32 %v3587_v11, 16  ;;  %12362 = vst [vmem:[#allocation13_spill] sm:$0xff] %v11717_v29  ;;  %4487 = vst [vmem:[#allocation6 + $0x1b0] sm:$0xff] %v4486_v1  ;;  %v4233_v10 = vrot.slane %v4232_v58, 4  ;;  %v3661_v39 = vrot.slane %v3659_v59, 5  ;;  %v3676_v50 = vrot.slane %v3674_v27, 4 }
 0x37d   :  { %v3852_v28 = vshrl.u32 %v3781_v12, 16  ;;  %v3855_v37 = vshll.u32 %v3781_v12, 16  ;;  %v3870_v40 = vshrl.u32 %v3783_v13, 16  ;;  %v3873_v33 = vshll.u32 %v3783_v13, 16  ;;  %v3977_v17 = vld [vmem:[#allocation4 + $0x94] sm:$0xf] }
 0x37e   :  { %v3679_v45 = vrot.slane %v3677_v49, 5  ;;  %v4336_v24 = vsel %vm9993_vm12, %v4233_v10, %v4335_v18  ;;  %v4657_v22 = vld [vmem:[#allocation6 + $0x1f8] sm:$0xff]  ;;  %v3662_v5 = vor.u32 %v3661_v39, %v3658_v53  ;;  %v3753_v48 = vld [vmem:[#allocation5 + $0x1f0] sm:$0xf]  ;;  %v4819_v11 = vshrl.u32 %v4755_v25, 16  ;;  %v11721_v29 = vpop.f32.mrb[47].mxu1 }
 0x37f   :  { %v3854_v43 = vrot.slane %v3852_v28, 4  ;;  %4337 = vst [vmem:[#allocation5 + $0x17c] sm:$0xf] %v4336_v24  ;;  %v3759_v1 = vld [vmem:[#allocation5 + $0x270] sm:$0xf]  ;;  %v3857_v58 = vrot.slane %v3855_v37, 5 }
 0x380   :  { %v3680_v51 = vor.u32 %v3679_v45, %v3676_v50  ;;  %v3872_v59 = vrot.slane %v3870_v40, 4  ;;  %v3875_v27 = vrot.slane %v3873_v33, 5  ;;  %v4863_v12 = vld [vmem:[#allocation6 + $0x1f0] sm:$0x88]  ;;  %v3663_v49 = vrot.slane %v3662_v5, 4 }
 0x381   :  { %v4821_v13 = vrot.slane %v4819_v11, 4  ;;  %v4048_v44 = vshrl.u32 %v3977_v17, 16  ;;  %v4051_v23 = vshll.u32 %v3977_v17, 16  ;;  %v4864_v18 = vsel %vm10615_vm10, %v4784_v54, %v4863_v12  ;;  %v4402_v53 = vld [vmem:[#allocation5 + $0x78] sm:$0xff]  ;;  %v3949_v28 = vld [vmem:[#allocation5 + $0x1f4] sm:$0xf] }
 0x382   :  { %v3681_v10 = vrot.slane %v3680_v51, 4  ;;  %v3858_v39 = vor.u32 %v3857_v58, %v3854_v43  ;;  %v3876_v25 = vor.u32 %v3875_v27, %v3872_v59  ;;  %v3955_v50 = vld [vmem:[#allocation5 + $0x274] sm:$0xf]  ;;  %4865 = vst [vmem:[#allocation6 + $0x1f0] sm:$0x88] %v4864_v18  ;;  %v4453_v45 = vshrl.u32 %v4402_v53, 16 }
 0x383   :  { %v4456_v37 = vshll.u32 %v4402_v53, 16  ;;  %v4635_v40 = vld [vmem:[#allocation5 + $0xf8] sm:$0xff]  ;;  %v3754_v33 = vsel %vm9993_vm12, %v3663_v49, %v3753_v48  ;;  %v4822_v24 = vor.u32 %v4821_v13, %v4784_v54  ;;  %v3979_v5 = vld [vmem:[#allocation4 + $0xb4] sm:$0xf]  ;;  %v11727_v11 = vpop.f32.mrb[48].mxu0  ;;  %v4050_v49 = vrot.slane %v4048_v44, 4 }
 0x384   :  { %v5606_v17 = vld [vmem:[#allocation6 + $0x1b0] sm:$0x11]  ;;  %v4658_v12 = vsel %vm10024_vm5, %v4635_v40, %v4657_v22  ;;  %3755 = vst [vmem:[#allocation5 + $0x1f0] sm:$0xf] %v3754_v33  ;;  %v3760_v43 = vsel %vm9993_vm12, %v3681_v10, %v3759_v1  ;;  %v3859_v51 = vrot.slane %v3858_v39, 4  ;;  %v3877_v58 = vrot.slane %v3876_v25, 4 }
 0x385   :  { %v4173_v59 = vld [vmem:[#allocation4 + $0x9c] sm:$0xf]  ;;  %v5607_v27 = vsel %vm10860_vm13, %v11659_v14, %v5606_v17  ;;  %v4455_v48 = vrot.slane %v4453_v45, 7  ;;  %4659 = vst [vmem:[#allocation6 + $0x1f8] sm:$0xff] %v4658_v12  ;;  %3761 = vst [vmem:[#allocation5 + $0x270] sm:$0xf] %v3760_v43 }
 0x386   :  { %v4823_v54 = vrot.slane %v4822_v24, 4  ;;  %v4175_v13 = vld [vmem:[#allocation4 + $0xbc] sm:$0xf]  ;;  %v11736_v18 = vpop.f32.mrb[49].mxu0  ;;  %5608 = vst [vmem:[#allocation6 + $0x1b0] sm:$0x11] %v5607_v27  ;;  %v3950_v22 = vsel %vm9993_vm12, %v3859_v51, %v3949_v28  ;;  %v3956_v1 = vsel %vm9993_vm12, %v3877_v58, %v3955_v50 }
 0x387   :  { %v4053_v53 = vrot.slane %v4051_v23, 5  ;;  %v4066_v10 = vshrl.u32 %v3979_v5, 16  ;;  %v4458_v39 = vor.u32 %v4456_v37, %v4455_v48  ;;  %v4756_v14 = vld [vmem:[#allocation5 + $0x178] sm:$0xff]  ;;  %3951 = vst [vmem:[#allocation5 + $0x1f4] sm:$0xf] %v3950_v22  ;;  %v4069_v25 = vshll.u32 %v3979_v5, 16 }
 0x388   :  { %3957 = vst [vmem:[#allocation5 + $0x274] sm:$0xf] %v3956_v1  ;;  %4875 = vst [vmem:[#allocation6 + $0x230] sm:$0x77] %v4823_v54  ;;  %v4244_v44 = vshrl.u32 %v4173_v59, 16  ;;  %v4247_v45 = vshll.u32 %v4173_v59, 16 }
 0x389   :  { %v4786_v40 = vshll.u32 %v4756_v14, 16  ;;  %v4054_v33 = vor.u32 %v4053_v53, %v4050_v49  ;;  %v4068_v24 = vrot.slane %v4066_v10, 4  ;;  %v4262_v17 = vshrl.u32 %v4175_v13, 16  ;;  %v11745_v28 = vld [vmem:[%s12298_s4] ss:$0 sm:$0xff]  ;;  %v11747_v50 = vpop.f32.mrb[50].mxu0 }
 0x38a   :  { %v4489_v23 = vsel %vm10147_vm11, %v4458_v39, %v4488_v19  ;;  %v4071_v37 = vrot.slane %v4069_v25, 5  ;;  %v4145_v12 = vld [vmem:[#allocation5 + $0x1f8] sm:$0xf]  ;;  %v4246_v43 = vrot.slane %v4244_v44, 4  ;;  %v4249_v5 = vrot.slane %v4247_v45, 5  ;;  %v11751_v51 = vpop.f32.mrb[48].mxu1 }
 0x38b   :  { %4490 = vst [vmem:[#allocation6 + $0x1b8] sm:$0xff] %v4489_v23  ;;  %v11753_v58 = vrot.slane %v4786_v40, 5  ;;  %v4055_v59 = vrot.slane %v4054_v33, 4  ;;  %v4151_v27 = vld [vmem:[#allocation5 + $0x278] sm:$0xf]  ;;  %v4264_v48 = vrot.slane %v4262_v17, 4  ;;  %v7447_v19 = vadd.f32 %v11560_v15, %v11745_v28 }
 0x38c   :  { %v4265_v54 = vshll.u32 %v4175_v13, 16  ;;  %v11755_v49 = vpop.f32.mrb[51].mxu0  ;;  %v4072_v22 = vor.u32 %v4071_v37, %v4068_v24  ;;  %v4250_v1 = vor.u32 %v4249_v5, %v4246_v43  ;;  %v4341_v53 = vld [vmem:[#allocation5 + $0x1fc] sm:$0xf]  ;;  %v4824_v21 = vshrl.u32 %v4756_v14, 16  ;;  %v11759_v10 = vpop.f32.mrb[49].mxu1 }
 0x38d   :  { %v11761_v39 = vpop.f32.mrb[52].mxu0  ;;  %v5803_v25 = vld [vmem:[#allocation6 + $0x1f0] sm:$0xff]  ;;  %v4866_v44 = vld [vmem:[#allocation6 + $0x1f8] sm:$0x88]  ;;  %v4146_v45 = vsel %vm9993_vm12, %v4055_v59, %v4145_v12  ;;  %v8815_v13 = vadd.f32 %v11580_v9, %v11564_v16  ;;  %v8873_v33 = vadd.f32 %v11582_v63, %v11574_v0  ;;  %v11769_v14 = vpop.f32.mrb[50].mxu1  ;;  %vm9474_vm5 = vmmov 0  }
 0x38e   :  { %12363 = vst [vmem:[#allocation14_spill] sm:$0xff] %v11761_v39  ;;  %v4267_v40 = vrot.slane %v4265_v54, 5  ;;  %v11771_v24 = vpop.f32.mrb[53].mxu0  ;;  %v5795_v15 = vld [vmem:[#allocation6 + $0x1b0] sm:$0xff]  ;;  %v4867_v17 = vsel %vm10615_vm10, %v11753_v58, %v4866_v44  ;;  %v4073_v23 = vrot.slane %v4072_v22, 4  ;;  %v4251_v37 = vrot.slane %v4250_v1, 4 }
 0x38f   :  { %12364 = vst [vmem:[#allocation15_spill] sm:$0xff] %v11771_v24  ;;  %4147 = vst [vmem:[#allocation5 + $0x1f8] sm:$0xf] %v4146_v45  ;;  %v4347_v12 = vld [vmem:[#allocation5 + $0x27c] sm:$0xf]  ;;  %v4826_v43 = vrot.slane %v4824_v21, 4  ;;  %v8580_v9 = vcombine.high %v5795_v15, %v5803_v25  ;;  %v8579_v0 = vcombine.low %v5795_v15, %v5803_v25  ;;  %v11781_v39 = vadd.f32 %v11570_v46, %v7447_v19 }
 0x390   :  { %v11776_v5 = vpop.f32.mrb[51].mxu1  ;;  %v11778_v16 = vpop.f32.mrb[54].mxu0  ;;  %4868 = vst [vmem:[#allocation6 + $0x1f8] sm:$0x88] %v4867_v17  ;;  %v5020_v63 = vld [vmem:[#allocation5 + $0x1f0] sm:$0xff]  ;;  %v4268_v24 = vor.u32 %v4267_v40, %v4264_v48  ;;  %v4342_v48 = vsel %vm9993_vm12, %v4251_v37, %v4341_v53  ;;  %v7450_v40 = vadd.f32 %v8815_v13, %v11745_v28 }
 0x391   :  { %12365 = vst [vmem:[#allocation16_spill] sm:$0xff] %v11776_v5  ;;  %12366 = vst [vmem:[#allocation17_spill] sm:$0xff] %v11778_v16  ;;  %v5088_v59 = vld [vmem:[#allocation6 + $0x270] sm:$0x77]  ;;  %v11783_v22 = vpop.f32.mrb[52].mxu1  ;;  %v11785_v1 = vpop.f32.mrb[55].mxu0  ;;  %v4152_v16 = vsel %vm9993_vm12, %v4073_v23, %v4151_v27  ;;  %7996 = vmatprep.mubr.bf16.mxu0 %v8580_v9  ;;  %v4827_v19 = vor.u32 %v4826_v43, %v11753_v58 }
 0x392   :  { %v5186_v54 = vld [vmem:[#allocation5 + $0x270] sm:$0xff]  ;;  %12367 = vst [vmem:[#allocation18_spill] sm:$0xff] %v11781_v39  ;;  %12368 = vst [vmem:[#allocation19_spill] sm:$0xff] %v11783_v22  ;;  %v5036_v21 = vrot.slane %v5020_v63, 5  ;;  %v3785_v25 = vld [vmem:[#allocation4 + $0xbc] sm:$0xf]  ;;  %7997 = vmatmul.mubr.bf16.gmra.mrb[128].mxu0 %v8579_v0  ;;  %v11806_v37 = vadd.f32 %v8873_v33, %v7450_v40 }
 0x393   :  { %12369 = vst [vmem:[#allocation20_spill] sm:$0xff] %v11785_v1  ;;  %v5237_v44 = vshrl.u32 %v5186_v54, 16  ;;  %v5240_v45 = vshll.u32 %v5186_v54, 16  ;;  %v3591_v17 = vld [vmem:[#allocation4 + $0xd4] sm:$0xf]  ;;  %v11789_v15 = vpop.f32.mrb[53].mxu1 }
 0x394   :  { %12370 = vst [vmem:[#allocation21_spill] sm:$0xff] %v11789_v15  ;;  %v11791_v5 = vpop.f32.mrb[56].mxu0  ;;  %4153 = vst [vmem:[#allocation5 + $0x278] sm:$0xf] %v4152_v16  ;;  %v4269_v46 = vrot.slane %v4268_v24, 4  ;;  %v11797_v54 = vpop.f32.mrb[54].mxu1 }
 0x395   :  { %12371 = vst [vmem:[#allocation22_spill] sm:$0xff] %v11791_v5  ;;  %v3787_v63 = vld [vmem:[#allocation4 + $0xdc] sm:$0xf]  ;;  %12372 = vst [vmem:[#allocation23_spill] sm:$0xff] %v11797_v54  ;;  %v11799_v27 = vpop.f32.mrb[57].mxu0  ;;  %v5044_v39 = vrot.slane %v5036_v21, 4 }
 0x396   :  { %12373 = vst [vmem:[#allocation24_spill] sm:$0xff] %v11799_v27  ;;  %v5609_v23 = vld [vmem:[#allocation6 + $0x1b8] sm:$0x11]  ;;  %5068 = vst [vmem:[#allocation6 + $0x230] sm:$0x88] %v5036_v21  ;;  %v5239_v5 = vrot.slane %v5237_v44, 5  ;;  %v4348_v58 = vsel %vm9993_vm12, %v4269_v46, %v4347_v12 }
 0x397   :  { %v5242_v9 = vrot.slane %v5240_v45, 6  ;;  %4343 = vst [vmem:[#allocation5 + $0x1fc] sm:$0xf] %v4342_v48  ;;  %v3692_v24 = vshrl.u32 %v3589_v6, 16  ;;  %v5610_v53 = vsel %vm10860_vm13, %v11683_v32, %v5609_v23  ;;  %v4828_v13 = vrot.slane %v4827_v19, 4  ;;  %12374 = vst [vmem:[#allocation25_spill] sm:$0xff] %v11806_v37 }
 0x398   :  { %v3981_v43 = vld [vmem:[#allocation4 + $0xd4] sm:$0xf]  ;;  %v11808_v16 = vpop.f32.mrb[55].mxu1  ;;  %v8849_v0 = vpop.f32.mrb[58].mxu0  ;;  %5611 = vst [vmem:[#allocation6 + $0x1b8] sm:$0x11] %v5610_v53  ;;  %v5089_v21 = vsel %vm10641_vm4, %v5044_v39, %v5088_v59 }
 0x399   :  { %12375 = vst [vmem:[#allocation26_spill] sm:$0xff] %v11808_v16  ;;  %v11812_v44 = vor.u32 %v5242_v9, %v5239_v5  ;;  %4349 = vst [vmem:[#allocation5 + $0x27c] sm:$0xf] %v4348_v58  ;;  %v3694_v45 = vrot.slane %v3692_v24, 4  ;;  %v11814_v32 = vld [vmem:[#allocation4 + $0xf4] sm:$0xf] }
 0x39a   :  { %v11816_v48 = vpop.f32.mrb[56].mxu1  ;;  %v8850_v12 = vpop.f32.mrb[59].mxu0  ;;  %5090 = vst [vmem:[#allocation6 + $0x270] sm:$0x77] %v5089_v21  ;;  %4876 = vst [vmem:[#allocation6 + $0x238] sm:$0x77] %v4828_v13 }
 0x39b   :  { %12376 = vst [vmem:[#allocation27_spill] sm:$0xff] %v11816_v48  ;;  %v3710_v33 = vshrl.u32 %v3591_v17, 16  ;;  %v3713_v46 = vshll.u32 %v3591_v17, 16  ;;  %v3888_v19 = vshrl.u32 %v3785_v25, 16  ;;  %v3891_v40 = vshll.u32 %v3785_v25, 16  ;;  %v11818_v23 = vpop.f32.mrb[57].mxu1 }
 0x39c   :  { %12377 = vst [vmem:[#allocation28_spill] sm:$0xff] %v11818_v23  ;;  %v11820_v53 = vpop.f32.mrb[60].mxu0  ;;  %v3697_v39 = vrot.slane %v3695_v38, 5  ;;  %v3906_v5 = vshrl.u32 %v3787_v63, 16  ;;  %v3909_v59 = vshll.u32 %v3787_v63, 16  ;;  %v5258_v6 = vrot.slane %v11812_v44, 4 }
 0x39d   :  { %12378 = vst [vmem:[#allocation29_spill] sm:$0xff] %v11820_v53  ;;  %v8907_v9 = vpop.f32.mrb[58].mxu1  ;;  %v3712_v24 = vrot.slane %v3710_v33, 4  ;;  %v3715_v58 = vrot.slane %v3713_v46, 5  ;;  %v3890_v0 = vrot.slane %v3888_v19, 4  ;;  %v3893_v12 = vrot.slane %v3891_v40, 5 }
 0x39e   :  { %v8908_v21 = vpop.f32.mrb[59].mxu1  ;;  %v11823_v13 = vpop.f32.mrb[61].mxu0  ;;  %v3698_v17 = vor.u32 %v3697_v39, %v3694_v45  ;;  %v3765_v37 = vld [vmem:[#allocation5 + $0x2f0] sm:$0xf]  ;;  %v3908_v48 = vrot.slane %v3906_v5, 4  ;;  %v3911_v23 = vrot.slane %v3909_v59, 5 }
 0x39f   :  { %12379 = vst [vmem:[#allocation30_spill] sm:$0xff] %v11823_v13  ;;  %v3771_v25 = vld [vmem:[#allocation5 + $0x370] sm:$0xf]  ;;  %5306 = vst [vmem:[#allocation6 + $0x2b0] sm:$0x33] %v5258_v6  ;;  %v4084_v53 = vshrl.u32 %v3981_v43, 16  ;;  %v3716_v33 = vor.u32 %v3715_v58, %v3712_v24  ;;  %v3894_v46 = vor.u32 %v3893_v12, %v3890_v0 }
 0x3a0   :  { %v11825_v38 = vpop.f32.mrb[62].mxu0  ;;  %v11827_v63 = vpop.f32.mrb[60].mxu1  ;;  %v5021_v27 = vld [vmem:[#allocation5 + $0x1f8] sm:$0xff]  ;;  %v3961_v19 = vld [vmem:[#allocation5 + $0x2f4] sm:$0xf]  ;;  %v4087_v40 = vshll.u32 %v3981_v43, 16  ;;  %v3912_v6 = vor.u32 %v3911_v23, %v3908_v48 }
 0x3a1   :  { %12380 = vst [vmem:[#allocation31_spill] sm:$0xff] %v11825_v38  ;;  %12381 = vst [vmem:[#allocation32_spill] sm:$0xff] %v11827_v63  ;;  %v5091_v9 = vld [vmem:[#allocation6 + $0x278] sm:$0x77]  ;;  %v4102_v21 = vshrl.u32 %v11814_v32, 16  ;;  %v11830_v13 = vpop.f32.mrb[63].mxu0 }
 0x3a2   :  { %12382 = vst [vmem:[#allocation33_spill] sm:$0xff] %v11830_v13  ;;  %v11832_v45 = vpop.f32.mrb[61].mxu1  ;;  %v5804_v39 = vld [vmem:[#allocation6 + $0x1f8] sm:$0xff]  ;;  %v5037_v5 = vrot.slane %v5021_v27, 5  ;;  %v3699_v59 = vrot.slane %v3698_v17, 4  ;;  %v4086_v16 = vrot.slane %v4084_v53, 4 }
 0x3a3   :  { %12383 = vst [vmem:[#allocation34_spill] sm:$0xff] %v11832_v45  ;;  %v4177_v38 = vld [vmem:[#allocation4 + $0xdc] sm:$0xf]  ;;  %v11834_v54 = vpop.f32.mrb[62].mxu1  ;;  %v11836_v63 = vpop.f32.mrb[64].mxu0  ;;  %v3717_v0 = vrot.slane %v3716_v33, 4 }
 0x3a4   :  { %v5796_v24 = vld [vmem:[#allocation6 + $0x1b8] sm:$0xff]  ;;  %v3895_v43 = vrot.slane %v3894_v46, 4  ;;  %v3967_v12 = vld [vmem:[#allocation5 + $0x374] sm:$0xf]  ;;  %v4089_v15 = vrot.slane %v4087_v40, 5  ;;  %v11838_v22 = vrot.slane %v4102_v21, 4  ;;  %v3766_v46 = vsel %vm9993_vm12, %v3699_v59, %v3765_v37 }
 0x3a5   :  { %v5187_v58 = vld [vmem:[#allocation5 + $0x278] sm:$0xff]  ;;  %v8582_v13 = vcombine.high %v5796_v24, %v5804_v39  ;;  %v5294_v45 = vld [vmem:[#allocation6 + $0x270] sm:$0xcc]  ;;  %v8581_v1 = vcombine.low %v5796_v24, %v5804_v39  ;;  %v5045_v27 = vrot.slane %v5037_v5, 4  ;;  %5069 = vst [vmem:[#allocation6 + $0x238] sm:$0x88] %v5037_v5  ;;  %v3772_v40 = vsel %vm9993_vm12, %v3717_v0, %v3771_v25 }
 0x3a6   :  { %v5245_v48 = vshrl.u32 %v5187_v58, 16  ;;  %v11840_v23 = vpop.f32.mrb[63].mxu1  ;;  %v11842_v53 = vpop.f32.mrb[65].mxu0  ;;  %v5295_v17 = vsel %vm10686_vm3, %v11812_v44, %v5294_v45  ;;  %v5248_v33 = vshll.u32 %v5187_v58, 16  ;;  %v4179_v21 = vld [vmem:[#allocation4 + $0xfc] sm:$0xf]  ;;  %v3962_v37 = vsel %vm9993_vm12, %v3895_v43, %v3961_v19 }
 0x3a7   :  { %12384 = vst [vmem:[#allocation35_spill] sm:$0xff] %v11842_v53  ;;  %v11851_v39 = vpop.f32.mrb[66].mxu0  ;;  %v11853_v5 = vpop.f32.mrb[64].mxu1  ;;  %8084 = vmatprep.mubr.bf16.mxu1 %v8582_v13  ;;  %5296 = vst [vmem:[#allocation6 + $0x270] sm:$0xcc] %v5295_v17  ;;  %v5092_v24 = vsel %vm10641_vm4, %v5045_v27, %v5091_v9  ;;  %v3913_v44 = vrot.slane %v3912_v6, 4  ;;  %v4090_v13 = vor.u32 %v4089_v15, %v4086_v16 }
 0x3a8   :  { %v5247_v53 = vrot.slane %v5245_v48, 5  ;;  %3767 = vst [vmem:[#allocation5 + $0x2f0] sm:$0xf] %v3766_v46  ;;  %3773 = vst [vmem:[#allocation5 + $0x370] sm:$0xf] %v3772_v40  ;;  %v11859_v59 = vpop.f32.mrb[67].mxu0  ;;  %8085 = vmatmul.mubr.bf16.gmra.mrb[128].mxu1 %v8581_v1 }
 0x3a9   :  { %v4157_v45 = vld [vmem:[#allocation5 + $0x2f8] sm:$0xf]  ;;  %v11861_v25 = vpop.f32.mrb[65].mxu1  ;;  %5093 = vst [vmem:[#allocation6 + $0x278] sm:$0x77] %v5092_v24  ;;  %v5250_v58 = vrot.slane %v5248_v33, 6  ;;  %v3968_v19 = vsel %vm9993_vm12, %v3913_v44, %v3967_v12 }
 0x3aa   :  { %3963 = vst [vmem:[#allocation5 + $0x2f4] sm:$0xf] %v3962_v37  ;;  %v4105_v34 = vshll.u32 %v11814_v32, 16  ;;  %v4280_v9 = vshrl.u32 %v4177_v38, 16  ;;  %v11864_v0 = vpop.f32.mrb[66].mxu1  ;;  %v11866_v27 = vpop.f32.mrb[68].mxu0 }
 0x3ab   :  { %12385 = vst [vmem:[#allocation36_spill] sm:$0xff] %v11866_v27  ;;  %v4283_v6 = vshll.u32 %v4177_v38, 16  ;;  %v4298_v43 = vshrl.u32 %v4179_v21, 16  ;;  %v4301_v48 = vshll.u32 %v4179_v21, 16  ;;  %v11870_v17 = vpop.f32.mrb[67].mxu1  ;;  %v11872_v1 = vpop.f32.mrb[69].mxu0  ;;  %v5251_v33 = vor.u32 %v5250_v58, %v5247_v53 }
 0x3ac   :  { %3969 = vst [vmem:[#allocation5 + $0x374] sm:$0xf] %v3968_v19  ;;  %v4091_v15 = vrot.slane %v4090_v13, 4  ;;  %v4107_v16 = vrot.slane %v4105_v34, 5  ;;  %v4282_v32 = vrot.slane %v4280_v9, 4  ;;  %v11874_v46 = vpop.f32.mrb[70].mxu0  ;;  %v8818_v38 = vadd.f32 %v11613_v8, %v11611_v57 }
 0x3ad   :  { %v11876_v40 = vpop.f32.mrb[68].mxu1  ;;  %v4285_v24 = vrot.slane %v4283_v6, 5  ;;  %v4300_v37 = vrot.slane %v4298_v43, 4  ;;  %v4303_v27 = vrot.slane %v4301_v48, 5  ;;  %v11880_v12 = vpop.f32.mrb[71].mxu0  ;;  %v5259_v13 = vrot.slane %v5251_v33, 4 }
 0x3ae   :  { %v11882_v21 = vpop.f32.mrb[69].mxu1  ;;  %v4108_v53 = vor.u32 %v4107_v16, %v11838_v22  ;;  %v4158_v44 = vsel %vm9993_vm12, %v4091_v15, %v4157_v45  ;;  %v4163_v58 = vld [vmem:[#allocation5 + $0x378] sm:$0xf]  ;;  %v8821_v34 = vadd.f32 %v11619_v47, %v11615_v55  ;;  %v11891_v19 = vpop.f32.mrb[72].mxu0  ;;  %v4353_v6 = vld [vmem:[#allocation5 + $0x2fc] sm:$0xf]  ;;  %v7455_v48 = vadd.f32 %v8818_v38, %v11745_v28 }
 0x3af   :  { %v11889_v9 = vpop.f32.mrb[70].mxu1  ;;  %12386 = vst [vmem:[#allocation37_spill] sm:$0xff] %v11891_v19  ;;  %4159 = vst [vmem:[#allocation5 + $0x2f8] sm:$0xf] %v4158_v44  ;;  %v4286_v57 = vor.u32 %v4285_v24, %v4282_v32  ;;  %v4304_v8 = vor.u32 %v4303_v27, %v4300_v37  ;;  %v4359_v43 = vld [vmem:[#allocation5 + $0x37c] sm:$0xf]  ;;  %v8876_v22 = vadd.f32 %v11633_v30, %v11627_v4 }
 0x3b0   :  { %v11896_v45 = vpop.f32.mrb[71].mxu1  ;;  %v11898_v15 = vpop.f32.mrb[73].mxu0  ;;  %v5811_v16 = vld [vmem:[#allocation6 + $0x230] sm:$0xff]  ;;  %v4109_v47 = vrot.slane %v4108_v53, 4  ;;  %5307 = vst [vmem:[#allocation6 + $0x2b8] sm:$0x33] %v5259_v13  ;;  %v7458_v19 = vadd.f32 %v8821_v34, %v11745_v28  ;;  %v8879_v27 = vadd.f32 %v11643_v60, %v11637_v41  ;;  %v8824_v32 = vadd.f32 %v11655_v62, %v11651_v31 }
 0x3b1   :  { %12387 = vst [vmem:[#allocation38_spill] sm:$0xff] %v11896_v45  ;;  %12388 = vst [vmem:[#allocation39_spill] sm:$0xff] %v11898_v15  ;;  %v5819_v55 = vld [vmem:[#allocation6 + $0x270] sm:$0xff]  ;;  %v11905_v24 = vpop.f32.mrb[74].mxu0  ;;  %v11907_v37 = vpop.f32.mrb[72].mxu1  ;;  %v4287_v15 = vrot.slane %v4286_v57, 4  ;;  %v11915_v60 = vadd.f32 %v8876_v22, %v7455_v48 }
 0x3b2   :  { %v8596_v4 = vcombine.high %v5811_v16, %v5819_v55  ;;  %v5297_v30 = vld [vmem:[#allocation6 + $0x278] sm:$0xcc]  ;;  %v8595_v38 = vcombine.low %v5811_v16, %v5819_v55  ;;  %v5451_v44 = vld [vmem:[#allocation5 + $0x2f0] sm:$0xff]  ;;  %v4305_v45 = vrot.slane %v4304_v8, 4  ;;  %v11909_v53 = vpop.f32.mrb[75].mxu0  ;;  %v4164_v41 = vsel %vm9993_vm12, %v4109_v47, %v4163_v58  ;;  %v11917_v31 = vpop.f32.mrb[73].mxu1 }
 0x3b3   :  { %v5298_v13 = vsel %vm10686_vm3, %v5251_v33, %v5297_v30  ;;  %v5467_v34 = vrot.slane %v5451_v44, 6  ;;  %v11919_v62 = vpop.f32.mrb[76].mxu0  ;;  %v5519_v16 = vld [vmem:[#allocation6 + $0x2f0] sm:$0x33]  ;;  %4165 = vst [vmem:[#allocation5 + $0x378] sm:$0xf] %v4164_v41  ;;  %v4354_v8 = vsel %vm9993_vm12, %v4287_v15, %v4353_v6  ;;  %v11925_v33 = vadd.f32 %v8879_v27, %v7458_v19 }
 0x3b4   :  { %8004 = vmatprep.mubr.bf16.mxu0 %v8596_v4  ;;  %5299 = vst [vmem:[#allocation6 + $0x278] sm:$0xcc] %v5298_v13  ;;  %v5619_v57 = vld [vmem:[#allocation5 + $0x370] sm:$0xff]  ;;  %v4360_v3 = vsel %vm9993_vm12, %v4305_v45, %v4359_v43  ;;  %v7463_v58 = vadd.f32 %v8824_v32, %v11745_v28  ;;  %v11928_v48 = vpop.f32.mrb[74].mxu1  ;;  %v11930_v22 = vpop.f32.mrb[77].mxu0  ;;  %v8827_v6 = vadd.f32 %v11667_v26, %v11657_v42  ;;  %vm8182_vm13 = vcmask 801792  }
 0x3b5   :  { %8005 = vmatmul.mubr.bf16.gmra.mrb[132].mxu0 %v8595_v38  ;;  %v5475_v55 = vrot.slane %v5467_v34, 4  ;;  %5499 = vst [vmem:[#allocation6 + $0x2b0] sm:$0xcc] %v5467_v34  ;;  %v5670_v47 = vshrl.u32 %v5619_v57, 16  ;;  %v5673_v4 = vshll.u32 %v5619_v57, 16  ;;  %v11934_v7 = vpop.f32.mrb[75].mxu1  ;;  %v8882_v43 = vadd.f32 %v11673_v56, %v11663_v36 }
 0x3b6   :  { %4355 = vst [vmem:[#allocation5 + $0x2fc] sm:$0xf] %v4354_v8  ;;  %4361 = vst [vmem:[#allocation5 + $0x37c] sm:$0xf] %v4360_v3  ;;  %v11936_v19 = vpop.f32.mrb[78].mxu0  ;;  %v8885_v45 = vadd.f32 %v11685_v35, %v11677_v52  ;;  %v8830_v15 = vadd.f32 %v11693_v61, %v11691_v2  ;;  %v12389_v27 = vld [vmem:[#allocation10_spill] sm:$0xff]  ;;  %v7466_v36 = vadd.f32 %v8827_v6, %v11745_v28 }
 0x3b7   :  { %v8833_v32 = vadd.f32 %v11703_v20, %v12389_v27  ;;  %v11946_v30 = vpop.f32.mrb[76].mxu1  ;;  %v11948_v38 = vpop.f32.mrb[79].mxu0  ;;  %v5520_v26 = vsel %vm9928_vm7, %v5475_v55, %v5519_v16  ;;  %v5672_v44 = vrot.slane %v5670_v47, 6  ;;  %v5675_v13 = vrot.slane %v5673_v4, 7  ;;  %v12391_v20 = vld [vmem:[#allocation11_spill] sm:$0xff]  ;;  %v12392_v34 = vld [vmem:[#allocation12_spill] sm:$0xff] }
 0x3b8   :  { %v11953_v56 = vpop.f32.mrb[77].mxu1  ;;  %v11955_v52 = vpop.f32.mrb[80].mxu0  ;;  %5521 = vst [vmem:[#allocation6 + $0x2f0] sm:$0x33] %v5520_v26  ;;  %v11957_v35 = vadd.f32 %v8882_v43, %v7463_v58  ;;  %v7471_v2 = vadd.f32 %v8830_v15, %v11745_v28  ;;  %v8888_v41 = vadd.f32 %v12392_v34, %v12391_v20  ;;  %v11967_v3 = vadd.f32 %v8885_v45, %v7466_v36  ;;  %v12394_v55 = vld [vmem:[#allocation13_spill] sm:$0xff]  ;;  %v12396_v45 = vld [vmem:[#allocation16_spill] sm:$0xff] }
 0x3b9   :  { %v7474_v61 = vadd.f32 %v8833_v32, %v11745_v28  ;;  %v11963_v57 = vpop.f32.mrb[78].mxu1  ;;  %v11965_v16 = vpop.f32.mrb[81].mxu0  ;;  %v5676_v8 = vor.u32 %v5675_v13, %v5672_v44  ;;  %v8891_v47 = vadd.f32 %v11721_v29, %v12394_v55  ;;  %v8836_v58 = vadd.f32 %v11736_v18, %v11727_v11  ;;  %v5812_v11 = vld [vmem:[#allocation6 + $0x238] sm:$0xff] }
 0x3ba   :  { %12393 = vst [vmem:[#allocation10_spill] sm:$0xff] %v11965_v16  ;;  %v11973_v4 = vpop.f32.mrb[79].mxu1  ;;  %v11975_v6 = vpop.f32.mrb[82].mxu0  ;;  %v11977_v43 = vadd.f32 %v8888_v41, %v7471_v2  ;;  %v8839_v15 = vadd.f32 %v11755_v49, %v11747_v50  ;;  %v8894_v27 = vadd.f32 %v11759_v10, %v11751_v51  ;;  %v8897_v32 = vadd.f32 %v12396_v45, %v11769_v14  ;;  %v12399_v2 = vld [vmem:[#allocation14_spill] sm:$0xff]  ;;  %v12400_v20 = vld [vmem:[#allocation15_spill] sm:$0xff]  ;;  %v12403_v45 = vld [vmem:[#allocation17_spill] sm:$0xff] }
 0x3bb   :  { %12395 = vst [vmem:[#allocation8_spill] sm:$0xff] %v11975_v6  ;;  %v11985_v26 = vpop.f32.mrb[80].mxu1  ;;  %v11987_v29 = vpop.f32.mrb[83].mxu0  ;;  %v5820_v18 = vld [vmem:[#allocation6 + $0x278] sm:$0xff]  ;;  %v5691_v44 = vrot.slane %v5676_v8, 4  ;;  %v11989_v13 = vadd.f32 %v8891_v47, %v7474_v61  ;;  %v7479_v36 = vadd.f32 %v8836_v58, %v11745_v28  ;;  %v8842_v50 = vadd.f32 %v12400_v20, %v12399_v2 }
 0x3bc   :  { %12397 = vst [vmem:[#allocation11_spill] sm:$0xff] %v11985_v26  ;;  %12398 = vst [vmem:[#allocation12_spill] sm:$0xff] %v11987_v29  ;;  %v11994_v49 = vpop.f32.mrb[81].mxu1  ;;  %v11996_v51 = vpop.f32.mrb[84].mxu0  ;;  %v8598_v10 = vcombine.high %v5812_v11, %v5820_v18  ;;  %v8597_v14 = vcombine.low %v5812_v11, %v5820_v18  ;;  %v7482_v55 = vadd.f32 %v8839_v15, %v11745_v28  ;;  %v12404_v26 = vld [vmem:[#allocation20_spill] sm:$0xff] }
 0x3bd   :  { %12401 = vst [vmem:[#allocation13_spill] sm:$0xff] %v11994_v49  ;;  %12402 = vst [vmem:[#allocation16_spill] sm:$0xff] %v11996_v51  ;;  %v5452_v34 = vld [vmem:[#allocation5 + $0x2f8] sm:$0xff]  ;;  %v8845_v29 = vadd.f32 %v12404_v26, %v12403_v45  ;;  %v12001_v61 = vpop.f32.mrb[82].mxu1  ;;  %v12003_v47 = vpop.f32.mrb[85].mxu0  ;;  %v12005_v20 = vadd.f32 %v8894_v27, %v7479_v36  ;;  %v7487_v15 = vadd.f32 %v8842_v50, %v11745_v28 }
 0x3be   :  { %v5620_v41 = vld [vmem:[#allocation5 + $0x378] sm:$0xff]  ;;  %12405 = vst [vmem:[#allocation14_spill] sm:$0xff] %v12001_v61  ;;  %12406 = vst [vmem:[#allocation15_spill] sm:$0xff] %v12003_v47  ;;  %v5468_v58 = vrot.slane %v5452_v34, 6  ;;  %v12007_v51 = vpop.f32.mrb[83].mxu1  ;;  %v8965_v11 = vpop.f32.mrb[86].mxu0  ;;  %8092 = vmatprep.mubr.bf16.mxu1 %v8598_v10  ;;  %v12009_v49 = vadd.f32 %v8897_v32, %v7482_v55  ;;  %v8955_v50 = vadd.f32 %v11948_v38, %v11936_v19 }
 0x3bf   :  { %v5678_v6 = vshrl.u32 %v5620_v41, 16  ;;  %v5681_v2 = vshll.u32 %v5620_v41, 16  ;;  %5739 = vst [vmem:[#allocation6 + $0x330] sm:$0x11] %v5691_v44  ;;  %12407 = vst [vmem:[#allocation17_spill] sm:$0xff] %v12005_v20  ;;  %v7490_v26 = vadd.f32 %v8845_v29, %v11745_v28  ;;  %v12410_v45 = vld [vmem:[#allocation19_spill] sm:$0xff]  ;;  %8093 = vmatmul.mubr.bf16.gmra.mrb[132].mxu1 %v8597_v14 }
 0x3c0   :  { %12408 = vst [vmem:[#allocation20_spill] sm:$0xff] %v12007_v51  ;;  %v5522_v18 = vld [vmem:[#allocation6 + $0x2f8] sm:$0x33]  ;;  %12409 = vst [vmem:[#allocation40_spill] sm:$0xff] %v12009_v49  ;;  %v12411_v61 = vld [vmem:[#allocation21_spill] sm:$0xff]  ;;  %v12015_v34 = vpop.f32.mrb[84].mxu1 }
 0x3c1   :  { %v8900_v47 = vadd.f32 %v12411_v61, %v12410_v45  ;;  %12412 = vst [vmem:[#allocation19_spill] sm:$0xff] %v12015_v34  ;;  %v8966_v41 = vpop.f32.mrb[87].mxu0  ;;  %v5727_v44 = vld [vmem:[#allocation6 + $0x2f0] sm:$0xee]  ;;  %v5476_v27 = vrot.slane %v5468_v58, 4  ;;  %v5680_v36 = vrot.slane %v5678_v6, 6 }
 0x3c2   :  { %5500 = vst [vmem:[#allocation6 + $0x2b8] sm:$0xcc] %v5468_v58  ;;  %v5683_v11 = vrot.slane %v5681_v2, 7  ;;  %v12413_v10 = vld [vmem:[#allocation23_spill] sm:$0xff]  ;;  %v12414_v51 = vld [vmem:[#allocation26_spill] sm:$0xff]  ;;  %v12019_v55 = vpop.f32.mrb[85].mxu1  ;;  %v5728_v29 = vsel %vm10768_vm8, %v5676_v8, %v5727_v44 }
 0x3c3   :  { %v8903_v32 = vadd.f32 %v12414_v51, %v12413_v10  ;;  %v12023_v49 = vadd.f32 %v8900_v47, %v7487_v15  ;;  %v12416_v61 = vld [vmem:[#allocation22_spill] sm:$0xff]  ;;  %v12417_v45 = vld [vmem:[#allocation24_spill] sm:$0xff]  ;;  %v12418_v41 = vld [vmem:[#allocation27_spill] sm:$0xff]  ;;  %v9023_v16 = vpop.f32.mrb[86].mxu1  ;;  %v12029_v58 = vpop.f32.mrb[88].mxu0  ;;  %v5523_v6 = vsel %vm9928_vm7, %v5476_v27, %v5522_v18  ;;  %v8989_v18 = vadd.f32 %v11840_v23, %v11834_v54 }
 0x3c4   :  { %v8848_v34 = vadd.f32 %v12417_v45, %v12416_v61  ;;  %v12419_v20 = vld [vmem:[#allocation28_spill] sm:$0xff]  ;;  %5729 = vst [vmem:[#allocation6 + $0x2f0] sm:$0xee] %v5728_v29  ;;  %v12033_v51 = vor.u32 %v5683_v11, %v5680_v36  ;;  %v12420_v8 = vld [vmem:[#allocation29_spill] sm:$0xff]  ;;  %v12421_v47 = vld [vmem:[#allocation30_spill] sm:$0xff]  ;;  %v9024_v44 = vpop.f32.mrb[87].mxu1 }
 0x3c5   :  { %v8906_v14 = vadd.f32 %v12419_v20, %v12418_v41  ;;  %v12035_v2 = vadd.f32 %v8903_v32, %v7490_v26  ;;  %v8928_v15 = vadd.f32 %v12421_v47, %v12420_v8  ;;  %v12039_v10 = vpop.f32.mrb[89].mxu0  ;;  %5524 = vst [vmem:[#allocation6 + $0x2f8] sm:$0x33] %v5523_v6  ;;  %v12422_v16 = vld [vmem:[#allocation31_spill] sm:$0xff]  ;;  %v12423_v61 = vld [vmem:[#allocation33_spill] sm:$0xff]  ;;  %v12424_v29 = vld [vmem:[#allocation32_spill] sm:$0xff] }
 0x3c6   :  { %v7495_v20 = vadd.f32 %v8848_v34, %v11745_v28  ;;  %v8931_v45 = vadd.f32 %v12423_v61, %v12422_v16  ;;  %v12425_v41 = vld [vmem:[#allocation34_spill] sm:$0xff]  ;;  %v12048_v26 = vpop.f32.mrb[90].mxu0  ;;  %v12050_v27 = vpop.f32.mrb[88].mxu1  ;;  %v5692_v36 = vrot.slane %v12033_v51, 4  ;;  %v12427_v6 = vld [vmem:[#allocation35_spill] sm:$0xff]  ;;  %v8937_v34 = vadd.f32 %v11859_v59, %v11851_v39  ;;  %v12428_v23 = vld [vmem:[#allocation25_spill] sm:$0xff] }
 0x3c7   :  { %v8986_v42 = vadd.f32 %v12425_v41, %v12424_v29  ;;  %v12426_v11 = vld [vmem:[#allocation18_spill] sm:$0xff]  ;;  %v8934_v28 = vadd.f32 %v12427_v6, %v11836_v63  ;;  %v12058_v8 = vpop.f32.mrb[91].mxu0  ;;  %v12060_v47 = vpop.f32.mrb[89].mxu1  ;;  %v8992_v61 = vadd.f32 %v11861_v25, %v11853_v5  ;;  %v8943_v41 = vadd.f32 %v11880_v12, %v11874_v46  ;;  %v12431_v6 = vld [vmem:[#allocation37_spill] sm:$0xff] }
 0x3c8   :  { %v7623_v32 = vadd.f32 %v8928_v15, %v12426_v11  ;;  %v12062_v44 = vld [vmem:[#allocation6 + $0x330] sm:$0x11]  ;;  %v12064_v54 = vadd.f32 %v8906_v14, %v7495_v20  ;;  %v7626_v16 = vadd.f32 %v8931_v45, %v12428_v23  ;;  %v8995_v15 = vadd.f32 %v11870_v17, %v11864_v0  ;;  %v12071_v63 = vpop.f32.mrb[90].mxu1  ;;  %v12073_v29 = vpop.f32.mrb[92].mxu0  ;;  %5740 = vst [vmem:[#allocation6 + $0x338] sm:$0x11] %v5692_v36 }
 0x3c9   :  { %v8628_v39 = vcombine.high %v12062_v44, %v12062_v44  ;;  %v7631_v14 = vadd.f32 %v8934_v28, %v11915_v60  ;;  %v12080_v20 = vpop.f32.mrb[91].mxu1  ;;  %v12082_v45 = vpop.f32.mrb[93].mxu0  ;;  %v7634_v25 = vadd.f32 %v8937_v34, %v11925_v33  ;;  %v12429_v0 = vld [vmem:[#allocation36_spill] sm:$0xff]  ;;  %v8998_v60 = vadd.f32 %v11882_v21, %v11876_v40  ;;  %v12432_v33 = vld [vmem:[#allocation39_spill] sm:$0xff]  ;;  %v5827_v46 = vld [vmem:[#allocation6 + $0x2b0] sm:$0xff] }
 0x3ca   :  { %v12077_v59 = vadd.f32 %v8986_v42, %v7623_v32  ;;  %v12084_v5 = vadd.f32 %v8989_v18, %v7626_v16  ;;  %v8940_v17 = vadd.f32 %v11872_v1, %v12429_v0  ;;  %v12091_v11 = vpop.f32.mrb[94].mxu0  ;;  %v12093_v42 = vpop.f32.mrb[92].mxu1  ;;  %v12430_v18 = vld [vmem:[#allocation38_spill] sm:$0xff]  ;;  %v8946_v28 = vadd.f32 %v12432_v33, %v12431_v6 }
 0x3cb   :  { %v12095_v36 = vadd.f32 %v8992_v61, %v7631_v14  ;;  %v9001_v32 = vadd.f32 %v12430_v18, %v11889_v9  ;;  %v12103_v34 = vpop.f32.mrb[95].mxu0  ;;  %v12105_v1 = vpop.f32.mrb[93].mxu1  ;;  %v5835_v12 = vld [vmem:[#allocation6 + $0x2f0] sm:$0xff]  ;;  %v12107_v23 = vadd.f32 %v8995_v15, %v7634_v25  ;;  %v7642_v61 = vadd.f32 %v8943_v41, %v11967_v3 }
 0x3cc   :  { %v7639_v16 = vadd.f32 %v8940_v17, %v11957_v35  ;;  %v8949_v40 = vadd.f32 %v11909_v53, %v11905_v24  ;;  %v12113_v21 = vpop.f32.mrb[94].mxu1  ;;  %v12115_v9 = vpop.f32.mrb[96].mxu0  ;;  %v8612_v14 = vcombine.high %v5827_v46, %v5835_v12  ;;  %v5730_v0 = vld [vmem:[#allocation6 + $0x2f8] sm:$0xee]  ;;  %v8611_v18 = vcombine.low %v5827_v46, %v5835_v12  ;;  %v12433_v46 = vld [vmem:[#allocation10_spill] sm:$0xff] }
 0x3cd   :  { %v7647_v6 = vadd.f32 %v8946_v28, %v11977_v43  ;;  %v9004_v15 = vadd.f32 %v11917_v31, %v11907_v37  ;;  %v9110_v25 = vpop.f32.mrb[95].mxu1  ;;  %v9055_v33 = vpop.f32.mrb[97].mxu0  ;;  %v5731_v35 = vsel %vm10768_vm8, %v12033_v51, %v5730_v0  ;;  %v12125_v24 = vadd.f32 %v9001_v32, %v7642_v61  ;;  %v12436_v61 = vld [vmem:[#allocation17_spill] sm:$0xff] }
 0x3ce   :  { %v12123_v3 = vadd.f32 %v8998_v60, %v7639_v16  ;;  %v7650_v53 = vadd.f32 %v8949_v40, %v11989_v13  ;;  %v9057_v17 = vpop.f32.mrb[98].mxu0  ;;  %v9112_v41 = vpop.f32.mrb[96].mxu1  ;;  %8012 = vmatprep.mubr.bf16.mxu0 %v8612_v14  ;;  %5732 = vst [vmem:[#allocation6 + $0x2f8] sm:$0xee] %v5731_v35  ;;  %v9007_v37 = vadd.f32 %v11934_v7, %v11928_v48  ;;  %v12434_v48 = vld [vmem:[#allocation8_spill] sm:$0xff]  ;;  %v12439_v0 = vld [vmem:[#allocation13_spill] sm:$0xff] }
 0x3cf   :  { %v12128_v43 = vadd.f32 %v9004_v15, %v7647_v6  ;;  %v8952_v31 = vadd.f32 %v11930_v22, %v11919_v62  ;;  %v9058_v51 = vpop.f32.mrb[99].mxu0  ;;  %v9113_v60 = vpop.f32.mrb[97].mxu1  ;;  %8013 = vmatmul.mubr.bf16.gmra.mrb[136].mxu0 %v8611_v18  ;;  %v5844_v32 = vld [vmem:[#allocation6 + $0x338] sm:$0x11]  ;;  %v9010_v13 = vadd.f32 %v11953_v56, %v11946_v30  ;;  %v9013_v28 = vadd.f32 %v11973_v4, %v11963_v57  ;;  %v12435_v7 = vld [vmem:[#allocation12_spill] sm:$0xff] }
 0x3d0   :  { %v8958_v12 = vadd.f32 %v12433_v46, %v11955_v52  ;;  %v8961_v16 = vadd.f32 %v12435_v7, %v12434_v48  ;;  %v9115_v62 = vpop.f32.mrb[98].mxu1  ;;  %8020 = vmatprep.mubr.bf16.mxu0 %v8628_v39  ;;  %v8630_v22 = vcombine.high %v5844_v32, %v5844_v32  ;;  %v8627_v19 = vcombine.low %v12062_v44, %v12062_v44  ;;  %v12437_v30 = vld [vmem:[#allocation40_spill] sm:$0xff]  ;;  %v12438_v52 = vld [vmem:[#allocation11_spill] sm:$0xff]  ;;  %v12440_v39 = vld [vmem:[#allocation14_spill] sm:$0xff] }
 0x3d1   :  { %v7738_v38 = vadd.f32 %v9007_v37, %v7650_v53  ;;  %v7655_v40 = vadd.f32 %v8952_v31, %v12436_v61  ;;  %v9116_v14 = vpop.f32.mrb[99].mxu1  ;;  %v7658_v56 = vadd.f32 %v8955_v50, %v12437_v30  ;;  %v9016_v18 = vadd.f32 %v12439_v0, %v12438_v52  ;;  %v12441_v15 = vld [vmem:[#allocation20_spill] sm:$0xff]  ;;  %v12443_v44 = vld [vmem:[#allocation15_spill] sm:$0xff] }
 0x3d2   :  { %v7663_v57 = vadd.f32 %v8958_v12, %v12023_v49  ;;  %v7666_v4 = vadd.f32 %v8961_v16, %v12035_v2  ;;  %v9019_v35 = vadd.f32 %v12441_v15, %v12440_v39  ;;  %v12442_v46 = vld [vmem:[#allocation16_spill] sm:$0xff]  ;;  %v12444_v37 = vld [vmem:[#allocation19_spill] sm:$0xff]  ;;  %v9044_v49 = vadd.f32 %v12039_v10, %v12029_v58 }
 0x3d3   :  { %v12152_v6 = vadd.f32 %v9010_v13, %v7655_v40  ;;  %v8964_v53 = vadd.f32 %v12443_v44, %v12442_v46  ;;  %v9022_v31 = vadd.f32 %v12019_v55, %v12444_v37  ;;  %v12160_v48 = vadd.f32 %v9013_v28, %v7658_v56  ;;  %v5828_v28 = vld [vmem:[#allocation6 + $0x2b8] sm:$0xff] }
 0x3d4   :  { %v12162_v50 = vadd.f32 %v9016_v18, %v7663_v57  ;;  %v9047_v2 = vadd.f32 %v12058_v8, %v12048_v26  ;;  %v12168_v13 = vadd.f32 %v9019_v35, %v7666_v4  ;;  %v9102_v7 = vadd.f32 %v12060_v47, %v12050_v27 }
 0x3d5   :  { %v7671_v12 = vadd.f32 %v8964_v53, %v12064_v54  ;;  %v9105_v55 = vadd.f32 %v12080_v20, %v12071_v63  ;;  %v5836_v16 = vld [vmem:[#allocation6 + $0x2f8] sm:$0xff]  ;;  %v7799_v61 = vadd.f32 %v9044_v49, %v12077_v59  ;;  %v9050_v58 = vadd.f32 %v12082_v45, %v12073_v29 }
 0x3d6   :  { %v7802_v40 = vadd.f32 %v9047_v2, %v12084_v5  ;;  %v9053_v10 = vadd.f32 %v12103_v34, %v12091_v11  ;;  %v8614_v26 = vcombine.high %v5828_v28, %v5836_v16  ;;  %v8613_v8 = vcombine.low %v5828_v28, %v5836_v16 }
 0x3d7   :  { %v12181_v54 = vadd.f32 %v9022_v31, %v7671_v12  ;;  %v9108_v27 = vadd.f32 %v12105_v1, %v12093_v42  ;;  %8021 = vmatmul.mubr.bf16.gmra.mrb[140].mxu0 %v8627_v19  ;;  %v12185_v47 = vadd.f32 %v9102_v7, %v7799_v61  ;;  %v7807_v59 = vadd.f32 %v9050_v58, %v12095_v36 }
 0x3d8   :  { %v12187_v63 = vadd.f32 %v9105_v55, %v7802_v40  ;;  %v7810_v20 = vadd.f32 %v9053_v10, %v12107_v23  ;;  %8100 = vmatprep.mubr.bf16.mxu1 %v8614_v26  ;;  %v9111_v29 = vadd.f32 %v9110_v25, %v12113_v21  ;;  %v9056_v45 = vadd.f32 %v9055_v33, %v12115_v9  ;;  %v9060_v25 = vpop.f32.mrb[100].mxu0 }
 0x3d9   :  { %v9059_v5 = vadd.f32 %v9058_v51, %v9057_v17  ;;  %v9114_v11 = vadd.f32 %v9113_v60, %v9112_v41  ;;  %8101 = vmatmul.mubr.bf16.gmra.mrb[136].mxu1 %v8613_v8  ;;  %v12193_v34 = vadd.f32 %v9108_v27, %v7807_v59  ;;  %v9117_v42 = vadd.f32 %v9116_v14, %v9115_v62  ;;  %v9061_v33 = vpop.f32.mrb[101].mxu0 }
 0x3da   :  { %8108 = vmatprep.mubr.bf16.mxu1 %v8630_v22  ;;  %v12195_v1 = vadd.f32 %v9111_v29, %v7810_v20  ;;  %v7815_v19 = vadd.f32 %v9056_v45, %v12123_v3  ;;  %v9473_v30 = vmov 0.0|0.0   ;;  %v8629_v9 = vcombine.low %v5844_v32, %v5844_v32  ;;  %v9063_v41 = vpop.f32.mrb[102].mxu0  ;;  %v9118_v22 = vpop.f32.mrb[100].mxu1 }
 0x3db   :  { %v7818_v36 = vadd.f32 %v9059_v5, %v12125_v24  ;;  %9301 = vmatprep.subr.bf16.mxu0 %v9473_v30  ;;  %v9062_v17 = vadd.f32 %v9061_v33, %v9060_v25  ;;  %v9064_v51 = vpop.f32.mrb[103].mxu0  ;;  %v9119_v24 = vpop.f32.mrb[101].mxu1 }
 0x3dc   :  { %v12200_v23 = vadd.f32 %v9114_v11, %v7815_v19  ;;  %v9065_v62 = vadd.f32 %v9064_v51, %v9063_v41  ;;  %v9120_v14 = vadd.f32 %v9119_v24, %v9118_v22  ;;  %v9121_v56 = vpop.f32.mrb[102].mxu1 }
 0x3dd   :  { %v12202_v21 = vadd.f32 %v9117_v42, %v7818_v36  ;;  %v7823_v60 = vadd.f32 %v9062_v17, %v12128_v43  ;;  %v9122_v57 = vpop.f32.mrb[103].mxu1  ;;  %v9066_v32 = vpop.f32.mrb[104].mxu0 }
 0x3de   :  { %v7826_v3 = vadd.f32 %v9065_v62, %v7738_v38  ;;  %v9123_v52 = vadd.f32 %v9122_v57, %v9121_v56  ;;  %v9067_v18 = vpop.f32.mrb[105].mxu0 }
 0x3df   :  { %v12205_v4 = vadd.f32 %v9120_v14, %v7823_v60  ;;  %v9068_v39 = vadd.f32 %v9067_v18, %v9066_v32  ;;  %v9069_v15 = vpop.f32.mrb[106].mxu0 }
 0x3e0   :  { %v12207_v0 = vadd.f32 %v9123_v52, %v7826_v3  ;;  %v9070_v35 = vpop.f32.mrb[107].mxu0 }
 0x3e1   :  { %8109 = vmatmul.mubr.bf16.gmra.mrb[140].mxu1 %v8629_v9  ;;  %v7831_v46 = vadd.f32 %v9068_v39, %v12152_v6  ;;  %v9071_v43 = vadd.f32 %v9070_v35, %v9069_v15 }
 0x3e3   :  { %v7834_v38 = vadd.f32 %v9071_v43, %v12160_v48 }
 0x3e9   :  { %v9124_v44 = vpop.f32.mrb[104].mxu1 }
 0x3ea   :  { %v9125_v53 = vpop.f32.mrb[105].mxu1 }
 0x3eb   :  { %v9126_v37 = vadd.f32 %v9125_v53, %v9124_v44  ;;  %v9127_v31 = vpop.f32.mrb[106].mxu1  ;;  %v9475_v44 = vmov 0.0  }
 0x3ec   :  { %v9128_v49 = vpop.f32.mrb[107].mxu1  ;;  %9298 = vmatprep.mubr.msk.f32.mxu0 %vm9474_vm5, %v9475_v44 }
 0x3ed   :  { %v12211_v2 = vadd.f32 %v9126_v37, %v7831_v46  ;;  %v9129_v12 = vadd.f32 %v9128_v49, %v9127_v31 }
 0x3ef   :  { %v12213_v7 = vadd.f32 %v9129_v12, %v7834_v38  ;;  %v8155_v38 = vld [vmem:[%s12299_s5] sm:$0xff] }
 0x3f6   :  { %v9072_v55 = vpop.f32.mrb[108].mxu0 }
 0x3f7   :  { %v9073_v28 = vpop.f32.mrb[109].mxu0 }
 0x3f8   :  { %v9074_v16 = vadd.f32 %v9073_v28, %v9072_v55  ;;  %v9075_v61 = vpop.f32.mrb[110].mxu0 }
 0x3f9   :  { %v9076_v40 = vpop.f32.mrb[111].mxu0 }
 0x3fa   :  { %v7839_v6 = vadd.f32 %v9074_v16, %v12162_v50  ;;  %v9077_v58 = vadd.f32 %v9076_v40, %v9075_v61 }
 0x3fc   :  { %v7842_v48 = vadd.f32 %v9077_v58, %v12168_v13 }
 0x3fe   :  { %v9078_v10 = vpop.f32.mrb[112].mxu0 }
 0x3ff   :  { %v9079_v26 = vpop.f32.mrb[113].mxu0 }
 0x400   :  { %v9080_v27 = vadd.f32 %v9079_v26, %v9078_v10  ;;  %v9081_v59 = vpop.f32.mrb[114].mxu0 }
 0x401   :  { %v9130_v8 = vpop.f32.mrb[108].mxu1  ;;  %v9082_v29 = vpop.f32.mrb[115].mxu0 }
 0x402   :  { %v9131_v20 = vpop.f32.mrb[109].mxu1  ;;  %v7847_v11 = vadd.f32 %v9080_v27, %v12181_v54 }
 0x403   :  { %v9132_v45 = vadd.f32 %v9131_v20, %v9130_v8  ;;  %v9133_v5 = vpop.f32.mrb[110].mxu1 }
 0x404   :  { %v9134_v42 = vpop.f32.mrb[111].mxu1 }
 0x405   :  { %v12218_v19 = vadd.f32 %v9132_v45, %v7839_v6  ;;  %v9135_v36 = vadd.f32 %v9134_v42, %v9133_v5 }
 0x407   :  { %v12220_v9 = vadd.f32 %v9135_v36, %v7842_v48 }
 0x409   :  { %v9136_v50 = vpop.f32.mrb[112].mxu1 }
 0x40a   :  { %v9137_v25 = vpop.f32.mrb[113].mxu1 }
 0x40b   :  { %v9138_v13 = vadd.f32 %v9137_v25, %v9136_v50  ;;  %v9139_v33 = vpop.f32.mrb[114].mxu1 }
 0x40c   :  { %v9140_v17 = vpop.f32.mrb[115].mxu1 }
 0x40d   :  { %v12222_v41 = vadd.f32 %v9138_v13, %v7847_v11 }
 0x412   :  { %v9158_v51 = vpop.f32.mrb[116].mxu0 }
 0x413   :  { %v9159_v60 = vpop.f32.mrb[117].mxu0 }
 0x414   :  { %v9160_v62 = vadd.f32 %v9159_v60, %v9158_v51  ;;  %v9161_v3 = vpop.f32.mrb[118].mxu0 }
 0x415   :  { %v9162_v22 = vpop.f32.mrb[119].mxu0 }
 0x416   :  { %v7975_v54 = vadd.f32 %v9160_v62, %v12185_v47  ;;  %v9163_v24 = vadd.f32 %v9162_v22, %v9161_v3 }
 0x418   :  { %v7978_v14 = vadd.f32 %v9163_v24, %v12187_v63  ;;  %v8156_v63 = vld [vmem:[%s12299_s5 + $0x8] sm:$0xff] }
 0x41f   :  { %v9216_v56 = vpop.f32.mrb[116].mxu1 }
 0x420   :  { %v9217_v57 = vpop.f32.mrb[117].mxu1 }
 0x421   :  { %v9218_v52 = vadd.f32 %v9217_v57, %v9216_v56  ;;  %v9219_v32 = vpop.f32.mrb[118].mxu1 }
 0x422   :  { %v9220_v18 = vpop.f32.mrb[119].mxu1 }
 0x423   :  { %v8063_v39 = vadd.f32 %v9218_v52, %v7975_v54  ;;  %v9221_v15 = vadd.f32 %v9220_v18, %v9219_v32 }
 0x425   :  { %vm8116_vm7 = vcmp.gt.f32.partialorder %v8063_v39, 0.0  ;;  %v8129_v35 = vmul.f32 0.2, %v8063_v39  ;;  %v8066_v46 = vadd.f32 %v9221_v15, %v7978_v14 }
 0x427   :  { %v8142_v43 = vsel %vm8116_vm7, %v8063_v39, %v8129_v35  ;;  %vm8117_vm12 = vcmp.gt.f32.partialorder %v8066_v46, 0.0  ;;  %v8130_v47 = vmul.f32 0.2, %v8066_v46  ;;  %vm8271_vm7 = vcmask 1024  }
 0x428   :  { %v8168_v31 = vmul.f32 %v8155_v38, %v8142_v43 }
 0x429   :  { %v8143_v53 = vsel %vm8117_vm12, %v8066_v46, %v8130_v47 }
 0x42a   :  { %v8169_v49 = vmul.f32 %v8156_v63, %v8143_v53 }
 0x42b   :  { %v9164_v37 = vpop.f32.mrb[120].mxu0 }
 0x42c   :  { %v9165_v12 = vpop.f32.mrb[121].mxu0  ;;  %v9302_v61 = vpack.c.bf16 %v8169_v49, %v8168_v31 }
 0x42d   :  { %v9166_v55 = vadd.f32 %v9165_v12, %v9164_v37  ;;  %v9167_v28 = vpop.f32.mrb[122].mxu0 }
 0x42e   :  { %v9168_v16 = vpop.f32.mrb[123].mxu0  ;;  %9303 = vmatpush3.bf16.msra.mxu0 %v9302_v61 }
 0x42f   :  { %v7983_v40 = vadd.f32 %v9166_v55, %v12193_v34  ;;  %v9169_v6 = vadd.f32 %v9168_v16, %v9167_v28  ;;  %9304 = vmatprep.subr.bf16.mxu0 %v9473_v30  ;;  %v8157_v34 = vld [vmem:[%s12299_s5 + $0x10] sm:$0xff] }
 0x431   :  { %v7986_v58 = vadd.f32 %v9169_v6, %v12195_v1  ;;  %v8158_v1 = vld [vmem:[%s12299_s5 + $0x18] sm:$0xff] }
 0x437   :  { %v9222_v48 = vpop.f32.mrb[120].mxu1 }
 0x438   :  { %v9223_v10 = vpop.f32.mrb[121].mxu1 }
 0x439   :  { %v9224_v26 = vadd.f32 %v9223_v10, %v9222_v48  ;;  %v9225_v8 = vpop.f32.mrb[122].mxu1 }
 0x43a   :  { %v9226_v27 = vpop.f32.mrb[123].mxu1 }
 0x43b   :  { %v8071_v59 = vadd.f32 %v9224_v26, %v7983_v40  ;;  %v9227_v20 = vadd.f32 %v9226_v27, %v9225_v8 }
 0x43d   :  { %vm8118_vm11 = vcmp.gt.f32.partialorder %v8071_v59, 0.0  ;;  %v8131_v29 = vmul.f32 0.2, %v8071_v59  ;;  %v8074_v45 = vadd.f32 %v9227_v20, %v7986_v58 }
 0x43f   :  { %v8144_v5 = vsel %vm8118_vm11, %v8071_v59, %v8131_v29  ;;  %vm8119_vm10 = vcmp.gt.f32.partialorder %v8074_v45, 0.0  ;;  %v8132_v11 = vmul.f32 0.2, %v8074_v45  ;;  %v8161_v59 = vld [vmem:[%s12299_s5 + $0x30] sm:$0xff] }
 0x440   :  { %v8170_v50 = vmul.f32 %v8157_v34, %v8144_v5 }
 0x441   :  { %v8145_v42 = vsel %vm8119_vm10, %v8074_v45, %v8132_v11 }
 0x442   :  { %v8171_v25 = vmul.f32 %v8158_v1, %v8145_v42 }
 0x443   :  { %v9170_v36 = vpop.f32.mrb[124].mxu0 }
 0x444   :  { %v9171_v13 = vpop.f32.mrb[125].mxu0  ;;  %v9305_v60 = vpack.c.bf16 %v8171_v25, %v8170_v50 }
 0x445   :  { %v9172_v33 = vadd.f32 %v9171_v13, %v9170_v36  ;;  %v9173_v17 = vpop.f32.mrb[126].mxu0 }
 0x446   :  { %v9174_v51 = vpop.f32.mrb[127].mxu0  ;;  %9306 = vmatpush3.bf16.msra.mxu0 %v9305_v60 }
 0x447   :  { %v7991_v62 = vadd.f32 %v9172_v33, %v12200_v23  ;;  %v9175_v3 = vadd.f32 %v9174_v51, %v9173_v17  ;;  %9307 = vmatprep.subr.bf16.mxu0 %v9473_v30  ;;  %v8159_v23 = vld [vmem:[%s12299_s5 + $0x20] sm:$0xff] }
 0x449   :  { %v7994_v22 = vadd.f32 %v9175_v3, %v12202_v21  ;;  %v8160_v21 = vld [vmem:[%s12299_s5 + $0x28] sm:$0xff] }
 0x44d   :  { %v9228_v54 = vpop.f32.mrb[124].mxu1 }
 0x44e   :  { %v9229_v24 = vpop.f32.mrb[125].mxu1 }
 0x44f   :  { %v9230_v14 = vadd.f32 %v9229_v24, %v9228_v54  ;;  %v9231_v56 = vpop.f32.mrb[126].mxu1 }
 0x450   :  { %v9232_v57 = vpop.f32.mrb[127].mxu1 }
 0x451   :  { %v8079_v52 = vadd.f32 %v9230_v14, %v7991_v62  ;;  %v9233_v32 = vadd.f32 %v9232_v57, %v9231_v56 }
 0x453   :  { %vm8120_vm4 = vcmp.gt.f32.partialorder %v8079_v52, 0.0  ;;  %v8133_v18 = vmul.f32 0.2, %v8079_v52  ;;  %v8082_v39 = vadd.f32 %v9233_v32, %v7994_v22 }
 0x455   :  { %v8146_v15 = vsel %vm8120_vm4, %v8079_v52, %v8133_v18  ;;  %vm8121_vm3 = vcmp.gt.f32.partialorder %v8082_v39, 0.0  ;;  %v8134_v35 = vmul.f32 0.2, %v8082_v39 }
 0x456   :  { %v8172_v43 = vmul.f32 %v8159_v23, %v8146_v15 }
 0x457   :  { %v8147_v46 = vsel %vm8121_vm3, %v8082_v39, %v8134_v35 }
 0x458   :  { %v8173_v38 = vmul.f32 %v8160_v21, %v8147_v46 }
 0x45a   :  { %v9308_v47 = vpack.c.bf16 %v8173_v38, %v8172_v43 }
 0x45c   :  { %9309 = vmatpush3.bf16.msra.mxu0 %v9308_v47 }
 0x45d   :  { %9310 = vmatprep.subr.bf16.mxu0 %v9473_v30 }
 0x465   :  { %v9176_v63 = vpop.f32.mrb[128].mxu0 }
 0x466   :  { %v9177_v53 = vpop.f32.mrb[129].mxu0 }
 0x467   :  { %v9178_v37 = vadd.f32 %v9177_v53, %v9176_v63  ;;  %v9179_v31 = vpop.f32.mrb[130].mxu0 }
 0x468   :  { %v9180_v49 = vpop.f32.mrb[131].mxu0 }
 0x469   :  { %v7999_v12 = vadd.f32 %v9178_v37, %v12205_v4  ;;  %v9181_v55 = vadd.f32 %v9180_v49, %v9179_v31 }
 0x46b   :  { %v8002_v28 = vadd.f32 %v9181_v55, %v12207_v0  ;;  %v8162_v0 = vld [vmem:[%s12299_s5 + $0x38] sm:$0xff] }
 0x47b   :  { %v9234_v16 = vpop.f32.mrb[128].mxu1 }
 0x47c   :  { %v9235_v61 = vpop.f32.mrb[129].mxu1 }
 0x47d   :  { %v9236_v40 = vadd.f32 %v9235_v61, %v9234_v16  ;;  %v9237_v6 = vpop.f32.mrb[130].mxu1 }
 0x47e   :  { %v9238_v58 = vpop.f32.mrb[131].mxu1 }
 0x47f   :  { %v8087_v48 = vadd.f32 %v9236_v40, %v7999_v12  ;;  %v9239_v10 = vadd.f32 %v9238_v58, %v9237_v6 }
 0x481   :  { %vm8122_vm15 = vcmp.gt.f32.partialorder %v8087_v48, 0.0  ;;  %v8135_v26 = vmul.f32 0.2, %v8087_v48  ;;  %v8090_v8 = vadd.f32 %v9239_v10, %v8002_v28  ;;  %v8166_v10 = vld [vmem:[%s12299_s5 + $0x58] sm:$0xff] }
 0x483   :  { %v8148_v27 = vsel %vm8122_vm15, %v8087_v48, %v8135_v26  ;;  %vm8123_vm8 = vcmp.gt.f32.partialorder %v8090_v8, 0.0  ;;  %v8136_v4 = vmul.f32 0.2, %v8090_v8 }
 0x484   :  { %v8174_v45 = vmul.f32 %v8161_v59, %v8148_v27 }
 0x485   :  { %v8149_v20 = vsel %vm8123_vm8, %v8090_v8, %v8136_v4 }
 0x486   :  { %v8175_v5 = vmul.f32 %v8162_v0, %v8149_v20 }
 0x488   :  { %v9182_v29 = vpop.f32.mrb[132].mxu0  ;;  %v9311_v36 = vpack.c.bf16 %v8175_v5, %v8174_v45 }
 0x489   :  { %v9183_v34 = vpop.f32.mrb[133].mxu0 }
 0x48a   :  { %v9184_v11 = vadd.f32 %v9183_v34, %v9182_v29  ;;  %v9185_v1 = vpop.f32.mrb[134].mxu0  ;;  %9312 = vmatpush3.bf16.msra.mxu0 %v9311_v36  ;;  %v8167_v34 = vld [vmem:[%s12299_s5 + $0x60] sm:$0x3]  ;;  %v13_v36 = vstv %s12301_s7 }
 0x48b   :  { %v9186_v42 = vpop.f32.mrb[135].mxu0  ;;  %9313 = vmatprep.subr.bf16.mxu0 %v9473_v30  ;;  %14 = vst [vmem:[#allocation7] sm:$0x1] %v13_v36 }
 0x48c   :  { %v8007_v50 = vadd.f32 %v9184_v11, %v12211_v2  ;;  %v9187_v25 = vadd.f32 %v9186_v42, %v9185_v1  ;;  %v8163_v2 = vld [vmem:[%s12299_s5 + $0x40] sm:$0xff] }
 0x48d   :  { %v8181_v42 = vld [vmem:[%s12300_s6] sm:$0x3] }
 0x48e   :  { %v8010_v13 = vadd.f32 %v9187_v25, %v12213_v7  ;;  %v8164_v7 = vld [vmem:[%s12299_s5 + $0x48] sm:$0xff] }
 0x492   :  { %v9240_v33 = vpop.f32.mrb[132].mxu1 }
 0x493   :  { %v9241_v17 = vpop.f32.mrb[133].mxu1 }
 0x494   :  { %v9242_v51 = vadd.f32 %v9241_v17, %v9240_v33  ;;  %v9243_v60 = vpop.f32.mrb[134].mxu1 }
 0x495   :  { %v9244_v62 = vpop.f32.mrb[135].mxu1 }
 0x496   :  { %v8095_v3 = vadd.f32 %v9242_v51, %v8007_v50  ;;  %v9245_v22 = vadd.f32 %v9244_v62, %v9243_v60 }
 0x498   :  { %vm8124_vm0 = vcmp.gt.f32.partialorder %v8095_v3, 0.0  ;;  %v8137_v54 = vmul.f32 0.2, %v8095_v3  ;;  %v8098_v24 = vadd.f32 %v9245_v22, %v8010_v13 }
 0x49a   :  { %v8150_v14 = vsel %vm8124_vm0, %v8095_v3, %v8137_v54  ;;  %vm8125_vm9 = vcmp.gt.f32.partialorder %v8098_v24, 0.0  ;;  %v8138_v56 = vmul.f32 0.2, %v8098_v24 }
 0x49b   :  { %v8176_v52 = vmul.f32 %v8163_v2, %v8150_v14 }
 0x49c   :  { %v8151_v57 = vsel %vm8125_vm9, %v8098_v24, %v8138_v56 }
 0x49d   :  { %v8177_v32 = vmul.f32 %v8164_v7, %v8151_v57 }
 0x49f   :  { %v9314_v39 = vpack.c.bf16 %v8177_v32, %v8176_v52 }
 0x4a1   :  { %9315 = vmatpush3.bf16.msra.mxu0 %v9314_v39 }
 0x4a2   :  { %v9188_v18 = vpop.f32.mrb[136].mxu0  ;;  %9316 = vmatprep.subr.bf16.mxu0 %v9473_v30 }
 0x4a3   :  { %v9189_v15 = vpop.f32.mrb[137].mxu0 }
 0x4a4   :  { %v9190_v23 = vadd.f32 %v9189_v15, %v9188_v18  ;;  %v9191_v35 = vpop.f32.mrb[138].mxu0 }
 0x4a5   :  { %v9192_v21 = vpop.f32.mrb[139].mxu0 }
 0x4a6   :  { %v8015_v46 = vadd.f32 %v9190_v23, %v12218_v19  ;;  %v9193_v43 = vadd.f32 %v9192_v21, %v9191_v35 }
 0x4a8   :  { %v8018_v38 = vadd.f32 %v9193_v43, %v12220_v9  ;;  %v8165_v9 = vld [vmem:[%s12299_s5 + $0x50] sm:$0xff] }
 0x4aa   :  { %v9194_v47 = vpop.f32.mrb[140].mxu0 }
 0x4ab   :  { %v9195_v63 = vpop.f32.mrb[141].mxu0 }
 0x4ac   :  { %v9246_v53 = vpop.f32.mrb[136].mxu1  ;;  %v9196_v37 = vadd.f32 %v9195_v63, %v9194_v47  ;;  %v9197_v31 = vpop.f32.mrb[142].mxu0 }
 0x4ad   :  { %v9247_v49 = vpop.f32.mrb[137].mxu1  ;;  %v9198_v12 = vpop.f32.mrb[143].mxu0 }
 0x4ae   :  { %v9248_v55 = vadd.f32 %v9247_v49, %v9246_v53  ;;  %v9249_v28 = vpop.f32.mrb[138].mxu1  ;;  %v8023_v16 = vadd.f32 %v9196_v37, %v12222_v41 }
 0x4af   :  { %v9250_v61 = vpop.f32.mrb[139].mxu1 }
 0x4b0   :  { %v8103_v40 = vadd.f32 %v9248_v55, %v8015_v46  ;;  %v9251_v6 = vadd.f32 %v9250_v61, %v9249_v28 }
 0x4b2   :  { %vm8126_vm6 = vcmp.gt.f32.partialorder %v8103_v40, 0.0  ;;  %v8139_v30 = vmul.f32 0.2, %v8103_v40  ;;  %v8106_v19 = vadd.f32 %v9251_v6, %v8018_v38 }
 0x4b4   :  { %v8152_v58 = vsel %vm8126_vm6, %v8103_v40, %v8139_v30  ;;  %vm8127_vm1 = vcmp.gt.f32.partialorder %v8106_v19, 0.0  ;;  %v8140_v48 = vmul.f32 0.2, %v8106_v19  ;;  %v9252_v26 = vpop.f32.mrb[140].mxu1 }
 0x4b5   :  { %v9253_v8 = vpop.f32.mrb[141].mxu1  ;;  %v8178_v4 = vmul.f32 %v8165_v9, %v8152_v58 }
 0x4b6   :  { %v8153_v41 = vsel %vm8127_vm1, %v8106_v19, %v8140_v48  ;;  %v9254_v27 = vadd.f32 %v9253_v8, %v9252_v26  ;;  %v9255_v59 = vpop.f32.mrb[142].mxu1 }
 0x4b7   :  { %v8179_v0 = vmul.f32 %v8166_v10, %v8153_v41  ;;  %v9256_v20 = vpop.f32.mrb[143].mxu1 }
 0x4b8   :  { %v8111_v29 = vadd.f32 %v9254_v27, %v8023_v16 }
 0x4b9   :  { %v9317_v45 = vpack.c.bf16 %v8179_v0, %v8178_v4 }
 0x4ba   :  { %vm8128_vm14 = vcmp.gt.f32.partialorder %v8111_v29, 0.0  ;;  %v8141_v5 = vmul.f32 0.2, %v8111_v29 }
 0x4bb   :  { %9318 = vmatpush3.bf16.msra.mxu0 %v9317_v45 }
 0x4bc   :  { %v8154_v11 = vsel %vm8128_vm14, %v8111_v29, %v8141_v5  ;;  %9296 = vmatprep.subr.mxu0 %v9475_v44  ;;  %v8761_v44 = vld [vmem:[#allocation7] ss:$0 sm:$0xff] }
 0x4bd   :  { %v8180_v1 = vmul.f32 %v8167_v34, %v8154_v11 }
 0x4bf   :  { %9297 = vmatpush3.msk.msra.mxu0 %vm1108_vm2, %v8180_v1 }
 0x4c0   :  { %9299 = vmatmul.mubr.msk.f32.vlgmr.msra.gmra.mrb[144].mxu0 %vm8182_vm13, %v8181_v42 }
 0x593   :  { %v8256_v50 = vpop.f32.mrb[144].mxu0 }
 0x594   :  { %v9300_v25 = vpop.f32.mrb[145].mxu0  ;;  %v8260_v13 = vsel %vm1108_vm2, %v8256_v50, 0.0 }
 0x595   :  { %8261 = vadd.xlane.f32.xlu0 %v8260_v13 }
 0x622   :  { %v8262_v33 = vpop.xlane.xlu0 %8261 }
 0x623   :  { %v8270_v17 = vadd.f32 %v8761_v44, %v8262_v33 }
 0x625   :  { %8272 = vst.msk [vmem:[%s12302_s8] sm:$0x3] %vm8271_vm7, %v8270_v17 }

</bundles_post_ra>
